<compile_context>
chip_gen: v5e
topology: v5e:2x2
jax: 0.10.0
libtpu: 0.0.40
codegen_flags: <defaults>
</compile_context>

<pallas_src>
import functools

import jax
import jax.numpy as jnp
from jax.experimental import pallas as pl
from jax.experimental.pallas import tpu as pltpu

KSIZE = 7
PAD = KSIZE // 2
BN_EPS = 1e-5
POOL1 = 5                 # MaxPool2d((5, 5))
POOL2_H, POOL2_W = 4, 100  # MaxPool2d((4, 100))
XROWS = 32                # padded input rows: H + 6 = 26 -> 32 (aligned)
HID_PAD = 128             # fc1 hidden 100 -> 128 (zero pad, exact)
FC_LANES = 128            # lane width used for the replicated-column FC head


# --------------------------------------------------------------------------
# Single fused per-image kernel.
# --------------------------------------------------------------------------
def _fused_kernel(x_ref, band1_ref, shift1_ref, sel_ref,
                  band2_ref, shift2_ref,
                  w1_ref, b1_ref, w2_ref, b2_ref,
                  o_ref,
                  rhs1_ref, rhs2_ref,
                  *, H, W):
    H2 = H // POOL1            # 4
    W2 = W // POOL1            # 100
    Wc = W - (POOL1 - 1)       # 496 window-max width

    # ---- Stage 1: conv1 (1->32, 7x7 same) + folded bn1 + relu ------------
    xp = x_ref[0].astype(jnp.bfloat16)            # (32, W+6), cast ONCE
    for dx in range(KSIZE):                       # stack lane-shifted slices
        rhs1_ref[32 * dx: 32 * (dx + 1), :] = xp[:, dx:dx + W]
    y1 = jnp.dot(band1_ref[...], rhs1_ref[...],   # (H*32, W), one K=224 matmul
                 preferred_element_type=jnp.float32)
    y1 = jnp.maximum(y1 + shift1_ref[...], 0.0)   # exact f32 bias/BN shift

    # ---- MaxPool2d((5,5)) with batched epilogue --------------------------
    groups = []
    for ho in range(H2):                          # max over 5 row groups
        base = POOL1 * 32 * ho
        blk = y1[base: base + 32, :]
        for k in range(1, POOL1):
            blk = jnp.maximum(blk, y1[base + 32 * k: base + 32 * k + 32, :])
        groups.append(blk)
    stacked = jnp.concatenate(groups, axis=0)     # (H2*32, W) = (128, 500)
    m = stacked[:, 0:Wc]                          # windowed max along W
    for s in range(1, POOL1):
        m = jnp.maximum(m, stacked[:, s:s + Wc])
    # ONE selection matmul: picks every 5th window start and emits the
    # 3-lane zero padding conv2 needs ('same' padding in W).
    slab = jnp.dot(m.astype(jnp.bfloat16), sel_ref[...],
                   preferred_element_type=jnp.float32)        # (128, W2+6)
    slab = slab.astype(jnp.bfloat16)              # cast ONCE for conv2 RHS

    # ---- Stage 2: conv2 (32->64, 7x7 same) + folded bn2 + relu -----------
    for dx in range(KSIZE):
        rhs2_ref[128 * dx: 128 * (dx + 1), :] = slab[:, dx:dx + W2]
    y2 = jnp.dot(band2_ref[...], rhs2_ref[...],   # (H2*64, W2), one K=896 matmul
                 preferred_element_type=jnp.float32)
    y2 = jnp.maximum(y2 + shift2_ref[...], 0.0)

    # ---- MaxPool2d((4,100)) == global max over the (4, 100) map ----------
    m2 = y2[0:64, :]
    for h in range(1, H2):
        m2 = jnp.maximum(m2, y2[64 * h: 64 * h + 64, :])
    feat = jnp.max(m2, axis=1, keepdims=True)     # (64, 1) channel-ordered

    # ---- FC head: fc1 + relu + fc2 + softmax (column-oriented) -----------
    # Broadcast the feature column across lanes so both matmuls are lane
    # dense (all columns identical; column 0 is taken at the end).
    featb = jnp.broadcast_to(feat, (feat.shape[0], FC_LANES))   # (64, 128)
    h1 = jnp.dot(w1_ref[...], featb, preferred_element_type=jnp.float32)
    h1 = jnp.maximum(h1 + b1_ref[...], 0.0)                     # (128, 128)
    logits = jnp.dot(w2_ref[...], h1, preferred_element_type=jnp.float32)
    logits = logits + b2_ref[...]                               # (C, 128)
    mx = jnp.max(logits, axis=0, keepdims=True)
    e = jnp.exp(logits - mx)
    denom = jnp.sum(e, axis=0, keepdims=True)
    probs = e * pl.reciprocal(denom, approx=True)               # (C, 128)
    o_ref[0] = probs[:, 0:1]                                    # (C, 1)


def dcase_baseline_forward(x, prep):
    """x: (B, 1, H, W) float32 NCHW.  Returns (B, class_count) softmax."""
    B = x.shape[0]
    H = prep["band1"].shape[0] // 32
    W = prep["sel"].shape[0] + (POOL1 - 1)
    C = prep["w2col"].shape[0]
    W2 = W // POOL1
    assert x.shape[2] == H and x.shape[3] == W

    # Only the tiny raw input is padded in XLA; no im2col ever hits HBM.
    xpad = jnp.pad(x[:, 0], ((0, 0), (PAD, XROWS - H - PAD), (PAD, PAD)))

    kernel = functools.partial(_fused_kernel, H=H, W=W)
    out = pl.pallas_call(
        kernel,
        out_shape=jax.ShapeDtypeStruct((B, C, 1), jnp.float32),
        grid_spec=pltpu.PrefetchScalarGridSpec(
            num_scalar_prefetch=0,
            grid=(B,),
            in_specs=[
                pl.BlockSpec((1, XROWS, W + 2 * PAD), lambda b: (b, 0, 0)),
                # Constant-index operands are fetched once (index unchanged
                # across grid steps -> Pallas skips the re-copy).
                pl.BlockSpec(prep["band1"].shape, lambda b: (0, 0)),
                pl.BlockSpec(prep["shift1"].shape, lambda b: (0, 0)),
                pl.BlockSpec(prep["sel"].shape, lambda b: (0, 0)),
                pl.BlockSpec(prep["band2"].shape, lambda b: (0, 0)),
                pl.BlockSpec(prep["shift2"].shape, lambda b: (0, 0)),
                pl.BlockSpec(prep["w1col"].shape, lambda b: (0, 0)),
                pl.BlockSpec(prep["b1col"].shape, lambda b: (0, 0)),
                pl.BlockSpec(prep["w2col"].shape, lambda b: (0, 0)),
                pl.BlockSpec(prep["b2col"].shape, lambda b: (0, 0)),
            ],
            out_specs=pl.BlockSpec((1, C, 1), lambda b: (b, 0, 0)),
            scratch_shapes=[
                pltpu.VMEM((KSIZE * 32, W), jnp.bfloat16),    # stage-1 stacked RHS
                pltpu.VMEM((KSIZE * 128, W2), jnp.bfloat16),  # stage-2 stacked RHS
            ],
        ),
        compiler_params=pltpu.CompilerParams(
            dimension_semantics=("parallel",),
            vmem_limit_bytes=32 * 1024 * 1024),
    )(xpad, prep["band1"], prep["shift1"], prep["sel"],
      prep["band2"], prep["shift2"],
      prep["w1col"], prep["b1col"], prep["w2col"], prep["b2col"])
    return out.reshape(B, C)


# --------------------------------------------------------------------------
# Parameters (deterministic synthetic init mirroring the PyTorch __init__)
# --------------------------------------------------------------------------
def init_params(key, feature_len, seq_len, class_count):
    k1, k2, k3, k4 = jax.random.split(key, 4)

    fi1, fo1 = 1 * KSIZE * KSIZE, 32 * KSIZE * KSIZE
    b1 = (6.0 / (fi1 + fo1)) ** 0.5
    w_conv1 = jax.random.uniform(k1, (32, 1, KSIZE, KSIZE), jnp.float32, -b1, b1)

    fi2, fo2 = 32 * KSIZE * KSIZE, 64 * KSIZE * KSIZE
    b2 = (6.0 / (fi2 + fo2)) ** 0.5
    w_conv2 = jax.random.uniform(k2, (64, 32, KSIZE, KSIZE), jnp.float32, -b2, b2)

    h1, w1 = feature_len // POOL1, seq_len // POOL1
    h2, w2 = h1 // POOL2_H, w1 // POOL2_W
    flat = 64 * h2 * w2

    return {
        "w_conv1": w_conv1,
        "b_conv1": jnp.zeros((32,), jnp.float32),
        "bn1_gamma": jnp.ones((32,), jnp.float32),
        "bn1_beta": jnp.zeros((32,), jnp.float32),
        "bn1_mean": jnp.zeros((32,), jnp.float32),
        "bn1_var": jnp.ones((32,), jnp.float32),
        "w_conv2": w_conv2,
        "b_conv2": jnp.zeros((64,), jnp.float32),
        "bn2_gamma": jnp.ones((64,), jnp.float32),
        "bn2_beta": jnp.zeros((64,), jnp.float32),
        "bn2_mean": jnp.zeros((64,), jnp.float32),
        "bn2_var": jnp.ones((64,), jnp.float32),
        "w_fc1": jax.random.uniform(k3, (flat, 100), jnp.float32, -0.1, 0.1),
        "b_fc1": jnp.zeros((100,), jnp.float32),
        "w_fc2": jax.random.uniform(k4, (100, class_count), jnp.float32, -0.1, 0.1),
        "b_fc2": jnp.zeros((class_count,), jnp.float32),
    }


def prepare_params(params, feature_len, seq_len):
    """One-time host-side folding: BN into conv weights, K-merged banded conv
    matrices, pool selection matrix, column-oriented lane-padded FC head."""
    H, W = feature_len, seq_len
    assert H % POOL1 == 0 and W % POOL1 == 0
    H2, W2 = H // POOL1, W // POOL1
    # TODO(synk): the fused kernel assumes pool2 collapses to a global max
    # (feature_len=20, seq_len=500); other configs need a tiled stage-2 pool.
    assert H2 == POOL2_H and W2 == POOL2_W, "fused kernel needs feature_len=20, seq_len=500"
    assert H + 2 * PAD <= XROWS

    # ---- conv1: fold BN1 scale, K-merged banded matrix (H*32, 7*32) ------
    scale1 = params["bn1_gamma"] / jnp.sqrt(params["bn1_var"] + BN_EPS)
    effw1 = params["w_conv1"][:, 0] * scale1[:, None, None]          # (32,7,7)
    shift1 = params["bn1_beta"] + (params["b_conv1"] - params["bn1_mean"]) * scale1
    h_idx = jnp.arange(H)
    i_idx = jnp.arange(H + 2 * PAD)
    dyy = i_idx[None, :] - h_idx[:, None]                            # (H, H+6)
    valid = (dyy >= 0) & (dyy < KSIZE)
    t = effw1[:, jnp.clip(dyy, 0, KSIZE - 1), :] * valid[None, :, :, None]
    band1_dx = jnp.transpose(t, (3, 1, 0, 2)).reshape(KSIZE, H * 32, H + 2 * PAD)
    band1_dx = jnp.pad(band1_dx, ((0, 0), (0, 0), (0, 32 - (H + 2 * PAD))))
    band1 = jnp.transpose(band1_dx, (1, 0, 2)).reshape(H * 32, KSIZE * 32)
    band1 = band1.astype(jnp.bfloat16)
    shift1_rows = jnp.tile(shift1, (H,)).reshape(H * 32, 1).astype(jnp.float32)

    # ---- conv2: fold BN2 scale, K-merged banded matrix (H2*64, 7*H2*32) --
    scale2 = params["bn2_gamma"] / jnp.sqrt(params["bn2_var"] + BN_EPS)
    effw2 = params["w_conv2"] * scale2[:, None, None, None]          # (64,32,7,7)
    shift2 = params["bn2_beta"] + (params["b_conv2"] - params["bn2_mean"]) * scale2
    dy2 = jnp.arange(H2)[None, :] - jnp.arange(H2)[:, None] + PAD    # (4,4) in 0..6
    t2 = effw2[:, :, dy2, :]                                         # (64,32,4,4,7)
    band2_dx = jnp.transpose(t2, (4, 2, 0, 3, 1)).reshape(KSIZE, H2 * 64, H2 * 32)
    band2 = jnp.transpose(band2_dx, (1, 0, 2)).reshape(H2 * 64, KSIZE * H2 * 32)
    band2 = band2.astype(jnp.bfloat16)
    shift2_rows = jnp.tile(shift2, (H2,)).reshape(H2 * 64, 1).astype(jnp.float32)

    # ---- W-pool selection matrix (every 5th window start + conv2 W pad) --
    sel = jnp.zeros((W - (POOL1 - 1), W2 + 2 * PAD), jnp.float32)
    sel = sel.at[POOL1 * jnp.arange(W2), PAD + jnp.arange(W2)].set(1.0)
    sel = sel.astype(jnp.bfloat16)

    # ---- FC head, column-oriented, hidden padded 100 -> 128 (exact) ------
    flat, hid = params["w_fc1"].shape          # (64, 100)
    n_cls = params["w_fc2"].shape[1]
    w1col = jnp.zeros((HID_PAD, flat), jnp.float32).at[:hid, :].set(params["w_fc1"].T)
    b1col = jnp.zeros((HID_PAD, 1), jnp.float32).at[:hid, 0].set(params["b_fc1"])
    w2col = jnp.zeros((n_cls, HID_PAD), jnp.float32).at[:, :hid].set(params["w_fc2"].T)
    b2col = params["b_fc2"].reshape(n_cls, 1).astype(jnp.float32)

    return {
        "band1": band1, "shift1": shift1_rows, "sel": sel,
        "band2": band2, "shift2": shift2_rows,
        "w1col": w1col, "b1col": b1col, "w2col": w2col, "b2col": b2col,
    }


# --------------------------------------------------------------------------
# Pure-JAX reference (exact f32) for a loose numerical sanity check.
# --------------------------------------------------------------------------
def _pool_max(y, ph, pw):
    B, C, H, W = y.shape
    return y.reshape(B, C, H // ph, ph, W // pw, pw).max(axis=(3, 5))


def reference_forward(x, params):
    p = params
    hi = jax.lax.Precision.HIGHEST

    def bn(y, g, b, m, v):
        s = g / jnp.sqrt(v + BN_EPS)
        return (y - m[None, :, None, None]) * s[None, :, None, None] + b[None, :, None, None]

    y = jax.lax.conv_general_dilated(x, p["w_conv1"], (1, 1), "SAME",
                                     dimension_numbers=("NCHW", "OIHW", "NCHW"),
                                     precision=hi)
    y = y + p["b_conv1"][None, :, None, None]
    y = jnp.maximum(bn(y, p["bn1_gamma"], p["bn1_beta"], p["bn1_mean"], p["bn1_var"]), 0.0)
    y = _pool_max(y, POOL1, POOL1)
    y = jax.lax.conv_general_dilated(y, p["w_conv2"], (1, 1), "SAME",
                                     dimension_numbers=("NCHW", "OIHW", "NCHW"),
                                     precision=hi)
    y = y + p["b_conv2"][None, :, None, None]
    y = jnp.maximum(bn(y, p["bn2_gamma"], p["bn2_beta"], p["bn2_mean"], p["bn2_var"]), 0.0)
    y = _pool_max(y, POOL2_H, POOL2_W)
    f = y.reshape(y.shape[0], -1)
    h = jnp.maximum(jnp.dot(f, p["w_fc1"], precision=hi) + p["b_fc1"], 0.0)
    logits = jnp.dot(h, p["w_fc2"], precision=hi) + p["b_fc2"]
    return jax.nn.softmax(logits, axis=-1)


# --------------------------------------------------------------------------
if __name__ == "__main__":
    # Smallest shapes consistent with the module: pool2 kernel (4, 100)
    # requires feature_len=20, seq_len=500 for a 1x1 pool2 output.
    BATCH, FEAT, SEQ, CLASSES = 2, 20, 500, 10

    key = jax.random.PRNGKey(0)
    pkey, xkey = jax.random.split(key)
    params = init_params(pkey, FEAT, SEQ, CLASSES)
    prep = prepare_params(params, FEAT, SEQ)
    x = jax.random.normal(xkey, (BATCH, 1, FEAT, SEQ), dtype=jnp.float32)

    fwd = jax.jit(dcase_baseline_forward)
    out = jax.block_until_ready(fwd(x, prep))
    assert out.shape == (BATCH, CLASSES), out.shape
    assert bool(jnp.all(jnp.isfinite(out)))

    ref = jax.block_until_ready(jax.jit(reference_forward)(x, params))
    sum_err = float(jnp.max(jnp.abs(jnp.sum(out, axis=1) - 1.0)))
    max_abs = float(jnp.max(jnp.abs(out - ref)))
    assert sum_err < 2e-2, f"softmax rows not normalized: {sum_err}"
    assert max_abs < 5e-2, f"mismatch vs reference: {max_abs}"
    print("KERNEL_OK")
</pallas_src>

<mosaic_0001>
module attributes {stable_mosaic.version = 11 : i64} {
  func.func @_fused_kernel(%arg0: i32, %arg1: memref<1x32x506xf32, #tpu.memory_space<vmem>>, %arg2: memref<640x224xbf16, #tpu.memory_space<vmem>>, %arg3: memref<640x1xf32, #tpu.memory_space<vmem>>, %arg4: memref<496x106xbf16, #tpu.memory_space<vmem>>, %arg5: memref<256x896xbf16, #tpu.memory_space<vmem>>, %arg6: memref<256x1xf32, #tpu.memory_space<vmem>>, %arg7: memref<128x64xf32, #tpu.memory_space<vmem>>, %arg8: memref<128x1xf32, #tpu.memory_space<vmem>>, %arg9: memref<10x128xf32, #tpu.memory_space<vmem>>, %arg10: memref<10x1xf32, #tpu.memory_space<vmem>>, %arg11: memref<1x10x1xf32, #tpu.memory_space<vmem>>, %arg12: memref<224x500xbf16, #tpu.memory_space<vmem>>, %arg13: memref<896x100xbf16, #tpu.memory_space<vmem>>) attributes {dimension_semantics = [#tpu.dimension_semantics<parallel>], iteration_bounds = array<i64: 2>, scalar_prefetch = 0 : i64, scratch_operands = 2 : i64, tpu.core_type = #tpu.core_type<tc>, window_params = [{transform_indices = @transform_0, window_bounds = array<i64: 1, 32, 506>}, {pipeline_mode = #tpu.pipeline_mode<synchronous>, transform_indices = @transform_1, window_bounds = array<i64: 640, 224>}, {pipeline_mode = #tpu.pipeline_mode<synchronous>, transform_indices = @transform_2, window_bounds = array<i64: 640, 1>}, {pipeline_mode = #tpu.pipeline_mode<synchronous>, transform_indices = @transform_3, window_bounds = array<i64: 496, 106>}, {pipeline_mode = #tpu.pipeline_mode<synchronous>, transform_indices = @transform_4, window_bounds = array<i64: 256, 896>}, {pipeline_mode = #tpu.pipeline_mode<synchronous>, transform_indices = @transform_5, window_bounds = array<i64: 256, 1>}, {pipeline_mode = #tpu.pipeline_mode<synchronous>, transform_indices = @transform_6, window_bounds = array<i64: 128, 64>}, {pipeline_mode = #tpu.pipeline_mode<synchronous>, transform_indices = @transform_7, window_bounds = array<i64: 128, 1>}, {pipeline_mode = #tpu.pipeline_mode<synchronous>, transform_indices = @transform_8, window_bounds = array<i64: 10, 128>}, {pipeline_mode = #tpu.pipeline_mode<synchronous>, transform_indices = @transform_9, window_bounds = array<i64: 10, 1>}, {transform_indices = @transform_10, window_bounds = array<i64: 1, 10, 1>}]} {
    %c0 = arith.constant 0 : index
    %c0_0 = arith.constant 0 : index
    %c0_1 = arith.constant 0 : index
    %0 = vector.load %arg1[%c0, %c0_0, %c0_1] : memref<1x32x506xf32, #tpu.memory_space<vmem>>, vector<1x32x506xf32>
    %1 = vector.shape_cast %0 : vector<1x32x506xf32> to vector<32x506xf32>
    %2 = arith.truncf %1 : vector<32x506xf32> to vector<32x506xbf16>
    %3 = vector.extract_strided_slice %2 {offsets = [0, 0], sizes = [32, 500], strides = [1, 1]} : vector<32x506xbf16> to vector<32x500xbf16>
    %c0_2 = arith.constant 0 : index
    %c0_3 = arith.constant 0 : index
    %4 = vector.load %arg12[%c0_2, %c0_3] : memref<224x500xbf16, #tpu.memory_space<vmem>>, vector<32x500xbf16>
    tpu.vector_store %arg12[%c0_2, %c0_3], %3 {strides = array<i32>} : memref<224x500xbf16, #tpu.memory_space<vmem>>, vector<32x500xbf16>,
    %5 = vector.extract_strided_slice %2 {offsets = [0, 1], sizes = [32, 500], strides = [1, 1]} : vector<32x506xbf16> to vector<32x500xbf16>
    %c32 = arith.constant 32 : index
    %c0_4 = arith.constant 0 : index
    %6 = vector.load %arg12[%c32, %c0_4] : memref<224x500xbf16, #tpu.memory_space<vmem>>, vector<32x500xbf16>
    tpu.vector_store %arg12[%c32, %c0_4], %5 {strides = array<i32>} : memref<224x500xbf16, #tpu.memory_space<vmem>>, vector<32x500xbf16>,
    %7 = vector.extract_strided_slice %2 {offsets = [0, 2], sizes = [32, 500], strides = [1, 1]} : vector<32x506xbf16> to vector<32x500xbf16>
    %c64 = arith.constant 64 : index
    %c0_5 = arith.constant 0 : index
    %8 = vector.load %arg12[%c64, %c0_5] : memref<224x500xbf16, #tpu.memory_space<vmem>>, vector<32x500xbf16>
    tpu.vector_store %arg12[%c64, %c0_5], %7 {strides = array<i32>} : memref<224x500xbf16, #tpu.memory_space<vmem>>, vector<32x500xbf16>,
    %9 = vector.extract_strided_slice %2 {offsets = [0, 3], sizes = [32, 500], strides = [1, 1]} : vector<32x506xbf16> to vector<32x500xbf16>
    %c96 = arith.constant 96 : index
    %c0_6 = arith.constant 0 : index
    %10 = vector.load %arg12[%c96, %c0_6] : memref<224x500xbf16, #tpu.memory_space<vmem>>, vector<32x500xbf16>
    tpu.vector_store %arg12[%c96, %c0_6], %9 {strides = array<i32>} : memref<224x500xbf16, #tpu.memory_space<vmem>>, vector<32x500xbf16>,
    %11 = vector.extract_strided_slice %2 {offsets = [0, 4], sizes = [32, 500], strides = [1, 1]} : vector<32x506xbf16> to vector<32x500xbf16>
    %c128 = arith.constant 128 : index
    %c0_7 = arith.constant 0 : index
    %12 = vector.load %arg12[%c128, %c0_7] : memref<224x500xbf16, #tpu.memory_space<vmem>>, vector<32x500xbf16>
    tpu.vector_store %arg12[%c128, %c0_7], %11 {strides = array<i32>} : memref<224x500xbf16, #tpu.memory_space<vmem>>, vector<32x500xbf16>,
    %13 = vector.extract_strided_slice %2 {offsets = [0, 5], sizes = [32, 500], strides = [1, 1]} : vector<32x506xbf16> to vector<32x500xbf16>
    %c160 = arith.constant 160 : index
    %c0_8 = arith.constant 0 : index
    %14 = vector.load %arg12[%c160, %c0_8] : memref<224x500xbf16, #tpu.memory_space<vmem>>, vector<32x500xbf16>
    tpu.vector_store %arg12[%c160, %c0_8], %13 {strides = array<i32>} : memref<224x500xbf16, #tpu.memory_space<vmem>>, vector<32x500xbf16>,
    %15 = vector.extract_strided_slice %2 {offsets = [0, 6], sizes = [32, 500], strides = [1, 1]} : vector<32x506xbf16> to vector<32x500xbf16>
    %c192 = arith.constant 192 : index
    %c0_9 = arith.constant 0 : index
    %16 = vector.load %arg12[%c192, %c0_9] : memref<224x500xbf16, #tpu.memory_space<vmem>>, vector<32x500xbf16>
    tpu.vector_store %arg12[%c192, %c0_9], %15 {strides = array<i32>} : memref<224x500xbf16, #tpu.memory_space<vmem>>, vector<32x500xbf16>,
    %c0_10 = arith.constant 0 : index
    %c0_11 = arith.constant 0 : index
    %17 = vector.load %arg2[%c0_10, %c0_11] : memref<640x224xbf16, #tpu.memory_space<vmem>>, vector<640x224xbf16>
    %c0_12 = arith.constant 0 : index
    %c0_13 = arith.constant 0 : index
    %18 = vector.load %arg12[%c0_12, %c0_13] : memref<224x500xbf16, #tpu.memory_space<vmem>>, vector<224x500xbf16>
    %cst = arith.constant dense<0.000000e+00> : vector<640x500xf32>
    %19 = tpu.matmul %17, %18, %cst {dimension_numbers = #tpu.dot_dimension_numbers<[1], [0], [0], [1], [0, 0, 1, 1], [], []>} : vector<640x224xbf16>, vector<224x500xbf16>, vector<640x500xf32> -> vector<640x500xf32>
    %c0_14 = arith.constant 0 : index
    %c0_15 = arith.constant 0 : index
    %20 = vector.load %arg3[%c0_14, %c0_15] : memref<640x1xf32, #tpu.memory_space<vmem>>, vector<640x1xf32>
    %21 = vector.broadcast %20 : vector<640x1xf32> to vector<640x500xf32>
    %22 = arith.addf %19, %21 : vector<640x500xf32>
    %cst_16 = arith.constant 0.000000e+00 : f32
    %23 = vector.broadcast %cst_16 : f32 to vector<640x500xf32>
    %24 = arith.maximumf %22, %23 : vector<640x500xf32>
    %25 = vector.extract_strided_slice %24 {offsets = [0, 0], sizes = [32, 500], strides = [1, 1]} : vector<640x500xf32> to vector<32x500xf32>
    %26 = vector.extract_strided_slice %24 {offsets = [32, 0], sizes = [32, 500], strides = [1, 1]} : vector<640x500xf32> to vector<32x500xf32>
    %27 = arith.maximumf %25, %26 : vector<32x500xf32>
    %28 = vector.extract_strided_slice %24 {offsets = [64, 0], sizes = [32, 500], strides = [1, 1]} : vector<640x500xf32> to vector<32x500xf32>
    %29 = arith.maximumf %27, %28 : vector<32x500xf32>
    %30 = vector.extract_strided_slice %24 {offsets = [96, 0], sizes = [32, 500], strides = [1, 1]} : vector<640x500xf32> to vector<32x500xf32>
    %31 = arith.maximumf %29, %30 : vector<32x500xf32>
    %32 = vector.extract_strided_slice %24 {offsets = [128, 0], sizes = [32, 500], strides = [1, 1]} : vector<640x500xf32> to vector<32x500xf32>
    %33 = arith.maximumf %31, %32 : vector<32x500xf32>
    %34 = vector.extract_strided_slice %24 {offsets = [160, 0], sizes = [32, 500], strides = [1, 1]} : vector<640x500xf32> to vector<32x500xf32>
    %35 = vector.extract_strided_slice %24 {offsets = [192, 0], sizes = [32, 500], strides = [1, 1]} : vector<640x500xf32> to vector<32x500xf32>
    %36 = arith.maximumf %34, %35 : vector<32x500xf32>
    %37 = vector.extract_strided_slice %24 {offsets = [224, 0], sizes = [32, 500], strides = [1, 1]} : vector<640x500xf32> to vector<32x500xf32>
    %38 = arith.maximumf %36, %37 : vector<32x500xf32>
    %39 = vector.extract_strided_slice %24 {offsets = [256, 0], sizes = [32, 500], strides = [1, 1]} : vector<640x500xf32> to vector<32x500xf32>
    %40 = arith.maximumf %38, %39 : vector<32x500xf32>
    %41 = vector.extract_strided_slice %24 {offsets = [288, 0], sizes = [32, 500], strides = [1, 1]} : vector<640x500xf32> to vector<32x500xf32>
    %42 = arith.maximumf %40, %41 : vector<32x500xf32>
    %43 = vector.extract_strided_slice %24 {offsets = [320, 0], sizes = [32, 500], strides = [1, 1]} : vector<640x500xf32> to vector<32x500xf32>
    %44 = vector.extract_strided_slice %24 {offsets = [352, 0], sizes = [32, 500], strides = [1, 1]} : vector<640x500xf32> to vector<32x500xf32>
    %45 = arith.maximumf %43, %44 : vector<32x500xf32>
    %46 = vector.extract_strided_slice %24 {offsets = [384, 0], sizes = [32, 500], strides = [1, 1]} : vector<640x500xf32> to vector<32x500xf32>
    %47 = arith.maximumf %45, %46 : vector<32x500xf32>
    %48 = vector.extract_strided_slice %24 {offsets = [416, 0], sizes = [32, 500], strides = [1, 1]} : vector<640x500xf32> to vector<32x500xf32>
    %49 = arith.maximumf %47, %48 : vector<32x500xf32>
    %50 = vector.extract_strided_slice %24 {offsets = [448, 0], sizes = [32, 500], strides = [1, 1]} : vector<640x500xf32> to vector<32x500xf32>
    %51 = arith.maximumf %49, %50 : vector<32x500xf32>
    %52 = vector.extract_strided_slice %24 {offsets = [480, 0], sizes = [32, 500], strides = [1, 1]} : vector<640x500xf32> to vector<32x500xf32>
    %53 = vector.extract_strided_slice %24 {offsets = [512, 0], sizes = [32, 500], strides = [1, 1]} : vector<640x500xf32> to vector<32x500xf32>
    %54 = arith.maximumf %52, %53 : vector<32x500xf32>
    %55 = vector.extract_strided_slice %24 {offsets = [544, 0], sizes = [32, 500], strides = [1, 1]} : vector<640x500xf32> to vector<32x500xf32>
    %56 = arith.maximumf %54, %55 : vector<32x500xf32>
    %57 = vector.extract_strided_slice %24 {offsets = [576, 0], sizes = [32, 500], strides = [1, 1]} : vector<640x500xf32> to vector<32x500xf32>
    %58 = arith.maximumf %56, %57 : vector<32x500xf32>
    %59 = vector.extract_strided_slice %24 {offsets = [608, 0], sizes = [32, 500], strides = [1, 1]} : vector<640x500xf32> to vector<32x500xf32>
    %60 = arith.maximumf %58, %59 : vector<32x500xf32>
    %61 = tpu.concatenate %33, %42, %51, %60 in 0 : vector<32x500xf32>, vector<32x500xf32>, vector<32x500xf32>, vector<32x500xf32> -> vector<128x500xf32>
    %62 = vector.extract_strided_slice %61 {offsets = [0, 0], sizes = [128, 496], strides = [1, 1]} : vector<128x500xf32> to vector<128x496xf32>
    %63 = vector.extract_strided_slice %61 {offsets = [0, 1], sizes = [128, 496], strides = [1, 1]} : vector<128x500xf32> to vector<128x496xf32>
    %64 = arith.maximumf %62, %63 : vector<128x496xf32>
    %65 = vector.extract_strided_slice %61 {offsets = [0, 2], sizes = [128, 496], strides = [1, 1]} : vector<128x500xf32> to vector<128x496xf32>
    %66 = arith.maximumf %64, %65 : vector<128x496xf32>
    %67 = vector.extract_strided_slice %61 {offsets = [0, 3], sizes = [128, 496], strides = [1, 1]} : vector<128x500xf32> to vector<128x496xf32>
    %68 = arith.maximumf %66, %67 : vector<128x496xf32>
    %69 = vector.extract_strided_slice %61 {offsets = [0, 4], sizes = [128, 496], strides = [1, 1]} : vector<128x500xf32> to vector<128x496xf32>
    %70 = arith.maximumf %68, %69 : vector<128x496xf32>
    %71 = arith.truncf %70 : vector<128x496xf32> to vector<128x496xbf16>
    %c0_17 = arith.constant 0 : index
    %c0_18 = arith.constant 0 : index
    %72 = vector.load %arg4[%c0_17, %c0_18] : memref<496x106xbf16, #tpu.memory_space<vmem>>, vector<496x106xbf16>
    %cst_19 = arith.constant dense<0.000000e+00> : vector<128x106xf32>
    %73 = tpu.matmul %71, %72, %cst_19 {dimension_numbers = #tpu.dot_dimension_numbers<[1], [0], [0], [1], [0, 0, 1, 1], [], []>} : vector<128x496xbf16>, vector<496x106xbf16>, vector<128x106xf32> -> vector<128x106xf32>
    %74 = arith.truncf %73 : vector<128x106xf32> to vector<128x106xbf16>
    %75 = vector.extract_strided_slice %74 {offsets = [0, 0], sizes = [128, 100], strides = [1, 1]} : vector<128x106xbf16> to vector<128x100xbf16>
    %c0_20 = arith.constant 0 : index
    %c0_21 = arith.constant 0 : index
    %76 = vector.load %arg13[%c0_20, %c0_21] : memref<896x100xbf16, #tpu.memory_space<vmem>>, vector<128x100xbf16>
    tpu.vector_store %arg13[%c0_20, %c0_21], %75 {strides = array<i32>} : memref<896x100xbf16, #tpu.memory_space<vmem>>, vector<128x100xbf16>,
    %77 = vector.extract_strided_slice %74 {offsets = [0, 1], sizes = [128, 100], strides = [1, 1]} : vector<128x106xbf16> to vector<128x100xbf16>
    %c128_22 = arith.constant 128 : index
    %c0_23 = arith.constant 0 : index
    %78 = vector.load %arg13[%c128_22, %c0_23] : memref<896x100xbf16, #tpu.memory_space<vmem>>, vector<128x100xbf16>
    tpu.vector_store %arg13[%c128_22, %c0_23], %77 {strides = array<i32>} : memref<896x100xbf16, #tpu.memory_space<vmem>>, vector<128x100xbf16>,
    %79 = vector.extract_strided_slice %74 {offsets = [0, 2], sizes = [128, 100], strides = [1, 1]} : vector<128x106xbf16> to vector<128x100xbf16>
    %c256 = arith.constant 256 : index
    %c0_24 = arith.constant 0 : index
    %80 = vector.load %arg13[%c256, %c0_24] : memref<896x100xbf16, #tpu.memory_space<vmem>>, vector<128x100xbf16>
    tpu.vector_store %arg13[%c256, %c0_24], %79 {strides = array<i32>} : memref<896x100xbf16, #tpu.memory_space<vmem>>, vector<128x100xbf16>,
    %81 = vector.extract_strided_slice %74 {offsets = [0, 3], sizes = [128, 100], strides = [1, 1]} : vector<128x106xbf16> to vector<128x100xbf16>
    %c384 = arith.constant 384 : index
    %c0_25 = arith.constant 0 : index
    %82 = vector.load %arg13[%c384, %c0_25] : memref<896x100xbf16, #tpu.memory_space<vmem>>, vector<128x100xbf16>
    tpu.vector_store %arg13[%c384, %c0_25], %81 {strides = array<i32>} : memref<896x100xbf16, #tpu.memory_space<vmem>>, vector<128x100xbf16>,
    %83 = vector.extract_strided_slice %74 {offsets = [0, 4], sizes = [128, 100], strides = [1, 1]} : vector<128x106xbf16> to vector<128x100xbf16>
    %c512 = arith.constant 512 : index
    %c0_26 = arith.constant 0 : index
    %84 = vector.load %arg13[%c512, %c0_26] : memref<896x100xbf16, #tpu.memory_space<vmem>>, vector<128x100xbf16>
    tpu.vector_store %arg13[%c512, %c0_26], %83 {strides = array<i32>} : memref<896x100xbf16, #tpu.memory_space<vmem>>, vector<128x100xbf16>,
    %85 = vector.extract_strided_slice %74 {offsets = [0, 5], sizes = [128, 100], strides = [1, 1]} : vector<128x106xbf16> to vector<128x100xbf16>
    %c640 = arith.constant 640 : index
    %c0_27 = arith.constant 0 : index
    %86 = vector.load %arg13[%c640, %c0_27] : memref<896x100xbf16, #tpu.memory_space<vmem>>, vector<128x100xbf16>
    tpu.vector_store %arg13[%c640, %c0_27], %85 {strides = array<i32>} : memref<896x100xbf16, #tpu.memory_space<vmem>>, vector<128x100xbf16>,
    %87 = vector.extract_strided_slice %74 {offsets = [0, 6], sizes = [128, 100], strides = [1, 1]} : vector<128x106xbf16> to vector<128x100xbf16>
    %c768 = arith.constant 768 : index
    %c0_28 = arith.constant 0 : index
    %88 = vector.load %arg13[%c768, %c0_28] : memref<896x100xbf16, #tpu.memory_space<vmem>>, vector<128x100xbf16>
    tpu.vector_store %arg13[%c768, %c0_28], %87 {strides = array<i32>} : memref<896x100xbf16, #tpu.memory_space<vmem>>, vector<128x100xbf16>,
    %c0_29 = arith.constant 0 : index
    %c0_30 = arith.constant 0 : index
    %89 = vector.load %arg5[%c0_29, %c0_30] : memref<256x896xbf16, #tpu.memory_space<vmem>>, vector<256x896xbf16>
    %c0_31 = arith.constant 0 : index
    %c0_32 = arith.constant 0 : index
    %90 = vector.load %arg13[%c0_31, %c0_32] : memref<896x100xbf16, #tpu.memory_space<vmem>>, vector<896x100xbf16>
    %cst_33 = arith.constant dense<0.000000e+00> : vector<256x100xf32>
    %91 = tpu.matmul %89, %90, %cst_33 {dimension_numbers = #tpu.dot_dimension_numbers<[1], [0], [0], [1], [0, 0, 1, 1], [], []>} : vector<256x896xbf16>, vector<896x100xbf16>, vector<256x100xf32> -> vector<256x100xf32>
    %c0_34 = arith.constant 0 : index
    %c0_35 = arith.constant 0 : index
    %92 = vector.load %arg6[%c0_34, %c0_35] : memref<256x1xf32, #tpu.memory_space<vmem>>, vector<256x1xf32>
    %93 = vector.broadcast %92 : vector<256x1xf32> to vector<256x100xf32>
    %94 = arith.addf %91, %93 : vector<256x100xf32>
    %cst_36 = arith.constant 0.000000e+00 : f32
    %95 = vector.broadcast %cst_36 : f32 to vector<256x100xf32>
    %96 = arith.maximumf %94, %95 : vector<256x100xf32>
    %97 = vector.extract_strided_slice %96 {offsets = [0, 0], sizes = [64, 100], strides = [1, 1]} : vector<256x100xf32> to vector<64x100xf32>
    %98 = vector.extract_strided_slice %96 {offsets = [64, 0], sizes = [64, 100], strides = [1, 1]} : vector<256x100xf32> to vector<64x100xf32>
    %99 = arith.maximumf %97, %98 : vector<64x100xf32>
    %100 = vector.extract_strided_slice %96 {offsets = [128, 0], sizes = [64, 100], strides = [1, 1]} : vector<256x100xf32> to vector<64x100xf32>
    %101 = arith.maximumf %99, %100 : vector<64x100xf32>
    %102 = vector.extract_strided_slice %96 {offsets = [192, 0], sizes = [64, 100], strides = [1, 1]} : vector<256x100xf32> to vector<64x100xf32>
    %103 = arith.maximumf %101, %102 : vector<64x100xf32>
    %cst_37 = arith.constant dense<0xFF800000> : vector<64xf32>
    %104 = vector.multi_reduction <maximumf>, %103, %cst_37 [1] : vector<64x100xf32> to vector<64xf32>
    %105 = vector.shape_cast %104 : vector<64xf32> to vector<64x1xf32>
    %106 = vector.shape_cast %105 : vector<64x1xf32> to vector<64x1xf32>
    %107 = vector.broadcast %106 : vector<64x1xf32> to vector<64x128xf32>
    %c0_38 = arith.constant 0 : index
    %c0_39 = arith.constant 0 : index
    %108 = vector.load %arg7[%c0_38, %c0_39] : memref<128x64xf32, #tpu.memory_space<vmem>>, vector<128x64xf32>
    %cst_40 = arith.constant dense<0.000000e+00> : vector<128x128xf32>
    %109 = tpu.matmul %108, %107, %cst_40 {dimension_numbers = #tpu.dot_dimension_numbers<[1], [0], [0], [1], [0, 0, 1, 1], [], []>} : vector<128x64xf32>, vector<64x128xf32>, vector<128x128xf32> -> vector<128x128xf32>
    %c0_41 = arith.constant 0 : index
    %c0_42 = arith.constant 0 : index
    %110 = vector.load %arg8[%c0_41, %c0_42] : memref<128x1xf32, #tpu.memory_space<vmem>>, vector<128x1xf32>
    %111 = vector.broadcast %110 : vector<128x1xf32> to vector<128x128xf32>
    %112 = arith.addf %109, %111 : vector<128x128xf32>
    %cst_43 = arith.constant 0.000000e+00 : f32
    %113 = vector.broadcast %cst_43 : f32 to vector<128x128xf32>
    %114 = arith.maximumf %112, %113 : vector<128x128xf32>
    %c0_44 = arith.constant 0 : index
    %c0_45 = arith.constant 0 : index
    %115 = vector.load %arg9[%c0_44, %c0_45] : memref<10x128xf32, #tpu.memory_space<vmem>>, vector<10x128xf32>
    %cst_46 = arith.constant dense<0.000000e+00> : vector<10x128xf32>
    %116 = tpu.matmul %115, %114, %cst_46 {dimension_numbers = #tpu.dot_dimension_numbers<[1], [0], [0], [1], [0, 0, 1, 1], [], []>} : vector<10x128xf32>, vector<128x128xf32>, vector<10x128xf32> -> vector<10x128xf32>
    %c0_47 = arith.constant 0 : index
    %c0_48 = arith.constant 0 : index
    %117 = vector.load %arg10[%c0_47, %c0_48] : memref<10x1xf32, #tpu.memory_space<vmem>>, vector<10x1xf32>
    %118 = vector.broadcast %117 : vector<10x1xf32> to vector<10x128xf32>
    %119 = arith.addf %116, %118 : vector<10x128xf32>
    %cst_49 = arith.constant dense<0xFF800000> : vector<128xf32>
    %120 = vector.multi_reduction <maximumf>, %119, %cst_49 [0] : vector<10x128xf32> to vector<128xf32>
    %121 = vector.shape_cast %120 : vector<128xf32> to vector<1x128xf32>
    %122 = vector.broadcast %121 : vector<1x128xf32> to vector<10x128xf32>
    %123 = arith.subf %119, %122 : vector<10x128xf32>
    %124 = math.exp %123 : vector<10x128xf32>
    %cst_50 = arith.constant dense<0.000000e+00> : vector<128xf32>
    %125 = vector.multi_reduction <add>, %124, %cst_50 [0] : vector<10x128xf32> to vector<128xf32>
    %126 = vector.shape_cast %125 : vector<128xf32> to vector<1x128xf32>
    %127 = tpu.reciprocal %126 {approx = true} : vector<1x128xf32> -> vector<1x128xf32>
    %128 = vector.broadcast %127 : vector<1x128xf32> to vector<10x128xf32>
    %129 = arith.mulf %124, %128 : vector<10x128xf32>
    %130 = vector.extract_strided_slice %129 {offsets = [0, 0], sizes = [10, 1], strides = [1, 1]} : vector<10x128xf32> to vector<10x1xf32>
    %c0_51 = arith.constant 0 : index
    %c0_52 = arith.constant 0 : index
    %c0_53 = arith.constant 0 : index
    %131 = vector.load %arg11[%c0_51, %c0_52, %c0_53] : memref<1x10x1xf32, #tpu.memory_space<vmem>>, vector<1x10x1xf32>
    %132 = vector.shape_cast %131 : vector<1x10x1xf32> to vector<10x1xf32>
    %133 = vector.shape_cast %130 : vector<10x1xf32> to vector<1x10x1xf32>
    tpu.vector_store %arg11[%c0_51, %c0_52, %c0_53], %133 {strides = array<i32>} : memref<1x10x1xf32, #tpu.memory_space<vmem>>, vector<1x10x1xf32>,
    return
  }
  func.func @transform_0(%arg0: i32) -> (i32, i32, i32) {
    %c0_i32 = arith.constant 0 : i32
    %c0_i32_0 = arith.constant 0 : i32
    %c0_i32_1 = arith.constant 0 : i32
    return %arg0, %c0_i32, %c0_i32_0 : i32, i32, i32
  }
  func.func @transform_1(%arg0: i32) -> (i32, i32) {
    %c0_i32 = arith.constant 0 : i32
    %c0_i32_0 = arith.constant 0 : i32
    %c0_i32_1 = arith.constant 0 : i32
    return %c0_i32, %c0_i32_0 : i32, i32
  }
  func.func @transform_2(%arg0: i32) -> (i32, i32) {
    %c0_i32 = arith.constant 0 : i32
    %c0_i32_0 = arith.constant 0 : i32
    %c0_i32_1 = arith.constant 0 : i32
    return %c0_i32, %c0_i32_0 : i32, i32
  }
  func.func @transform_3(%arg0: i32) -> (i32, i32) {
    %c0_i32 = arith.constant 0 : i32
    %c0_i32_0 = arith.constant 0 : i32
    %c0_i32_1 = arith.constant 0 : i32
    return %c0_i32, %c0_i32_0 : i32, i32
  }
  func.func @transform_4(%arg0: i32) -> (i32, i32) {
    %c0_i32 = arith.constant 0 : i32
    %c0_i32_0 = arith.constant 0 : i32
    %c0_i32_1 = arith.constant 0 : i32
    return %c0_i32, %c0_i32_0 : i32, i32
  }
  func.func @transform_5(%arg0: i32) -> (i32, i32) {
    %c0_i32 = arith.constant 0 : i32
    %c0_i32_0 = arith.constant 0 : i32
    %c0_i32_1 = arith.constant 0 : i32
    return %c0_i32, %c0_i32_0 : i32, i32
  }
  func.func @transform_6(%arg0: i32) -> (i32, i32) {
    %c0_i32 = arith.constant 0 : i32
    %c0_i32_0 = arith.constant 0 : i32
    %c0_i32_1 = arith.constant 0 : i32
    return %c0_i32, %c0_i32_0 : i32, i32
  }
  func.func @transform_7(%arg0: i32) -> (i32, i32) {
    %c0_i32 = arith.constant 0 : i32
    %c0_i32_0 = arith.constant 0 : i32
    %c0_i32_1 = arith.constant 0 : i32
    return %c0_i32, %c0_i32_0 : i32, i32
  }
  func.func @transform_8(%arg0: i32) -> (i32, i32) {
    %c0_i32 = arith.constant 0 : i32
    %c0_i32_0 = arith.constant 0 : i32
    %c0_i32_1 = arith.constant 0 : i32
    return %c0_i32, %c0_i32_0 : i32, i32
  }
  func.func @transform_9(%arg0: i32) -> (i32, i32) {
    %c0_i32 = arith.constant 0 : i32
    %c0_i32_0 = arith.constant 0 : i32
    %c0_i32_1 = arith.constant 0 : i32
    return %c0_i32, %c0_i32_0 : i32, i32
  }
  func.func @transform_10(%arg0: i32) -> (i32, i32, i32) {
    %c0_i32 = arith.constant 0 : i32
    %c0_i32_0 = arith.constant 0 : i32
    %c0_i32_1 = arith.constant 0 : i32
    return %arg0, %c0_i32, %c0_i32_0 : i32, i32, i32
  }
}

</mosaic_0001>

<bundles_post_ra>
// kernel: dcase_baseline_forward.1
= control target key start
LH: loop header
LB: loop body
LE: loop exit
PB: predicated region body
PF: predicated region fallthrough
CT: control target
= control target key end

     0   :  { %s11608_s13 = smov 0   ;;  %s18785_s0 = inlined_call_operand.vmem [shape: f32[2,32,506], index: 0, kind: input, shape index: {}]   ;;  %s18786_s1 = inlined_call_operand.vmem [shape: bf16[640,224], index: 1, kind: input, shape index: {}]   ;;  %s18787_s2 = inlined_call_operand.vmem [shape: f32[640,1], index: 2, kind: input, shape index: {}]   ;;  %s18788_s3 = inlined_call_operand.vmem [shape: bf16[496,106], index: 3, kind: input, shape index: {}]   ;;  %s18789_s4 = inlined_call_operand.vmem [shape: bf16[256,896], index: 4, kind: input, shape index: {}]   ;;  %s18790_s5 = inlined_call_operand.vmem [shape: f32[256,1], index: 5, kind: input, shape index: {}]   ;;  %s18791_s6 = inlined_call_operand.vmem [shape: f32[128,64], index: 6, kind: input, shape index: {}]   ;;  %s18792_s7 = inlined_call_operand.vmem [shape: f32[128,1], index: 7, kind: input, shape index: {}]   ;;  %s18793_s8 = inlined_call_operand.vmem [shape: f32[10,128], index: 8, kind: input, shape index: {}]   ;;  %s18794_s9 = inlined_call_operand.vmem [shape: f32[10,1], index: 9, kind: input, shape index: {}]   ;;  %s18795_s10 = inlined_call_operand.vmem [shape: f32[2,10,1], index: 10, kind: output, shape index: {}]  }
   0x1 LB: > { %s8978_s14 = sadd.s32 4294967295, %s11544_s13   ;;  %p8982_p0 = scmp.ge.s32.totalorder %s11544_s13, 1  ;;  %s11544_s13 = sphi %s11608_s13, %s20_s13  }
   0x2   : > { %p312_p1 = scmp.lt.s32.totalorder %s11544_s13, 3 }
   0x4   : > { %p313_p2 = pnand %p8982_p0, %p312_p1 }
   0x6   : > { %316 = sbr.rel (%p313_p2) target bundleno = 3413 (0xd55), region = 60 }
   0xb   : > { %p350_p3 = scmp.lt.s32.totalorder %s8978_s14, 1  ;;  %s11546_s19 = smov 125   ;;  %vm386_vm0 = vcmask 1043456   ;;  %vm387_vm1 = vcmask 949252   ;;  %v11551_v27 = vmov 0   ;;  %vm536_vm3 = vcmask 1022976  }
   0xc   : > { %s11547_s20 = smov 126   ;;  %s11548_s21 = smov 127   ;;  %vm11715_vm2 = vmor %vm387_vm1, %vm386_vm0  ;;  %10891 = vset.pattern.permute.xlu2 %v11551_v27  ;;  %10890 = vset.pattern.permute.xlu1 %v11551_v27  ;;  %vm483_vm4 = vcmask 1031168   ;;  %v860_v48 = vld [vmem:[%s18787_s2 + $0x8] sm:$0xff]  ;;  %v859_v52 = vld [vmem:[%s18787_s2] sm:$0xff]  ;;  %vm430_vm5 = vcmask 1039360  }
   0xd   : > { %s20151_s14 = smov (!%p350_p3, %s8978_s14), 1  ;;  %s11549_s22 = smov 122   ;;  %10889 = vset.pattern.permute.xlu0 %v11551_v27  ;;  %v861_v53 = vld [vmem:[%s18787_s2 + $0x10] sm:$0xff]  ;;  %v862_v62 = vld [vmem:[%s18787_s2 + $0x18] sm:$0xff]  ;;  %vm695_vm6 = vcmask 998400   ;;  %vm642_vm7 = vcmask 1006592  }
   0xe   : > { %s10513_s15 = sshll.u32 %s20151_s14, 7  ;;  %s11550_s23 = smov 123   ;;  %vm589_vm8 = vcmask 1014784   ;;  %v906_v24 = vld [vmem:[%s18787_s2 + $0x178] sm:$0xff]  ;;  %vm1979_vm9 = vcmask 785408   ;;  %vm5912_vm10 = vcmask 916480  }
   0xf   : > { %s11622_s18 = scalar_lea.vmem %s18785_s0, %s10513_s15  ;;  %s11552_s24 = smov 124   ;;  %vm6149_vm11 = vcmask 814080   ;;  %vm8589_vm12 = vcmask 818176   ;;  %vm8726_vm13 = vcmask 523264   ;;  %vm8893_vm14 = vcmask 1041408  }
  0x10   : > { %v373_v0 = vld [vmem:[%s11622_s18 + $0x60] sm:$0xff]  ;;  %v374_v1 = vld [vmem:[%s11622_s18 + $0x68] sm:$0xff]  ;;  %v375_v9 = vld [vmem:[%s11622_s18 + $0x70] sm:$0xff]  ;;  %vm8919_vm15 = vcmask 7168  }
  0x11   : > { %v369_v2 = vld [vmem:[%s11622_s18 + $0x40] sm:$0xff]  ;;  %v11627_v3 = vpack.c.bf16 %v374_v1, %v373_v0  ;;  %v370_v4 = vld [vmem:[%s11622_s18 + $0x48] sm:$0xff]  ;;  %v376_v10 = vld [vmem:[%s11622_s18 + $0x78] sm:$0xff] }
  0x12   : > { %v361_v5 = vld [vmem:[%s11622_s18] sm:$0xff]  ;;  %v362_v6 = vld [vmem:[%s11622_s18 + $0x8] sm:$0xff]  ;;  %v11632_v7 = vpack.c.bf16 %v370_v4, %v369_v2  ;;  %v371_v11 = vld [vmem:[%s11622_s18 + $0x50] sm:$0xff]  ;;  %v11655_v18 = vpack.c.bf16 %v376_v10, %v375_v9 }
  0x13   : > { %v11634_v8 = vpack.c.bf16 %v362_v6, %v361_v5  ;;  %523 = vrot.lane.b32.xlu1 %v11627_v3, %s11546_s19  ;;  %394 = vst [vmem:[#allocation2 + $0x30] sm:$0xff] %v11627_v3  ;;  %v372_v12 = vld [vmem:[%s11622_s18 + $0x58] sm:$0xff]  ;;  %v363_v13 = vld [vmem:[%s11622_s18 + $0x10] sm:$0xff]  ;;  %v365_v15 = vld [vmem:[%s11622_s18 + $0x20] sm:$0xff] }
  0x14   : > { %519 = vrot.lane.b32.xlu0 %v11632_v7, %s11546_s19  ;;  %392 = vst [vmem:[#allocation2 + $0x20] sm:$0xff] %v11632_v7  ;;  %v364_v14 = vld [vmem:[%s11622_s18 + $0x18] sm:$0xff]  ;;  %v366_v16 = vld [vmem:[%s11622_s18 + $0x28] sm:$0xff]  ;;  %v11657_v19 = vpack.c.bf16 %v372_v12, %v371_v11  ;;  %v367_v21 = vld [vmem:[%s11622_s18 + $0x30] sm:$0xff] }
  0x15   : > { %511 = vrot.lane.b32.xlu2 %v11634_v8, %s11546_s19  ;;  %385 = vst [vmem:[#allocation2] sm:$0xff] %v11634_v8  ;;  %v11653_v17 = vpack.c.bf16 %v366_v16, %v365_v15  ;;  %v11659_v20 = vpack.c.bf16 %v364_v14, %v363_v13  ;;  %v368_v22 = vld [vmem:[%s11622_s18 + $0x38] sm:$0xff]  ;;  %v864_v1 = vld [vmem:[%s18787_s2 + $0x28] sm:$0xff]  ;;  %v863_v2 = vld [vmem:[%s18787_s2 + $0x20] sm:$0xff] }
  0x16   : > { %v11670_v23 = vpack.c.bf16 %v368_v22, %v367_v21  ;;  %393 = vst.msk [vmem:[#allocation2 + $0x28] sm:$0xff] %vm11715_vm2, %v11657_v19  ;;  %v865_v14 = vld [vmem:[%s18787_s2 + $0x30] sm:$0xff] }
  0x17   : > { %390 = vst [vmem:[#allocation2 + $0x10] sm:$0xff] %v11653_v17 }
  0x18   : > { %389 = vst.msk [vmem:[#allocation2 + $0x8] sm:$0xff] %vm11715_vm2, %v11659_v20 }
  0x19   : > { %391 = vst.msk [vmem:[#allocation2 + $0x18] sm:$0xff] %vm11715_vm2, %v11670_v23 }
  0x1a   : > { %395 = vst.msk [vmem:[#allocation2 + $0x38] sm:$0xff] %vm11715_vm2, %v11655_v18 }
  0x1b   : > { %525 = vrot.lane.b32.xlu1 %v11655_v18, %s11546_s19 }
  0x1c   : > { %521 = vrot.lane.b32.xlu0 %v11657_v19, %s11546_s19 }
  0x1d   : > { %513 = vrot.lane.b32.xlu2 %v11659_v20, %s11546_s19 }
  0x23   : > { %517 = vrot.lane.b32.xlu1 %v11670_v23, %s11546_s19 }
  0x24   : > { %515 = vrot.lane.b32.xlu0 %v11653_v17, %s11546_s19 }
  0x25   : > { %466 = vrot.lane.b32.xlu2 %v11632_v7, %s11547_s20 }
  0x2b   : > { %470 = vrot.lane.b32.xlu1 %v11627_v3, %s11547_s20 }
  0x2c   : > { %468 = vrot.lane.b32.xlu0 %v11657_v19, %s11547_s20 }
  0x2d   : > { %472 = vrot.lane.b32.xlu2 %v11655_v18, %s11547_s20 }
  0x33   : > { %460 = vrot.lane.b32.xlu1 %v11659_v20, %s11547_s20 }
  0x34   : > { %458 = vrot.lane.b32.xlu0 %v11634_v8, %s11547_s20 }
  0x35   : > { %462 = vrot.lane.b32.xlu2 %v11653_v17, %s11547_s20 }
  0x3b   : > { %412 = vrot.lane.b32.xlu1 %v11632_v7, %s11548_s21 }
  0x3c   : > { %464 = vrot.lane.b32.xlu0 %v11670_v23, %s11547_s20 }
  0x3d   : > { %414 = vrot.lane.b32.xlu2 %v11657_v19, %s11548_s21 }
  0x43   : > { %418 = vrot.lane.b32.xlu1 %v11655_v18, %s11548_s21 }
  0x44   : > { %416 = vrot.lane.b32.xlu0 %v11627_v3, %s11548_s21 }
  0x45   : > { %404 = vrot.lane.b32.xlu2 %v11634_v8, %s11548_s21 }
  0x4b   : > { %408 = vrot.lane.b32.xlu1 %v11653_v17, %s11548_s21 }
  0x4c   : > { %406 = vrot.lane.b32.xlu0 %v11659_v20, %s11548_s21 }
  0x4d   : > { %410 = vrot.lane.b32.xlu2 %v11670_v23, %s11548_s21 }
  0x53   : > { %680 = vrot.lane.b32.xlu1 %v11657_v19, %s11549_s22 }
  0x54   : > { %678 = vrot.lane.b32.xlu0 %v11632_v7, %s11549_s22 }
  0x55   : > { %682 = vrot.lane.b32.xlu2 %v11627_v3, %s11549_s22 }
  0x5b   : > { %670 = vrot.lane.b32.xlu1 %v11634_v8, %s11549_s22 }
  0x5c   : > { %684 = vrot.lane.b32.xlu0 %v11655_v18, %s11549_s22 }
  0x5d   : > { %672 = vrot.lane.b32.xlu2 %v11659_v20, %s11549_s22 }
  0x63   : > { %676 = vrot.lane.b32.xlu1 %v11670_v23, %s11549_s22 }
  0x64   : > { %674 = vrot.lane.b32.xlu0 %v11653_v17, %s11549_s22 }
  0x65   : > { %625 = vrot.lane.b32.xlu2 %v11632_v7, %s11550_s23 }
  0x6b   : > { %629 = vrot.lane.b32.xlu1 %v11627_v3, %s11550_s23 }
  0x6c   : > { %627 = vrot.lane.b32.xlu0 %v11657_v19, %s11550_s23 }
  0x6d   : > { %631 = vrot.lane.b32.xlu2 %v11655_v18, %s11550_s23 }
  0x6f   : > { %v512_v25 = vpop.permute.xlu2 %511 }
  0x70   : > { %v527_v26 = vrot.slane %v512_v25, 4 }
  0x73   : > { %619 = vrot.lane.b32.xlu1 %v11659_v20, %s11550_s23 }
  0x74   : > { %617 = vrot.lane.b32.xlu0 %v11634_v8, %s11550_s23 }
  0x75   : > { %621 = vrot.lane.b32.xlu2 %v11653_v17, %s11550_s23 }
  0x77   : > { %v514_v28 = vpop.permute.xlu2 %513 }
  0x78   : > { %v528_v29 = vrot.slane %v514_v28, 4 }
  0x7a   : > { %v535_v30 = vsel %vm386_vm0, %v527_v26, %v528_v29  ;;  %v538_v31 = vsel %vm536_vm3, %v514_v28, %v528_v29 }
  0x7b   : > { %v537_v32 = vsel %vm536_vm3, %v512_v25, %v535_v30  ;;  %557 = vst.msk [vmem:[#allocation2 + $0xc8] sm:$0xff] %vm11715_vm2, %v538_v31  ;;  %572 = vrot.lane.b32.xlu1 %v11632_v7, %s11552_s24 }
  0x7c   : > { %556 = vst [vmem:[#allocation2 + $0xc0] sm:$0xff] %v537_v32  ;;  %623 = vrot.lane.b32.xlu0 %v11670_v23, %s11550_s23  ;;  %v868_v32 = vld [vmem:[%s18787_s2 + $0x48] sm:$0xff] }
  0x7d   : > { %574 = vrot.lane.b32.xlu2 %v11657_v19, %s11552_s24  ;;  %v866_v19 = vld [vmem:[%s18787_s2 + $0x38] sm:$0xff] }
  0x7f   : > { %v11766_v33 = vpop.permute.xlu2 %466 }
  0x80   : > { %v478_v11 = vrot.slane %v11766_v33, 4 }
  0x83   : > { %578 = vrot.lane.b32.xlu1 %v11655_v18, %s11552_s24  ;;  %v867_v18 = vld [vmem:[%s18787_s2 + $0x40] sm:$0xff] }
  0x84   : > { %576 = vrot.lane.b32.xlu0 %v11627_v3, %s11552_s24  ;;  %v9405_v21 = vld [vmem:[#allocation2 + $0xc0] sm:$0xf] }
  0x85   : > { %564 = vrot.lane.b32.xlu2 %v11634_v8, %s11552_s24  ;;  %v524_v34 = vpop.permute.xlu1 %523 }
  0x86   : > { %v520_v35 = vpop.permute.xlu0 %519  ;;  %v533_v40 = vrot.slane %v524_v34, 4 }
  0x87   : > { %v11774_v36 = vpop.permute.xlu2 %472  ;;  %v531_v44 = vrot.slane %v520_v35, 4 }
  0x88   : > { %v481_v37 = vrot.slane %v11774_v36, 4 }
  0x8a   : > { %v494_v38 = vsel %vm483_vm4, %v11774_v36, %v481_v37  ;;  %v869_v36 = vld [vmem:[%s18787_s2 + $0x50] sm:$0xff] }
  0x8b   : > { %510 = vst.msk [vmem:[#allocation2 + $0xb8] sm:$0xff] %vm11715_vm2, %v494_v38  ;;  %568 = vrot.lane.b32.xlu1 %v11653_v17, %s11552_s24 }
  0x8c   : > { %566 = vrot.lane.b32.xlu0 %v11659_v20, %s11552_s24 }
  0x8d   : > { %570 = vrot.lane.b32.xlu2 %v11670_v23, %s11552_s24  ;;  %v526_v39 = vpop.permute.xlu1 %525 }
  0x8e   : > { %v534_v41 = vrot.slane %v526_v39, 4  ;;  %v522_v42 = vpop.permute.xlu0 %521 }
  0x8f   : > { %v11787_v43 = vpop.permute.xlu2 %462  ;;  %v532_v45 = vrot.slane %v522_v42, 4 }
  0x90   : > { %v545_v46 = vsel %vm386_vm0, %v533_v40, %v534_v41  ;;  %v547_v47 = vsel %vm536_vm3, %v526_v39, %v534_v41 }
  0x91   : > { %v546_v49 = vsel %vm536_vm3, %v524_v34, %v545_v46  ;;  %563 = vst.msk [vmem:[#allocation2 + $0xf8] sm:$0xff] %vm11715_vm2, %v547_v47  ;;  %v542_v50 = vsel %vm386_vm0, %v531_v44, %v532_v45  ;;  %v544_v51 = vsel %vm536_vm3, %v522_v42, %v532_v45  ;;  %v476_v46 = vrot.slane %v11787_v43, 4 }
  0x92   : > { %562 = vst [vmem:[#allocation2 + $0xf0] sm:$0xff] %v546_v49  ;;  %v543_v54 = vsel %vm536_vm3, %v520_v35, %v542_v50  ;;  %v870_v35 = vld [vmem:[%s18787_s2 + $0x58] sm:$0xff]  ;;  %v871_v49 = vld [vmem:[%s18787_s2 + $0x60] sm:$0xff] }
  0x93   : > { %560 = vst [vmem:[#allocation2 + $0xe0] sm:$0xff] %v543_v54  ;;  %946 = vperm.xlu1 %10890, %v860_v48   ;;  %v872_v54 = vld [vmem:[%s18787_s2 + $0x68] sm:$0xff] }
  0x94   : > { %561 = vst.msk [vmem:[#allocation2 + $0xe8] sm:$0xff] %vm11715_vm2, %v544_v51  ;;  %941 = vperm.xlu0 %10889, %v859_v52  }
  0x95   : > { %951 = vperm.xlu2 %10891, %v861_v53   ;;  %v518_v55 = vpop.permute.xlu1 %517  ;;  %v873_v53 = vld [vmem:[%s18787_s2 + $0x70] sm:$0xff] }
  0x96   : > { %v530_v56 = vrot.slane %v518_v55, 4  ;;  %v516_v57 = vpop.permute.xlu0 %515 }
  0x97   : > { %v11808_v58 = vpop.permute.xlu2 %414  ;;  %v529_v59 = vrot.slane %v516_v57, 4 }
  0x98   : > { %v425_v60 = vrot.slane %v11808_v58, 4  ;;  %v541_v61 = vsel %vm536_vm3, %v518_v55, %v530_v56 }
  0x99   : > { %559 = vst.msk [vmem:[#allocation2 + $0xd8] sm:$0xff] %vm11715_vm2, %v541_v61  ;;  %v539_v63 = vsel %vm386_vm0, %v529_v59, %v530_v56  ;;  %v10625_v3 = vld [vmem:[#allocation2 + $0xec] sm:$0xf0] }
  0x9a   : > { %v438_v0 = vsel %vm430_vm5, %v11808_v58, %v425_v60  ;;  %v540_v4 = vsel %vm536_vm3, %v516_v57, %v539_v63  ;;  %v9421_v5 = vld [vmem:[#allocation2 + $0xe0] sm:$0xf] }
  0x9b   : > { %455 = vst.msk [vmem:[#allocation2 + $0x68] sm:$0xff] %vm11715_vm2, %v438_v0  ;;  %956 = vperm.xlu1 %10890, %v862_v62   ;;  %v9422_v6 = vor.u32 %v10625_v3, %v9421_v5 }
  0x9c   : > { %558 = vst [vmem:[#allocation2 + $0xd0] sm:$0xff] %v540_v4  ;;  %966 = vperm.xlu0 %10889, %v864_v1   ;;  %v876_v1 = vld [vmem:[%s18787_s2 + $0x88] sm:$0xff] }
  0x9d   : > { %961 = vperm.xlu2 %10891, %v863_v2   ;;  %2100 = vmatpush.bf16.msra.mxu0 %v9422_v6  ;;  %v471_v7 = vpop.permute.xlu1 %470  ;;  %v875_v2 = vld [vmem:[%s18787_s2 + $0x80] sm:$0xff] }
  0x9e   : > { %10850 = vmatpush.bf16.msra.mxu2 %v9422_v6  ;;  %v480_v8 = vrot.slane %v471_v7, 4  ;;  %v469_v9 = vpop.permute.xlu0 %468 }
  0x9f   : > { %v11831_v10 = vpop.permute.xlu2 %404  ;;  %v479_v12 = vrot.slane %v469_v9, 4 }
  0xa0   : > { %v492_v13 = vsel %vm386_vm0, %v480_v8, %v481_v37 }
  0xa1   : > { %v493_v15 = vsel %vm483_vm4, %v471_v7, %v492_v13  ;;  %v489_v16 = vsel %vm386_vm0, %v478_v11, %v479_v12  ;;  %v491_v17 = vsel %vm483_vm4, %v469_v9, %v479_v12  ;;  %v420_v12 = vrot.slane %v11831_v10, 4 }
  0xa2   : > { %509 = vst [vmem:[#allocation2 + $0xb0] sm:$0xff] %v493_v15  ;;  %v490_v20 = vsel %vm483_vm4, %v11766_v33, %v489_v16  ;;  %v877_v15 = vld [vmem:[%s18787_s2 + $0x90] sm:$0xff] }
  0xa3   : > { %v10621_v22 = vld [vmem:[#allocation2 + $0xcc] sm:$0xf0]  ;;  %507 = vst [vmem:[#allocation2 + $0xa0] sm:$0xff] %v490_v20  ;;  %971 = vperm.xlu1 %10890, %v865_v14   ;;  %v878_v20 = vld [vmem:[%s18787_s2 + $0x98] sm:$0xff] }
  0xa4   : > { %v9406_v23 = vor.u32 %v10621_v22, %v9405_v21  ;;  %508 = vst.msk [vmem:[#allocation2 + $0xa8] sm:$0xff] %vm11715_vm2, %v491_v17  ;;  %981 = vperm.xlu0 %10889, %v867_v18  }
  0xa5   : > { %976 = vperm.xlu2 %10891, %v866_v19   ;;  %v461_v25 = vpop.permute.xlu1 %460  ;;  %v879_v19 = vld [vmem:[%s18787_s2 + $0xa0] sm:$0xff] }
  0xa6   : > { %2101 = vmatpush.bf16.msra.mxu0 %v9406_v23  ;;  %10851 = vmatpush.bf16.msra.mxu2 %v9406_v23  ;;  %v475_v26 = vrot.slane %v461_v25, 4  ;;  %v459_v27 = vpop.permute.xlu0 %458 }
  0xa7   : > { %v11851_v28 = vpop.permute.xlu2 %410  ;;  %v474_v29 = vrot.slane %v459_v27, 4 }
  0xa8   : > { %v423_v30 = vrot.slane %v11851_v28, 4  ;;  %v485_v31 = vsel %vm483_vm4, %v461_v25, %v475_v26 }
  0xa9   : > { %504 = vst.msk [vmem:[#allocation2 + $0x88] sm:$0xff] %vm11715_vm2, %v485_v31  ;;  %v482_v33 = vsel %vm386_vm0, %v474_v29, %v475_v26  ;;  %v10617_v37 = vld [vmem:[#allocation2 + $0xac] sm:$0xf0] }
  0xaa   : > { %v435_v34 = vsel %vm430_vm5, %v11851_v28, %v423_v30  ;;  %v484_v38 = vsel %vm483_vm4, %v459_v27, %v482_v33  ;;  %v9389_v39 = vld [vmem:[#allocation2 + $0xa0] sm:$0xf]  ;;  %v882_v33 = vld [vmem:[%s18787_s2 + $0xb8] sm:$0xff] }
  0xab   : > { %453 = vst.msk [vmem:[#allocation2 + $0x58] sm:$0xff] %vm11715_vm2, %v435_v34  ;;  %986 = vperm.xlu1 %10890, %v868_v32   ;;  %v9390_v40 = vor.u32 %v10617_v37, %v9389_v39  ;;  %v880_v32 = vld [vmem:[%s18787_s2 + $0xa8] sm:$0xff] }
  0xac   : > { %503 = vst [vmem:[#allocation2 + $0x80] sm:$0xff] %v484_v38  ;;  %996 = vperm.xlu0 %10889, %v870_v35   ;;  %v9325_v38 = vld [vmem:[#allocation2 + $0x20] sm:$0xf] }
  0xad   : > { %991 = vperm.xlu2 %10891, %v869_v36   ;;  %2102 = vmatpush.bf16.msra.mxu0 %v9390_v40  ;;  %v413_v41 = vpop.permute.xlu1 %412  ;;  %v881_v36 = vld [vmem:[%s18787_s2 + $0xb0] sm:$0xff] }
  0xae   : > { %10852 = vmatpush.bf16.msra.mxu2 %v9390_v40  ;;  %v424_v42 = vrot.slane %v413_v41, 4  ;;  %v465_v44 = vpop.permute.xlu0 %464 }
  0xaf   : > { %v11874_v45 = vpop.permute.xlu2 %682  ;;  %v477_v47 = vrot.slane %v465_v44, 4 }
  0xb0   : > { %v436_v48 = vsel %vm386_vm0, %v424_v42, %v425_v60 }
  0xb1   : > { %v437_v50 = vsel %vm430_vm5, %v413_v41, %v436_v48  ;;  %v486_v51 = vsel %vm386_vm0, %v476_v46, %v477_v47  ;;  %v488_v52 = vsel %vm483_vm4, %v465_v44, %v477_v47  ;;  %v10601_v41 = vld [vmem:[#allocation2 + $0x2c] sm:$0xf0]  ;;  %v9309_v47 = vld [vmem:[#allocation2] sm:$0xf] }
  0xb2   : > { %454 = vst [vmem:[#allocation2 + $0x60] sm:$0xff] %v437_v50  ;;  %v487_v55 = vsel %vm483_vm4, %v11787_v43, %v486_v51  ;;  %v874_v43 = vld [vmem:[%s18787_s2 + $0x78] sm:$0xff]  ;;  %v9326_v46 = vor.u32 %v10601_v41, %v9325_v38  ;;  %v10597_v48 = vld [vmem:[#allocation2 + $0xc] sm:$0xf0] }
  0xb3   : > { %505 = vst [vmem:[#allocation2 + $0x90] sm:$0xff] %v487_v55  ;;  %1001 = vperm.xlu1 %10890, %v871_v49   ;;  %v9373_v4 = vld [vmem:[#allocation2 + $0x80] sm:$0xf]  ;;  %v9399_v41 = vld [vmem:[#allocation2 + $0xb8] sm:$0xf0] }
  0xb4   : > { %506 = vst.msk [vmem:[#allocation2 + $0x98] sm:$0xff] %vm11715_vm2, %v488_v52  ;;  %1011 = vperm.xlu0 %10889, %v873_v53   ;;  %v10623_v52 = vld [vmem:[#allocation2 + $0xe4] sm:$0xf]  ;;  %v9423_v53 = vld [vmem:[#allocation2 + $0xf0] sm:$0xf0] }
  0xb5   : > { %1006 = vperm.xlu2 %10891, %v872_v54   ;;  %v419_v56 = vpop.permute.xlu1 %418  ;;  %v692_v54 = vrot.slane %v11874_v45, 4 }
  0xb6   : > { %v427_v57 = vrot.slane %v419_v56, 4  ;;  %v417_v58 = vpop.permute.xlu0 %416 }
  0xb7   : > { %v11896_v59 = vpop.permute.xlu2 %672  ;;  %v426_v60 = vrot.slane %v417_v58, 4 }
  0xb8   : > { %v687_v61 = vrot.slane %v11896_v59, 4  ;;  %v441_v62 = vsel %vm430_vm5, %v419_v56, %v427_v57  ;;  %v883_v56 = vld [vmem:[%s18787_s2 + $0xc0] sm:$0xff] }
  0xb9   : > { %457 = vst.msk [vmem:[#allocation2 + $0x78] sm:$0xff] %vm11715_vm2, %v441_v62  ;;  %v439_v63 = vsel %vm386_vm0, %v426_v60, %v427_v57  ;;  %v9357_v22 = vld [vmem:[#allocation2 + $0x60] sm:$0xf]  ;;  %v10624_v57 = vld [vmem:[#allocation2 + $0xec] sm:$0xf]  ;;  %v885_v62 = vld [vmem:[%s18787_s2 + $0xd0] sm:$0xff] }
  0xba   : > { %v697_v0 = vsel %vm695_vm6, %v11896_v59, %v687_v61  ;;  %v440_v3 = vsel %vm430_vm5, %v417_v58, %v439_v63  ;;  %v10613_v5 = vld [vmem:[#allocation2 + $0x8c] sm:$0xf0]  ;;  %v9431_v58 = vld [vmem:[#allocation2 + $0xf8] sm:$0xf0]  ;;  %v9310_v63 = vor.u32 %v10597_v48, %v9309_v47  ;;  %v9375_v47 = vld [vmem:[#allocation2 + $0x90] sm:$0xf0] }
  0xbb   : > { %716 = vst.msk [vmem:[#allocation2 + $0x188] sm:$0xff] %vm11715_vm2, %v697_v0  ;;  %1016 = vperm.xlu1 %10890, %v874_v43   ;;  %v9374_v6 = vor.u32 %v10613_v5, %v9373_v4  ;;  %v884_v43 = vld [vmem:[%s18787_s2 + $0xc8] sm:$0xff]  ;;  %v8989_v0 = vld [vmem:[%s18786_s1] sm:$0xf] }
  0xbc   : > { %456 = vst [vmem:[#allocation2 + $0x70] sm:$0xff] %v440_v3  ;;  %1026 = vperm.xlu0 %10889, %v876_v1   ;;  %v9293_v3 = vld [vmem:[%s18786_s1 + $0x260] sm:$0xf]  ;;  %v10592_v4 = vld [vmem:[%s18786_s1 + $0x264] sm:$0xf0] }
  0xbd   : > { %1021 = vperm.xlu2 %10891, %v875_v2   ;;  %2103 = vmatpush.bf16.msra.mxu0 %v9374_v6  ;;  %v409_v7 = vpop.permute.xlu1 %408  ;;  %v10612_v48 = vld [vmem:[#allocation2 + $0x8c] sm:$0xf] }
  0xbe   : > { %10853 = vmatpush.bf16.msra.mxu2 %v9374_v6  ;;  %v422_v8 = vrot.slane %v409_v7, 4  ;;  %v407_v9 = vpop.permute.xlu0 %406  ;;  %v9426_v6 = vor.u32 %v10623_v52, %v9423_v53 }
  0xbf   : > { %v11919_v11 = vpop.permute.xlu2 %625  ;;  %v421_v13 = vrot.slane %v407_v9, 4 }
  0xc0   : > { %v433_v14 = vsel %vm386_vm0, %v422_v8, %v423_v30 }
  0xc1   : > { %v434_v16 = vsel %vm430_vm5, %v409_v7, %v433_v14  ;;  %v429_v17 = vsel %vm386_vm0, %v420_v12, %v421_v13  ;;  %v432_v18 = vsel %vm430_vm5, %v407_v9, %v421_v13  ;;  %v9434_v7 = vor.u32 %v10624_v57, %v9431_v58  ;;  %v9407_v13 = vld [vmem:[#allocation2 + $0xd0] sm:$0xf0]  ;;  %v9415_v14 = vld [vmem:[#allocation2 + $0xd8] sm:$0xf0] }
  0xc2   : > { %452 = vst [vmem:[#allocation2 + $0x50] sm:$0xff] %v434_v16  ;;  %v431_v21 = vsel %vm430_vm5, %v11831_v10, %v429_v17  ;;  %v12000_v9 = vor.u32 %v10592_v4, %v9293_v3  ;;  %v10619_v17 = vld [vmem:[#allocation2 + $0xc4] sm:$0xf]  ;;  %v889_v58 = vld [vmem:[%s18787_s2 + $0xf0] sm:$0xff] }
  0xc3   : > { %v10609_v23 = vld [vmem:[#allocation2 + $0x6c] sm:$0xf0]  ;;  %450 = vst [vmem:[#allocation2 + $0x40] sm:$0xff] %v431_v21  ;;  %1031 = vperm.xlu1 %10890, %v877_v15   ;;  %v10615_v21 = vld [vmem:[#allocation2 + $0xa4] sm:$0xf] }
  0xc4   : > { %v9358_v25 = vor.u32 %v10609_v23, %v9357_v22  ;;  %451 = vst.msk [vmem:[#allocation2 + $0x48] sm:$0xff] %vm11715_vm2, %v432_v18  ;;  %1041 = vperm.xlu0 %10889, %v879_v19   ;;  %v10620_v18 = vld [vmem:[#allocation2 + $0xcc] sm:$0xf]  ;;  %v9391_v22 = vld [vmem:[#allocation2 + $0xb0] sm:$0xf0] }
  0xc5   : > { %1036 = vperm.xlu2 %10891, %v878_v20   ;;  %v681_v26 = vpop.permute.xlu1 %680  ;;  %19319 = vst [vmem:[#allocation4_spill] sm:$0xff] %v12000_v9  ;;  %v9301_v3 = vld [vmem:[%s18786_s1 + $0x270] sm:$0xf] }
  0xc6   : > { %2104 = vmatpush.bf16.msra.mxu0 %v9358_v25  ;;  %10854 = vmatpush.bf16.msra.mxu2 %v9358_v25  ;;  %v691_v27 = vrot.slane %v681_v26, 4  ;;  %v679_v28 = vpop.permute.xlu0 %678  ;;  %v9410_v25 = vor.u32 %v10619_v17, %v9407_v13  ;;  %v10607_v17 = vld [vmem:[#allocation2 + $0x64] sm:$0xf] }
  0xc7   : > { %v11941_v29 = vpop.permute.xlu2 %631  ;;  %v690_v30 = vrot.slane %v679_v28, 4 }
  0xc8   : > { %v640_v10 = vrot.slane %v11941_v29, 4  ;;  %v703_v31 = vsel %vm695_vm6, %v681_v26, %v691_v27  ;;  %v9418_v26 = vor.u32 %v10620_v18, %v9415_v14 }
  0xc9   : > { %720 = vst.msk [vmem:[#allocation2 + $0x1a8] sm:$0xff] %vm11715_vm2, %v703_v31  ;;  %v701_v34 = vsel %vm386_vm0, %v690_v30, %v691_v27  ;;  %v10605_v37 = vld [vmem:[#allocation2 + $0x4c] sm:$0xf0]  ;;  %v886_v27 = vld [vmem:[%s18787_s2 + $0xd8] sm:$0xff]  ;;  %v10616_v30 = vld [vmem:[#allocation2 + $0xac] sm:$0xf] }
  0xca   : > { %v653_v35 = vsel %vm642_vm7, %v11941_v29, %v640_v10  ;;  %v702_v39 = vsel %vm695_vm6, %v679_v28, %v701_v34  ;;  %v9341_v40 = vld [vmem:[#allocation2 + $0x40] sm:$0xf]  ;;  %v888_v28 = vld [vmem:[%s18787_s2 + $0xe8] sm:$0xff] }
  0xcb   : > { %669 = vst.msk [vmem:[#allocation2 + $0x178] sm:$0xff] %vm11715_vm2, %v653_v35  ;;  %1046 = vperm.xlu1 %10890, %v880_v32   ;;  %v9342_v42 = vor.u32 %v10605_v37, %v9341_v40 }
  0xcc   : > { %719 = vst [vmem:[#allocation2 + $0x1a0] sm:$0xff] %v702_v39  ;;  %1056 = vperm.xlu0 %10889, %v882_v33   ;;  %v887_v33 = vld [vmem:[%s18787_s2 + $0xe0] sm:$0xff] }
  0xcd   : > { %1051 = vperm.xlu2 %10891, %v881_v36   ;;  %2105 = vmatpush.bf16.msra.mxu0 %v9342_v42  ;;  %v671_v44 = vpop.permute.xlu1 %670 }
  0xce   : > { %10855 = vmatpush.bf16.msra.mxu2 %v9342_v42  ;;  %v686_v49 = vrot.slane %v671_v44, 4  ;;  %v685_v50 = vpop.permute.xlu0 %684  ;;  %v9394_v42 = vor.u32 %v10615_v21, %v9391_v22 }
  0xcf   : > { %v11964_v51 = vpop.permute.xlu2 %621  ;;  %v693_v55 = vrot.slane %v685_v50, 4 }
  0xd0   : > { %v694_v60 = vsel %vm386_vm0, %v686_v49, %v687_v61  ;;  %v10516_v61 = vld [vmem:[%s18786_s1 + $0x4] sm:$0xf0]  ;;  %v9383_v49 = vld [vmem:[#allocation2 + $0x98] sm:$0xf0] }
  0xd1   : > { %v696_v1 = vsel %vm695_vm6, %v671_v44, %v694_v60  ;;  %v704_v2 = vsel %vm386_vm0, %v692_v54, %v693_v55  ;;  %v706_v59 = vsel %vm695_vm6, %v685_v50, %v693_v55  ;;  %2106 = vmatpush.bf16.msra.mxu0 %v9326_v46  ;;  %v11998_v8 = vor.u32 %v10516_v61, %v8989_v0  ;;  %v10611_v54 = vld [vmem:[#allocation2 + $0x84] sm:$0xf]  ;;  %v9367_v55 = vld [vmem:[#allocation2 + $0x78] sm:$0xf0]  ;;  %v10518_v61 = vld [vmem:[%s18786_s1 + $0x14] sm:$0xf0] }
  0xd2   : > { %10856 = vmatpush.bf16.msra.mxu2 %v9326_v46  ;;  %715 = vst [vmem:[#allocation2 + $0x180] sm:$0xff] %v696_v1  ;;  %v705_v5 = vsel %vm695_vm6, %v11874_v45, %v704_v2  ;;  %v9402_v44 = vor.u32 %v10616_v30, %v9399_v41  ;;  %v891_v60 = vld [vmem:[%s18787_s2 + $0x100] sm:$0xff]  ;;  %v9378_v0 = vor.u32 %v10611_v54, %v9375_v47  ;;  %v10608_v2 = vld [vmem:[#allocation2 + $0x6c] sm:$0xf] }
  0xd3   : > { %721 = vst [vmem:[#allocation2 + $0x1b0] sm:$0xff] %v705_v5  ;;  %1061 = vperm.xlu1 %10890, %v883_v56   ;;  %v9517_v34 = vld [vmem:[#allocation2 + $0x1a0] sm:$0xf]  ;;  %v10647_v35 = vld [vmem:[#allocation2 + $0x1a4] sm:$0xf]  ;;  %v637_v56 = vrot.slane %v11919_v11, 4  ;;  %v9386_v1 = vor.u32 %v10612_v48, %v9383_v49  ;;  %v9370_v18 = vor.u32 %v10608_v2, %v9367_v55 }
  0xd4   : > { %722 = vst.msk [vmem:[#allocation2 + $0x1b8] sm:$0xff] %vm11715_vm2, %v706_v59  ;;  %1071 = vperm.xlu0 %10889, %v885_v62   ;;  %v890_v62 = vld [vmem:[%s18787_s2 + $0xf8] sm:$0xff]  ;;  %v8997_v59 = vld [vmem:[%s18786_s1 + $0x10] sm:$0xf] }
  0xd5   : > { %1066 = vperm.xlu2 %10891, %v884_v43   ;;  %2107 = vmatpush.bf16.msra.mxu0 %v9310_v63  ;;  %v677_v12 = vpop.permute.xlu1 %676  ;;  %v9359_v43 = vld [vmem:[#allocation2 + $0x70] sm:$0xf0]  ;;  %v12061_v21 = vor.u32 %v10518_v61, %v8997_v59  ;;  %v895_v61 = vld [vmem:[%s18787_s2 + $0x120] sm:$0xff] }
  0xd6   : > { %10857 = vmatpush.bf16.msra.mxu2 %v9310_v63  ;;  %v689_v15 = vrot.slane %v677_v12, 4  ;;  %v675_v45 = vpop.permute.xlu0 %674 }
  0xd7   : > { %v12002_v16 = vpop.permute.xlu2 %574  ;;  %v688_v19 = vrot.slane %v675_v45, 4 }
  0xd8   : > { %v585_v20 = vrot.slane %v12002_v16, 4  ;;  %v700_v23 = vsel %vm695_vm6, %v677_v12, %v689_v15  ;;  %2108 = vmatmul.bf16.vlgmr.msra.gmra.mxu0 %v11998_v8 }
  0xd9   : > { %3354 = vmatpush.bf16.msrb.mxu0 %v9434_v7  ;;  %2298 = vmatmul.bf16.vlgmr.msra.gmra.mxu2 %v12000_v9  ;;  %718 = vst.msk [vmem:[#allocation2 + $0x198] sm:$0xff] %vm11715_vm2, %v700_v23  ;;  %v698_v31 = vsel %vm386_vm0, %v688_v19, %v689_v15  ;;  %v9501_v5 = vld [vmem:[#allocation2 + $0x180] sm:$0xf]  ;;  %v10594_v7 = vld [vmem:[%s18786_s1 + $0x274] sm:$0xf0]  ;;  %v9362_v19 = vor.u32 %v10607_v17, %v9359_v43 }
  0xda   : > { %2518 = vmatpush.bf16.msrb.mxu2 %v9426_v6  ;;  %v597_v32 = vsel %vm589_vm8, %v12002_v16, %v585_v20  ;;  %v699_v36 = vsel %vm695_vm6, %v675_v45, %v698_v31  ;;  %v10649_v37 = vld [vmem:[#allocation2 + $0x1ac] sm:$0xf0]  ;;  %v9519_v38 = vld [vmem:[#allocation2 + $0x1b0] sm:$0xf0]  ;;  %v10643_v6 = vld [vmem:[#allocation2 + $0x184] sm:$0xf]  ;;  %v12063_v22 = vor.u32 %v10594_v7, %v9301_v3 }
  0xdb   : > { %614 = vst.msk [vmem:[#allocation2 + $0x128] sm:$0xff] %vm11715_vm2, %v597_v32  ;;  %1076 = vperm.xlu1 %10890, %v886_v27   ;;  %v9518_v39 = vor.u32 %v10649_v37, %v9517_v34  ;;  %v9522_v40 = vor.u32 %v10647_v35, %v9519_v38  ;;  %v10603_v23 = vld [vmem:[#allocation2 + $0x44] sm:$0xf]  ;;  %v9351_v31 = vld [vmem:[#allocation2 + $0x58] sm:$0xf0]  ;;  %v897_v3 = vld [vmem:[%s18787_s2 + $0x130] sm:$0xff] }
  0xdc   : > { %717 = vst [vmem:[#allocation2 + $0x190] sm:$0xff] %v699_v36  ;;  %1086 = vperm.xlu0 %10889, %v888_v28   ;;  %v10599_v34 = vld [vmem:[#allocation2 + $0x24] sm:$0xf]  ;;  %v9327_v35 = vld [vmem:[#allocation2 + $0x30] sm:$0xf0]  ;;  %v896_v16 = vld [vmem:[%s18787_s2 + $0x128] sm:$0xff] }
  0xdd   : > { %3355 = vmatpush.bf16.msrb.mxu0 %v9418_v26  ;;  %1081 = vperm.xlu2 %10891, %v887_v33   ;;  %v630_v46 = vpop.permute.xlu1 %629  ;;  %19320 = vst [vmem:[#allocation5_spill] sm:$0xff] %v12063_v22  ;;  %v10604_v26 = vld [vmem:[#allocation2 + $0x4c] sm:$0xf] }
  0xde   : > { %2519 = vmatpush.bf16.msrb.mxu2 %v9410_v25  ;;  %2311 = vmatpush.bf16.msra.mxu1 %v9518_v39  ;;  %v639_v50 = vrot.slane %v630_v46, 4  ;;  %v628_v52 = vpop.permute.xlu0 %627  ;;  %v9343_v25 = vld [vmem:[#allocation2 + $0x50] sm:$0xf0]  ;;  %v9354_v38 = vor.u32 %v10604_v26, %v9351_v31  ;;  %v892_v39 = vld [vmem:[%s18787_s2 + $0x108] sm:$0xff]  ;;  %v10614_v26 = vld [vmem:[#allocation2 + $0x94] sm:$0xf0] }
  0xdf   : > { %2729 = vmatpush.bf16.msra.mxu3 %v9522_v40  ;;  %v12027_v53 = vpop.permute.xlu2 %564  ;;  %v638_v57 = vrot.slane %v628_v52, 4  ;;  %v9346_v37 = vor.u32 %v10603_v23, %v9343_v25  ;;  %v894_v40 = vld [vmem:[%s18787_s2 + $0x118] sm:$0xff]  ;;  %v900_v31 = vld [vmem:[%s18787_s2 + $0x148] sm:$0xff] }
  0xe0   : > { %v651_v63 = vsel %vm386_vm0, %v639_v50, %v640_v10  ;;  %v10618_v23 = vld [vmem:[#allocation2 + $0xb4] sm:$0xf0] }
  0xe1   : > { %3356 = vmatpush.bf16.msrb.mxu0 %v9402_v44  ;;  %v652_v4 = vsel %vm642_vm7, %v630_v46, %v651_v63  ;;  %v648_v29 = vsel %vm386_vm0, %v637_v56, %v638_v57  ;;  %v650_v10 = vsel %vm642_vm7, %v628_v52, %v638_v57  ;;  %v893_v44 = vld [vmem:[%s18787_s2 + $0x110] sm:$0xff]  ;;  %v9330_v52 = vor.u32 %v10599_v34, %v9327_v35  ;;  %v10595_v56 = vld [vmem:[#allocation2 + $0x4] sm:$0xf]  ;;  %v9429_v63 = vld [vmem:[#allocation2 + $0xe8] sm:$0xf] }
  0xe2   : > { %2520 = vmatpush.bf16.msrb.mxu2 %v9394_v42  ;;  %668 = vst [vmem:[#allocation2 + $0x170] sm:$0xff] %v652_v4  ;;  %v649_v12 = vsel %vm642_vm7, %v11919_v11, %v648_v29  ;;  %v9311_v57 = vld [vmem:[#allocation2 + $0x10] sm:$0xf0]  ;;  %v898_v25 = vld [vmem:[%s18787_s2 + $0x138] sm:$0xff] }
  0xe3   : > { %v10645_v13 = vld [vmem:[#allocation2 + $0x18c] sm:$0xf0]  ;;  %v9503_v14 = vld [vmem:[#allocation2 + $0x190] sm:$0xf0]  ;;  %666 = vst [vmem:[#allocation2 + $0x160] sm:$0xff] %v649_v12  ;;  %1091 = vperm.xlu1 %10890, %v889_v58   ;;  %v9314_v43 = vor.u32 %v10595_v56, %v9311_v57  ;;  %v903_v56 = vld [vmem:[%s18787_s2 + $0x160] sm:$0xff] }
  0xe4   : > { %v9502_v15 = vor.u32 %v10645_v13, %v9501_v5  ;;  %v9506_v45 = vor.u32 %v10643_v6, %v9503_v14  ;;  %667 = vst.msk [vmem:[#allocation2 + $0x168] sm:$0xff] %vm11715_vm2, %v650_v10  ;;  %1101 = vperm.xlu0 %10889, %v891_v60   ;;  %v10520_v6 = vld [vmem:[%s18786_s1 + $0x24] sm:$0xf0]  ;;  %v10622_v12 = vld [vmem:[#allocation2 + $0xd4] sm:$0xf0] }
  0xe5   : > { %3357 = vmatpush.bf16.msrb.mxu0 %v9386_v1  ;;  %1096 = vperm.xlu2 %10891, %v890_v62   ;;  %v620_v11 = vpop.permute.xlu1 %619  ;;  %v635_v1 = vrot.slane %v11964_v51, 4  ;;  %v9413_v13 = vld [vmem:[#allocation2 + $0xc8] sm:$0xf]  ;;  %v902_v57 = vld [vmem:[%s18787_s2 + $0x158] sm:$0xff] }
  0xe6   : > { %2521 = vmatpush.bf16.msrb.mxu2 %v9378_v0  ;;  %2312 = vmatpush.bf16.msra.mxu1 %v9502_v15  ;;  %v634_v27 = vrot.slane %v620_v11, 4  ;;  %v618_v28 = vpop.permute.xlu0 %617  ;;  %v10626_v0 = vld [vmem:[#allocation2 + $0xf4] sm:$0xf0] }
  0xe7   : > { %2730 = vmatpush.bf16.msra.mxu3 %v9506_v45  ;;  %v12065_v30 = vpop.permute.xlu2 %570  ;;  %v633_v32 = vrot.slane %v618_v28, 4  ;;  %v12103_v5 = vor.u32 %v10626_v0, %v9429_v63  ;;  %v12121_v45 = vor.u32 %v10622_v12, %v9413_v13  ;;  %v905_v12 = vld [vmem:[%s18787_s2 + $0x170] sm:$0xff]  ;;  %v10650_v13 = vld [vmem:[#allocation2 + $0x1b4] sm:$0xf0] }
  0xe8   : > { %v583_v33 = vrot.slane %v12065_v30, 4  ;;  %v644_v36 = vsel %vm642_vm7, %v620_v11, %v634_v27  ;;  %2113 = vmatmul.bf16.gmra.mxu0 %v12061_v21 }
  0xe9   : > { %3358 = vmatpush.bf16.msrb.mxu0 %v9370_v18  ;;  %2303 = vmatmul.bf16.gmra.mxu2 %v12063_v22  ;;  %663 = vst.msk [vmem:[#allocation2 + $0x148] sm:$0xff] %vm11715_vm2, %v644_v36  ;;  %v641_v41 = vsel %vm386_vm0, %v633_v32, %v634_v27  ;;  %v10641_v46 = vld [vmem:[#allocation2 + $0x16c] sm:$0xf0]  ;;  %v9487_v47 = vld [vmem:[#allocation2 + $0x170] sm:$0xf0]  ;;  %v899_v32 = vld [vmem:[%s18787_s2 + $0x140] sm:$0xff] }
  0xea   : > { %2522 = vmatpush.bf16.msrb.mxu2 %v9362_v19  ;;  %v594_v42 = vsel %vm589_vm8, %v12065_v30, %v583_v33  ;;  %v643_v48 = vsel %vm642_vm7, %v618_v28, %v641_v41  ;;  %v9485_v49 = vld [vmem:[#allocation2 + $0x160] sm:$0xf]  ;;  %v10639_v50 = vld [vmem:[#allocation2 + $0x164] sm:$0xf]  ;;  %v9381_v41 = vld [vmem:[#allocation2 + $0x88] sm:$0xf] }
  0xeb   : > { %612 = vst.msk [vmem:[#allocation2 + $0x118] sm:$0xff] %vm11715_vm2, %v594_v42  ;;  %1106 = vperm.xlu1 %10890, %v892_v39   ;;  %v9486_v54 = vor.u32 %v10641_v46, %v9485_v49  ;;  %v9490_v55 = vor.u32 %v10639_v50, %v9487_v47  ;;  %v580_v49 = vrot.slane %v12027_v53, 4 }
  0xec   : > { %662 = vst [vmem:[#allocation2 + $0x140] sm:$0xff] %v643_v48  ;;  %1116 = vperm.xlu0 %10889, %v894_v40   ;;  %v10610_v48 = vld [vmem:[#allocation2 + $0x74] sm:$0xf0] }
  0xed   : > { %3359 = vmatpush.bf16.msrb.mxu0 %v9354_v38  ;;  %1111 = vperm.xlu2 %10891, %v893_v44   ;;  %v573_v58 = vpop.permute.xlu1 %572  ;;  %v12143_v44 = vor.u32 %v10614_v26, %v9381_v41  ;;  %v9511_v41 = vld [vmem:[#allocation2 + $0x198] sm:$0xf0] }
  0xee   : > { %2523 = vmatpush.bf16.msrb.mxu2 %v9346_v37  ;;  %2313 = vmatpush.bf16.msra.mxu1 %v9486_v54  ;;  %v584_v60 = vrot.slane %v573_v58, 4  ;;  %v624_v62 = vpop.permute.xlu0 %623  ;;  %v901_v54 = vld [vmem:[%s18787_s2 + $0x150] sm:$0xff] }
  0xef   : > { %2731 = vmatpush.bf16.msra.mxu3 %v9490_v55  ;;  %v636_v2 = vrot.slane %v624_v62, 4 }
  0xf0   : > { %v595_v59 = vsel %vm386_vm0, %v584_v60, %v585_v20  ;;  %v9005_v20 = vld [vmem:[%s18786_s1 + $0x20] sm:$0xf]  ;;  %v9013_v60 = vld [vmem:[%s18786_s1 + $0x30] sm:$0xf] }
  0xf1   : > { %v596_v4 = vsel %vm589_vm8, %v573_v58, %v595_v59  ;;  %v645_v29 = vsel %vm386_vm0, %v635_v1, %v636_v2  ;;  %v647_v10 = vsel %vm642_vm7, %v624_v62, %v636_v2  ;;  %v12119_v14 = vor.u32 %v10520_v6, %v9005_v20  ;;  %v9349_v58 = vld [vmem:[#allocation2 + $0x48] sm:$0xf]  ;;  %v10522_v1 = vld [vmem:[%s18786_s1 + $0x34] sm:$0xf0] }
  0xf2   : > { %2524 = vmatpush.bf16.msrb.mxu2 %v9330_v52  ;;  %613 = vst [vmem:[#allocation2 + $0x120] sm:$0xff] %v596_v4  ;;  %v646_v7 = vsel %vm642_vm7, %v11964_v51, %v645_v29  ;;  %v9397_v51 = vld [vmem:[#allocation2 + $0xa8] sm:$0xf]  ;;  %v10606_v29 = vld [vmem:[#allocation2 + $0x54] sm:$0xf0] }
  0xf3   : > { %664 = vst [vmem:[#allocation2 + $0x150] sm:$0xff] %v646_v7  ;;  %1121 = vperm.xlu1 %10890, %v895_v61   ;;  %v12133_v28 = vor.u32 %v10618_v23, %v9397_v51  ;;  %v9469_v34 = vld [vmem:[#allocation2 + $0x140] sm:$0xf]  ;;  %v10635_v37 = vld [vmem:[#allocation2 + $0x144] sm:$0xf]  ;;  %v904_v7 = vld [vmem:[%s18787_s2 + $0x168] sm:$0xff] }
  0xf4   : > { %665 = vst.msk [vmem:[#allocation2 + $0x158] sm:$0xff] %vm11715_vm2, %v647_v10  ;;  %1131 = vperm.xlu0 %10889, %v897_v3   ;;  %v9365_v52 = vld [vmem:[#allocation2 + $0x68] sm:$0xf]  ;;  %v12175_v10 = vor.u32 %v10522_v1, %v9013_v60  ;;  %v10602_v20 = vld [vmem:[#allocation2 + $0x34] sm:$0xf0] }
  0xf5   : > { %1126 = vperm.xlu2 %10891, %v896_v16   ;;  %v579_v15 = vpop.permute.xlu1 %578  ;;  %v9333_v16 = vld [vmem:[#allocation2 + $0x28] sm:$0xf] }
  0xf6   : > { %2525 = vmatpush.bf16.msrb.mxu2 %v9314_v43  ;;  %v587_v17 = vrot.slane %v579_v15, 4  ;;  %v577_v18 = vpop.permute.xlu0 %576  ;;  %v12180_v6 = vor.u32 %v10602_v20, %v9333_v16 }
  0xf7   : > { %v586_v19 = vrot.slane %v577_v18, 4 }
  0xf8   : > { %v600_v11 = vsel %vm589_vm8, %v579_v15, %v587_v17  ;;  %2118 = vmatmul.bf16.gmra.mxu0 %v12119_v14  ;;  %v9317_v15 = vld [vmem:[#allocation2 + $0x8] sm:$0xf] }
  0xf9   : > { %2526 = vmatmul.bf16.vlgmr.msrb.gmra.mxu2 %v11998_v8  ;;  %616 = vst.msk [vmem:[#allocation2 + $0x138] sm:$0xff] %vm11715_vm2, %v600_v11  ;;  %v598_v27 = vsel %vm386_vm0, %v586_v19, %v587_v17  ;;  %v9453_v63 = vld [vmem:[#allocation2 + $0x120] sm:$0xf]  ;;  %v10631_v0 = vld [vmem:[#allocation2 + $0x124] sm:$0xf] }
  0xfa   : > { %10858 = vmatpush.bf16.msra.mxu2 %v12103_v5  ;;  %v599_v35 = vsel %vm589_vm8, %v577_v18, %v598_v27  ;;  %v10637_v36 = vld [vmem:[#allocation2 + $0x14c] sm:$0xf0]  ;;  %v9471_v38 = vld [vmem:[#allocation2 + $0x150] sm:$0xf0]  ;;  %v10598_v17 = vld [vmem:[#allocation2 + $0x14] sm:$0xf0] }
  0xfb   : > { %615 = vst [vmem:[#allocation2 + $0x130] sm:$0xff] %v599_v35  ;;  %1136 = vperm.xlu1 %10890, %v898_v25   ;;  %v9470_v39 = vor.u32 %v10637_v36, %v9469_v34  ;;  %v9474_v40 = vor.u32 %v10635_v37, %v9471_v38  ;;  %v10515_v18 = vld [vmem:[%s18786_s1 + $0x4] sm:$0xf]  ;;  %v8991_v11 = vld [vmem:[%s18786_s1 + $0x8] sm:$0xf0] }
  0xfc   : > { %1146 = vperm.xlu0 %10889, %v900_v31   ;;  %v9525_v31 = vld [vmem:[#allocation2 + $0x1a8] sm:$0xf]  ;;  %v12202_v35 = vor.u32 %v10515_v18, %v8991_v11  ;;  %v9527_v36 = vld [vmem:[#allocation2 + $0x1b8] sm:$0xf0]  ;;  %v10646_v37 = vld [vmem:[#allocation2 + $0x194] sm:$0xf0] }
  0xfd   : > { %1141 = vperm.xlu2 %10891, %v899_v32   ;;  %2314 = vmatpush.bf16.msra.mxu1 %v9470_v39  ;;  %v569_v42 = vpop.permute.xlu1 %568  ;;  %v12200_v32 = vor.u32 %v10598_v17, %v9317_v15  ;;  %v9526_v34 = vor.u32 %v10650_v13, %v9525_v31  ;;  %v10648_v38 = vld [vmem:[#allocation2 + $0x1ac] sm:$0xf]  ;;  %v10638_v60 = vld [vmem:[#allocation2 + $0x154] sm:$0xf0]  ;;  %v9479_v1 = vld [vmem:[#allocation2 + $0x158] sm:$0xf0] }
  0xfe   : > { %10859 = vmatpush.bf16.msra.mxu2 %v12121_v45  ;;  %2732 = vmatpush.bf16.msra.mxu3 %v9474_v40  ;;  %v582_v46 = vrot.slane %v569_v42, 4  ;;  %v567_v47 = vpop.permute.xlu0 %566  ;;  %v9530_v39 = vor.u32 %v10648_v38, %v9527_v36  ;;  %v9509_v40 = vld [vmem:[#allocation2 + $0x188] sm:$0xf]  ;;  %v10630_v15 = vld [vmem:[#allocation2 + $0x114] sm:$0xf0]  ;;  %v917_v18 = vld [vmem:[%s18787_s2 + $0x1d0] sm:$0xff] }
  0xff   : > { %v581_v50 = vrot.slane %v567_v47, 4  ;;  %v912_v17 = vld [vmem:[%s18787_s2 + $0x1a8] sm:$0xff]  ;;  %v10526_v11 = vld [vmem:[%s18786_s1 + $0x54] sm:$0xf0]  ;;  %v913_v31 = vld [vmem:[%s18787_s2 + $0x1b0] sm:$0xff] }
 0x100   : > { %v592_v55 = vsel %vm386_vm0, %v582_v46, %v583_v33  ;;  %v12165_v33 = vor.u32 %v10610_v48, %v9365_v52  ;;  %v907_v46 = vld [vmem:[%s18787_s2 + $0x180] sm:$0xff]  ;;  %v908_v48 = vld [vmem:[%s18787_s2 + $0x188] sm:$0xff] }
 0x101   : > { %v593_v62 = vsel %vm589_vm8, %v569_v42, %v592_v55  ;;  %v588_v43 = vsel %vm386_vm0, %v580_v49, %v581_v50  ;;  %v591_v30 = vsel %vm589_vm8, %v567_v47, %v581_v50  ;;  %v9510_v42 = vor.u32 %v10646_v37, %v9509_v40  ;;  %v9493_v47 = vld [vmem:[#allocation2 + $0x168] sm:$0xf]  ;;  %v9021_v49 = vld [vmem:[%s18786_s1 + $0x40] sm:$0xf]  ;;  %v10644_v52 = vld [vmem:[#allocation2 + $0x18c] sm:$0xf] }
 0x102   : > { %10860 = vmatpush.bf16.msra.mxu2 %v12133_v28  ;;  %611 = vst [vmem:[#allocation2 + $0x110] sm:$0xff] %v593_v62  ;;  %v590_v2 = vsel %vm589_vm8, %v12027_v53, %v588_v43  ;;  %v10633_v59 = vld [vmem:[#allocation2 + $0x12c] sm:$0xf0]  ;;  %v9455_v61 = vld [vmem:[#allocation2 + $0x130] sm:$0xf0]  ;;  %v12177_v53 = vor.u32 %v10606_v29, %v9349_v58  ;;  %v918_v37 = vld [vmem:[%s18787_s2 + $0x1d8] sm:$0xff] }
 0x103   : > { %609 = vst [vmem:[#allocation2 + $0x100] sm:$0xff] %v590_v2  ;;  %1151 = vperm.xlu1 %10890, %v901_v54   ;;  %v9454_v3 = vor.u32 %v10633_v59, %v9453_v63  ;;  %v9458_v4 = vor.u32 %v10631_v0, %v9455_v61  ;;  %v10524_v50 = vld [vmem:[%s18786_s1 + $0x44] sm:$0xf0]  ;;  %v9514_v54 = vor.u32 %v10644_v52, %v9511_v41  ;;  %v10642_v55 = vld [vmem:[#allocation2 + $0x174] sm:$0xf0]  ;;  %v927_v52 = vld [vmem:[%s18787_s2 + $0x220] sm:$0xff] }
 0x104   : > { %610 = vst.msk [vmem:[#allocation2 + $0x108] sm:$0xff] %vm11715_vm2, %v591_v30  ;;  %1161 = vperm.xlu0 %10889, %v903_v56   ;;  %v9494_v56 = vor.u32 %v10642_v55, %v9493_v47  ;;  %v10640_v58 = vld [vmem:[#allocation2 + $0x16c] sm:$0xf]  ;;  %v9495_v62 = vld [vmem:[#allocation2 + $0x178] sm:$0xf0]  ;;  %vm8921_vm0 = vcmask 1024  }
 0x105   : > { %1156 = vperm.xlu2 %10891, %v902_v57   ;;  %2315 = vmatpush.bf16.msra.mxu1 %v9454_v3  ;;  %v12226_v57 = vor.u32 %v10524_v50, %v9021_v49  ;;  %v9498_v43 = vor.u32 %v10640_v58, %v9495_v62  ;;  %v9477_v30 = vld [vmem:[#allocation2 + $0x148] sm:$0xf]  ;;  %v914_v0 = vld [vmem:[%s18787_s2 + $0x1b8] sm:$0xff]  ;;  %v10517_v59 = vld [vmem:[%s18786_s1 + $0x14] sm:$0xf] }
 0x106   : > { %10861 = vmatpush.bf16.msra.mxu2 %v12143_v44  ;;  %2733 = vmatpush.bf16.msra.mxu3 %v9458_v4  ;;  %v9478_v63 = vor.u32 %v10638_v60, %v9477_v30  ;;  %v10634_v2 = vld [vmem:[#allocation2 + $0x134] sm:$0xf0]  ;;  %v8999_v61 = vld [vmem:[%s18786_s1 + $0x18] sm:$0xf0]  ;;  %v10636_v3 = vld [vmem:[#allocation2 + $0x14c] sm:$0xf] }
 0x107   : > { %v9482_v4 = vor.u32 %v10636_v3, %v9479_v1  ;;  %v9461_v29 = vld [vmem:[#allocation2 + $0x128] sm:$0xf]  ;;  %v12247_v20 = vor.u32 %v10517_v59, %v8999_v61  ;;  %v10521_v47 = vld [vmem:[%s18786_s1 + $0x34] sm:$0xf]  ;;  %v931_v50 = vld [vmem:[%s18787_s2 + $0x240] sm:$0xff] }
 0x108   : > { %2123 = vmatmul.bf16.gmra.mxu0 %v12175_v10  ;;  %v9462_v16 = vor.u32 %v10634_v2, %v9461_v29  ;;  %v928_v38 = vld [vmem:[%s18787_s2 + $0x228] sm:$0xff]  ;;  %v10530_v55 = vld [vmem:[%s18786_s1 + $0x74] sm:$0xf0]  ;;  %v921_v58 = vld [vmem:[%s18787_s2 + $0x1f0] sm:$0xff] }
 0x109   : > { %2531 = vmatmul.bf16.gmra.mxu2 %v12061_v21  ;;  %v10629_v51 = vld [vmem:[#allocation2 + $0x10c] sm:$0xf0]  ;;  %v9439_v19 = vld [vmem:[#allocation2 + $0x110] sm:$0xf0]  ;;  %v10528_v40 = vld [vmem:[%s18786_s1 + $0x64] sm:$0xf0] }
 0x10a   : > { %10862 = vmatpush.bf16.msra.mxu2 %v12165_v33  ;;  %v9437_v23 = vld [vmem:[#allocation2 + $0x100] sm:$0xf]  ;;  %v10627_v25 = vld [vmem:[#allocation2 + $0x104] sm:$0xf]  ;;  %v932_v60 = vld [vmem:[%s18787_s2 + $0x248] sm:$0xff] }
 0x10b   : > { %1166 = vperm.xlu1 %10890, %v904_v7   ;;  %v9438_v26 = vor.u32 %v10629_v51, %v9437_v23  ;;  %v9442_v27 = vor.u32 %v10627_v25, %v9439_v19  ;;  %v9463_v7 = vld [vmem:[#allocation2 + $0x138] sm:$0xf0]  ;;  %v916_v51 = vld [vmem:[%s18787_s2 + $0x1c8] sm:$0xff]  ;;  %v9029_v19 = vld [vmem:[%s18786_s1 + $0x50] sm:$0xf] }
 0x10c   : > { %1176 = vperm.xlu0 %10889, %v906_v24   ;;  %v9445_v24 = vld [vmem:[#allocation2 + $0x108] sm:$0xf]  ;;  %v9447_v23 = vld [vmem:[#allocation2 + $0x118] sm:$0xf0]  ;;  %v10523_v62 = vld [vmem:[%s18786_s1 + $0x44] sm:$0xf] }
 0x10d   : > { %1171 = vperm.xlu2 %10891, %v905_v12   ;;  %2316 = vmatpush.bf16.msra.mxu1 %v9438_v26  ;;  %v10632_v12 = vld [vmem:[#allocation2 + $0x12c] sm:$0xf]  ;;  %v12270_v26 = vor.u32 %v10526_v11, %v9029_v19  ;;  %v929_v59 = vld [vmem:[%s18787_s2 + $0x230] sm:$0xff]  ;;  %v922_v61 = vld [vmem:[%s18787_s2 + $0x1f8] sm:$0xff] }
 0x10e   : > { %10863 = vmatpush.bf16.msra.mxu2 %v12177_v53  ;;  %2734 = vmatpush.bf16.msra.mxu3 %v9442_v27  ;;  %v9466_v13 = vor.u32 %v10632_v12, %v9463_v7  ;;  %v915_v27 = vld [vmem:[%s18787_s2 + $0x1c0] sm:$0xff]  ;;  %v10525_v3 = vld [vmem:[%s18786_s1 + $0x54] sm:$0xf]  ;;  %v930_v12 = vld [vmem:[%s18787_s2 + $0x238] sm:$0xff] }
 0x10f   : > { %v10527_v19 = vld [vmem:[%s18786_s1 + $0x64] sm:$0xf]  ;;  %v9039_v11 = vld [vmem:[%s18786_s1 + $0x68] sm:$0xf0] }
 0x110   : > { %9531 = vmatmul.msk.bf16.vlgmr.msra.gmra.mxu1 %vm1979_vm9, %v12202_v35 }
 0x111   : > { %2936 = vmatpush.bf16.msrb.mxu1 %v12103_v5  ;;  %9571 = vmatmul.msk.bf16.vlgmr.msra.gmra.mxu3 %vm1979_vm9, %v12202_v35  ;;  %v909_v5 = vld [vmem:[%s18787_s2 + $0x190] sm:$0xff] }
 0x112   : > { %10864 = vmatpush.bf16.msra.mxu2 %v12180_v6  ;;  %3147 = vmatpush.bf16.msrb.mxu3 %v9526_v34  ;;  %v9007_v34 = vld [vmem:[%s18786_s1 + $0x28] sm:$0xf0] }
 0x113   : > { %1181 = vperm.xlu1 %10890, %v907_v46   ;;  %v936_v46 = vld [vmem:[%s18787_s2 + $0x268] sm:$0xff] }
 0x114   : > { %1191 = vperm.xlu0 %10889, %v909_v5   ;;  %v924_v5 = vld [vmem:[%s18787_s2 + $0x208] sm:$0xff] }
 0x115   : > { %2937 = vmatpush.bf16.msrb.mxu1 %v12121_v45  ;;  %1186 = vperm.xlu2 %10891, %v908_v48   ;;  %v910_v45 = vld [vmem:[%s18787_s2 + $0x198] sm:$0xff] }
 0x116   : > { %10865 = vmatpush.bf16.msra.mxu2 %v12200_v32  ;;  %3148 = vmatpush.bf16.msrb.mxu3 %v9510_v42  ;;  %v923_v42 = vld [vmem:[%s18787_s2 + $0x200] sm:$0xff]  ;;  %v9015_v48 = vld [vmem:[%s18786_s1 + $0x38] sm:$0xf0] }
 0x117   : > { %v12331_v49 = vor.u32 %v10521_v47, %v9015_v48 }
 0x118   : > { %2128 = vmatmul.bf16.gmra.mxu0 %v12226_v57 }
 0x119   : > { %2938 = vmatpush.bf16.msrb.mxu1 %v12133_v28  ;;  %2536 = vmatmul.bf16.gmra.mxu2 %v12119_v14  ;;  %v911_v28 = vld [vmem:[%s18787_s2 + $0x1a0] sm:$0xff]  ;;  %19322 = vst [vmem:[#allocation7_spill] sm:$0xff] %v12331_v49 }
 0x11a   : > { %3565 = vmatpush.bf16.msrb.mxu2 %v9530_v39  ;;  %3149 = vmatpush.bf16.msrb.mxu3 %v9494_v56  ;;  %v9037_v39 = vld [vmem:[%s18786_s1 + $0x60] sm:$0xf] }
 0x11b   : > { %1196 = vperm.xlu1 %10890, %v910_v45   ;;  %v12312_v41 = vor.u32 %v10528_v40, %v9037_v39  ;;  %v926_v45 = vld [vmem:[%s18787_s2 + $0x218] sm:$0xff] }
 0x11c   : > { %1216 = vperm.xlu0 %10889, %v914_v0   ;;  %v9053_v0 = vld [vmem:[%s18786_s1 + $0x80] sm:$0xf] }
 0x11d   : > { %2939 = vmatpush.bf16.msrb.mxu1 %v12143_v44  ;;  %1201 = vperm.xlu2 %10891, %v911_v28   ;;  %v9446_v44 = vor.u32 %v10630_v15, %v9445_v24  ;;  %v10532_v28 = vld [vmem:[%s18786_s1 + $0x84] sm:$0xf0]  ;;  %v934_v24 = vld [vmem:[%s18787_s2 + $0x258] sm:$0xff] }
 0x11e   : > { %3566 = vmatpush.bf16.msrb.mxu2 %v9514_v54  ;;  %3150 = vmatpush.bf16.msrb.mxu3 %v9478_v63  ;;  %v9045_v54 = vld [vmem:[%s18786_s1 + $0x70] sm:$0xf]  ;;  %v935_v63 = vld [vmem:[%s18787_s2 + $0x260] sm:$0xff]  ;;  %v12383_v1 = vor.u32 %v10532_v28, %v9053_v0  ;;  %v10534_v15 = vld [vmem:[%s18786_s1 + $0x94] sm:$0xf0]  ;;  %v12509_v28 = vpop.permute.xlu1 %946 }
 0x11f   : > { %v12349_v56 = vor.u32 %v10530_v55, %v9045_v54  ;;  %v10531_v54 = vld [vmem:[%s18786_s1 + $0x84] sm:$0xf]  ;;  %v9055_v55 = vld [vmem:[%s18786_s1 + $0x88] sm:$0xf0]  ;;  %19338 = vst [vmem:[#allocation23_spill] sm:$0xff] %v12509_v28 }
 0x120   : > { %9532 = vmatmul.msk.bf16.gmra.mxu1 %vm1979_vm9, %v12247_v20  ;;  %19325 = vst [vmem:[#allocation10_spill] sm:$0xff] %v12383_v1 }
 0x121   : > { %2940 = vmatpush.bf16.msrb.mxu1 %v12165_v33  ;;  %9572 = vmatmul.msk.bf16.gmra.mxu3 %vm1979_vm9, %v12247_v20  ;;  %v10628_v33 = vld [vmem:[#allocation2 + $0x10c] sm:$0xf]  ;;  %19323 = vst [vmem:[#allocation8_spill] sm:$0xff] %v12349_v56 }
 0x122   : > { %3567 = vmatpush.bf16.msrb.mxu2 %v9498_v43  ;;  %3151 = vmatpush.bf16.msrb.mxu3 %v9462_v16  ;;  %v9450_v25 = vor.u32 %v10628_v33, %v9447_v23  ;;  %v9023_v43 = vld [vmem:[%s18786_s1 + $0x48] sm:$0xf0]  ;;  %v937_v33 = vld [vmem:[%s18787_s2 + $0x270] sm:$0xff] }
 0x123   : > { %1206 = vperm.xlu1 %10890, %v912_v17   ;;  %v12365_v30 = vor.u32 %v10523_v62, %v9023_v43  ;;  %v12498_v62 = vor.u32 %v10531_v54, %v9055_v55  ;;  %v9093_v55 = vld [vmem:[%s18786_s1 + $0xd0] sm:$0xf] }
 0x124   : > { %1231 = vperm.xlu0 %10889, %v917_v18  }
 0x125   : > { %2941 = vmatpush.bf16.msrb.mxu1 %v12177_v53  ;;  %1226 = vperm.xlu2 %10891, %v916_v51   ;;  %v920_v53 = vld [vmem:[%s18787_s2 + $0x1e8] sm:$0xff]  ;;  %19324 = vst [vmem:[#allocation9_spill] sm:$0xff] %v12365_v30  ;;  %v938_v51 = vld [vmem:[%s18787_s2 + $0x278] sm:$0xff] }
 0x126   : > { %3568 = vmatpush.bf16.msrb.mxu2 %v9482_v4  ;;  %3152 = vmatpush.bf16.msrb.mxu3 %v9446_v44  ;;  %v9031_v4 = vld [vmem:[%s18786_s1 + $0x58] sm:$0xf0]  ;;  %19337 = vst [vmem:[#allocation22_spill] sm:$0xff] %v12498_v62 }
 0x127   : > { %v12401_v16 = vor.u32 %v10525_v3, %v9031_v4 }
 0x128   : > { %2133 = vmatmul.bf16.gmra.mxu0 %v12270_v26 }
 0x129   : > { %2942 = vmatpush.bf16.msrb.mxu1 %v12180_v6  ;;  %2541 = vmatmul.bf16.gmra.mxu2 %v12175_v10  ;;  %v10519_v6 = vld [vmem:[%s18786_s1 + $0x24] sm:$0xf]  ;;  %19327 = vst [vmem:[#allocation12_spill] sm:$0xff] %v12401_v16 }
 0x12a   : > { %3569 = vmatpush.bf16.msrb.mxu2 %v9466_v13  ;;  %v12291_v36 = vor.u32 %v10519_v6, %v9007_v34  ;;  %v9061_v13 = vld [vmem:[%s18786_s1 + $0x90] sm:$0xf] }
 0x12b   : > { %1221 = vperm.xlu1 %10890, %v915_v27   ;;  %v12421_v17 = vor.u32 %v10534_v15, %v9061_v13 }
 0x12c   : > { %1246 = vperm.xlu0 %10889, %v920_v53   ;;  %19321 = vst [vmem:[#allocation6_spill] sm:$0xff] %v12291_v36  ;;  %v9069_v53 = vld [vmem:[%s18786_s1 + $0xa0] sm:$0xf] }
 0x12d   : > { %2943 = vmatpush.bf16.msrb.mxu1 %v12200_v32  ;;  %1211 = vperm.xlu2 %10891, %v913_v31   ;;  %v919_v32 = vld [vmem:[%s18787_s2 + $0x1e0] sm:$0xff]  ;;  %19329 = vst [vmem:[#allocation14_spill] sm:$0xff] %v12421_v17  ;;  %v10536_v31 = vld [vmem:[%s18786_s1 + $0xa4] sm:$0xf0] }
 0x12e   : > { %3570 = vmatpush.bf16.msrb.mxu2 %v9450_v25  ;;  %v12441_v25 = vor.u32 %v10527_v19, %v9039_v11  ;;  %v12457_v34 = vor.u32 %v10536_v31, %v9069_v53  ;;  %v12529_v19 = vpop.permute.xlu2 %951  ;;  %v9063_v11 = vld [vmem:[%s18786_s1 + $0x98] sm:$0xf0] }
 0x12f   : > { %19340 = vst [vmem:[#allocation25_spill] sm:$0xff] %v12529_v19 }
 0x130   : > { %9533 = vmatmul.msk.bf16.gmra.mxu1 %vm1979_vm9, %v12291_v36  ;;  %19331 = vst [vmem:[#allocation16_spill] sm:$0xff] %v12441_v25 }
 0x131   : > { %9573 = vmatmul.msk.bf16.gmra.mxu3 %vm1979_vm9, %v12291_v36  ;;  %19333 = vst [vmem:[#allocation18_spill] sm:$0xff] %v12457_v34 }
 0x133   : > { %1236 = vperm.xlu1 %10890, %v918_v37  }
 0x134   : > { %1286 = vperm.xlu0 %10889, %v928_v38   ;;  %v10529_v38 = vld [vmem:[%s18786_s1 + $0x74] sm:$0xf] }
 0x135   : > { %1241 = vperm.xlu2 %10891, %v919_v32   ;;  %v9047_v32 = vld [vmem:[%s18786_s1 + $0x78] sm:$0xf0] }
 0x136   : > { %v12469_v40 = vor.u32 %v10529_v38, %v9047_v32 }
 0x138   : > { %2138 = vmatmul.bf16.gmra.mxu0 %v12312_v41  ;;  %19334 = vst [vmem:[#allocation19_spill] sm:$0xff] %v12469_v40 }
 0x139   : > { %2546 = vmatmul.bf16.gmra.mxu2 %v12226_v57 }
 0x13b   : > { %1261 = vperm.xlu1 %10890, %v923_v42  }
 0x13c   : > { %1326 = vperm.xlu0 %10889, %v936_v46   ;;  %v9077_v46 = vld [vmem:[%s18786_s1 + $0xb0] sm:$0xf] }
 0x13d   : > { %1266 = vperm.xlu2 %10891, %v924_v5   ;;  %v10538_v5 = vld [vmem:[%s18786_s1 + $0xb4] sm:$0xf0] }
 0x13e   : > { %v12483_v48 = vor.u32 %v10538_v5, %v9077_v46 }
 0x140   : > { %9534 = vmatmul.msk.bf16.gmra.mxu1 %vm1979_vm9, %v12331_v49  ;;  %19335 = vst [vmem:[#allocation20_spill] sm:$0xff] %v12483_v48 }
 0x141   : > { %9574 = vmatmul.msk.bf16.gmra.mxu3 %vm1979_vm9, %v12331_v49 }
 0x143   : > { %1301 = vperm.xlu1 %10890, %v931_v50  }
 0x145   : > { %1281 = vperm.xlu2 %10891, %v927_v52   ;;  %v12489_v52 = vpop.permute.xlu0 %941 }
 0x146   : > { %19336 = vst [vmem:[#allocation21_spill] sm:$0xff] %v12489_v52 }
 0x148   : > { %2143 = vmatmul.bf16.gmra.mxu0 %v12349_v56 }
 0x149   : > { %2551 = vmatmul.bf16.gmra.mxu2 %v12270_v26 }
 0x14b   : > { %1251 = vperm.xlu1 %10890, %v921_v58  }
 0x14d   : > { %1306 = vperm.xlu2 %10891, %v932_v60  }
 0x150   : > { %9535 = vmatmul.msk.bf16.gmra.mxu1 %vm1979_vm9, %v12365_v30 }
 0x151   : > { %9575 = vmatmul.msk.bf16.gmra.mxu3 %vm1979_vm9, %v12365_v30 }
 0x153   : > { %1276 = vperm.xlu1 %10890, %v926_v45  }
 0x155   : > { %1321 = vperm.xlu2 %10891, %v935_v63   ;;  %v2109_v2 = vpop.f32.mrf.mxu0 }
 0x156   : > { %v2110_v58 = vadd.f32 %v2109_v2, %v12489_v52  ;;  %v9085_v2 = vld [vmem:[%s18786_s1 + $0xc0] sm:$0xf] }
 0x158   : > { %2148 = vmatmul.bf16.gmra.mxu0 %v12383_v1 }
 0x159   : > { %2556 = vmatmul.bf16.gmra.mxu2 %v12312_v41 }
 0x15b   : > { %1291 = vperm.xlu1 %10890, %v929_v59   ;;  %v10540_v59 = vld [vmem:[%s18786_s1 + $0xc4] sm:$0xf0] }
 0x15c   : > { %v12399_v29 = vpop.f32.mrf.mxu2 }
 0x15d   : > { %19326 = vst [vmem:[#allocation11_spill] sm:$0xff] %v12399_v29  ;;  %1256 = vperm.xlu2 %10891, %v922_v61   ;;  %v2111_v7 = vpop.f32.mrf.mxu0 }
 0x15e   : > { %v2112_v61 = vadd.f32 %v2111_v7, %v12509_v28  ;;  %v10533_v7 = vld [vmem:[%s18786_s1 + $0x94] sm:$0xf] }
 0x160   : > { %9536 = vmatmul.msk.bf16.gmra.mxu1 %vm1979_vm9, %v12401_v16 }
 0x161   : > { %9576 = vmatmul.msk.bf16.gmra.mxu3 %vm1979_vm9, %v12401_v16 }
 0x163   : > { %1316 = vperm.xlu1 %10890, %v934_v24  }
 0x164   : > { %v12419_v44 = vpop.f32.mrf.mxu2 }
 0x165   : > { %19328 = vst [vmem:[#allocation13_spill] sm:$0xff] %v12419_v44  ;;  %1296 = vperm.xlu2 %10891, %v930_v12   ;;  %v12423_v18 = vpop.f32.mrf.mxu0  ;;  %v12520_v12 = vor.u32 %v10540_v59, %v9085_v2 }
 0x166   : > { %v2115_v53 = vadd.f32 %v12423_v18, %v12529_v19  ;;  %v12552_v18 = vpop.permute.xlu1 %956 }
 0x167   : > { %19339 = vst [vmem:[#allocation24_spill] sm:$0xff] %v12520_v12 }
 0x168   : > { %2153 = vmatmul.bf16.gmra.mxu0 %v12421_v17  ;;  %19342 = vst [vmem:[#allocation27_spill] sm:$0xff] %v12552_v18 }
 0x169   : > { %2561 = vmatmul.bf16.gmra.mxu2 %v12349_v56 }
 0x16b   : > { %1331 = vperm.xlu1 %10890, %v937_v33  }
 0x16c   : > { %v12439_v23 = vpop.f32.mrf.mxu2 }
 0x16d   : > { %19330 = vst [vmem:[#allocation15_spill] sm:$0xff] %v12439_v23  ;;  %1336 = vperm.xlu2 %10891, %v938_v51   ;;  %v12443_v27 = vpop.f32.mrf.mxu0 }
 0x170   : > { %9537 = vmatmul.msk.bf16.gmra.mxu1 %vm1979_vm9, %v12441_v25 }
 0x171   : > { %9577 = vmatmul.msk.bf16.gmra.mxu3 %vm1979_vm9, %v12441_v25 }
 0x174   : > { %v12455_v6 = vpop.f32.mrf.mxu2 }
 0x175   : > { %19332 = vst [vmem:[#allocation17_spill] sm:$0xff] %v12455_v6  ;;  %v12459_v37 = vpop.f32.mrf.mxu0 }
 0x178   : > { %2158 = vmatmul.bf16.gmra.mxu0 %v12457_v34 }
 0x179   : > { %2566 = vmatmul.bf16.gmra.mxu2 %v12383_v1 }
 0x17c   : > { %v2527_v39 = vpop.f32.mrf.mxu2 }
 0x17d   : > { %v12471_v42 = vpop.f32.mrf.mxu0  ;;  %v2528_v0 = vadd.f32 %v2527_v39, %v12489_v52  ;;  %v12541_v39 = vor.u32 %v10533_v7, %v9063_v11  ;;  %v12573_v7 = vpop.permute.xlu2 %961  ;;  %v9071_v11 = vld [vmem:[%s18786_s1 + $0xa8] sm:$0xf0] }
 0x17e   : > { %19344 = vst [vmem:[#allocation29_spill] sm:$0xff] %v12573_v7 }
 0x17f   : > { %19341 = vst [vmem:[#allocation26_spill] sm:$0xff] %v12541_v39 }
 0x180   : > { %9538 = vmatmul.msk.bf16.gmra.mxu1 %vm1979_vm9, %v12469_v40 }
 0x181   : > { %9578 = vmatmul.msk.bf16.gmra.mxu3 %vm1979_vm9, %v12469_v40 }
 0x184   : > { %v2529_v47 = vpop.f32.mrf.mxu2 }
 0x185   : > { %v12485_v50 = vpop.f32.mrf.mxu0  ;;  %v2530_v51 = vadd.f32 %v2529_v47, %v12509_v28 }
 0x188   : > { %2163 = vmatmul.bf16.gmra.mxu0 %v12483_v48 }
 0x189   : > { %2571 = vmatmul.bf16.gmra.mxu2 %v12421_v17 }
 0x18c   : > { %v2532_v60 = vpop.f32.mrf.mxu2 }
 0x18d   : > { %v12500_v43 = vpop.f32.mrf.mxu0  ;;  %v2318_v45 = vpop.f32.mrf.mxu1  ;;  %v2533_v54 = vadd.f32 %v2532_v60, %v12529_v19 }
 0x18e   : > { %v12502_v63 = vadd.f32 %v2318_v45, %v2110_v58  ;;  %v10542_v58 = vld [vmem:[%s18786_s1 + $0xd4] sm:$0xf0]  ;;  %v2117_v45 = vadd.f32 %v12443_v27, %v12552_v18  ;;  %v10535_v27 = vld [vmem:[%s18786_s1 + $0xa4] sm:$0xf] }
 0x18f   : > { %v12564_v59 = vor.u32 %v10542_v58, %v9093_v55 }
 0x190   : > { %9539 = vmatmul.msk.bf16.gmra.mxu1 %vm1979_vm9, %v12498_v62 }
 0x191   : > { %9579 = vmatmul.msk.bf16.gmra.mxu3 %vm1979_vm9, %v12498_v62  ;;  %19343 = vst [vmem:[#allocation28_spill] sm:$0xff] %v12564_v59 }
 0x194   : > { %v2534_v3 = vpop.f32.mrf.mxu2  ;;  %v2736_v4 = vpop.f32.mrf.mxu3 }
 0x195   : > { %v12518_v24 = vadd.f32 %v2736_v4, %v2528_v0  ;;  %v12522_v13 = vpop.f32.mrf.mxu0  ;;  %v2320_v15 = vpop.f32.mrf.mxu1 }
 0x196   : > { %v12524_v33 = vadd.f32 %v2320_v15, %v2112_v61 }
 0x198   : > { %2168 = vmatmul.bf16.gmra.mxu0 %v12520_v12  ;;  %v3776_v28 = vmax.f32 %v12524_v33, 0.0 }
 0x199   : > { %2576 = vmatmul.bf16.gmra.mxu2 %v12457_v34 }
 0x19c   : > { %v2537_v31 = vpop.f32.mrf.mxu2  ;;  %v2738_v38 = vpop.f32.mrf.mxu3 }
 0x19d   : > { %v12539_v32 = vadd.f32 %v2738_v38, %v2530_v51  ;;  %v12543_v46 = vpop.f32.mrf.mxu0  ;;  %v2323_v5 = vpop.f32.mrf.mxu1  ;;  %v2535_v51 = vadd.f32 %v2534_v3, %v12552_v18 }
 0x19e   : > { %v12545_v47 = vadd.f32 %v2323_v5, %v2115_v53  ;;  %v2120_v53 = vadd.f32 %v12459_v37, %v12573_v7  ;;  %v12595_v37 = vpop.permute.xlu0 %966 }
 0x19f   : > { %19346 = vst [vmem:[#allocation31_spill] sm:$0xff] %v12595_v37 }
 0x1a0   : > { %9540 = vmatmul.msk.bf16.gmra.mxu1 %vm1979_vm9, %v12541_v39 }
 0x1a1   : > { %9580 = vmatmul.msk.bf16.gmra.mxu3 %vm1979_vm9, %v12541_v39 }
 0x1a4   : > { %v2539_v60 = vpop.f32.mrf.mxu2  ;;  %v2741_v0 = vpop.f32.mrf.mxu3 }
 0x1a5   : > { %v12562_v2 = vadd.f32 %v2741_v0, %v2533_v54  ;;  %v12566_v61 = vpop.f32.mrf.mxu0  ;;  %v2325_v4 = vpop.f32.mrf.mxu1  ;;  %v12585_v54 = vor.u32 %v10535_v27, %v9071_v11  ;;  %v3772_v0 = vmax.f32 %v12502_v63, 0.0  ;;  %v10544_v27 = vld [vmem:[%s18786_s1 + $0xe4] sm:$0xf0]  ;;  %v2122_v63 = vadd.f32 %v12471_v42, %v12595_v37 }
 0x1a6   : > { %v12568_v15 = vadd.f32 %v2325_v4, %v2117_v45  ;;  %v2538_v4 = vadd.f32 %v2537_v31, %v12573_v7  ;;  %v3773_v7 = vmax.f32 %v12518_v24, 0.0  ;;  %v2540_v62 = vadd.f32 %v2539_v60, %v12595_v37  ;;  %v9079_v24 = vld [vmem:[%s18786_s1 + $0xb8] sm:$0xf0] }
 0x1a7   : > { %19345 = vst [vmem:[#allocation30_spill] sm:$0xff] %v12585_v54 }
 0x1a8   : > { %2173 = vmatmul.bf16.gmra.mxu0 %v12564_v59 }
 0x1a9   : > { %2581 = vmatmul.bf16.gmra.mxu2 %v12483_v48 }
 0x1ac   : > { %v2542_v38 = vpop.f32.mrf.mxu2  ;;  %v2743_v5 = vpop.f32.mrf.mxu3 }
 0x1ad   : > { %v12583_v3 = vadd.f32 %v2743_v5, %v2535_v51  ;;  %v12587_v55 = vpop.f32.mrf.mxu0  ;;  %v2328_v58 = vpop.f32.mrf.mxu1  ;;  %v9101_v51 = vld [vmem:[%s18786_s1 + $0xe0] sm:$0xf] }
 0x1ae   : > { %v2329_v45 = vadd.f32 %v2328_v58, %v2120_v53  ;;  %v12607_v58 = vor.u32 %v10544_v27, %v9101_v51  ;;  %v3777_v27 = vmax.f32 %v12539_v32, 0.0  ;;  %v10546_v32 = vld [vmem:[%s18786_s1 + $0xf4] sm:$0xf0] }
 0x1b0   : > { %v3788_v18 = vmax.f32 %v2329_v45, 0.0  ;;  %9541 = vmatmul.msk.bf16.gmra.mxu1 %vm1979_vm9, %v12585_v54  ;;  %19347 = vst [vmem:[#allocation32_spill] sm:$0xff] %v12607_v58 }
 0x1b1   : > { %9581 = vmatmul.msk.bf16.gmra.mxu3 %vm1979_vm9, %v12585_v54 }
 0x1b2   : > { %v12605_v31 = vmax.f32 %v3772_v0, %v3788_v18  ;;  %v12618_v18 = vpop.permute.xlu1 %971  ;;  %v10537_v0 = vld [vmem:[%s18786_s1 + $0xb4] sm:$0xf] }
 0x1b3   : > { %19348 = vst [vmem:[#allocation33_spill] sm:$0xff] %v12618_v18  ;;  %v2125_v33 = vadd.f32 %v12485_v50, %v12618_v18  ;;  %v2543_v37 = vadd.f32 %v2542_v38, %v12618_v18 }
 0x1b4   : > { %v2544_v11 = vpop.f32.mrf.mxu2  ;;  %v2746_v53 = vpop.f32.mrf.mxu3 }
 0x1b5   : > { %v2747_v5 = vadd.f32 %v2746_v53, %v2538_v4  ;;  %v12609_v45 = vpop.f32.mrf.mxu0  ;;  %v2330_v54 = vpop.f32.mrf.mxu1 }
 0x1b6   : > { %v2331_v19 = vadd.f32 %v2330_v54, %v2122_v63  ;;  %v12630_v54 = vor.u32 %v10537_v0, %v9079_v24 }
 0x1b7   : > { %v3789_v39 = vmax.f32 %v2747_v5, 0.0  ;;  %v3780_v5 = vmax.f32 %v12545_v47, 0.0 }
 0x1b8   : > { %v3792_v42 = vmax.f32 %v2331_v19, 0.0  ;;  %2178 = vmatmul.bf16.gmra.mxu0 %v12607_v58  ;;  %19349 = vst [vmem:[#allocation34_spill] sm:$0xff] %v12630_v54 }
 0x1b9   : > { %v12614_v52 = vmax.f32 %v3773_v7, %v3789_v39  ;;  %2586 = vmatmul.bf16.gmra.mxu2 %v12520_v12 }
 0x1ba   : > { %v12628_v39 = vmax.f32 %v3776_v28, %v3792_v42  ;;  %v9109_v28 = vld [vmem:[%s18786_s1 + $0xf0] sm:$0xf] }
 0x1bc   : > { %v2547_v19 = vpop.f32.mrf.mxu2  ;;  %v2748_v60 = vpop.f32.mrf.mxu3 }
 0x1bd   : > { %v2749_v7 = vadd.f32 %v2748_v60, %v2540_v62  ;;  %v12632_v4 = vpop.f32.mrf.mxu0  ;;  %v2333_v51 = vpop.f32.mrf.mxu1 }
 0x1be   : > { %v2334_v53 = vadd.f32 %v2333_v51, %v2125_v33  ;;  %v12643_v62 = vpop.permute.xlu2 %976  ;;  %v12655_v33 = vor.u32 %v10546_v32, %v9109_v28  ;;  %v3781_v51 = vmax.f32 %v12562_v2, 0.0  ;;  %v9087_v2 = vld [vmem:[%s18786_s1 + $0xc8] sm:$0xf0] }
 0x1bf   : > { %v3793_v63 = vmax.f32 %v2749_v7, 0.0  ;;  %19350 = vst [vmem:[#allocation35_spill] sm:$0xff] %v12643_v62  ;;  %v2127_v47 = vadd.f32 %v12500_v43, %v12643_v62 }
 0x1c0   : > { %v3796_v50 = vmax.f32 %v2334_v53, 0.0  ;;  %9542 = vmatmul.msk.bf16.gmra.mxu1 %vm1979_vm9, %v12630_v54  ;;  %19351 = vst [vmem:[#allocation36_spill] sm:$0xff] %v12655_v33  ;;  %v3784_v53 = vmax.f32 %v12568_v15, 0.0 }
 0x1c1   : > { %v12637_v6 = vmax.f32 %v3777_v27, %v3793_v63  ;;  %9582 = vmatmul.msk.bf16.gmra.mxu3 %vm1979_vm9, %v12630_v54  ;;  %v2545_v54 = vadd.f32 %v2544_v11, %v12643_v62 }
 0x1c2   : > { %v12653_v38 = vmax.f32 %v3780_v5, %v3796_v50  ;;  %v10539_v5 = vld [vmem:[%s18786_s1 + $0xc4] sm:$0xf] }
 0x1c4   : > { %v2549_v42 = vpop.f32.mrf.mxu2  ;;  %v2751_v0 = vpop.f32.mrf.mxu3 }
 0x1c5   : > { %v2752_v24 = vadd.f32 %v2751_v0, %v2543_v37  ;;  %v12657_v60 = vpop.f32.mrf.mxu0  ;;  %v2335_v7 = vpop.f32.mrf.mxu1 }
 0x1c6   : > { %v2336_v63 = vadd.f32 %v2335_v7, %v2127_v47  ;;  %v12666_v37 = vpop.permute.xlu0 %981  ;;  %v12678_v47 = vor.u32 %v10539_v5, %v9087_v2  ;;  %v3785_v7 = vmax.f32 %v12583_v3, 0.0  ;;  %v10548_v3 = vld [vmem:[%s18786_s1 + $0x104] sm:$0xf0] }
 0x1c7   : > { %v3797_v27 = vmax.f32 %v2752_v24, 0.0  ;;  %19352 = vst [vmem:[#allocation37_spill] sm:$0xff] %v12666_v37  ;;  %v2130_v15 = vadd.f32 %v12522_v13, %v12666_v37  ;;  %v9117_v13 = vld [vmem:[%s18786_s1 + $0x100] sm:$0xf] }
 0x1c8   : > { %v3800_v43 = vmax.f32 %v2336_v63, 0.0  ;;  %2183 = vmatmul.bf16.gmra.mxu0 %v12655_v33  ;;  %19353 = vst [vmem:[#allocation38_spill] sm:$0xff] %v12678_v47  ;;  %v2548_v63 = vadd.f32 %v2547_v19, %v12666_v37  ;;  %v12697_v5 = vor.u32 %v10548_v3, %v9117_v13 }
 0x1c9   : > { %v12662_v18 = vmax.f32 %v3781_v51, %v3797_v27  ;;  %2591 = vmatmul.bf16.gmra.mxu2 %v12564_v59 }
 0x1ca   : > { %v12676_v11 = vmax.f32 %v3784_v53, %v3800_v43  ;;  %19354 = vst [vmem:[#allocation39_spill] sm:$0xff] %v12697_v5 }
 0x1cc   : > { %v2552_v50 = vpop.f32.mrf.mxu2  ;;  %v2753_v28 = vpop.f32.mrf.mxu3 }
 0x1cd   : > { %v2754_v32 = vadd.f32 %v2753_v28, %v2545_v54  ;;  %v12680_v0 = vpop.f32.mrf.mxu0  ;;  %v2338_v24 = vpop.f32.mrf.mxu1 }
 0x1ce   : > { %v2339_v27 = vadd.f32 %v2338_v24, %v2130_v15 }
 0x1cf   : > { %v3801_v51 = vmax.f32 %v2754_v32, 0.0  ;;  %v12703_v32 = vpop.permute.xlu1 %986 }
 0x1d0   : > { %v3804_v59 = vmax.f32 %v2339_v27, 0.0  ;;  %9543 = vmatmul.msk.bf16.gmra.mxu1 %vm1979_vm9, %v12678_v47  ;;  %19355 = vst [vmem:[#allocation40_spill] sm:$0xff] %v12703_v32  ;;  %v2550_v24 = vadd.f32 %v2549_v42, %v12703_v32 }
 0x1d1   : > { %v4105_v62 = vmax.f32 %v3785_v7, %v3801_v51  ;;  %9583 = vmatmul.msk.bf16.gmra.mxu3 %vm1979_vm9, %v12678_v47  ;;  %v9095_v51 = vld [vmem:[%s18786_s1 + $0xd8] sm:$0xf0] }
 0x1d2   : > { %v12695_v54 = vmax.f32 %v12605_v31, %v3804_v59  ;;  %v12709_v59 = vpop.permute.xlu2 %991  ;;  %v10541_v31 = vld [vmem:[%s18786_s1 + $0xd4] sm:$0xf] }
 0x1d3   : > { %19356 = vst [vmem:[#allocation41_spill] sm:$0xff] %v12709_v59  ;;  %v2135_v27 = vadd.f32 %v12566_v61, %v12709_v59  ;;  %v12719_v13 = vor.u32 %v10541_v31, %v9095_v51  ;;  %v2553_v47 = vadd.f32 %v2552_v50, %v12709_v59  ;;  %v9125_v61 = vld [vmem:[%s18786_s1 + $0x110] sm:$0xf] }
 0x1d4   : > { %v2554_v19 = vpop.f32.mrf.mxu2  ;;  %v2756_v53 = vpop.f32.mrf.mxu3 }
 0x1d5   : > { %v2757_v43 = vadd.f32 %v2756_v53, %v2548_v63  ;;  %v12699_v2 = vpop.f32.mrf.mxu0  ;;  %v12701_v15 = vpop.f32.mrf.mxu1  ;;  %19357 = vst [vmem:[#allocation42_spill] sm:$0xff] %v12719_v13 }
 0x1d7   : > { %v3805_v28 = vmax.f32 %v2757_v43, 0.0 }
 0x1d8   : > { %2188 = vmatmul.bf16.gmra.mxu0 %v12697_v5 }
 0x1d9   : > { %v4109_v7 = vmax.f32 %v12614_v52, %v3805_v28  ;;  %2596 = vmatmul.bf16.gmra.mxu2 %v12607_v58 }
 0x1da   : > { %v12784_v40 = vpop.permute.xlu2 %1006 }
 0x1db   : > { %19363 = vst [vmem:[#allocation48_spill] sm:$0xff] %v12784_v40 }
 0x1dc   : > { %v2557_v42 = vpop.f32.mrf.mxu2  ;;  %v2758_v63 = vpop.f32.mrf.mxu3 }
 0x1dd   : > { %v2759_v52 = vadd.f32 %v2758_v63, %v2550_v24  ;;  %v12721_v3 = vpop.f32.mrf.mxu0  ;;  %v2343_v53 = vpop.f32.mrf.mxu1  ;;  %v10550_v24 = vld [vmem:[%s18786_s1 + $0x114] sm:$0xf0] }
 0x1de   : > { %v2344_v28 = vadd.f32 %v2343_v53, %v2135_v27  ;;  %v12738_v27 = vor.u32 %v10550_v24, %v9125_v61 }
 0x1df   : > { %v3809_v43 = vmax.f32 %v2759_v52, 0.0 }
 0x1e0   : > { %v3812_v58 = vmax.f32 %v2344_v28, 0.0  ;;  %9544 = vmatmul.msk.bf16.gmra.mxu1 %vm1979_vm9, %v12719_v13  ;;  %19358 = vst [vmem:[#allocation43_spill] sm:$0xff] %v12738_v27 }
 0x1e1   : > { %v4113_v37 = vmax.f32 %v12637_v6, %v3809_v43  ;;  %9584 = vmatmul.msk.bf16.gmra.mxu3 %vm1979_vm9, %v12719_v13  ;;  %v12744_v43 = vpop.permute.xlu0 %996 }
 0x1e2   : > { %v12736_v31 = vmax.f32 %v12653_v38, %v3812_v58  ;;  %19359 = vst [vmem:[#allocation44_spill] sm:$0xff] %v12744_v43  ;;  %v2555_v28 = vadd.f32 %v2554_v19, %v12744_v43  ;;  %v10543_v58 = vld [vmem:[%s18786_s1 + $0xe4] sm:$0xf]  ;;  %v9103_v38 = vld [vmem:[%s18786_s1 + $0xe8] sm:$0xf0] }
 0x1e4   : > { %v2559_v50 = vpop.f32.mrf.mxu2  ;;  %v2761_v6 = vpop.f32.mrf.mxu3 }
 0x1e5   : > { %v2762_v51 = vadd.f32 %v2761_v6, %v2553_v47  ;;  %v12740_v63 = vpop.f32.mrf.mxu0  ;;  %v12742_v52 = vpop.f32.mrf.mxu1  ;;  %v12756_v6 = vor.u32 %v10543_v58, %v9103_v38  ;;  %v9133_v58 = vld [vmem:[%s18786_s1 + $0x120] sm:$0xf]  ;;  %v2560_v12 = vadd.f32 %v2559_v50, %v12784_v40 }
 0x1e7   : > { %v3813_v53 = vmax.f32 %v2762_v51, 0.0  ;;  %19360 = vst [vmem:[#allocation45_spill] sm:$0xff] %v12756_v6 }
 0x1e8   : > { %2193 = vmatmul.bf16.gmra.mxu0 %v12738_v27 }
 0x1e9   : > { %v4117_v13 = vmax.f32 %v12662_v18, %v3813_v53  ;;  %2601 = vmatmul.bf16.gmra.mxu2 %v12655_v33  ;;  %v12762_v53 = vpop.permute.xlu1 %1001  ;;  %v12806_v29 = vpop.permute.xlu0 %1011 }
 0x1ea   : > { %19361 = vst [vmem:[#allocation46_spill] sm:$0xff] %v12762_v53  ;;  %v2558_v59 = vadd.f32 %v2557_v42, %v12762_v53  ;;  %v10552_v42 = vld [vmem:[%s18786_s1 + $0x124] sm:$0xf0] }
 0x1eb   : > { %19365 = vst [vmem:[#allocation50_spill] sm:$0xff] %v12806_v29 }
 0x1ec   : > { %v2562_v47 = vpop.f32.mrf.mxu2  ;;  %v2763_v61 = vpop.f32.mrf.mxu3 }
 0x1ed   : > { %v2764_v24 = vadd.f32 %v2763_v61, %v2555_v28  ;;  %v12758_v19 = vpop.f32.mrf.mxu0  ;;  %v12760_v18 = vpop.f32.mrf.mxu1  ;;  %v925_v28 = vld [vmem:[%s18787_s2 + $0x210] sm:$0xff]  ;;  %v2563_v25 = vadd.f32 %v2562_v47, %v12806_v29 }
 0x1ee   : > { %1271 = vperm.xlu0 %10889, %v925_v28   ;;  %v10545_v28 = vld [vmem:[%s18786_s1 + $0xf4] sm:$0xf] }
 0x1ef   : > { %v3817_v51 = vmax.f32 %v2764_v24, 0.0  ;;  %v12780_v24 = vor.u32 %v10552_v42, %v9133_v58  ;;  %v9111_v58 = vld [vmem:[%s18786_s1 + $0xf8] sm:$0xf0] }
 0x1f0   : > { %9545 = vmatmul.msk.bf16.gmra.mxu1 %vm1979_vm9, %v12756_v6  ;;  %v12800_v42 = vor.u32 %v10545_v28, %v9111_v58 }
 0x1f1   : > { %v12765_v33 = vmax.f32 %v4105_v62, %v3817_v51  ;;  %9585 = vmatmul.msk.bf16.gmra.mxu3 %vm1979_vm9, %v12756_v6  ;;  %19362 = vst [vmem:[#allocation47_spill] sm:$0xff] %v12780_v24  ;;  %v12827_v16 = vpop.permute.xlu1 %1016 }
 0x1f2   : > { %19364 = vst [vmem:[#allocation49_spill] sm:$0xff] %v12800_v42 }
 0x1f3   : > { %19367 = vst [vmem:[#allocation52_spill] sm:$0xff] %v12827_v16 }
 0x1f4   : > { %v2564_v62 = vpop.f32.mrf.mxu2  ;;  %v2766_v38 = vpop.f32.mrf.mxu3 }
 0x1f5   : > { %v2767_v61 = vadd.f32 %v2766_v38, %v2558_v59  ;;  %v12782_v51 = vpop.f32.mrf.mxu0  ;;  %v2350_v6 = vpop.f32.mrf.mxu1  ;;  %v933_v59 = vld [vmem:[%s18787_s2 + $0x250] sm:$0xff] }
 0x1f6   : > { %1311 = vperm.xlu0 %10889, %v933_v59   ;;  %v10554_v59 = vld [vmem:[%s18786_s1 + $0x134] sm:$0xf0] }
 0x1f7   : > { %v3821_v23 = vmax.f32 %v2767_v61, 0.0 }
 0x1f8   : > { %2198 = vmatmul.bf16.gmra.mxu0 %v12780_v24 }
 0x1f9   : > { %v12787_v44 = vmax.f32 %v4109_v7, %v3821_v23  ;;  %2606 = vmatmul.bf16.gmra.mxu2 %v12697_v5 }
 0x1fc   : > { %v2567_v50 = vpop.f32.mrf.mxu2  ;;  %v2768_v23 = vpop.f32.mrf.mxu3 }
 0x1fd   : > { %v2769_v7 = vadd.f32 %v2768_v23, %v2560_v12  ;;  %v12802_v38 = vpop.f32.mrf.mxu0  ;;  %v12804_v61 = vpop.f32.mrf.mxu1  ;;  %v9141_v12 = vld [vmem:[%s18786_s1 + $0x130] sm:$0xf] }
 0x1fe   : > { %v12821_v47 = vor.u32 %v10554_v59, %v9141_v12  ;;  %v9119_v12 = vld [vmem:[%s18786_s1 + $0x108] sm:$0xf0]  ;;  %v2132_v59 = vadd.f32 %v12543_v46, %v12703_v32 }
 0x1ff   : > { %v3825_v5 = vmax.f32 %v2769_v7, 0.0 }
 0x200   : > { %9546 = vmatmul.msk.bf16.gmra.mxu1 %vm1979_vm9, %v12800_v42  ;;  %19366 = vst [vmem:[#allocation51_spill] sm:$0xff] %v12821_v47  ;;  %v2341_v32 = vadd.f32 %v12701_v15, %v2132_v59  ;;  %v10556_v15 = vld [vmem:[%s18786_s1 + $0x144] sm:$0xf0] }
 0x201   : > { %v12809_v48 = vmax.f32 %v4113_v37, %v3825_v5  ;;  %9586 = vmatmul.msk.bf16.gmra.mxu3 %vm1979_vm9, %v12800_v42  ;;  %v2565_v42 = vadd.f32 %v2564_v62, %v12827_v16  ;;  %v2140_v62 = vadd.f32 %v12609_v45, %v12762_v53 }
 0x203   : > { %v2349_v53 = vadd.f32 %v12760_v18, %v2140_v62 }
 0x204   : > { %v2569_v28 = vpop.f32.mrf.mxu2  ;;  %v2771_v58 = vpop.f32.mrf.mxu3 }
 0x205   : > { %v2772_v23 = vadd.f32 %v2771_v58, %v2563_v25  ;;  %v12823_v37 = vpop.f32.mrf.mxu0  ;;  %v12825_v5 = vpop.f32.mrf.mxu1  ;;  %v10547_v25 = vld [vmem:[%s18786_s1 + $0x104] sm:$0xf]  ;;  %v3820_v18 = vmax.f32 %v2349_v53, 0.0 }
 0x206   : > { %v12850_v30 = vor.u32 %v10547_v25, %v9119_v12 }
 0x207   : > { %v3829_v7 = vmax.f32 %v2772_v23, 0.0  ;;  %v12846_v23 = vpop.permute.xlu2 %1021 }
 0x208   : > { %2203 = vmatmul.bf16.gmra.mxu0 %v12821_v47  ;;  %19368 = vst [vmem:[#allocation53_spill] sm:$0xff] %v12846_v23  ;;  %v2150_v46 = vadd.f32 %v12699_v2, %v12846_v23  ;;  %v2568_v36 = vadd.f32 %v2567_v50, %v12846_v23  ;;  %v9149_v2 = vld [vmem:[%s18786_s1 + $0x140] sm:$0xf]  ;;  %v4124_v23 = vmax.f32 %v12695_v54, %v3820_v18 }
 0x209   : > { %v12830_v34 = vmax.f32 %v4117_v13, %v3829_v7  ;;  %2611 = vmatmul.bf16.gmra.mxu2 %v12738_v27  ;;  %v2142_v7 = vadd.f32 %v12632_v4, %v12784_v40  ;;  %19369 = vst [vmem:[#allocation54_spill] sm:$0xff] %v12850_v30  ;;  %v12866_v4 = vpop.permute.xlu0 %1026  ;;  %v12878_v59 = vor.u32 %v10556_v15, %v9149_v2 }
 0x20a   : > { %19370 = vst [vmem:[#allocation55_spill] sm:$0xff] %v12866_v4  ;;  %v2137_v54 = vadd.f32 %v12587_v55, %v12744_v43 }
 0x20b   : > { %v2351_v1 = vadd.f32 %v2350_v6, %v2142_v7  ;;  %19371 = vst [vmem:[#allocation56_spill] sm:$0xff] %v12878_v59 }
 0x20c   : > { %v12844_v13 = vpop.f32.mrf.mxu2  ;;  %v2773_v58 = vpop.f32.mrf.mxu3 }
 0x20d   : > { %v2774_v27 = vadd.f32 %v2773_v58, %v2565_v42  ;;  %v12852_v17 = vpop.f32.mrf.mxu0  ;;  %v2358_v49 = vpop.f32.mrf.mxu1  ;;  %v3824_v25 = vmax.f32 %v2351_v1, 0.0 }
 0x20e   : > { %v2359_v6 = vadd.f32 %v2358_v49, %v2150_v46  ;;  %v2570_v49 = vadd.f32 %v2569_v28, %v12866_v4  ;;  %v2147_v46 = vadd.f32 %v12680_v0, %v12827_v16 }
 0x20f   : > { %v3833_v45 = vmax.f32 %v2774_v27, 0.0  ;;  %v3808_v27 = vmax.f32 %v2341_v32, 0.0 }
 0x210   : > { %9547 = vmatmul.msk.bf16.gmra.mxu1 %vm1979_vm9, %v12850_v30 }
 0x211   : > { %v12860_v56 = vmax.f32 %v12765_v33, %v3833_v45  ;;  %9587 = vmatmul.msk.bf16.gmra.mxu3 %vm1979_vm9, %v12850_v30  ;;  %v2152_v33 = vadd.f32 %v12721_v3, %v12866_v4  ;;  %v4112_v7 = vmax.f32 %v12628_v39, %v3808_v27  ;;  %v3836_v45 = vmax.f32 %v2359_v6, 0.0  ;;  %v9127_v39 = vld [vmem:[%s18786_s1 + $0x118] sm:$0xf0]  ;;  %v12908_v27 = vpop.permute.xlu1 %1031 }
 0x212   : > { %19375 = vst [vmem:[#allocation60_spill] sm:$0xff] %v12908_v27 }
 0x213   : > { %v4128_v3 = vmax.f32 %v4112_v7, %v3824_v25  ;;  %v12898_v28 = vmax.f32 %v4124_v23, %v3836_v45 }
 0x214   : > { %v12876_v50 = vpop.f32.mrf.mxu2  ;;  %v2776_v42 = vpop.f32.mrf.mxu3 }
 0x215   : > { %v2777_v12 = vadd.f32 %v2776_v42, %v2568_v36  ;;  %v12880_v62 = vpop.f32.mrf.mxu0  ;;  %v2360_v58 = vpop.f32.mrf.mxu1  ;;  %v10549_v36 = vld [vmem:[%s18786_s1 + $0x114] sm:$0xf]  ;;  %19373 = vst [vmem:[#allocation58_spill] sm:$0xff] %v12898_v28  ;;  %v2346_v42 = vadd.f32 %v12742_v52, %v2137_v54  ;;  %v9157_v52 = vld [vmem:[%s18786_s1 + $0x150] sm:$0xf] }
 0x216   : > { %v2361_v32 = vadd.f32 %v2360_v58, %v2152_v33  ;;  %v12912_v55 = vor.u32 %v10549_v36, %v9127_v39  ;;  %v2573_v58 = vadd.f32 %v12844_v13, %v12908_v27 }
 0x217   : > { %v3837_v30 = vmax.f32 %v2777_v12, 0.0  ;;  %v2356_v12 = vadd.f32 %v12825_v5, %v2147_v46  ;;  %v3816_v5 = vmax.f32 %v2346_v42, 0.0 }
 0x218   : > { %v3840_v1 = vmax.f32 %v2361_v32, 0.0  ;;  %2208 = vmatmul.bf16.gmra.mxu0 %v12878_v59  ;;  %19376 = vst [vmem:[#allocation61_spill] sm:$0xff] %v12912_v55 }
 0x219   : > { %v12886_v53 = vmax.f32 %v12787_v44, %v3837_v30  ;;  %2616 = vmatmul.bf16.gmra.mxu2 %v12780_v24  ;;  %v2145_v44 = vadd.f32 %v12657_v60, %v12806_v29  ;;  %v2155_v60 = vadd.f32 %v12740_v63, %v12908_v27  ;;  %v12933_v63 = vpop.permute.xlu2 %1036 }
 0x21a   : > { %v12900_v30 = vmax.f32 %v4128_v3, %v3840_v1  ;;  %19378 = vst [vmem:[#allocation63_spill] sm:$0xff] %v12933_v63 }
 0x21b   : > { %19372 = vst [vmem:[#allocation57_spill] sm:$0xff] %v12886_v53  ;;  %v2354_v25 = vadd.f32 %v12804_v61, %v2145_v44  ;;  %v10558_v61 = vld [vmem:[%s18786_s1 + $0x154] sm:$0xf0]  ;;  %v4120_v44 = vmax.f32 %v12676_v11, %v3816_v5  ;;  %v12957_v11 = vpop.permute.xlu0 %1041 }
 0x21c   : > { %19374 = vst [vmem:[#allocation59_spill] sm:$0xff] %v12900_v30  ;;  %v12906_v2 = vpop.f32.mrf.mxu2  ;;  %v2778_v15 = vpop.f32.mrf.mxu3  ;;  %v10907_v6 = vpack.i.bf16 %v12900_v30, %v12898_v28  ;;  %v12943_v36 = vor.u32 %v10558_v61, %v9157_v52 }
 0x21d   : > { %v2779_v33 = vadd.f32 %v2778_v15, %v2570_v49  ;;  %v12914_v23 = vpop.f32.mrf.mxu0  ;;  %v2363_v18 = vpop.f32.mrf.mxu1  ;;  %v3828_v45 = vmax.f32 %v2354_v25, 0.0  ;;  %v3832_v49 = vmax.f32 %v2356_v12, 0.0  ;;  %19381 = vst [vmem:[#allocation66_spill] sm:$0xff] %v12957_v11 }
 0x21e   : > { %10908 = vrot.lane.b32.xlu0 %v10907_v6, %s11552_s24  ;;  %10898 = vrot.lane.b32.xlu2 %v10907_v6, %s11547_s20  ;;  %v2364_v13 = vadd.f32 %v2363_v18, %v2155_v60  ;;  %19379 = vst [vmem:[#allocation64_spill] sm:$0xff] %v12943_v36  ;;  %v2575_v18 = vadd.f32 %v12876_v50, %v12933_v63 }
 0x21f   : > { %v3841_v0 = vmax.f32 %v2779_v33, 0.0  ;;  %10893 = vrot.lane.b32.xlu1 %v10907_v6, %s11548_s21  ;;  %v4132_v42 = vmax.f32 %v12736_v31, %v3828_v45  ;;  %v10551_v31 = vld [vmem:[%s18786_s1 + $0x124] sm:$0xf]  ;;  %v2160_v50 = vadd.f32 %v12782_v51, %v12957_v11  ;;  %v2578_v51 = vadd.f32 %v12906_v2, %v12957_v11 }
 0x220   : > { %9548 = vmatmul.msk.bf16.gmra.mxu1 %vm1979_vm9, %v12912_v55  ;;  %v3844_v46 = vmax.f32 %v2364_v13, 0.0 }
 0x221   : > { %v12927_v7 = vmax.f32 %v12809_v48, %v3841_v0  ;;  %9588 = vmatmul.msk.bf16.gmra.mxu3 %vm1979_vm9, %v12912_v55  ;;  %v2157_v48 = vadd.f32 %v12758_v19, %v12933_v63  ;;  %v4136_v19 = vmax.f32 %v4120_v44, %v3832_v49  ;;  %v10560_v44 = vld [vmem:[%s18786_s1 + $0x164] sm:$0xf0] }
 0x223   : > { %19377 = vst [vmem:[#allocation62_spill] sm:$0xff] %v12927_v7 }
 0x224   : > { %v2579_v32 = vpop.f32.mrf.mxu2  ;;  %v2781_v3 = vpop.f32.mrf.mxu3 }
 0x225   : > { %v2782_v1 = vadd.f32 %v2781_v3, %v2573_v58  ;;  %v12945_v39 = vpop.f32.mrf.mxu0  ;;  %v2365_v54 = vpop.f32.mrf.mxu1 }
 0x226   : > { %v2366_v33 = vadd.f32 %v2365_v54, %v2157_v48  ;;  %v9165_v54 = vld [vmem:[%s18786_s1 + $0x160] sm:$0xf] }
 0x227   : > { %v3845_v15 = vmax.f32 %v2782_v1, 0.0  ;;  %10903 = vrot.lane.b32.xlu1 %v10907_v6, %s11546_s19  ;;  %v9135_v6 = vld [vmem:[%s18786_s1 + $0x128] sm:$0xf0]  ;;  %v12991_v1 = vpop.permute.xlu1 %1046 }
 0x228   : > { %v3848_v0 = vmax.f32 %v2366_v33, 0.0  ;;  %2213 = vmatmul.bf16.gmra.mxu0 %v12943_v36  ;;  %v12973_v5 = vor.u32 %v10551_v31, %v9135_v6  ;;  %19386 = vst [vmem:[#allocation71_spill] sm:$0xff] %v12991_v1  ;;  %v13003_v33 = vor.u32 %v10560_v44, %v9165_v54  ;;  %v10553_v31 = vld [vmem:[%s18786_s1 + $0x134] sm:$0xf]  ;;  %v9143_v6 = vld [vmem:[%s18786_s1 + $0x138] sm:$0xf0] }
 0x229   : > { %v12953_v60 = vmax.f32 %v12830_v34, %v3845_v15  ;;  %2621 = vmatmul.bf16.gmra.mxu2 %v12821_v47  ;;  %v12967_v34 = vmax.f32 %v4132_v42, %v3844_v46  ;;  %v9173_v44 = vld [vmem:[%s18786_s1 + $0x170] sm:$0xf] }
 0x22a   : > { %v12969_v25 = vmax.f32 %v4136_v19, %v3848_v0  ;;  %19384 = vst [vmem:[#allocation69_spill] sm:$0xff] %v12973_v5  ;;  %v2580_v0 = vadd.f32 %v2579_v32, %v12991_v1 }
 0x22b   : > { %19380 = vst [vmem:[#allocation65_spill] sm:$0xff] %v12953_v60 }
 0x22c   : > { %19382 = vst [vmem:[#allocation67_spill] sm:$0xff] %v12967_v34  ;;  %v2582_v12 = vpop.f32.mrf.mxu2  ;;  %v2783_v58 = vpop.f32.mrf.mxu3  ;;  %v10917_v61 = vpack.i.bf16 %v12969_v25, %v12967_v34 }
 0x22d   : > { %19383 = vst [vmem:[#allocation68_spill] sm:$0xff] %v12969_v25  ;;  %v2784_v52 = vadd.f32 %v2783_v58, %v2575_v18  ;;  %v12975_v48 = vpop.f32.mrf.mxu0  ;;  %v2368_v13 = vpop.f32.mrf.mxu1 }
 0x22e   : > { %v12977_v3 = vadd.f32 %v2368_v13, %v2160_v50  ;;  %10918 = vrot.lane.b32.xlu0 %v10917_v61, %s11547_s20  ;;  %10913 = vrot.lane.b32.xlu2 %v10917_v61, %s11548_s21  ;;  %19387 = vst [vmem:[#allocation72_spill] sm:$0xff] %v13003_v33 }
 0x22f   : > { %v3849_v45 = vmax.f32 %v2784_v52, 0.0  ;;  %10928 = vrot.lane.b32.xlu1 %v10917_v61, %s11552_s24  ;;  %v13057_v34 = vpop.permute.xlu1 %1061 }
 0x230   : > { %9549 = vmatmul.msk.bf16.gmra.mxu1 %vm1979_vm9, %v12973_v5  ;;  %19392 = vst [vmem:[#allocation77_spill] sm:$0xff] %v13057_v34  ;;  %v3852_v30 = vmax.f32 %v12977_v3, 0.0 }
 0x231   : > { %v12985_v49 = vmax.f32 %v12860_v56, %v3849_v45  ;;  %9589 = vmatmul.msk.bf16.gmra.mxu3 %vm1979_vm9, %v12973_v5  ;;  %v2162_v56 = vadd.f32 %v12802_v38, %v12991_v1  ;;  %v13013_v38 = vpop.permute.xlu2 %1051 }
 0x232   : > { %19388 = vst [vmem:[#allocation73_spill] sm:$0xff] %v13013_v38  ;;  %v2165_v50 = vadd.f32 %v12823_v37, %v13013_v38  ;;  %v2583_v54 = vadd.f32 %v2582_v12, %v13013_v38  ;;  %v13036_v37 = vpop.permute.xlu0 %1056 }
 0x233   : > { %19385 = vst [vmem:[#allocation70_spill] sm:$0xff] %v12985_v49 }
 0x234   : > { %v2584_v2 = vpop.f32.mrf.mxu2  ;;  %v2786_v46 = vpop.f32.mrf.mxu3  ;;  %19390 = vst [vmem:[#allocation75_spill] sm:$0xff] %v13036_v37 }
 0x235   : > { %v13001_v15 = vadd.f32 %v2786_v46, %v2578_v51  ;;  %v13005_v42 = vpop.f32.mrf.mxu0  ;;  %v2370_v19 = vpop.f32.mrf.mxu1  ;;  %v2167_v46 = vadd.f32 %v12852_v17, %v13036_v37  ;;  %v10555_v17 = vld [vmem:[%s18786_s1 + $0x144] sm:$0xf] }
 0x236   : > { %v13007_v18 = vadd.f32 %v2370_v19, %v2162_v56  ;;  %10923 = vrot.lane.b32.xlu2 %v10917_v61, %s11546_s19  ;;  %v13025_v61 = vor.u32 %v10553_v31, %v9143_v6  ;;  %v10562_v56 = vld [vmem:[%s18786_s1 + $0x174] sm:$0xf0] }
 0x237   : > { %v13048_v31 = vor.u32 %v10562_v56, %v9173_v44  ;;  %v2170_v44 = vadd.f32 %v12880_v62, %v13057_v34 }
 0x238   : > { %2218 = vmatmul.bf16.gmra.mxu0 %v13003_v33  ;;  %19389 = vst [vmem:[#allocation74_spill] sm:$0xff] %v13025_v61  ;;  %v3856_v49 = vmax.f32 %v13007_v18, 0.0 }
 0x239   : > { %2626 = vmatmul.bf16.gmra.mxu2 %v12878_v59  ;;  %19391 = vst [vmem:[#allocation76_spill] sm:$0xff] %v13048_v31  ;;  %v13079_v62 = vpop.permute.xlu2 %1066 }
 0x23a   : > { %19394 = vst [vmem:[#allocation79_spill] sm:$0xff] %v13079_v62  ;;  %v2172_v3 = vadd.f32 %v12914_v23, %v13079_v62  ;;  %v13102_v23 = vpop.permute.xlu0 %1071 }
 0x23b   : > { %19396 = vst [vmem:[#allocation81_spill] sm:$0xff] %v13102_v23  ;;  %v2175_v18 = vadd.f32 %v12945_v39, %v13102_v23 }
 0x23c   : > { %v2587_v58 = vpop.f32.mrf.mxu2  ;;  %v2788_v52 = vpop.f32.mrf.mxu3 }
 0x23d   : > { %v13023_v32 = vadd.f32 %v2788_v52, %v2580_v0  ;;  %v13027_v13 = vpop.f32.mrf.mxu0  ;;  %v2373_v45 = vpop.f32.mrf.mxu1 }
 0x23e   : > { %v13029_v51 = vadd.f32 %v2373_v45, %v2165_v50  ;;  %v2585_v45 = vadd.f32 %v2584_v2, %v13036_v37  ;;  %v2588_v37 = vadd.f32 %v2587_v58, %v13057_v34  ;;  %v3853_v34 = vmax.f32 %v13001_v15, 0.0  ;;  %v9159_v15 = vld [vmem:[%s18786_s1 + $0x158] sm:$0xf0] }
 0x240   : > { %9550 = vmatmul.msk.bf16.gmra.mxu1 %vm1979_vm9, %v13025_v61 }
 0x241   : > { %9590 = vmatmul.msk.bf16.gmra.mxu3 %vm1979_vm9, %v13025_v61 }
 0x244   : > { %v2589_v12 = vpop.f32.mrf.mxu2  ;;  %v2791_v19 = vpop.f32.mrf.mxu3 }
 0x245   : > { %v13046_v0 = vadd.f32 %v2791_v19, %v2583_v54  ;;  %v13050_v6 = vpop.f32.mrf.mxu0  ;;  %v2375_v50 = vpop.f32.mrf.mxu1  ;;  %v9151_v54 = vld [vmem:[%s18786_s1 + $0x148] sm:$0xf0]  ;;  %v2590_v1 = vadd.f32 %v2589_v12, %v13079_v62 }
 0x246   : > { %v13052_v52 = vadd.f32 %v2375_v50, %v2167_v46  ;;  %v13069_v19 = vor.u32 %v10555_v17, %v9151_v54 }
 0x248   : > { %2223 = vmatmul.bf16.gmra.mxu0 %v13048_v31  ;;  %19393 = vst [vmem:[#allocation78_spill] sm:$0xff] %v13069_v19 }
 0x249   : > { %2631 = vmatmul.bf16.gmra.mxu2 %v12943_v36 }
 0x24c   : > { %v2592_v56 = vpop.f32.mrf.mxu2  ;;  %v2793_v46 = vpop.f32.mrf.mxu3 }
 0x24d   : > { %v13067_v2 = vadd.f32 %v2793_v46, %v2585_v45  ;;  %v13071_v50 = vpop.f32.mrf.mxu0  ;;  %v2378_v25 = vpop.f32.mrf.mxu1  ;;  %v9181_v45 = vld [vmem:[%s18786_s1 + $0x180] sm:$0xf]  ;;  %v2593_v62 = vadd.f32 %v2592_v56, %v13102_v23 }
 0x24e   : > { %v2379_v28 = vadd.f32 %v2378_v25, %v2170_v44  ;;  %v10564_v25 = vld [vmem:[%s18786_s1 + $0x184] sm:$0xf0] }
 0x24f   : > { %v13091_v44 = vor.u32 %v10564_v25, %v9181_v45  ;;  %v3857_v25 = vmax.f32 %v13023_v32, 0.0  ;;  %v10566_v32 = vld [vmem:[%s18786_s1 + $0x194] sm:$0xf0] }
 0x250   : > { %v3868_v61 = vmax.f32 %v2379_v28, 0.0  ;;  %9551 = vmatmul.msk.bf16.gmra.mxu1 %vm1979_vm9, %v13069_v19 }
 0x251   : > { %9591 = vmatmul.msk.bf16.gmra.mxu3 %vm1979_vm9, %v13069_v19  ;;  %19395 = vst [vmem:[#allocation80_spill] sm:$0xff] %v13091_v44 }
 0x252   : > { %v13089_v28 = vmax.f32 %v3852_v30, %v3868_v61  ;;  %v10557_v61 = vld [vmem:[%s18786_s1 + $0x154] sm:$0xf] }
 0x253   : > { %v13114_v12 = vor.u32 %v10557_v61, %v9159_v15 }
 0x254   : > { %v2594_v58 = vpop.f32.mrf.mxu2  ;;  %v2796_v17 = vpop.f32.mrf.mxu3 }
 0x255   : > { %v2797_v54 = vadd.f32 %v2796_v17, %v2588_v37  ;;  %v13093_v46 = vpop.f32.mrf.mxu0  ;;  %v2380_v19 = vpop.f32.mrf.mxu1  ;;  %19397 = vst [vmem:[#allocation82_spill] sm:$0xff] %v13114_v12 }
 0x256   : > { %v2381_v60 = vadd.f32 %v2380_v19, %v2172_v3 }
 0x257   : > { %v3869_v38 = vmax.f32 %v2797_v54, 0.0  ;;  %v3860_v54 = vmax.f32 %v13029_v51, 0.0 }
 0x258   : > { %v3872_v30 = vmax.f32 %v2381_v60, 0.0  ;;  %2228 = vmatmul.bf16.gmra.mxu0 %v13091_v44 }
 0x259   : > { %v13098_v63 = vmax.f32 %v3853_v34, %v3869_v38  ;;  %2636 = vmatmul.bf16.gmra.mxu2 %v13003_v33 }
 0x25a   : > { %v13112_v34 = vmax.f32 %v3856_v49, %v3872_v30  ;;  %v13127_v49 = vpop.permute.xlu1 %1076 }
 0x25b   : > { %19398 = vst [vmem:[#allocation83_spill] sm:$0xff] %v13127_v49  ;;  %v2177_v51 = vadd.f32 %v12975_v48, %v13127_v49 }
 0x25c   : > { %v2597_v60 = vpop.f32.mrf.mxu2  ;;  %v2798_v38 = vpop.f32.mrf.mxu3 }
 0x25d   : > { %v2799_v37 = vadd.f32 %v2798_v38, %v2590_v1  ;;  %v13116_v19 = vpop.f32.mrf.mxu0  ;;  %v2383_v45 = vpop.f32.mrf.mxu1  ;;  %v9189_v1 = vld [vmem:[%s18786_s1 + $0x190] sm:$0xf] }
 0x25e   : > { %v2384_v17 = vadd.f32 %v2383_v45, %v2175_v18  ;;  %v13139_v18 = vor.u32 %v10566_v32, %v9189_v1  ;;  %v3861_v45 = vmax.f32 %v13046_v0, 0.0  ;;  %v9167_v0 = vld [vmem:[%s18786_s1 + $0x168] sm:$0xf0] }
 0x25f   : > { %v3873_v3 = vmax.f32 %v2799_v37, 0.0 }
 0x260   : > { %v3876_v39 = vmax.f32 %v2384_v17, 0.0  ;;  %9552 = vmatmul.msk.bf16.gmra.mxu1 %vm1979_vm9, %v13114_v12  ;;  %19399 = vst [vmem:[#allocation84_spill] sm:$0xff] %v13139_v18  ;;  %v3864_v17 = vmax.f32 %v13052_v52, 0.0 }
 0x261   : > { %v13121_v5 = vmax.f32 %v3857_v25, %v3873_v3  ;;  %9592 = vmatmul.msk.bf16.gmra.mxu3 %vm1979_vm9, %v13114_v12  ;;  %v2595_v12 = vadd.f32 %v2594_v58, %v13127_v49 }
 0x262   : > { %v13137_v56 = vmax.f32 %v3860_v54, %v3876_v39  ;;  %v10559_v54 = vld [vmem:[%s18786_s1 + $0x164] sm:$0xf] }
 0x264   : > { %v2599_v30 = vpop.f32.mrf.mxu2  ;;  %v2801_v61 = vpop.f32.mrf.mxu3 }
 0x265   : > { %v2802_v15 = vadd.f32 %v2801_v61, %v2593_v62  ;;  %v13141_v38 = vpop.f32.mrf.mxu0  ;;  %v2385_v37 = vpop.f32.mrf.mxu1 }
 0x266   : > { %v2386_v3 = vadd.f32 %v2385_v37, %v2177_v51  ;;  %v13150_v62 = vpop.permute.xlu2 %1081  ;;  %v13162_v51 = vor.u32 %v10559_v54, %v9167_v0  ;;  %v3865_v37 = vmax.f32 %v13067_v2, 0.0  ;;  %v10568_v2 = vld [vmem:[%s18786_s1 + $0x1a4] sm:$0xf0] }
 0x267   : > { %v3877_v25 = vmax.f32 %v2802_v15, 0.0  ;;  %19400 = vst [vmem:[#allocation85_spill] sm:$0xff] %v13150_v62  ;;  %v2180_v52 = vadd.f32 %v13005_v42, %v13150_v62  ;;  %v9197_v42 = vld [vmem:[%s18786_s1 + $0x1a0] sm:$0xf] }
 0x268   : > { %v3880_v48 = vmax.f32 %v2386_v3, 0.0  ;;  %2233 = vmatmul.bf16.gmra.mxu0 %v13139_v18  ;;  %19401 = vst [vmem:[#allocation86_spill] sm:$0xff] %v13162_v51  ;;  %v2598_v3 = vadd.f32 %v2597_v60, %v13150_v62  ;;  %v13181_v54 = vor.u32 %v10568_v2, %v9197_v42 }
 0x269   : > { %v13146_v23 = vmax.f32 %v3861_v45, %v3877_v25  ;;  %2641 = vmatmul.bf16.gmra.mxu2 %v13048_v31 }
 0x26a   : > { %v13160_v58 = vmax.f32 %v3864_v17, %v3880_v48  ;;  %19402 = vst [vmem:[#allocation87_spill] sm:$0xff] %v13181_v54 }
 0x26c   : > { %v2602_v39 = vpop.f32.mrf.mxu2  ;;  %v2803_v1 = vpop.f32.mrf.mxu3 }
 0x26d   : > { %v2804_v32 = vadd.f32 %v2803_v1, %v2595_v12  ;;  %v13164_v61 = vpop.f32.mrf.mxu0  ;;  %v2388_v15 = vpop.f32.mrf.mxu1 }
 0x26e   : > { %v2389_v25 = vadd.f32 %v2388_v15, %v2180_v52 }
 0x26f   : > { %v3881_v45 = vmax.f32 %v2804_v32, 0.0  ;;  %v13187_v32 = vpop.permute.xlu0 %1086 }
 0x270   : > { %v3884_v31 = vmax.f32 %v2389_v25, 0.0  ;;  %9553 = vmatmul.msk.bf16.gmra.mxu1 %vm1979_vm9, %v13162_v51  ;;  %19403 = vst [vmem:[#allocation88_spill] sm:$0xff] %v13187_v32  ;;  %v2600_v15 = vadd.f32 %v2599_v30, %v13187_v32 }
 0x271   : > { %v4169_v49 = vmax.f32 %v3865_v37, %v3881_v45  ;;  %9593 = vmatmul.msk.bf16.gmra.mxu3 %vm1979_vm9, %v13162_v51  ;;  %v9175_v45 = vld [vmem:[%s18786_s1 + $0x178] sm:$0xf0] }
 0x272   : > { %v13179_v12 = vmax.f32 %v13089_v28, %v3884_v31  ;;  %v13193_v31 = vpop.permute.xlu1 %1091  ;;  %v10561_v28 = vld [vmem:[%s18786_s1 + $0x174] sm:$0xf] }
 0x273   : > { %19404 = vst [vmem:[#allocation89_spill] sm:$0xff] %v13193_v31  ;;  %v2185_v25 = vadd.f32 %v13050_v6, %v13193_v31  ;;  %v13203_v42 = vor.u32 %v10561_v28, %v9175_v45  ;;  %v2603_v62 = vadd.f32 %v2602_v39, %v13193_v31  ;;  %v9205_v6 = vld [vmem:[%s18786_s1 + $0x1b0] sm:$0xf] }
 0x274   : > { %v2604_v60 = vpop.f32.mrf.mxu2  ;;  %v2806_v17 = vpop.f32.mrf.mxu3 }
 0x275   : > { %v2807_v48 = vadd.f32 %v2806_v17, %v2598_v3  ;;  %v13183_v0 = vpop.f32.mrf.mxu0  ;;  %v13185_v52 = vpop.f32.mrf.mxu1  ;;  %19405 = vst [vmem:[#allocation90_spill] sm:$0xff] %v13203_v42 }
 0x277   : > { %v3885_v1 = vmax.f32 %v2807_v48, 0.0 }
 0x278   : > { %2238 = vmatmul.bf16.gmra.mxu0 %v13181_v54 }
 0x279   : > { %v4173_v37 = vmax.f32 %v13098_v63, %v3885_v1  ;;  %2646 = vmatmul.bf16.gmra.mxu2 %v13091_v44 }
 0x27a   : > { %v13265_v7 = vpop.permute.xlu1 %1106 }
 0x27b   : > { %19411 = vst [vmem:[#allocation96_spill] sm:$0xff] %v13265_v7 }
 0x27c   : > { %v2607_v30 = vpop.f32.mrf.mxu2  ;;  %v2808_v3 = vpop.f32.mrf.mxu3 }
 0x27d   : > { %v2809_v63 = vadd.f32 %v2808_v3, %v2600_v15  ;;  %v13205_v2 = vpop.f32.mrf.mxu0  ;;  %v2393_v17 = vpop.f32.mrf.mxu1  ;;  %v10570_v15 = vld [vmem:[%s18786_s1 + $0x1b4] sm:$0xf0] }
 0x27e   : > { %v2394_v1 = vadd.f32 %v2393_v17, %v2185_v25  ;;  %v13222_v25 = vor.u32 %v10570_v15, %v9205_v6 }
 0x27f   : > { %v3889_v48 = vmax.f32 %v2809_v63, 0.0 }
 0x280   : > { %v3892_v44 = vmax.f32 %v2394_v1, 0.0  ;;  %9554 = vmatmul.msk.bf16.gmra.mxu1 %vm1979_vm9, %v13203_v42  ;;  %19406 = vst [vmem:[#allocation91_spill] sm:$0xff] %v13222_v25 }
 0x281   : > { %v4177_v51 = vmax.f32 %v13121_v5, %v3889_v48  ;;  %9594 = vmatmul.msk.bf16.gmra.mxu3 %vm1979_vm9, %v13203_v42  ;;  %v13228_v48 = vpop.permute.xlu2 %1096 }
 0x282   : > { %v13220_v28 = vmax.f32 %v13137_v56, %v3892_v44  ;;  %19407 = vst [vmem:[#allocation92_spill] sm:$0xff] %v13228_v48  ;;  %v2605_v1 = vadd.f32 %v2604_v60, %v13228_v48  ;;  %v10563_v44 = vld [vmem:[%s18786_s1 + $0x184] sm:$0xf]  ;;  %v9183_v56 = vld [vmem:[%s18786_s1 + $0x188] sm:$0xf0] }
 0x284   : > { %v2609_v39 = vpop.f32.mrf.mxu2  ;;  %v2811_v5 = vpop.f32.mrf.mxu3 }
 0x285   : > { %v2812_v45 = vadd.f32 %v2811_v5, %v2603_v62  ;;  %v13224_v3 = vpop.f32.mrf.mxu0  ;;  %v13226_v63 = vpop.f32.mrf.mxu1  ;;  %v13240_v5 = vor.u32 %v10563_v44, %v9183_v56  ;;  %v10572_v44 = vld [vmem:[%s18786_s1 + $0x1c4] sm:$0xf0] }
 0x287   : > { %v3893_v17 = vmax.f32 %v2812_v45, 0.0  ;;  %19408 = vst [vmem:[#allocation93_spill] sm:$0xff] %v13240_v5 }
 0x288   : > { %2243 = vmatmul.bf16.gmra.mxu0 %v13222_v25 }
 0x289   : > { %v4181_v31 = vmax.f32 %v13146_v23, %v3893_v17  ;;  %2651 = vmatmul.bf16.gmra.mxu2 %v13139_v18  ;;  %v13246_v17 = vpop.permute.xlu0 %1101  ;;  %v13284_v33 = vpop.permute.xlu2 %1111 }
 0x28a   : > { %19409 = vst [vmem:[#allocation94_spill] sm:$0xff] %v13246_v17  ;;  %v2608_v42 = vadd.f32 %v2607_v30, %v13246_v17 }
 0x28b   : > { %19413 = vst [vmem:[#allocation98_spill] sm:$0xff] %v13284_v33 }
 0x28c   : > { %v2612_v62 = vpop.f32.mrf.mxu2  ;;  %v2813_v6 = vpop.f32.mrf.mxu3 }
 0x28d   : > { %v2814_v15 = vadd.f32 %v2813_v6, %v2605_v1  ;;  %v13242_v60 = vpop.f32.mrf.mxu0  ;;  %v13244_v23 = vpop.f32.mrf.mxu1  ;;  %v9213_v1 = vld [vmem:[%s18786_s1 + $0x1c0] sm:$0xf] }
 0x28e   : > { %v13261_v30 = vor.u32 %v10572_v44, %v9213_v1  ;;  %v9191_v1 = vld [vmem:[%s18786_s1 + $0x198] sm:$0xf0] }
 0x28f   : > { %v3897_v45 = vmax.f32 %v2814_v15, 0.0 }
 0x290   : > { %9555 = vmatmul.msk.bf16.gmra.mxu1 %vm1979_vm9, %v13240_v5  ;;  %19410 = vst [vmem:[#allocation95_spill] sm:$0xff] %v13261_v30 }
 0x291   : > { %v13249_v18 = vmax.f32 %v4169_v49, %v3897_v45  ;;  %9595 = vmatmul.msk.bf16.gmra.mxu3 %vm1979_vm9, %v13240_v5  ;;  %v2610_v5 = vadd.f32 %v2609_v39, %v13265_v7  ;;  %v13305_v36 = vpop.permute.xlu0 %1116 }
 0x292   : > { %19415 = vst [vmem:[#allocation100_spill] sm:$0xff] %v13305_v36 }
 0x294   : > { %v2614_v56 = vpop.f32.mrf.mxu2  ;;  %v2816_v6 = vpop.f32.mrf.mxu3 }
 0x295   : > { %v2817_v15 = vadd.f32 %v2816_v6, %v2608_v42  ;;  %v13263_v49 = vpop.f32.mrf.mxu0  ;;  %v2400_v45 = vpop.f32.mrf.mxu1  ;;  %v10565_v42 = vld [vmem:[%s18786_s1 + $0x194] sm:$0xf] }
 0x296   : > { %v13278_v55 = vor.u32 %v10565_v42, %v9191_v1  ;;  %v10574_v42 = vld [vmem:[%s18786_s1 + $0x1d4] sm:$0xf0] }
 0x297   : > { %v3901_v11 = vmax.f32 %v2817_v15, 0.0 }
 0x298   : > { %2248 = vmatmul.bf16.gmra.mxu0 %v13261_v30  ;;  %19412 = vst [vmem:[#allocation97_spill] sm:$0xff] %v13278_v55 }
 0x299   : > { %v13268_v53 = vmax.f32 %v4173_v37, %v3901_v11  ;;  %2656 = vmatmul.bf16.gmra.mxu2 %v13181_v54  ;;  %v2613_v54 = vadd.f32 %v2612_v62, %v13284_v33 }
 0x29c   : > { %v2617_v44 = vpop.f32.mrf.mxu2  ;;  %v2818_v6 = vpop.f32.mrf.mxu3 }
 0x29d   : > { %v2819_v15 = vadd.f32 %v2818_v6, %v2610_v5  ;;  %v13280_v39 = vpop.f32.mrf.mxu0  ;;  %v13282_v11 = vpop.f32.mrf.mxu1  ;;  %v9221_v5 = vld [vmem:[%s18786_s1 + $0x1d0] sm:$0xf] }
 0x29e   : > { %v13299_v62 = vor.u32 %v10574_v42, %v9221_v5  ;;  %v9199_v5 = vld [vmem:[%s18786_s1 + $0x1a8] sm:$0xf0]  ;;  %v2182_v42 = vadd.f32 %v13027_v13, %v13187_v32 }
 0x29f   : > { %v3905_v37 = vmax.f32 %v2819_v15, 0.0 }
 0x2a0   : > { %9556 = vmatmul.msk.bf16.gmra.mxu1 %vm1979_vm9, %v13278_v55  ;;  %19414 = vst [vmem:[#allocation99_spill] sm:$0xff] %v13299_v62  ;;  %v2391_v32 = vadd.f32 %v13185_v52, %v2182_v42 }
 0x2a1   : > { %v13287_v27 = vmax.f32 %v4177_v51, %v3905_v37  ;;  %9596 = vmatmul.msk.bf16.gmra.mxu3 %vm1979_vm9, %v13278_v55  ;;  %v2615_v55 = vadd.f32 %v2614_v56, %v13305_v36  ;;  %v2190_v56 = vadd.f32 %v13093_v46, %v13246_v17 }
 0x2a2   : > { %v3888_v52 = vmax.f32 %v2391_v32, 0.0 }
 0x2a3   : > { %v2399_v17 = vadd.f32 %v13244_v23, %v2190_v56 }
 0x2a4   : > { %v2619_v1 = vpop.f32.mrf.mxu2  ;;  %v2821_v6 = vpop.f32.mrf.mxu3 }
 0x2a5   : > { %v2822_v15 = vadd.f32 %v2821_v6, %v2613_v54  ;;  %v13301_v51 = vpop.f32.mrf.mxu0  ;;  %v13303_v37 = vpop.f32.mrf.mxu1  ;;  %v10567_v54 = vld [vmem:[%s18786_s1 + $0x1a4] sm:$0xf]  ;;  %v3900_v23 = vmax.f32 %v2399_v17, 0.0 }
 0x2a6   : > { %v13324_v6 = vpop.permute.xlu1 %1121  ;;  %v13328_v59 = vor.u32 %v10567_v54, %v9199_v5 }
 0x2a7   : > { %v3909_v4 = vmax.f32 %v2822_v15, 0.0  ;;  %19416 = vst [vmem:[#allocation101_spill] sm:$0xff] %v13324_v6  ;;  %v2192_v15 = vadd.f32 %v13116_v19, %v13265_v7  ;;  %v2200_v13 = vadd.f32 %v13183_v0, %v13324_v6  ;;  %v2618_v43 = vadd.f32 %v2617_v44, %v13324_v6  ;;  %v9229_v19 = vld [vmem:[%s18786_s1 + $0x1e0] sm:$0xf]  ;;  %v10576_v0 = vld [vmem:[%s18786_s1 + $0x1e4] sm:$0xf0] }
 0x2a8   : > { %2253 = vmatmul.bf16.gmra.mxu0 %v13299_v62  ;;  %19417 = vst [vmem:[#allocation102_spill] sm:$0xff] %v13328_v59  ;;  %v13356_v42 = vor.u32 %v10576_v0, %v9229_v19 }
 0x2a9   : > { %v13308_v16 = vmax.f32 %v4181_v31, %v3909_v4  ;;  %2661 = vmatmul.bf16.gmra.mxu2 %v13222_v25  ;;  %v2401_v47 = vadd.f32 %v2400_v45, %v2192_v15  ;;  %v4176_v15 = vmax.f32 %v13112_v34, %v3888_v52  ;;  %v9207_v34 = vld [vmem:[%s18786_s1 + $0x1b8] sm:$0xf0]  ;;  %v13384_v52 = vpop.permute.xlu0 %1131 }
 0x2aa   : > { %19419 = vst [vmem:[#allocation104_spill] sm:$0xff] %v13356_v42 }
 0x2ab   : > { %v3904_v54 = vmax.f32 %v2401_v47, 0.0  ;;  %19423 = vst [vmem:[#allocation108_spill] sm:$0xff] %v13384_v52 }
 0x2ac   : > { %v13322_v4 = vpop.f32.mrf.mxu2  ;;  %v2823_v31 = vpop.f32.mrf.mxu3 }
 0x2ad   : > { %v2824_v25 = vadd.f32 %v2823_v31, %v2615_v55  ;;  %v13330_v29 = vpop.f32.mrf.mxu0  ;;  %v2408_v40 = vpop.f32.mrf.mxu1 }
 0x2ae   : > { %v13344_v55 = vpop.permute.xlu2 %1126 }
 0x2af   : > { %v3913_v46 = vmax.f32 %v2824_v25, 0.0  ;;  %19418 = vst [vmem:[#allocation103_spill] sm:$0xff] %v13344_v55  ;;  %v2409_v25 = vadd.f32 %v2408_v40, %v2200_v13  ;;  %v2620_v40 = vadd.f32 %v2619_v1, %v13344_v55  ;;  %v2197_v13 = vadd.f32 %v13164_v61, %v13305_v36 }
 0x2b0   : > { %9557 = vmatmul.msk.bf16.gmra.mxu1 %vm1979_vm9, %v13328_v59 }
 0x2b1   : > { %v13338_v24 = vmax.f32 %v13249_v18, %v3913_v46  ;;  %9597 = vmatmul.msk.bf16.gmra.mxu3 %vm1979_vm9, %v13328_v59  ;;  %v2202_v18 = vadd.f32 %v13205_v2, %v13344_v55  ;;  %v3916_v46 = vmax.f32 %v2409_v25, 0.0  ;;  %v4188_v59 = vmax.f32 %v13179_v12, %v3900_v23 }
 0x2b2   : > { %v4192_v2 = vmax.f32 %v4176_v15, %v3904_v54  ;;  %v2187_v12 = vadd.f32 %v13071_v50, %v13228_v48 }
 0x2b3   : > { %v13376_v1 = vmax.f32 %v4188_v59, %v3916_v46 }
 0x2b4   : > { %v13354_v45 = vpop.f32.mrf.mxu2  ;;  %v2826_v44 = vpop.f32.mrf.mxu3 }
 0x2b5   : > { %v2827_v5 = vadd.f32 %v2826_v44, %v2618_v43  ;;  %v13358_v56 = vpop.f32.mrf.mxu0  ;;  %v2410_v31 = vpop.f32.mrf.mxu1  ;;  %v10569_v43 = vld [vmem:[%s18786_s1 + $0x1b4] sm:$0xf]  ;;  %19421 = vst [vmem:[#allocation106_spill] sm:$0xff] %v13376_v1  ;;  %v2205_v44 = vadd.f32 %v13224_v3, %v13384_v52 }
 0x2b6   : > { %v2411_v32 = vadd.f32 %v2410_v31, %v2202_v18  ;;  %v13388_v23 = vor.u32 %v10569_v43, %v9207_v34  ;;  %v2623_v31 = vadd.f32 %v13322_v4, %v13384_v52  ;;  %v13408_v3 = vpop.permute.xlu1 %1136 }
 0x2b7   : > { %v3917_v6 = vmax.f32 %v2827_v5, 0.0  ;;  %v2406_v5 = vadd.f32 %v13303_v37, %v2197_v13  ;;  %19426 = vst [vmem:[#allocation111_spill] sm:$0xff] %v13408_v3 }
 0x2b8   : > { %v3920_v47 = vmax.f32 %v2411_v32, 0.0  ;;  %2258 = vmatmul.bf16.gmra.mxu0 %v13356_v42  ;;  %19424 = vst [vmem:[#allocation109_spill] sm:$0xff] %v13388_v23 }
 0x2b9   : > { %v13364_v17 = vmax.f32 %v13268_v53, %v3917_v6  ;;  %2666 = vmatmul.bf16.gmra.mxu2 %v13261_v30  ;;  %v2195_v6 = vadd.f32 %v13141_v38, %v13284_v33  ;;  %v2396_v38 = vadd.f32 %v13226_v63, %v2187_v12  ;;  %v9237_v63 = vld [vmem:[%s18786_s1 + $0x1f0] sm:$0xf] }
 0x2ba   : > { %v13378_v53 = vmax.f32 %v4192_v2, %v3920_v47 }
 0x2bb   : > { %19420 = vst [vmem:[#allocation105_spill] sm:$0xff] %v13364_v17  ;;  %v2404_v61 = vadd.f32 %v13282_v11, %v2195_v6  ;;  %v10578_v11 = vld [vmem:[%s18786_s1 + $0x1f4] sm:$0xf0]  ;;  %v3896_v37 = vmax.f32 %v2396_v38, 0.0 }
 0x2bc   : > { %19422 = vst [vmem:[#allocation107_spill] sm:$0xff] %v13378_v53  ;;  %v2627_v19 = vpop.f32.mrf.mxu2  ;;  %v2828_v0 = vpop.f32.mrf.mxu3  ;;  %v10937_v25 = vpack.i.bf16 %v13378_v53, %v13376_v1  ;;  %v13418_v43 = vor.u32 %v10578_v11, %v9237_v63 }
 0x2bd   : > { %v2829_v18 = vadd.f32 %v2828_v0, %v2620_v40  ;;  %v13390_v59 = vpop.f32.mrf.mxu0  ;;  %v2413_v50 = vpop.f32.mrf.mxu1  ;;  %v3908_v46 = vmax.f32 %v2404_v61, 0.0  ;;  %v3912_v40 = vmax.f32 %v2406_v5, 0.0  ;;  %v4184_v6 = vmax.f32 %v13160_v58, %v3896_v37  ;;  %v10571_v61 = vld [vmem:[%s18786_s1 + $0x1c4] sm:$0xf] }
 0x2be   : > { %10938 = vrot.lane.b32.xlu2 %v10937_v25, %s11547_s20  ;;  %10933 = vrot.lane.b32.xlu1 %v10937_v25, %s11548_s21  ;;  %v2414_v4 = vadd.f32 %v2413_v50, %v2205_v44  ;;  %19427 = vst [vmem:[#allocation112_spill] sm:$0xff] %v13418_v43  ;;  %v2625_v44 = vadd.f32 %v13354_v45, %v13408_v3  ;;  %v13432_v58 = vpop.permute.xlu2 %1141 }
 0x2bf   : > { %v3921_v54 = vmax.f32 %v2829_v18, 0.0  ;;  %v4200_v50 = vmax.f32 %v4184_v6, %v3912_v40  ;;  %19429 = vst [vmem:[#allocation114_spill] sm:$0xff] %v13432_v58  ;;  %v2210_v45 = vadd.f32 %v13263_v49, %v13432_v58  ;;  %v2628_v49 = vadd.f32 %v2627_v19, %v13432_v58  ;;  %v9245_v6 = vld [vmem:[%s18786_s1 + $0x200] sm:$0xf] }
 0x2c0   : > { %9558 = vmatmul.msk.bf16.gmra.mxu1 %vm1979_vm9, %v13388_v23  ;;  %v3924_v13 = vmax.f32 %v2414_v4, 0.0 }
 0x2c1   : > { %v13402_v15 = vmax.f32 %v13287_v27, %v3921_v54  ;;  %9598 = vmatmul.msk.bf16.gmra.mxu3 %vm1979_vm9, %v13388_v23  ;;  %v2207_v27 = vadd.f32 %v13242_v60, %v13408_v3  ;;  %v4196_v60 = vmax.f32 %v13220_v28, %v3908_v46  ;;  %v9215_v28 = vld [vmem:[%s18786_s1 + $0x1c8] sm:$0xf0] }
 0x2c3   : > { %19425 = vst [vmem:[#allocation110_spill] sm:$0xff] %v13402_v15 }
 0x2c4   : > { %v2629_v32 = vpop.f32.mrf.mxu2  ;;  %v2831_v2 = vpop.f32.mrf.mxu3 }
 0x2c5   : > { %v2832_v47 = vadd.f32 %v2831_v2, %v2623_v31  ;;  %v13420_v34 = vpop.f32.mrf.mxu0  ;;  %v2415_v12 = vpop.f32.mrf.mxu1 }
 0x2c6   : > { %v2416_v18 = vadd.f32 %v2415_v12, %v2207_v27  ;;  %10943 = vrot.lane.b32.xlu1 %v10937_v25, %s11546_s19  ;;  %v13448_v27 = vor.u32 %v10571_v61, %v9215_v28  ;;  %v13464_v12 = vpop.permute.xlu0 %1146  ;;  %v10573_v61 = vld [vmem:[%s18786_s1 + $0x1d4] sm:$0xf]  ;;  %v9223_v28 = vld [vmem:[%s18786_s1 + $0x1d8] sm:$0xf0] }
 0x2c7   : > { %v3925_v0 = vmax.f32 %v2832_v47, 0.0  ;;  %19434 = vst [vmem:[#allocation119_spill] sm:$0xff] %v13464_v12 }
 0x2c8   : > { %v3928_v54 = vmax.f32 %v2416_v18, 0.0  ;;  %2263 = vmatmul.bf16.gmra.mxu0 %v13418_v43  ;;  %19432 = vst [vmem:[#allocation117_spill] sm:$0xff] %v13448_v27 }
 0x2c9   : > { %v13428_v38 = vmax.f32 %v13308_v16, %v3925_v0  ;;  %2671 = vmatmul.bf16.gmra.mxu2 %v13299_v62  ;;  %v13442_v16 = vmax.f32 %v4196_v60, %v3924_v13 }
 0x2ca   : > { %v13444_v5 = vmax.f32 %v4200_v50, %v3928_v54  ;;  %v2630_v54 = vadd.f32 %v2629_v32, %v13464_v12 }
 0x2cb   : > { %19428 = vst [vmem:[#allocation113_spill] sm:$0xff] %v13428_v38 }
 0x2cc   : > { %19430 = vst [vmem:[#allocation115_spill] sm:$0xff] %v13442_v16  ;;  %v2632_v31 = vpop.f32.mrf.mxu2  ;;  %v2833_v63 = vpop.f32.mrf.mxu3  ;;  %v10952_v37 = vpack.i.bf16 %v13444_v5, %v13442_v16 }
 0x2cd   : > { %19431 = vst [vmem:[#allocation116_spill] sm:$0xff] %v13444_v5  ;;  %v2834_v11 = vadd.f32 %v2833_v63, %v2625_v44  ;;  %v13450_v4 = vpop.f32.mrf.mxu0  ;;  %v2418_v46 = vpop.f32.mrf.mxu1 }
 0x2ce   : > { %v13452_v40 = vadd.f32 %v2418_v46, %v2210_v45  ;;  %10953 = vrot.lane.b32.xlu0 %v10952_v37, %s11548_s21  ;;  %10948 = vrot.lane.b32.xlu1 %v10937_v25, %s11552_s24  ;;  %v10580_v25 = vld [vmem:[%s18786_s1 + $0x204] sm:$0xf0]  ;;  %v13499_v46 = vor.u32 %v10573_v61, %v9223_v28  ;;  %v13532_v16 = vpop.permute.xlu0 %1161 }
 0x2cf   : > { %v3929_v2 = vmax.f32 %v2834_v11, 0.0  ;;  %v13476_v18 = vor.u32 %v10580_v25, %v9245_v6  ;;  %19440 = vst [vmem:[#allocation125_spill] sm:$0xff] %v13532_v16 }
 0x2d0   : > { %9559 = vmatmul.msk.bf16.gmra.mxu1 %vm1979_vm9, %v13448_v27  ;;  %19437 = vst [vmem:[#allocation122_spill] sm:$0xff] %v13499_v46  ;;  %v3932_v1 = vmax.f32 %v13452_v40, 0.0 }
 0x2d1   : > { %v13458_v47 = vmax.f32 %v13338_v24, %v3929_v2  ;;  %9599 = vmatmul.msk.bf16.gmra.mxu3 %vm1979_vm9, %v13448_v27  ;;  %v2212_v24 = vadd.f32 %v13280_v39, %v13464_v12  ;;  %19435 = vst [vmem:[#allocation120_spill] sm:$0xff] %v13476_v18  ;;  %v13487_v39 = vpop.permute.xlu1 %1151 }
 0x2d2   : > { %19436 = vst [vmem:[#allocation121_spill] sm:$0xff] %v13487_v39  ;;  %v2215_v45 = vadd.f32 %v13301_v51, %v13487_v39  ;;  %v2633_v25 = vadd.f32 %v2632_v31, %v13487_v39  ;;  %v13511_v51 = vpop.permute.xlu2 %1156 }
 0x2d3   : > { %19433 = vst [vmem:[#allocation118_spill] sm:$0xff] %v13458_v47 }
 0x2d4   : > { %v2634_v19 = vpop.f32.mrf.mxu2  ;;  %v2836_v13 = vpop.f32.mrf.mxu3  ;;  %19438 = vst [vmem:[#allocation123_spill] sm:$0xff] %v13511_v51 }
 0x2d5   : > { %v13474_v0 = vadd.f32 %v2836_v13, %v2628_v49  ;;  %v13478_v60 = vpop.f32.mrf.mxu0  ;;  %v2420_v50 = vpop.f32.mrf.mxu1  ;;  %v10582_v13 = vld [vmem:[%s18786_s1 + $0x214] sm:$0xf0] }
 0x2d6   : > { %v13480_v44 = vadd.f32 %v2420_v50, %v2212_v24  ;;  %10963 = vrot.lane.b32.xlu0 %v10952_v37, %s11546_s19  ;;  %10958 = vrot.lane.b32.xlu1 %v10952_v37, %s11547_s20  ;;  %v9253_v24 = vld [vmem:[%s18786_s1 + $0x210] sm:$0xf] }
 0x2d7   : > { %v13523_v61 = vor.u32 %v10582_v13, %v9253_v24  ;;  %v2220_v24 = vadd.f32 %v13358_v56, %v13532_v16 }
 0x2d8   : > { %2268 = vmatmul.bf16.gmra.mxu0 %v13476_v18  ;;  %v3936_v12 = vmax.f32 %v13480_v44, 0.0 }
 0x2d9   : > { %2676 = vmatmul.bf16.gmra.mxu2 %v13356_v42  ;;  %19439 = vst [vmem:[#allocation124_spill] sm:$0xff] %v13523_v61  ;;  %v13554_v56 = vpop.permute.xlu1 %1166 }
 0x2da   : > { %19442 = vst [vmem:[#allocation127_spill] sm:$0xff] %v13554_v56  ;;  %v2222_v40 = vadd.f32 %v13390_v59, %v13554_v56  ;;  %v13577_v59 = vpop.permute.xlu2 %1171 }
 0x2db   : > { %19444 = vst [vmem:[#allocation129_spill] sm:$0xff] %v13577_v59 }
 0x2dc   : > { %v2637_v63 = vpop.f32.mrf.mxu2  ;;  %v2838_v11 = vpop.f32.mrf.mxu3 }
 0x2dd   : > { %v13497_v32 = vadd.f32 %v2838_v11, %v2630_v54  ;;  %v13501_v2 = vpop.f32.mrf.mxu0  ;;  %v2423_v49 = vpop.f32.mrf.mxu1 }
 0x2de   : > { %v13503_v6 = vadd.f32 %v2423_v49, %v2215_v45  ;;  %10968 = vrot.lane.b32.xlu0 %v10952_v37, %s11552_s24  ;;  %v2217_v37 = vadd.f32 %v13330_v29, %v13511_v51  ;;  %v2635_v49 = vadd.f32 %v2634_v19, %v13511_v51  ;;  %v10575_v29 = vld [vmem:[%s18786_s1 + $0x1e4] sm:$0xf]  ;;  %v2638_v51 = vadd.f32 %v2637_v63, %v13532_v16 }
 0x2e0   : > { %9560 = vmatmul.msk.bf16.gmra.mxu1 %vm1979_vm9, %v13499_v46 }
 0x2e1   : > { %9600 = vmatmul.msk.bf16.gmra.mxu3 %vm1979_vm9, %v13499_v46 }
 0x2e4   : > { %v2639_v31 = vpop.f32.mrf.mxu2  ;;  %v2841_v50 = vpop.f32.mrf.mxu3 }
 0x2e5   : > { %v13521_v54 = vadd.f32 %v2841_v50, %v2633_v25  ;;  %v13525_v28 = vpop.f32.mrf.mxu0  ;;  %v2425_v45 = vpop.f32.mrf.mxu1  ;;  %v9231_v25 = vld [vmem:[%s18786_s1 + $0x1e8] sm:$0xf0]  ;;  %v2640_v3 = vadd.f32 %v2639_v31, %v13554_v56 }
 0x2e6   : > { %v13527_v11 = vadd.f32 %v2425_v45, %v2217_v37  ;;  %v13544_v50 = vor.u32 %v10575_v29, %v9231_v25 }
 0x2e8   : > { %2273 = vmatmul.bf16.gmra.mxu0 %v13523_v61  ;;  %19441 = vst [vmem:[#allocation126_spill] sm:$0xff] %v13544_v50 }
 0x2e9   : > { %2681 = vmatmul.bf16.gmra.mxu2 %v13418_v43 }
 0x2ec   : > { %v2642_v13 = vpop.f32.mrf.mxu2  ;;  %v2843_v37 = vpop.f32.mrf.mxu3 }
 0x2ed   : > { %v13542_v19 = vadd.f32 %v2843_v37, %v2635_v49  ;;  %v13546_v45 = vpop.f32.mrf.mxu0  ;;  %v2428_v5 = vpop.f32.mrf.mxu1  ;;  %v9261_v49 = vld [vmem:[%s18786_s1 + $0x220] sm:$0xf]  ;;  %v2643_v56 = vadd.f32 %v2642_v13, %v13577_v59 }
 0x2ee   : > { %v2429_v53 = vadd.f32 %v2428_v5, %v2220_v24  ;;  %v10584_v5 = vld [vmem:[%s18786_s1 + $0x224] sm:$0xf0] }
 0x2ef   : > { %v13566_v24 = vor.u32 %v10584_v5, %v9261_v49  ;;  %v3937_v5 = vmax.f32 %v13497_v32, 0.0  ;;  %v10586_v32 = vld [vmem:[%s18786_s1 + $0x234] sm:$0xf0] }
 0x2f0   : > { %v3948_v47 = vmax.f32 %v2429_v53, 0.0  ;;  %9561 = vmatmul.msk.bf16.gmra.mxu1 %vm1979_vm9, %v13544_v50 }
 0x2f1   : > { %9601 = vmatmul.msk.bf16.gmra.mxu3 %vm1979_vm9, %v13544_v50  ;;  %19443 = vst [vmem:[#allocation128_spill] sm:$0xff] %v13566_v24  ;;  %v3933_v50 = vmax.f32 %v13474_v0, 0.0  ;;  %v2225_v0 = vadd.f32 %v13420_v34, %v13577_v59 }
 0x2f2   : > { %v13564_v53 = vmax.f32 %v3932_v1, %v3948_v47  ;;  %v10577_v47 = vld [vmem:[%s18786_s1 + $0x1f4] sm:$0xf] }
 0x2f4   : > { %v2644_v63 = vpop.f32.mrf.mxu2  ;;  %v2846_v29 = vpop.f32.mrf.mxu3 }
 0x2f5   : > { %v2847_v25 = vadd.f32 %v2846_v29, %v2638_v51  ;;  %v13568_v37 = vpop.f32.mrf.mxu0  ;;  %v2430_v16 = vpop.f32.mrf.mxu1 }
 0x2f6   : > { %v2431_v46 = vadd.f32 %v2430_v16, %v2222_v40  ;;  %v9239_v16 = vld [vmem:[%s18786_s1 + $0x1f8] sm:$0xf0] }
 0x2f7   : > { %v3949_v39 = vmax.f32 %v2847_v25, 0.0  ;;  %v13589_v31 = vor.u32 %v10577_v47, %v9239_v16  ;;  %v3940_v25 = vmax.f32 %v13503_v6, 0.0 }
 0x2f8   : > { %v3952_v1 = vmax.f32 %v2431_v46, 0.0  ;;  %2278 = vmatmul.bf16.gmra.mxu0 %v13566_v24 }
 0x2f9   : > { %v13573_v38 = vmax.f32 %v3933_v50, %v3949_v39  ;;  %2686 = vmatmul.bf16.gmra.mxu2 %v13476_v18  ;;  %19445 = vst [vmem:[#allocation130_spill] sm:$0xff] %v13589_v31 }
 0x2fa   : > { %v13587_v44 = vmax.f32 %v3936_v12, %v3952_v1  ;;  %v9269_v12 = vld [vmem:[%s18786_s1 + $0x230] sm:$0xf] }
 0x2fc   : > { %v2647_v39 = vpop.f32.mrf.mxu2  ;;  %v2848_v46 = vpop.f32.mrf.mxu3 }
 0x2fd   : > { %v2849_v51 = vadd.f32 %v2848_v46, %v2640_v3  ;;  %v13591_v50 = vpop.f32.mrf.mxu0  ;;  %v2433_v49 = vpop.f32.mrf.mxu1 }
 0x2fe   : > { %v2434_v29 = vadd.f32 %v2433_v49, %v2225_v0  ;;  %v13602_v3 = vpop.permute.xlu0 %1176  ;;  %v13614_v0 = vor.u32 %v10586_v32, %v9269_v12  ;;  %v3941_v49 = vmax.f32 %v13521_v54, 0.0  ;;  %v9247_v54 = vld [vmem:[%s18786_s1 + $0x208] sm:$0xf0] }
 0x2ff   : > { %v3953_v40 = vmax.f32 %v2849_v51, 0.0  ;;  %19446 = vst [vmem:[#allocation131_spill] sm:$0xff] %v13602_v3  ;;  %v2227_v6 = vadd.f32 %v13450_v4, %v13602_v3  ;;  %v2645_v59 = vadd.f32 %v2644_v63, %v13602_v3 }
 0x300   : > { %v3956_v34 = vmax.f32 %v2434_v29, 0.0  ;;  %9562 = vmatmul.msk.bf16.gmra.mxu1 %vm1979_vm9, %v13589_v31  ;;  %19447 = vst [vmem:[#allocation132_spill] sm:$0xff] %v13614_v0  ;;  %v3944_v29 = vmax.f32 %v13527_v11, 0.0 }
 0x301   : > { %v13596_v27 = vmax.f32 %v3937_v5, %v3953_v40  ;;  %9602 = vmatmul.msk.bf16.gmra.mxu3 %vm1979_vm9, %v13589_v31 }
 0x302   : > { %v13612_v13 = vmax.f32 %v3940_v25, %v3956_v34  ;;  %v10579_v25 = vld [vmem:[%s18786_s1 + $0x204] sm:$0xf] }
 0x304   : > { %v2649_v1 = vpop.f32.mrf.mxu2  ;;  %v2851_v47 = vpop.f32.mrf.mxu3 }
 0x305   : > { %v2852_v16 = vadd.f32 %v2851_v47, %v2643_v56  ;;  %v13616_v46 = vpop.f32.mrf.mxu0  ;;  %v2435_v51 = vpop.f32.mrf.mxu1 }
 0x306   : > { %v2436_v40 = vadd.f32 %v2435_v51, %v2227_v6  ;;  %v13625_v56 = vpop.permute.xlu1 %1181  ;;  %v13637_v6 = vor.u32 %v10579_v25, %v9247_v54  ;;  %v3945_v51 = vmax.f32 %v13542_v19, 0.0  ;;  %v10588_v19 = vld [vmem:[%s18786_s1 + $0x244] sm:$0xf0] }
 0x307   : > { %v3957_v5 = vmax.f32 %v2852_v16, 0.0  ;;  %19448 = vst [vmem:[#allocation133_spill] sm:$0xff] %v13625_v56  ;;  %v2230_v11 = vadd.f32 %v13478_v60, %v13625_v56  ;;  %v9277_v60 = vld [vmem:[%s18786_s1 + $0x240] sm:$0xf] }
 0x308   : > { %v3960_v4 = vmax.f32 %v2436_v40, 0.0  ;;  %2283 = vmatmul.bf16.gmra.mxu0 %v13614_v0  ;;  %19449 = vst [vmem:[#allocation134_spill] sm:$0xff] %v13637_v6  ;;  %v2648_v40 = vadd.f32 %v2647_v39, %v13625_v56 }
 0x309   : > { %v13621_v31 = vmax.f32 %v3941_v49, %v3957_v5  ;;  %2691 = vmatmul.bf16.gmra.mxu2 %v13523_v61 }
 0x30a   : > { %v13635_v63 = vmax.f32 %v3944_v29, %v3960_v4  ;;  %v9335_v29 = vld [vmem:[#allocation2 + $0x38] sm:$0xf0] }
 0x30c   : > { %v2652_v34 = vpop.f32.mrf.mxu2  ;;  %v2853_v12 = vpop.f32.mrf.mxu3 }
 0x30d   : > { %v2854_v32 = vadd.f32 %v2853_v12, %v2645_v59  ;;  %v13639_v47 = vpop.f32.mrf.mxu0  ;;  %v2438_v16 = vpop.f32.mrf.mxu1  ;;  %v10600_v59 = vld [vmem:[#allocation2 + $0x2c] sm:$0xf]  ;;  %v13658_v12 = vor.u32 %v10588_v19, %v9277_v60  ;;  %v10581_v60 = vld [vmem:[%s18786_s1 + $0x214] sm:$0xf]  ;;  %v9255_v19 = vld [vmem:[%s18786_s1 + $0x218] sm:$0xf0] }
 0x30e   : > { %v2439_v5 = vadd.f32 %v2438_v16, %v2230_v11  ;;  %v9338_v4 = vor.u32 %v10600_v59, %v9335_v29 }
 0x30f   : > { %v3961_v49 = vmax.f32 %v2854_v32, 0.0  ;;  %19450 = vst [vmem:[#allocation135_spill] sm:$0xff] %v13658_v12 }
 0x310   : > { %v3964_v61 = vmax.f32 %v2439_v5, 0.0  ;;  %9563 = vmatmul.msk.bf16.gmra.mxu1 %vm1979_vm9, %v13637_v6  ;;  %3360 = vmatpush.bf16.msrb.mxu0 %v9338_v4  ;;  %v13680_v4 = vor.u32 %v10581_v60, %v9255_v19 }
 0x311   : > { %v13643_v3 = vmax.f32 %v3945_v51, %v3961_v49  ;;  %9603 = vmatmul.msk.bf16.gmra.mxu3 %vm1979_vm9, %v13637_v6  ;;  %v10596_v51 = vld [vmem:[#allocation2 + $0xc] sm:$0xf]  ;;  %v9319_v49 = vld [vmem:[#allocation2 + $0x18] sm:$0xf0]  ;;  %v13664_v6 = vpop.permute.xlu2 %1186 }
 0x312   : > { %v13656_v39 = vmax.f32 %v13564_v53, %v3964_v61  ;;  %v9322_v56 = vor.u32 %v10596_v51, %v9319_v49  ;;  %19451 = vst [vmem:[#allocation136_spill] sm:$0xff] %v13664_v6  ;;  %v2650_v61 = vadd.f32 %v2649_v1, %v13664_v6 }
 0x313   : > { %19453 = vst [vmem:[#allocation138_spill] sm:$0xff] %v13680_v4 }
 0x314   : > { %v2654_v25 = vpop.f32.mrf.mxu2  ;;  %v2856_v54 = vpop.f32.mrf.mxu3  ;;  %3361 = vmatpush.bf16.msrb.mxu0 %v9322_v56  ;;  %v10590_v56 = vld [vmem:[%s18786_s1 + $0x254] sm:$0xf0] }
 0x315   : > { %v2857_v11 = vadd.f32 %v2856_v54, %v2648_v40  ;;  %v13660_v32 = vpop.f32.mrf.mxu0  ;;  %v13662_v16 = vpop.f32.mrf.mxu1 }
 0x316   : > { %v13670_v40 = vpop.permute.xlu0 %1191 }
 0x317   : > { %v3965_v5 = vmax.f32 %v2857_v11, 0.0  ;;  %19452 = vst [vmem:[#allocation137_spill] sm:$0xff] %v13670_v40  ;;  %v2235_v1 = vadd.f32 %v13525_v28, %v13670_v40  ;;  %v9285_v28 = vld [vmem:[%s18786_s1 + $0x250] sm:$0xf] }
 0x318   : > { %2288 = vmatmul.bf16.gmra.mxu0 %v13658_v12  ;;  %v13699_v19 = vor.u32 %v10590_v56, %v9285_v28 }
 0x319   : > { %v4237_v53 = vmax.f32 %v13573_v38, %v3965_v5  ;;  %2696 = vmatmul.bf16.gmra.mxu2 %v13566_v24  ;;  %v2653_v5 = vadd.f32 %v2652_v34, %v13670_v40 }
 0x31a   : > { %19454 = vst [vmem:[#allocation139_spill] sm:$0xff] %v13699_v19 }
 0x31c   : > { %v2657_v59 = vpop.f32.mrf.mxu2  ;;  %v2858_v38 = vpop.f32.mrf.mxu3 }
 0x31d   : > { %v2859_v29 = vadd.f32 %v2858_v38, %v2650_v61  ;;  %v13682_v54 = vpop.f32.mrf.mxu0  ;;  %v2443_v11 = vpop.f32.mrf.mxu1 }
 0x31e   : > { %v2444_v49 = vadd.f32 %v2443_v11, %v2235_v1  ;;  %v13705_v11 = vpop.permute.xlu1 %1196  ;;  %v13765_v43 = vpop.permute.xlu0 %1216 }
 0x31f   : > { %v3969_v51 = vmax.f32 %v2859_v29, 0.0  ;;  %19455 = vst [vmem:[#allocation140_spill] sm:$0xff] %v13705_v11 }
 0x320   : > { %v3972_v58 = vmax.f32 %v2444_v49, 0.0  ;;  %9564 = vmatmul.msk.bf16.gmra.mxu1 %vm1979_vm9, %v13680_v4  ;;  %19462 = vst [vmem:[#allocation147_spill] sm:$0xff] %v13765_v43 }
 0x321   : > { %v4241_v24 = vmax.f32 %v13596_v27, %v3969_v51  ;;  %9604 = vmatmul.msk.bf16.gmra.mxu3 %vm1979_vm9, %v13680_v4  ;;  %v2655_v51 = vadd.f32 %v2654_v25, %v13705_v11 }
 0x322   : > { %v13697_v61 = vmax.f32 %v13612_v13, %v3972_v58  ;;  %v10583_v58 = vld [vmem:[%s18786_s1 + $0x224] sm:$0xf]  ;;  %v9263_v13 = vld [vmem:[%s18786_s1 + $0x228] sm:$0xf0] }
 0x323   : > { %v13719_v25 = vor.u32 %v10583_v58, %v9263_v13 }
 0x324   : > { %v2659_v34 = vpop.f32.mrf.mxu2  ;;  %v2861_v27 = vpop.f32.mrf.mxu3 }
 0x325   : > { %v2862_v60 = vadd.f32 %v2861_v27, %v2653_v5  ;;  %v13701_v1 = vpop.f32.mrf.mxu0  ;;  %v13703_v38 = vpop.f32.mrf.mxu1  ;;  %19457 = vst [vmem:[#allocation142_spill] sm:$0xff] %v13719_v25 }
 0x326   : > { %v13717_v5 = vpop.permute.xlu2 %1201 }
 0x327   : > { %v3973_v29 = vmax.f32 %v2862_v60, 0.0  ;;  %19456 = vst [vmem:[#allocation141_spill] sm:$0xff] %v13717_v5  ;;  %v2658_v40 = vadd.f32 %v2657_v59, %v13717_v5 }
 0x328   : > { %2293 = vmatmul.bf16.gmra.mxu0 %v13699_v19 }
 0x329   : > { %v4245_v49 = vmax.f32 %v13621_v31, %v3973_v29  ;;  %2701 = vmatmul.bf16.gmra.mxu2 %v13614_v0 }
 0x32c   : > { %v2662_v28 = vpop.f32.mrf.mxu2  ;;  %v2863_v56 = vpop.f32.mrf.mxu3 }
 0x32d   : > { %v2864_v27 = vadd.f32 %v2863_v56, %v2655_v51  ;;  %v13721_v31 = vpop.f32.mrf.mxu0  ;;  %v2448_v60 = vpop.f32.mrf.mxu1 }
 0x32e   : > { %v13729_v17 = vpop.permute.xlu2 %1226 }
 0x32f   : > { %v3977_v29 = vmax.f32 %v2864_v27, 0.0  ;;  %19458 = vst [vmem:[#allocation143_spill] sm:$0xff] %v13729_v17  ;;  %v13733_v27 = vpop.permute.xlu1 %1206 }
 0x330   : > { %9565 = vmatmul.msk.bf16.gmra.mxu1 %vm1979_vm9, %v13719_v25  ;;  %19459 = vst [vmem:[#allocation144_spill] sm:$0xff] %v13733_v27  ;;  %v2660_v59 = vadd.f32 %v2659_v34, %v13733_v27 }
 0x331   : > { %v4249_v4 = vmax.f32 %v13643_v3, %v3977_v29  ;;  %9605 = vmatmul.msk.bf16.gmra.mxu3 %vm1979_vm9, %v13719_v25  ;;  %v10585_v29 = vld [vmem:[%s18786_s1 + $0x234] sm:$0xf] }
 0x334   : > { %v2664_v0 = vpop.f32.mrf.mxu2  ;;  %v2866_v15 = vpop.f32.mrf.mxu3 }
 0x335   : > { %v2867_v51 = vadd.f32 %v2866_v15, %v2658_v40  ;;  %v13731_v58 = vpop.f32.mrf.mxu0  ;;  %v2450_v13 = vpop.f32.mrf.mxu1  ;;  %v9271_v15 = vld [vmem:[%s18786_s1 + $0x238] sm:$0xf0] }
 0x336   : > { %v13746_v23 = vor.u32 %v10585_v29, %v9271_v15  ;;  %v13752_v18 = vpop.permute.xlu2 %1211 }
 0x337   : > { %v3981_v56 = vmax.f32 %v2867_v51, 0.0  ;;  %19461 = vst [vmem:[#allocation146_spill] sm:$0xff] %v13752_v18 }
 0x338   : > { %3362 = vmatmul.bf16.vlgmr.msrb.gmra.mxu0 %v11998_v8  ;;  %19460 = vst [vmem:[#allocation145_spill] sm:$0xff] %v13746_v23 }
 0x339   : > { %v13736_v3 = vmax.f32 %v4237_v53, %v3981_v56  ;;  %2706 = vmatmul.bf16.gmra.mxu2 %v13658_v12  ;;  %v2663_v12 = vadd.f32 %v2662_v28, %v13752_v18  ;;  %v2665_v28 = vadd.f32 %v2664_v0, %v13765_v43  ;;  %v2240_v0 = vadd.f32 %v13568_v37, %v13717_v5 }
 0x33c   : > { %v2667_v40 = vpop.f32.mrf.mxu2  ;;  %v2868_v51 = vpop.f32.mrf.mxu3 }
 0x33d   : > { %v2869_v25 = vadd.f32 %v2868_v51, %v2660_v59  ;;  %v13748_v34 = vpop.f32.mrf.mxu0  ;;  %v13750_v53 = vpop.f32.mrf.mxu1 }
 0x33e   : > { %v13792_v7 = vpop.permute.xlu2 %1241 }
 0x33f   : > { %v3985_v56 = vmax.f32 %v2869_v25, 0.0  ;;  %19465 = vst [vmem:[#allocation150_spill] sm:$0xff] %v13792_v7 }
 0x340   : > { %9566 = vmatmul.msk.bf16.gmra.mxu1 %vm1979_vm9, %v13746_v23 }
 0x341   : > { %v13755_v52 = vmax.f32 %v4241_v24, %v3985_v56  ;;  %9606 = vmatmul.msk.bf16.gmra.mxu3 %vm1979_vm9, %v13746_v23  ;;  %v10587_v56 = vld [vmem:[%s18786_s1 + $0x244] sm:$0xf]  ;;  %v2242_v23 = vadd.f32 %v13591_v50, %v13733_v27 }
 0x343   : > { %v2451_v62 = vadd.f32 %v2450_v13, %v2242_v23 }
 0x344   : > { %v2669_v59 = vpop.f32.mrf.mxu2  ;;  %v2871_v29 = vpop.f32.mrf.mxu3 }
 0x345   : > { %v2872_v15 = vadd.f32 %v2871_v29, %v2663_v12  ;;  %v13761_v51 = vpop.f32.mrf.mxu0  ;;  %v13763_v55 = vpop.f32.mrf.mxu1  ;;  %v9279_v12 = vld [vmem:[%s18786_s1 + $0x248] sm:$0xf0]  ;;  %v2232_v29 = vadd.f32 %v13501_v2, %v13664_v6  ;;  %v2449_v6 = vadd.f32 %v2448_v60, %v2240_v0  ;;  %v3984_v23 = vmax.f32 %v2451_v62, 0.0 }
 0x346   : > { %v13788_v36 = vor.u32 %v10587_v56, %v9279_v12 }
 0x347   : > { %v3989_v25 = vmax.f32 %v2872_v15, 0.0  ;;  %v2441_v37 = vadd.f32 %v13662_v16, %v2232_v29  ;;  %v3980_v56 = vmax.f32 %v2449_v6, 0.0 }
 0x348   : > { %3367 = vmatmul.bf16.gmra.mxu0 %v12061_v21  ;;  %19464 = vst [vmem:[#allocation149_spill] sm:$0xff] %v13788_v36 }
 0x349   : > { %v13768_v24 = vmax.f32 %v4245_v49, %v3989_v25  ;;  %2711 = vmatmul.bf16.gmra.mxu2 %v13699_v19  ;;  %v13784_v25 = vpop.permute.xlu1 %1221  ;;  %v3968_v50 = vmax.f32 %v2441_v37, 0.0  ;;  %v4252_v0 = vmax.f32 %v13656_v39, %v3980_v56  ;;  %v2245_v37 = vadd.f32 %v13616_v46, %v13752_v18  ;;  %v13840_v56 = vpop.permute.xlu0 %1231 }
 0x34a   : > { %19463 = vst [vmem:[#allocation148_spill] sm:$0xff] %v13784_v25  ;;  %v2250_v2 = vadd.f32 %v13660_v32, %v13784_v25  ;;  %v2668_v48 = vadd.f32 %v2667_v40, %v13784_v25  ;;  %v2255_v46 = vadd.f32 %v13701_v1, %v13840_v56  ;;  %v19506_v25 = vld [vmem:[#allocation11_spill] sm:$0xff] }
 0x34b   : > { %19471 = vst [vmem:[#allocation156_spill] sm:$0xff] %v13840_v56 }
 0x34c   : > { %v13782_v49 = vpop.f32.mrf.mxu2  ;;  %v2873_v15 = vpop.f32.mrf.mxu3 }
 0x34d   : > { %v2874_v19 = vadd.f32 %v2873_v15, %v2665_v28  ;;  %v13790_v33 = vpop.f32.mrf.mxu0  ;;  %v2458_v42 = vpop.f32.mrf.mxu1  ;;  %v2252_v28 = vadd.f32 %v13682_v54, %v13729_v17 }
 0x34e   : > { %v2459_v32 = vadd.f32 %v2458_v42, %v2250_v2  ;;  %v13812_v15 = vpop.permute.xlu2 %1266  ;;  %v2670_v42 = vadd.f32 %v2669_v59, %v13729_v17  ;;  %v2237_v59 = vadd.f32 %v13546_v45, %v13705_v11 }
 0x34f   : > { %v3993_v5 = vmax.f32 %v2874_v19, 0.0  ;;  %19466 = vst [vmem:[#allocation151_spill] sm:$0xff] %v13812_v15 }
 0x350   : > { %9567 = vmatmul.msk.bf16.gmra.mxu1 %vm1979_vm9, %v13788_v36  ;;  %v3996_v40 = vmax.f32 %v2459_v32, 0.0 }
 0x351   : > { %v13798_v30 = vmax.f32 %v4249_v4, %v3993_v5  ;;  %9607 = vmatmul.msk.bf16.gmra.mxu3 %vm1979_vm9, %v13788_v36  ;;  %v4240_v5 = vmax.f32 %v13587_v44, %v3968_v50  ;;  %v9287_v44 = vld [vmem:[%s18786_s1 + $0x258] sm:$0xf0]  ;;  %v13826_v39 = vpop.permute.xlu1 %1236  ;;  %v2247_v50 = vadd.f32 %v13639_v47, %v13765_v43 }
 0x352   : > { %19468 = vst [vmem:[#allocation153_spill] sm:$0xff] %v13826_v39 }
 0x353   : > { %v4256_v54 = vmax.f32 %v4240_v5, %v3984_v23  ;;  %v2446_v5 = vadd.f32 %v13703_v38, %v2237_v59 }
 0x354   : > { %v13806_v16 = vpop.f32.mrf.mxu2  ;;  %v2876_v19 = vpop.f32.mrf.mxu3 }
 0x355   : > { %v2877_v60 = vadd.f32 %v2876_v19, %v2668_v48  ;;  %v13808_v13 = vpop.f32.mrf.mxu0  ;;  %v2460_v4 = vpop.f32.mrf.mxu1  ;;  %v10589_v48 = vld [vmem:[%s18786_s1 + $0x254] sm:$0xf]  ;;  %v3976_v38 = vmax.f32 %v2446_v5, 0.0 }
 0x356   : > { %v2461_v29 = vadd.f32 %v2460_v4, %v2252_v28  ;;  %v13844_v45 = vor.u32 %v10589_v48, %v9287_v44  ;;  %v13865_v1 = vpop.permute.xlu2 %1281 }
 0x357   : > { %v3997_v12 = vmax.f32 %v2877_v60, 0.0  ;;  %19474 = vst [vmem:[#allocation159_spill] sm:$0xff] %v13865_v1 }
 0x358   : > { %v4000_v62 = vmax.f32 %v2461_v29, 0.0  ;;  %3372 = vmatmul.bf16.gmra.mxu0 %v12119_v14  ;;  %19472 = vst [vmem:[#allocation157_spill] sm:$0xff] %v13844_v45  ;;  %v2673_v29 = vadd.f32 %v13782_v49, %v13840_v56 }
 0x359   : > { %v13816_v6 = vmax.f32 %v13736_v3, %v3997_v12  ;;  %2716 = vmatmul.bf16.gmra.mxu2 %v12000_v9  ;;  %v13830_v3 = vmax.f32 %v4252_v0, %v3996_v40  ;;  %v2454_v40 = vadd.f32 %v13750_v53, %v2245_v37  ;;  %v2456_v12 = vadd.f32 %v13763_v55, %v2247_v50  ;;  %v13869_v49 = vpop.permute.xlu1 %1261 }
 0x35a   : > { %v13832_v2 = vmax.f32 %v4256_v54, %v4000_v62  ;;  %v2257_v53 = vadd.f32 %v13721_v31, %v13826_v39  ;;  %19475 = vst [vmem:[#allocation160_spill] sm:$0xff] %v13869_v49  ;;  %v4248_v37 = vmax.f32 %v13635_v63, %v3976_v38  ;;  %v10591_v63 = vld [vmem:[%s18786_s1 + $0x264] sm:$0xf] }
 0x35b   : > { %19467 = vst [vmem:[#allocation152_spill] sm:$0xff] %v13816_v6  ;;  %v3988_v55 = vmax.f32 %v2454_v40, 0.0 }
 0x35c   : > { %19469 = vst [vmem:[#allocation154_spill] sm:$0xff] %v13830_v3  ;;  %v13838_v28 = vpop.f32.mrf.mxu2  ;;  %v2878_v32 = vpop.f32.mrf.mxu3  ;;  %v10977_v23 = vpack.i.bf16 %v13832_v2, %v13830_v3 }
 0x35d   : > { %19470 = vst [vmem:[#allocation155_spill] sm:$0xff] %v13832_v2  ;;  %v2879_v19 = vadd.f32 %v2878_v32, %v2670_v42  ;;  %v13846_v60 = vpop.f32.mrf.mxu0  ;;  %v2463_v4 = vpop.f32.mrf.mxu1  ;;  %v4260_v31 = vmax.f32 %v13697_v61, %v3988_v55  ;;  %v9295_v61 = vld [vmem:[%s18786_s1 + $0x268] sm:$0xf0] }
 0x35e   : > { %10978 = vrot.lane.b32.xlu0 %v10977_v23, %s11547_s20  ;;  %10973 = vrot.lane.b32.xlu2 %v10977_v23, %s11548_s21  ;;  %v2464_v54 = vadd.f32 %v2463_v4, %v2255_v46  ;;  %v2675_v46 = vadd.f32 %v13806_v16, %v13826_v39 }
 0x35f   : > { %v4001_v47 = vmax.f32 %v2879_v19, 0.0  ;;  %10988 = vrot.lane.b32.xlu1 %v10977_v23, %s11552_s24 }
 0x360   : > { %9568 = vmatmul.msk.bf16.gmra.mxu1 %vm1979_vm9, %v13844_v45  ;;  %v4004_v50 = vmax.f32 %v2464_v54, 0.0  ;;  %v13899_v54 = vor.u32 %v10591_v63, %v9295_v61 }
 0x361   : > { %v13859_v0 = vmax.f32 %v13755_v52, %v4001_v47  ;;  %9608 = vmatmul.msk.bf16.gmra.mxu3 %vm1979_vm9, %v13844_v45  ;;  %v3992_v52 = vmax.f32 %v2456_v12, 0.0 }
 0x362   : > { %v13891_v16 = vmax.f32 %v4260_v31, %v4004_v50  ;;  %19480 = vst [vmem:[#allocation165_spill] sm:$0xff] %v13899_v54  ;;  %v13919_v50 = vpop.permute.xlu0 %1246 }
 0x363   : > { %19473 = vst [vmem:[#allocation158_spill] sm:$0xff] %v13859_v0  ;;  %v4264_v4 = vmax.f32 %v4248_v37, %v3992_v52 }
 0x364   : > { %v2679_v42 = vpop.f32.mrf.mxu2  ;;  %v2881_v62 = vpop.f32.mrf.mxu3  ;;  %19477 = vst [vmem:[#allocation162_spill] sm:$0xff] %v13891_v16 }
 0x365   : > { %v2882_v48 = vadd.f32 %v2881_v62, %v2673_v29  ;;  %v13871_v44 = vpop.f32.mrf.mxu0  ;;  %v2465_v59 = vpop.f32.mrf.mxu1  ;;  %19483 = vst [vmem:[#allocation168_spill] sm:$0xff] %v13919_v50  ;;  %v2680_v63 = vadd.f32 %v2679_v42, %v13919_v50 }
 0x366   : > { %v2466_v19 = vadd.f32 %v2465_v59, %v2257_v53  ;;  %10983 = vrot.lane.b32.xlu2 %v10977_v23, %s11546_s19  ;;  %v2260_v23 = vadd.f32 %v13731_v58, %v13792_v7  ;;  %v13895_v29 = vpop.permute.xlu2 %1306  ;;  %v13907_v58 = vpop.permute.xlu1 %1301  ;;  %v2678_v59 = vadd.f32 %v13838_v28, %v13792_v7 }
 0x367   : > { %v4005_v32 = vmax.f32 %v2882_v48, 0.0  ;;  %19479 = vst [vmem:[#allocation164_spill] sm:$0xff] %v13895_v29 }
 0x368   : > { %v4008_v47 = vmax.f32 %v2466_v19, 0.0  ;;  %3377 = vmatmul.bf16.gmra.mxu0 %v12175_v10  ;;  %19481 = vst [vmem:[#allocation166_spill] sm:$0xff] %v13907_v58 }
 0x369   : > { %v13879_v5 = vmax.f32 %v13768_v24, %v4005_v32  ;;  %2721 = vmatmul.bf16.gmra.mxu2 %v12063_v22  ;;  %v2262_v32 = vadd.f32 %v13748_v34, %v13919_v50  ;;  %v10593_v34 = vld [vmem:[%s18786_s1 + $0x274] sm:$0xf] }
 0x36a   : > { %v13893_v24 = vmax.f32 %v4264_v4, %v4008_v47 }
 0x36b   : > { %19476 = vst [vmem:[#allocation161_spill] sm:$0xff] %v13879_v5 }
 0x36c   : > { %19478 = vst [vmem:[#allocation163_spill] sm:$0xff] %v13893_v24  ;;  %v2682_v40 = vpop.f32.mrf.mxu2  ;;  %v2883_v12 = vpop.f32.mrf.mxu3  ;;  %v10992_v53 = vpack.i.bf16 %v13893_v24, %v13891_v16 }
 0x36d   : > { %v2884_v38 = vadd.f32 %v2883_v12, %v2675_v46  ;;  %v13901_v55 = vpop.f32.mrf.mxu0  ;;  %v2468_v62 = vpop.f32.mrf.mxu1 }
 0x36e   : > { %v13903_v48 = vadd.f32 %v2468_v62, %v2260_v23  ;;  %10993 = vrot.lane.b32.xlu0 %v10992_v53, %s11548_s21  ;;  %11008 = vrot.lane.b32.xlu2 %v10992_v53, %s11552_s24  ;;  %v13933_v61 = vpop.permute.xlu1 %1251  ;;  %v9303_v23 = vld [vmem:[%s18786_s1 + $0x278] sm:$0xf0] }
 0x36f   : > { %v4009_v52 = vmax.f32 %v2884_v38, 0.0  ;;  %10998 = vrot.lane.b32.xlu1 %v10992_v53, %s11547_s20  ;;  %19485 = vst [vmem:[#allocation170_spill] sm:$0xff] %v13933_v61  ;;  %v2265_v12 = vadd.f32 %v13761_v51, %v13933_v61  ;;  %v13945_v62 = vor.u32 %v10593_v34, %v9303_v23 }
 0x370   : > { %9569 = vmatmul.msk.bf16.gmra.mxu1 %vm1979_vm9, %v13899_v54  ;;  %v4012_v3 = vmax.f32 %v13903_v48, 0.0 }
 0x371   : > { %v13913_v37 = vmax.f32 %v13798_v30, %v4009_v52  ;;  %9609 = vmatmul.msk.bf16.gmra.mxu3 %vm1979_vm9, %v13899_v54  ;;  %v13928_v30 = vpop.permute.xlu2 %1321  ;;  %19486 = vst [vmem:[#allocation171_spill] sm:$0xff] %v13945_v62  ;;  %v19500_v54 = vld [vmem:[#allocation18_spill] sm:$0xff] }
 0x372   : > { %19484 = vst [vmem:[#allocation169_spill] sm:$0xff] %v13928_v30  ;;  %v2300_v36 = vadd.f32 %v19506_v25, %v13928_v30 }
 0x373   : > { %19482 = vst [vmem:[#allocation167_spill] sm:$0xff] %v13913_v37 }
 0x374   : > { %v2684_v19 = vpop.f32.mrf.mxu2  ;;  %v2886_v31 = vpop.f32.mrf.mxu3 }
 0x375   : > { %v2887_v4 = vadd.f32 %v2886_v31, %v2678_v59  ;;  %v13923_v46 = vpop.f32.mrf.mxu0  ;;  %v2470_v28 = vpop.f32.mrf.mxu1  ;;  %v2683_v31 = vadd.f32 %v2682_v40, %v13933_v61 }
 0x376   : > { %v13925_v47 = vadd.f32 %v2470_v28, %v2262_v32  ;;  %11003 = vrot.lane.b32.xlu0 %v10992_v53, %s11546_s19  ;;  %v13966_v40 = vpop.permute.xlu0 %1286 }
 0x377   : > { %19488 = vst [vmem:[#allocation173_spill] sm:$0xff] %v13966_v40 }
 0x378   : > { %3382 = vmatmul.bf16.gmra.mxu0 %v12226_v57 }
 0x379   : > { %3139 = vmatmul.bf16.vlgmr.msra.gmra.mxu2 %v12063_v22  ;;  %v13956_v51 = vpop.permute.xlu2 %1256 }
 0x37a   : > { %19487 = vst [vmem:[#allocation172_spill] sm:$0xff] %v13956_v51  ;;  %v2267_v28 = vadd.f32 %v13790_v33, %v13956_v51  ;;  %v2685_v24 = vadd.f32 %v2684_v19, %v13956_v51  ;;  %v2270_v33 = vadd.f32 %v13808_v13, %v13869_v49  ;;  %v2272_v13 = vadd.f32 %v13846_v60, %v13812_v15 }
 0x37c   : > { %v2687_v38 = vpop.f32.mrf.mxu2  ;;  %v2888_v53 = vpop.f32.mrf.mxu3 }
 0x37d   : > { %v13943_v42 = vadd.f32 %v2888_v53, %v2680_v63  ;;  %v13947_v52 = vpop.f32.mrf.mxu0  ;;  %v2473_v59 = vpop.f32.mrf.mxu1  ;;  %v2688_v19 = vadd.f32 %v2687_v38, %v13869_v49  ;;  %v4013_v38 = vmax.f32 %v2887_v4, 0.0 }
 0x37e   : > { %v13949_v32 = vadd.f32 %v2473_v59, %v2265_v12  ;;  %v13983_v50 = vpop.permute.xlu0 %1326 }
 0x37f   : > { %19489 = vst [vmem:[#allocation174_spill] sm:$0xff] %v13983_v50 }
 0x380   : > { %9570 = vmatmul.msk.bf16.gmra.mxu1 %vm1979_vm9, %v13945_v62 }
 0x381   : > { %9610 = vmatmul.msk.bf16.gmra.mxu3 %vm1979_vm9, %v13945_v62 }
 0x384   : > { %v2689_v63 = vpop.f32.mrf.mxu2  ;;  %v2891_v34 = vpop.f32.mrf.mxu3 }
 0x385   : > { %v13960_v23 = vadd.f32 %v2891_v34, %v2683_v31  ;;  %v13962_v53 = vpop.f32.mrf.mxu0  ;;  %v2475_v12 = vpop.f32.mrf.mxu1 }
 0x386   : > { %v13964_v59 = vadd.f32 %v2475_v12, %v2267_v28 }
 0x388   : > { %3387 = vmatmul.bf16.gmra.mxu0 %v12270_v26 }
 0x389   : > { %9651 = vmatmul.msk.bf16.vlgmr.msrb.gmra.mxu2 %vm1979_vm9, %v12202_v35 }
 0x38c   : > { %v2692_v16 = vpop.f32.mrf.mxu2  ;;  %v2893_v31 = vpop.f32.mrf.mxu3 }
 0x38d   : > { %v13974_v34 = vadd.f32 %v2893_v31, %v2685_v24  ;;  %v13976_v2 = vpop.f32.mrf.mxu0  ;;  %v2478_v28 = vpop.f32.mrf.mxu1 }
 0x38e   : > { %v2479_v12 = vadd.f32 %v2478_v28, %v2270_v33 }
 0x390   : > { %v4028_v51 = vmax.f32 %v2479_v12, 0.0  ;;  %2944 = vmatmul.bf16.vlgmr.msrb.gmra.mxu1 %v11998_v8  ;;  %v4016_v8 = vmax.f32 %v13925_v47, 0.0 }
 0x391   : > { %9611 = vmatmul.msk.bf16.vlgmr.msrb.gmra.mxu3 %vm1979_vm9, %v12202_v35  ;;  %v2690_v35 = vadd.f32 %v2689_v63, %v13812_v15 }
 0x392   : > { %v13987_v24 = vmax.f32 %v4012_v3, %v4028_v51  ;;  %v13996_v3 = vpop.permute.xlu0 %1271 }
 0x393   : > { %19490 = vst [vmem:[#allocation175_spill] sm:$0xff] %v13996_v3  ;;  %v2275_v60 = vadd.f32 %v13871_v44, %v13996_v3  ;;  %v14010_v44 = vpop.permute.xlu1 %1276 }
 0x394   : > { %v2694_v31 = vpop.f32.mrf.mxu2  ;;  %v2896_v61 = vpop.f32.mrf.mxu3  ;;  %19491 = vst [vmem:[#allocation176_spill] sm:$0xff] %v14010_v44 }
 0x395   : > { %v2897_v33 = vadd.f32 %v2896_v61, %v2688_v19  ;;  %v13989_v28 = vpop.f32.mrf.mxu0  ;;  %v2480_v48 = vpop.f32.mrf.mxu1 }
 0x396   : > { %v2481_v49 = vadd.f32 %v2480_v48, %v2272_v13  ;;  %v4020_v48 = vmax.f32 %v13949_v32, 0.0 }
 0x397   : > { %v4029_v12 = vmax.f32 %v2897_v33, 0.0 }
 0x398   : > { %v4032_v37 = vmax.f32 %v2481_v49, 0.0  ;;  %3392 = vmatmul.bf16.gmra.mxu0 %v12312_v41  ;;  %v4017_v49 = vmax.f32 %v13943_v42, 0.0 }
 0x399   : > { %v4285_v62 = vmax.f32 %v4013_v38, %v4029_v12  ;;  %9652 = vmatmul.msk.bf16.gmra.mxu2 %vm1979_vm9, %v12247_v20  ;;  %v2693_v38 = vadd.f32 %v2692_v16, %v13996_v3  ;;  %v4021_v16 = vmax.f32 %v13960_v23, 0.0 }
 0x39a   : > { %v14000_v61 = vmax.f32 %v4016_v8, %v4032_v37  ;;  %v2277_v37 = vadd.f32 %v13901_v55, %v14010_v44  ;;  %v19493_v55 = vld [vmem:[#allocation6_spill] sm:$0xff] }
 0x39c   : > { %v2697_v4 = vpop.f32.mrf.mxu2  ;;  %v2898_v51 = vpop.f32.mrf.mxu3 }
 0x39d   : > { %v2899_v19 = vadd.f32 %v2898_v51, %v2690_v35  ;;  %v14002_v47 = vpop.f32.mrf.mxu0  ;;  %v2483_v63 = vpop.f32.mrf.mxu1 }
 0x39e   : > { %v2484_v33 = vadd.f32 %v2483_v63, %v2275_v60 }
 0x39f   : > { %v4033_v13 = vmax.f32 %v2899_v19, 0.0 }
 0x3a0   : > { %v4036_v15 = vmax.f32 %v2484_v33, 0.0  ;;  %2949 = vmatmul.bf16.gmra.mxu1 %v12061_v21  ;;  %v4024_v21 = vmax.f32 %v13964_v59, 0.0  ;;  %v19492_v33 = vld [vmem:[#allocation8_spill] sm:$0xff] }
 0x3a1   : > { %v4289_v12 = vmax.f32 %v4017_v49, %v4033_v13  ;;  %9612 = vmatmul.msk.bf16.gmra.mxu3 %vm1979_vm9, %v12247_v20  ;;  %v2695_v20 = vadd.f32 %v2694_v31, %v14010_v44  ;;  %v4025_v31 = vmax.f32 %v13974_v34, 0.0 }
 0x3a2   : > { %v4292_v8 = vmax.f32 %v4020_v48, %v4036_v15  ;;  %v2280_v15 = vadd.f32 %v13923_v46, %v13865_v1 }
 0x3a4   : > { %v2699_v42 = vpop.f32.mrf.mxu2  ;;  %v2901_v35 = vpop.f32.mrf.mxu3 }
 0x3a5   : > { %v2902_v60 = vadd.f32 %v2901_v35, %v2693_v38  ;;  %v14014_v51 = vpop.f32.mrf.mxu0  ;;  %v2485_v32 = vpop.f32.mrf.mxu1 }
 0x3a6   : > { %v2486_v63 = vadd.f32 %v2485_v32, %v2277_v37 }
 0x3a7   : > { %v4037_v19 = vmax.f32 %v2902_v60, 0.0 }
 0x3a8   : > { %v4040_v13 = vmax.f32 %v2486_v63, 0.0  ;;  %3397 = vmatmul.bf16.gmra.mxu0 %v19492_v33 }
 0x3a9   : > { %v4293_v49 = vmax.f32 %v4021_v16, %v4037_v19  ;;  %9653 = vmatmul.msk.bf16.gmra.mxu2 %vm1979_vm9, %v19493_v55  ;;  %v2698_v16 = vadd.f32 %v2697_v4, %v13865_v1  ;;  %v2700_v4 = vadd.f32 %v2699_v42, %v13966_v40 }
 0x3aa   : > { %v14024_v48 = vmax.f32 %v4024_v21, %v4040_v13 }
 0x3ac   : > { %v2702_v38 = vpop.f32.mrf.mxu2  ;;  %v2903_v23 = vpop.f32.mrf.mxu3 }
 0x3ad   : > { %v2904_v35 = vadd.f32 %v2903_v23, %v2695_v20  ;;  %v14026_v37 = vpop.f32.mrf.mxu0  ;;  %v2488_v59 = vpop.f32.mrf.mxu1 }
 0x3ae   : > { %v2489_v32 = vadd.f32 %v2488_v59, %v2280_v15  ;;  %v19494_v59 = vld [vmem:[#allocation10_spill] sm:$0xff] }
 0x3af   : > { %v4041_v60 = vmax.f32 %v2904_v35, 0.0 }
 0x3b0   : > { %v4044_v63 = vmax.f32 %v2489_v32, 0.0  ;;  %2954 = vmatmul.bf16.gmra.mxu1 %v12119_v14  ;;  %v19495_v14 = vld [vmem:[#allocation7_spill] sm:$0xff] }
 0x3b1   : > { %v4297_v19 = vmax.f32 %v4025_v31, %v4041_v60  ;;  %9613 = vmatmul.msk.bf16.gmra.mxu3 %vm1979_vm9, %v19493_v55  ;;  %v14044_v55 = vpop.permute.xlu1 %1291 }
 0x3b2   : > { %v14034_v46 = vmax.f32 %v13987_v24, %v4044_v63  ;;  %19496 = vst [vmem:[#allocation8_spill] sm:$0xff] %v14044_v55  ;;  %v2285_v24 = vadd.f32 %v13962_v53, %v14044_v55 }
 0x3b4   : > { %v2704_v21 = vpop.f32.mrf.mxu2  ;;  %v2906_v20 = vpop.f32.mrf.mxu3 }
 0x3b5   : > { %v2907_v13 = vadd.f32 %v2906_v20, %v2698_v16  ;;  %v14036_v23 = vpop.f32.mrf.mxu1  ;;  %v14038_v34 = vpop.f32.mrf.mxu0 }
 0x3b7   : > { %v4045_v15 = vmax.f32 %v2907_v13, 0.0 }
 0x3b8   : > { %3402 = vmatmul.bf16.gmra.mxu0 %v19494_v59 }
 0x3b9   : > { %v4301_v35 = vmax.f32 %v4285_v62, %v4045_v15  ;;  %9654 = vmatmul.msk.bf16.gmra.mxu2 %vm1979_vm9, %v19495_v14  ;;  %v2703_v62 = vadd.f32 %v2702_v38, %v14044_v55 }
 0x3bc   : > { %v2707_v31 = vpop.f32.mrf.mxu2  ;;  %v2908_v60 = vpop.f32.mrf.mxu3 }
 0x3bd   : > { %v2909_v32 = vadd.f32 %v2908_v60, %v2700_v4  ;;  %v2493_v16 = vpop.f32.mrf.mxu1  ;;  %v14048_v63 = vpop.f32.mrf.mxu0 }
 0x3be   : > { %v2494_v13 = vadd.f32 %v2493_v16, %v2285_v24  ;;  %v14060_v24 = vpop.permute.xlu2 %1296  ;;  %v19498_v16 = vld [vmem:[#allocation14_spill] sm:$0xff] }
 0x3bf   : > { %v4049_v20 = vmax.f32 %v2909_v32, 0.0  ;;  %19497 = vst [vmem:[#allocation6_spill] sm:$0xff] %v14060_v24 }
 0x3c0   : > { %v4052_v15 = vmax.f32 %v2494_v13, 0.0  ;;  %2959 = vmatmul.bf16.gmra.mxu1 %v12175_v10  ;;  %v19499_v10 = vld [vmem:[#allocation9_spill] sm:$0xff] }
 0x3c1   : > { %v4305_v42 = vmax.f32 %v4289_v12, %v4049_v20  ;;  %9614 = vmatmul.msk.bf16.gmra.mxu3 %vm1979_vm9, %v19495_v14  ;;  %v2705_v12 = vadd.f32 %v2704_v21, %v14060_v24 }
 0x3c2   : > { %v14054_v44 = vmax.f32 %v4292_v8, %v4052_v15  ;;  %v2708_v15 = vadd.f32 %v2707_v31, %v13907_v58 }
 0x3c4   : > { %v2709_v53 = vpop.f32.mrf.mxu2  ;;  %v2911_v1 = vpop.f32.mrf.mxu3 }
 0x3c5   : > { %v2912_v3 = vadd.f32 %v2911_v1, %v2703_v62  ;;  %v14056_v4 = vpop.f32.mrf.mxu1  ;;  %v14058_v60 = vpop.f32.mrf.mxu0 }
 0x3c7   : > { %v4053_v32 = vmax.f32 %v2912_v3, 0.0 }
 0x3c8   : > { %3407 = vmatmul.bf16.gmra.mxu0 %v19498_v16 }
 0x3c9   : > { %v4309_v38 = vmax.f32 %v4293_v49, %v4053_v32  ;;  %9655 = vmatmul.msk.bf16.gmra.mxu2 %vm1979_vm9, %v19499_v10 }
 0x3cc   : > { %v2712_v8 = vpop.f32.mrf.mxu2  ;;  %v2913_v14 = vpop.f32.mrf.mxu3 }
 0x3cd   : > { %v2914_v20 = vadd.f32 %v2913_v14, %v2705_v12  ;;  %v2498_v13 = vpop.f32.mrf.mxu1  ;;  %v14066_v1 = vpop.f32.mrf.mxu0  ;;  %v2710_v12 = vadd.f32 %v2709_v53, %v13895_v29 }
 0x3cf   : > { %v4057_v62 = vmax.f32 %v2914_v20, 0.0  ;;  %v19501_v20 = vld [vmem:[#allocation12_spill] sm:$0xff] }
 0x3d0   : > { %2964 = vmatmul.bf16.gmra.mxu1 %v12226_v57 }
 0x3d1   : > { %v4313_v3 = vmax.f32 %v4297_v19, %v4057_v62  ;;  %9615 = vmatmul.msk.bf16.gmra.mxu3 %vm1979_vm9, %v19499_v10 }
 0x3d4   : > { %v2714_v49 = vpop.f32.mrf.mxu2  ;;  %v2916_v21 = vpop.f32.mrf.mxu3 }
 0x3d5   : > { %v2917_v32 = vadd.f32 %v2916_v21, %v2708_v15  ;;  %v2500_v55 = vpop.f32.mrf.mxu1  ;;  %v14072_v5 = vpop.f32.mrf.mxu0 }
 0x3d6   : > { %v14082_v21 = vpop.permute.xlu0 %1311 }
 0x3d7   : > { %v4061_v39 = vmax.f32 %v2917_v32, 0.0  ;;  %19502 = vst [vmem:[#allocation10_spill] sm:$0xff] %v14082_v21  ;;  %v2713_v32 = vadd.f32 %v2712_v8, %v14082_v21 }
 0x3d8   : > { %3412 = vmatmul.bf16.gmra.mxu0 %v19500_v54 }
 0x3d9   : > { %v4317_v14 = vmax.f32 %v4301_v35, %v4061_v39  ;;  %9656 = vmatmul.msk.bf16.gmra.mxu2 %vm1979_vm9, %v19501_v20 }
 0x3dc   : > { %v2717_v19 = vpop.f32.mrf.mxu2  ;;  %v2918_v57 = vpop.f32.mrf.mxu3 }
 0x3dd   : > { %v2919_v31 = vadd.f32 %v2918_v57, %v2710_v12  ;;  %v14078_v62 = vpop.f32.mrf.mxu1  ;;  %v14080_v10 = vpop.f32.mrf.mxu0 }
 0x3df   : > { %v4065_v15 = vmax.f32 %v2919_v31, 0.0  ;;  %v14094_v31 = vpop.permute.xlu1 %1316 }
 0x3e0   : > { %2969 = vmatmul.bf16.gmra.mxu1 %v12270_v26  ;;  %19503 = vst [vmem:[#allocation7_spill] sm:$0xff] %v14094_v31  ;;  %v2715_v6 = vadd.f32 %v2714_v49, %v14094_v31  ;;  %v19505_v26 = vld [vmem:[#allocation16_spill] sm:$0xff] }
 0x3e1   : > { %v14085_v7 = vmax.f32 %v4305_v42, %v4065_v15  ;;  %9616 = vmatmul.msk.bf16.gmra.mxu3 %vm1979_vm9, %v19501_v20  ;;  %v19504_v42 = vld [vmem:[#allocation20_spill] sm:$0xff]  ;;  %v2282_v20 = vadd.f32 %v13947_v52, %v13966_v40  ;;  %v2290_v15 = vadd.f32 %v13989_v28, %v13907_v58  ;;  %v2718_v40 = vadd.f32 %v2717_v19, %v13928_v30 }
 0x3e3   : > { %v2499_v17 = vadd.f32 %v2498_v13, %v2290_v15 }
 0x3e4   : > { %v2719_v39 = vpop.f32.mrf.mxu2  ;;  %v2921_v35 = vpop.f32.mrf.mxu3 }
 0x3e5   : > { %v2922_v53 = vadd.f32 %v2921_v35, %v2713_v32  ;;  %v14090_v12 = vpop.f32.mrf.mxu1  ;;  %v14092_v57 = vpop.f32.mrf.mxu0 }
 0x3e7   : > { %v4069_v0 = vmax.f32 %v2922_v53, 0.0  ;;  %v2292_v53 = vadd.f32 %v14002_v47, %v13895_v29 }
 0x3e8   : > { %3417 = vmatmul.bf16.gmra.mxu0 %v19504_v42 }
 0x3e9   : > { %v14097_v8 = vmax.f32 %v4309_v38, %v4069_v0  ;;  %9657 = vmatmul.msk.bf16.gmra.mxu2 %vm1979_vm9, %v19505_v26  ;;  %v2491_v38 = vadd.f32 %v14036_v23, %v2282_v20  ;;  %v2501_v52 = vadd.f32 %v2500_v55, %v2292_v53  ;;  %v19507_v20 = vld [vmem:[#allocation13_spill] sm:$0xff] }
 0x3ea   : > { %v2302_v25 = vadd.f32 %v19507_v20, %v13983_v50 }
 0x3ec   : > { %v2722_v32 = vpop.f32.mrf.mxu2  ;;  %v2923_v35 = vpop.f32.mrf.mxu3 }
 0x3ed   : > { %v2924_v56 = vadd.f32 %v2923_v35, %v2715_v6  ;;  %v2508_v49 = vpop.f32.mrf.mxu1  ;;  %v14108_v0 = vpop.f32.mrf.mxu0  ;;  %v4048_v6 = vmax.f32 %v2491_v38, 0.0  ;;  %v4060_v35 = vmax.f32 %v2499_v17, 0.0  ;;  %v19510_v38 = vld [vmem:[#allocation19_spill] sm:$0xff] }
 0x3ee   : > { %v2509_v47 = vadd.f32 %v2508_v49, %v2300_v36  ;;  %v2720_v36 = vadd.f32 %v2719_v39, %v13983_v50 }
 0x3ef   : > { %v4073_v45 = vmax.f32 %v2924_v56, 0.0  ;;  %v4064_v56 = vmax.f32 %v2501_v52, 0.0  ;;  %v2287_v52 = vadd.f32 %v13976_v2, %v14060_v24 }
 0x3f0   : > { %2974 = vmatmul.bf16.gmra.mxu1 %v12312_v41 }
 0x3f1   : > { %v14114_v28 = vmax.f32 %v4313_v3, %v4073_v45  ;;  %9617 = vmatmul.msk.bf16.gmra.mxu3 %vm1979_vm9, %v19505_v26  ;;  %v4304_v45 = vmax.f32 %v14000_v61, %v4048_v6  ;;  %v4076_v3 = vmax.f32 %v2509_v47, 0.0  ;;  %v4316_v26 = vmax.f32 %v14034_v46, %v4060_v35 }
 0x3f2   : > { %v2295_v46 = vadd.f32 %v14014_v51, %v14082_v21  ;;  %v2297_v35 = vadd.f32 %v14026_v37, %v14094_v31  ;;  %v2496_v20 = vadd.f32 %v14056_v4, %v2287_v52  ;;  %v14164_v4 = vpop.permute.xlu2 %1336  ;;  %v19554_v31 = vld [vmem:[#allocation56_spill] sm:$0xff] }
 0x3f3   : > { %v4320_v53 = vmax.f32 %v4304_v45, %v4064_v56  ;;  %v14133_v61 = vmax.f32 %v4316_v26, %v4076_v3  ;;  %19517 = vst [vmem:[#allocation11_spill] sm:$0xff] %v14164_v4 }
 0x3f4   : > { %v2724_v29 = vpop.f32.mrf.mxu2  ;;  %v2926_v23 = vpop.f32.mrf.mxu3  ;;  %v2504_v51 = vadd.f32 %v14078_v62, %v2295_v46  ;;  %v2506_v37 = vadd.f32 %v14090_v12, %v2297_v35  ;;  %v4056_v62 = vmax.f32 %v2496_v20, 0.0 }
 0x3f5   : > { %v2927_v13 = vadd.f32 %v2926_v23, %v2718_v40  ;;  %v2510_v55 = vpop.f32.mrf.mxu1  ;;  %v14121_v15 = vpop.f32.mrf.mxu0  ;;  %v19509_v40 = vld [vmem:[#allocation24_spill] sm:$0xff]  ;;  %19511 = vst [vmem:[#allocation9_spill] sm:$0xff] %v14133_v61 }
 0x3f6   : > { %v2511_v19 = vadd.f32 %v2510_v55, %v2302_v25  ;;  %v19515_v55 = vld [vmem:[#allocation15_spill] sm:$0xff]  ;;  %v4068_v26 = vmax.f32 %v2504_v51, 0.0  ;;  %v2725_v51 = vadd.f32 %v2724_v29, %v14164_v4 }
 0x3f7   : > { %v4077_v41 = vmax.f32 %v2927_v13, 0.0 }
 0x3f8   : > { %v4080_v49 = vmax.f32 %v2511_v19, 0.0  ;;  %3422 = vmatmul.bf16.gmra.mxu0 %v19509_v40  ;;  %v4324_v20 = vmax.f32 %v14054_v44, %v4068_v26 }
 0x3f9   : > { %v14126_v17 = vmax.f32 %v4317_v14, %v4077_v41  ;;  %9658 = vmatmul.msk.bf16.gmra.mxu2 %vm1979_vm9, %v19510_v38  ;;  %v14141_v14 = vpop.permute.xlu1 %1331 }
 0x3fa   : > { %v14135_v6 = vmax.f32 %v4320_v53, %v4080_v49  ;;  %19514 = vst [vmem:[#allocation20_spill] sm:$0xff] %v14141_v14  ;;  %v2305_v45 = vadd.f32 %v19515_v55, %v14141_v14  ;;  %v2723_v3 = vadd.f32 %v2722_v32, %v14141_v14  ;;  %v4072_v49 = vmax.f32 %v2506_v37, 0.0  ;;  %v19519_v32 = vld [vmem:[#allocation17_spill] sm:$0xff]  ;;  %v19522_v37 = vld [vmem:[#allocation28_spill] sm:$0xff] }
 0x3fb   : > { %19508 = vst [vmem:[#allocation14_spill] sm:$0xff] %v14126_v17  ;;  %v2307_v52 = vadd.f32 %v19519_v32, %v14164_v4  ;;  %v19549_v17 = vld [vmem:[#allocation46_spill] sm:$0xff] }
 0x3fc   : > { %19512 = vst [vmem:[#allocation18_spill] sm:$0xff] %v14135_v6  ;;  %v2928_v47 = vpop.f32.mrf.mxu3  ;;  %v14139_v39 = vpop.f32.mrf.mxu2  ;;  %v11027_v56 = vpack.i.bf16 %v14135_v6, %v14133_v61 }
 0x3fd   : > { %19513 = vst [vmem:[#allocation12_spill] sm:$0xff] %v14139_v39  ;;  %v2929_v23 = vadd.f32 %v2928_v47, %v2720_v36  ;;  %v2513_v2 = vpop.f32.mrf.mxu1  ;;  %v14147_v13 = vpop.f32.mrf.mxu0 }
 0x3fe   : > { %11028 = vrot.lane.b32.xlu0 %v11027_v56, %s11552_s24  ;;  %11018 = vrot.lane.b32.xlu2 %v11027_v56, %s11547_s20  ;;  %v2514_v19 = vadd.f32 %v2513_v2, %v2305_v45 }
 0x3ff   : > { %v4081_v25 = vmax.f32 %v2929_v23, 0.0  ;;  %11013 = vrot.lane.b32.xlu1 %v11027_v56, %s11548_s21  ;;  %v19520_v23 = vld [vmem:[#allocation21_spill] sm:$0xff] }
 0x400   : > { %2979 = vmatmul.bf16.gmra.mxu1 %v19492_v33  ;;  %v4312_v33 = vmax.f32 %v14024_v48, %v4056_v62  ;;  %v4084_v47 = vmax.f32 %v2514_v19, 0.0  ;;  %v3364_v2 = vadd.f32 %v14038_v34, %v19520_v23  ;;  %v19523_v48 = vld [vmem:[#allocation22_spill] sm:$0xff] }
 0x401   : > { %v14159_v41 = vmax.f32 %v14085_v7, %v4081_v25  ;;  %9618 = vmatmul.msk.bf16.gmra.mxu3 %vm1979_vm9, %v19510_v38 }
 0x402   : > { %v4328_v25 = vmax.f32 %v4312_v33, %v4072_v49  ;;  %v19527_v49 = vld [vmem:[#allocation23_spill] sm:$0xff] }
 0x403   : > { %19516 = vst [vmem:[#allocation16_spill] sm:$0xff] %v14159_v41 }
 0x404   : > { %v2931_v53 = vpop.f32.mrf.mxu3  ;;  %v14166_v36 = vpop.f32.mrf.mxu2 }
 0x405   : > { %19518 = vst [vmem:[#allocation13_spill] sm:$0xff] %v14166_v36  ;;  %v2932_v12 = vadd.f32 %v2931_v53, %v2723_v3  ;;  %v2515_v7 = vpop.f32.mrf.mxu1  ;;  %v14170_v46 = vpop.f32.mrf.mxu0  ;;  %v14184_v3 = vmax.f32 %v4324_v20, %v4084_v47  ;;  %v19529_v20 = vld [vmem:[#allocation25_spill] sm:$0xff] }
 0x406   : > { %v2516_v35 = vadd.f32 %v2515_v7, %v2307_v52 }
 0x407   : > { %v4085_v38 = vmax.f32 %v2932_v12, 0.0  ;;  %11023 = vrot.lane.b32.xlu1 %v11027_v56, %s11546_s19  ;;  %19524 = vst [vmem:[#allocation19_spill] sm:$0xff] %v14184_v3  ;;  %v3366_v12 = vadd.f32 %v14048_v63, %v19527_v49  ;;  %v3369_v63 = vadd.f32 %v14058_v60, %v19529_v20 }
 0x408   : > { %v4088_v45 = vmax.f32 %v2516_v35, 0.0  ;;  %3427 = vmatmul.bf16.gmra.mxu0 %v19522_v37 }
 0x409   : > { %v14179_v55 = vmax.f32 %v14097_v8, %v4085_v38  ;;  %9659 = vmatmul.msk.bf16.gmra.mxu2 %vm1979_vm9, %v19523_v48 }
 0x40a   : > { %v14186_v62 = vmax.f32 %v4328_v25, %v4088_v45  ;;  %v19530_v25 = vld [vmem:[#allocation32_spill] sm:$0xff] }
 0x40b   : > { %19521 = vst [vmem:[#allocation24_spill] sm:$0xff] %v14179_v55 }
 0x40c   : > { %19525 = vst [vmem:[#allocation15_spill] sm:$0xff] %v14186_v62  ;;  %v2933_v34 = vpop.f32.mrf.mxu3  ;;  %v3572_v44 = vpop.f32.mrf.mxu2  ;;  %v14190_v29 = vpack.i.bf16 %v14186_v62, %v14184_v3 }
 0x40d   : > { %v2934_v19 = vadd.f32 %v2933_v34, %v2725_v51  ;;  %v3573_v56 = vadd.f32 %v3572_v44, %v3364_v2  ;;  %v2945_v8 = vpop.f32.mrf.mxu1  ;;  %v14192_v26 = vpop.f32.mrf.mxu0 }
 0x40e   : > { %19526 = vst [vmem:[#allocation17_spill] sm:$0xff] %v14190_v29  ;;  %11033 = vrot.lane.b32.xlu2 %v14190_v29, %s11548_s21  ;;  %v2946_v52 = vadd.f32 %v2945_v8, %v19520_v23 }
 0x40f   : > { %v4089_v53 = vmax.f32 %v2934_v19, 0.0  ;;  %v19532_v19 = vld [vmem:[#allocation27_spill] sm:$0xff] }
 0x410   : > { %2984 = vmatmul.bf16.gmra.mxu1 %v19494_v59  ;;  %v3371_v8 = vadd.f32 %v14066_v1, %v19532_v19  ;;  %v19534_v1 = vld [vmem:[#allocation36_spill] sm:$0xff] }
 0x411   : > { %v14199_v32 = vmax.f32 %v14114_v28, %v4089_v53  ;;  %9619 = vmatmul.msk.bf16.gmra.mxu3 %vm1979_vm9, %v19523_v48  ;;  %v19531_v28 = vld [vmem:[#allocation26_spill] sm:$0xff] }
 0x413   : > { %19528 = vst [vmem:[#allocation21_spill] sm:$0xff] %v14199_v32 }
 0x414   : > { %v3154_v7 = vpop.f32.mrf.mxu3  ;;  %v3574_v33 = vpop.f32.mrf.mxu2 }
 0x415   : > { %v3155_v47 = vadd.f32 %v3154_v7, %v2946_v52  ;;  %v3575_v38 = vadd.f32 %v3574_v33, %v3366_v12  ;;  %v2947_v35 = vpop.f32.mrf.mxu1  ;;  %v14205_v2 = vpop.f32.mrf.mxu0 }
 0x416   : > { %v2948_v59 = vadd.f32 %v2947_v35, %v19527_v49  ;;  %v19533_v35 = vld [vmem:[#allocation29_spill] sm:$0xff] }
 0x418   : > { %3432 = vmatmul.bf16.gmra.mxu0 %v19530_v25 }
 0x419   : > { %9660 = vmatmul.msk.bf16.gmra.mxu2 %vm1979_vm9, %v19531_v28 }
 0x41c   : > { %v3156_v23 = vpop.f32.mrf.mxu3  ;;  %v3577_v51 = vpop.f32.mrf.mxu2 }
 0x41d   : > { %v3157_v45 = vadd.f32 %v3156_v23, %v2948_v59  ;;  %v3578_v48 = vadd.f32 %v3577_v51, %v3369_v63  ;;  %v2950_v34 = vpop.f32.mrf.mxu1  ;;  %v14213_v44 = vpop.f32.mrf.mxu0  ;;  %v3374_v63 = vadd.f32 %v14072_v5, %v19533_v35  ;;  %v3775_v23 = vmax.f32 %v3573_v56, 0.0 }
 0x41e   : > { %v2951_v53 = vadd.f32 %v2950_v34, %v19529_v20  ;;  %v19535_v20 = vld [vmem:[#allocation30_spill] sm:$0xff] }
 0x41f   : > { %v3778_v61 = vmax.f32 %v3157_v45, 0.0 }
 0x420   : > { %2989 = vmatmul.bf16.gmra.mxu1 %v19498_v16 }
 0x421   : > { %9620 = vmatmul.msk.bf16.gmra.mxu3 %vm1979_vm9, %v19531_v28 }
 0x424   : > { %v3159_v60 = vpop.f32.mrf.mxu3  ;;  %v3579_v12 = vpop.f32.mrf.mxu2 }
 0x425   : > { %v14221_v49 = vadd.f32 %v3159_v60, %v2951_v53  ;;  %v14223_v52 = vadd.f32 %v3579_v12, %v3371_v8  ;;  %v2952_v7 = vpop.f32.mrf.mxu1  ;;  %v14225_v33 = vpop.f32.mrf.mxu0  ;;  %v19536_v12 = vld [vmem:[#allocation31_spill] sm:$0xff] }
 0x426   : > { %v2953_v16 = vadd.f32 %v2952_v7, %v19532_v19  ;;  %v3376_v5 = vadd.f32 %v14080_v10, %v19536_v12  ;;  %v3779_v7 = vmax.f32 %v3575_v38, 0.0 }
 0x428   : > { %3437 = vmatmul.bf16.gmra.mxu0 %v19534_v1 }
 0x429   : > { %9661 = vmatmul.msk.bf16.gmra.mxu2 %vm1979_vm9, %v19535_v20 }
 0x42c   : > { %v3161_v28 = vpop.f32.mrf.mxu3  ;;  %v3582_v59 = vpop.f32.mrf.mxu2 }
 0x42d   : > { %v14233_v51 = vadd.f32 %v3161_v28, %v2953_v16  ;;  %v3583_v34 = vadd.f32 %v3582_v59, %v3374_v63  ;;  %v2955_v8 = vpop.f32.mrf.mxu1  ;;  %v14235_v53 = vpop.f32.mrf.mxu0 }
 0x42e   : > { %v2956_v62 = vadd.f32 %v2955_v8, %v19533_v35  ;;  %v19538_v8 = vld [vmem:[#allocation39_spill] sm:$0xff] }
 0x42f   : > { %v3791_v60 = vmax.f32 %v3583_v34, 0.0  ;;  %v3774_v34 = vmax.f32 %v3155_v47, 0.0 }
 0x430   : > { %2994 = vmatmul.bf16.gmra.mxu1 %v19500_v54 }
 0x431   : > { %v14239_v3 = vmax.f32 %v3775_v23, %v3791_v60  ;;  %9621 = vmatmul.msk.bf16.gmra.mxu3 %vm1979_vm9, %v19535_v20  ;;  %v19537_v23 = vld [vmem:[#allocation33_spill] sm:$0xff]  ;;  %v19539_v20 = vld [vmem:[#allocation34_spill] sm:$0xff] }
 0x432   : > { %v3379_v60 = vadd.f32 %v14092_v57, %v19537_v23 }
 0x434   : > { %v3164_v56 = vpop.f32.mrf.mxu3  ;;  %v3584_v19 = vpop.f32.mrf.mxu2 }
 0x435   : > { %v3165_v63 = vadd.f32 %v3164_v56, %v2956_v62  ;;  %v3585_v16 = vadd.f32 %v3584_v19, %v3376_v5  ;;  %v2957_v28 = vpop.f32.mrf.mxu1  ;;  %v14245_v59 = vpop.f32.mrf.mxu0  ;;  %v3783_v56 = vmax.f32 %v3578_v48, 0.0 }
 0x436   : > { %v2958_v62 = vadd.f32 %v2957_v28, %v19536_v12  ;;  %v3787_v28 = vmax.f32 %v14223_v52, 0.0 }
 0x437   : > { %v3790_v6 = vmax.f32 %v3165_v63, 0.0  ;;  %v3795_v10 = vmax.f32 %v3585_v16, 0.0 }
 0x438   : > { %3442 = vmatmul.bf16.gmra.mxu0 %v19538_v8 }
 0x439   : > { %v14249_v35 = vmax.f32 %v3774_v34, %v3790_v6  ;;  %v4099_v54 = vmax.f32 %v3779_v7, %v3795_v10  ;;  %9662 = vmatmul.msk.bf16.gmra.mxu2 %vm1979_vm9, %v19539_v20  ;;  %v19540_v34 = vld [vmem:[#allocation35_spill] sm:$0xff] }
 0x43a   : > { %v3381_v7 = vadd.f32 %v14108_v0, %v19540_v34  ;;  %v3782_v0 = vmax.f32 %v14221_v49, 0.0 }
 0x43c   : > { %v3166_v38 = vpop.f32.mrf.mxu3  ;;  %v3587_v5 = vpop.f32.mrf.mxu2 }
 0x43d   : > { %v3167_v19 = vadd.f32 %v3166_v38, %v2958_v62  ;;  %v3588_v47 = vadd.f32 %v3587_v5, %v3379_v60  ;;  %v2960_v63 = vpop.f32.mrf.mxu1  ;;  %v14255_v16 = vpop.f32.mrf.mxu0 }
 0x43e   : > { %v2961_v32 = vadd.f32 %v2960_v63, %v19537_v23 }
 0x43f   : > { %v3794_v57 = vmax.f32 %v3167_v19, 0.0  ;;  %v3799_v6 = vmax.f32 %v3588_v47, 0.0  ;;  %v19542_v47 = vld [vmem:[#allocation43_spill] sm:$0xff] }
 0x440   : > { %2999 = vmatmul.bf16.gmra.mxu1 %v19504_v42 }
 0x441   : > { %v14259_v10 = vmax.f32 %v3778_v61, %v3794_v57  ;;  %v4103_v29 = vmax.f32 %v3783_v56, %v3799_v6  ;;  %9622 = vmatmul.msk.bf16.gmra.mxu3 %vm1979_vm9, %v19539_v20  ;;  %v19541_v56 = vld [vmem:[#allocation37_spill] sm:$0xff]  ;;  %v19543_v20 = vld [vmem:[#allocation38_spill] sm:$0xff] }
 0x442   : > { %v3384_v23 = vadd.f32 %v14121_v15, %v19541_v56 }
 0x444   : > { %v3169_v48 = vpop.f32.mrf.mxu3  ;;  %v3589_v12 = vpop.f32.mrf.mxu2 }
 0x445   : > { %v3170_v45 = vadd.f32 %v3169_v48, %v2961_v32  ;;  %v3590_v60 = vadd.f32 %v3589_v12, %v3381_v7  ;;  %v2962_v62 = vpop.f32.mrf.mxu1  ;;  %v14266_v38 = vpop.f32.mrf.mxu0  ;;  %v3786_v48 = vmax.f32 %v14233_v51, 0.0 }
 0x446   : > { %v2963_v32 = vadd.f32 %v2962_v62, %v19540_v34 }
 0x447   : > { %v3798_v61 = vmax.f32 %v3170_v45, 0.0  ;;  %v3803_v5 = vmax.f32 %v3590_v60, 0.0 }
 0x448   : > { %3447 = vmatmul.bf16.gmra.mxu0 %v19542_v47 }
 0x449   : > { %v4102_v42 = vmax.f32 %v3782_v0, %v3798_v61  ;;  %v4107_v19 = vmax.f32 %v3787_v28, %v3803_v5  ;;  %9663 = vmatmul.msk.bf16.gmra.mxu2 %vm1979_vm9, %v19543_v20  ;;  %v19544_v28 = vld [vmem:[#allocation40_spill] sm:$0xff] }
 0x44a   : > { %v3386_v45 = vadd.f32 %v14147_v13, %v19544_v28 }
 0x44c   : > { %v3171_v52 = vpop.f32.mrf.mxu3  ;;  %v3592_v63 = vpop.f32.mrf.mxu2 }
 0x44d   : > { %v3172_v57 = vadd.f32 %v3171_v52, %v2963_v32  ;;  %v3593_v6 = vadd.f32 %v3592_v63, %v3384_v23  ;;  %v14275_v7 = vpop.f32.mrf.mxu1  ;;  %v14277_v49 = vpop.f32.mrf.mxu0  ;;  %v19545_v32 = vld [vmem:[#allocation41_spill] sm:$0xff]  ;;  %v19546_v63 = vld [vmem:[#allocation47_spill] sm:$0xff] }
 0x44e   : > { %v3389_v13 = vadd.f32 %v14170_v46, %v19545_v32 }
 0x44f   : > { %v3802_v15 = vmax.f32 %v3172_v57, 0.0  ;;  %v3807_v12 = vmax.f32 %v3593_v6, 0.0 }
 0x450   : > { %3004 = vmatmul.bf16.gmra.mxu1 %v19509_v40 }
 0x451   : > { %v14282_v60 = vmax.f32 %v3786_v48, %v3802_v15  ;;  %v4111_v0 = vmax.f32 %v14239_v3, %v3807_v12  ;;  %9623 = vmatmul.msk.bf16.gmra.mxu3 %vm1979_vm9, %v19543_v20  ;;  %v19547_v3 = vld [vmem:[#allocation42_spill] sm:$0xff]  ;;  %v19548_v12 = vld [vmem:[#allocation44_spill] sm:$0xff] }
 0x454   : > { %v14288_v34 = vpop.f32.mrf.mxu3  ;;  %v3594_v62 = vpop.f32.mrf.mxu2 }
 0x455   : > { %v3595_v61 = vadd.f32 %v3594_v62, %v3386_v45  ;;  %v14290_v5 = vpop.f32.mrf.mxu1  ;;  %v14292_v51 = vpop.f32.mrf.mxu0  ;;  %v3391_v45 = vadd.f32 %v14192_v26, %v19548_v12 }
 0x457   : > { %v3811_v23 = vmax.f32 %v3595_v61, 0.0 }
 0x458   : > { %3452 = vmatmul.bf16.gmra.mxu0 %v19546_v63 }
 0x459   : > { %v4115_v52 = vmax.f32 %v4099_v54, %v3811_v23  ;;  %9664 = vmatmul.msk.bf16.gmra.mxu2 %vm1979_vm9, %v19547_v3 }
 0x45c   : > { %v14299_v40 = vpop.f32.mrf.mxu3  ;;  %v3597_v20 = vpop.f32.mrf.mxu2 }
 0x45d   : > { %v3598_v57 = vadd.f32 %v3597_v20, %v3389_v13  ;;  %v2970_v6 = vpop.f32.mrf.mxu1  ;;  %v14301_v48 = vpop.f32.mrf.mxu0 }
 0x45e   : > { %v2971_v46 = vadd.f32 %v2970_v6, %v19545_v32  ;;  %v19551_v6 = vld [vmem:[#allocation45_spill] sm:$0xff] }
 0x45f   : > { %v3815_v15 = vmax.f32 %v3598_v57, 0.0 }
 0x460   : > { %3009 = vmatmul.bf16.gmra.mxu1 %v19522_v37  ;;  %v19550_v37 = vld [vmem:[#allocation51_spill] sm:$0xff] }
 0x461   : > { %v4119_v62 = vmax.f32 %v4103_v29, %v3815_v15  ;;  %9624 = vmatmul.msk.bf16.gmra.mxu3 %vm1979_vm9, %v19547_v3  ;;  %v3394_v29 = vadd.f32 %v14205_v2, %v19549_v17 }
 0x464   : > { %v3179_v54 = vpop.f32.mrf.mxu3  ;;  %v3599_v61 = vpop.f32.mrf.mxu2 }
 0x465   : > { %v3180_v23 = vadd.f32 %v3179_v54, %v2971_v46  ;;  %v3600_v55 = vadd.f32 %v3599_v61, %v3391_v45  ;;  %v14309_v13 = vpop.f32.mrf.mxu1  ;;  %v14311_v20 = vpop.f32.mrf.mxu0 }
 0x467   : > { %v3814_v57 = vmax.f32 %v3180_v23, 0.0  ;;  %v3819_v41 = vmax.f32 %v3600_v55, 0.0  ;;  %v19552_v55 = vld [vmem:[#allocation48_spill] sm:$0xff] }
 0x468   : > { %3457 = vmatmul.bf16.gmra.mxu0 %v19550_v37  ;;  %v3396_v23 = vadd.f32 %v14213_v44, %v19552_v55  ;;  %v19555_v44 = vld [vmem:[#allocation49_spill] sm:$0xff] }
 0x469   : > { %v14315_v26 = vmax.f32 %v4102_v42, %v3814_v57  ;;  %v4123_v32 = vmax.f32 %v4107_v19, %v3819_v41  ;;  %9665 = vmatmul.msk.bf16.gmra.mxu2 %vm1979_vm9, %v19551_v6 }
 0x46c   : > { %v14320_v3 = vpop.f32.mrf.mxu3  ;;  %v3602_v15 = vpop.f32.mrf.mxu2 }
 0x46d   : > { %v3603_v45 = vadd.f32 %v3602_v15, %v3394_v29  ;;  %v2975_v46 = vpop.f32.mrf.mxu1  ;;  %v14322_v54 = vpop.f32.mrf.mxu0  ;;  %v19553_v15 = vld [vmem:[#allocation50_spill] sm:$0xff] }
 0x46e   : > { %v3399_v30 = vadd.f32 %v14225_v33, %v19553_v15 }
 0x46f   : > { %v3823_v61 = vmax.f32 %v3603_v45, 0.0 }
 0x470   : > { %3014 = vmatmul.bf16.gmra.mxu1 %v19530_v25 }
 0x471   : > { %v4127_v2 = vmax.f32 %v4111_v0, %v3823_v61  ;;  %9625 = vmatmul.msk.bf16.gmra.mxu3 %vm1979_vm9, %v19551_v6 }
 0x474   : > { %v3184_v41 = vpop.f32.mrf.mxu3  ;;  %v3604_v42 = vpop.f32.mrf.mxu2 }
 0x475   : > { %v3605_v19 = vadd.f32 %v3604_v42, %v3396_v23  ;;  %v2977_v57 = vpop.f32.mrf.mxu1  ;;  %v14329_v50 = vpop.f32.mrf.mxu0  ;;  %v19556_v42 = vld [vmem:[#allocation52_spill] sm:$0xff] }
 0x477   : > { %v3827_v29 = vmax.f32 %v3605_v19, 0.0  ;;  %v3401_v19 = vadd.f32 %v14235_v53, %v19556_v42  ;;  %v2966_v53 = vadd.f32 %v14275_v7, %v19541_v56 }
 0x478   : > { %3462 = vmatmul.bf16.gmra.mxu0 %v19554_v31 }
 0x479   : > { %v4131_v45 = vmax.f32 %v4115_v52, %v3827_v29  ;;  %9666 = vmatmul.msk.bf16.gmra.mxu2 %vm1979_vm9, %v19555_v44 }
 0x47c   : > { %v3186_v25 = vpop.f32.mrf.mxu3  ;;  %v3607_v0 = vpop.f32.mrf.mxu2 }
 0x47d   : > { %v3608_v61 = vadd.f32 %v3607_v0, %v3399_v30  ;;  %v14336_v6 = vpop.f32.mrf.mxu1  ;;  %v14338_v21 = vpop.f32.mrf.mxu0 }
 0x47f   : > { %v3831_v23 = vmax.f32 %v3608_v61, 0.0  ;;  %v19557_v61 = vld [vmem:[#allocation53_spill] sm:$0xff] }
 0x480   : > { %3019 = vmatmul.bf16.gmra.mxu1 %v19534_v1  ;;  %v3404_v36 = vadd.f32 %v14245_v59, %v19557_v61  ;;  %v19558_v1 = vld [vmem:[#allocation64_spill] sm:$0xff] }
 0x481   : > { %v14342_v58 = vmax.f32 %v4119_v62, %v3831_v23  ;;  %9626 = vmatmul.msk.bf16.gmra.mxu3 %vm1979_vm9, %v19555_v44  ;;  %v19559_v44 = vld [vmem:[#allocation54_spill] sm:$0xff]  ;;  %v2976_v23 = vadd.f32 %v2975_v46, %v19549_v17  ;;  %v2968_v17 = vadd.f32 %v14290_v5, %v19544_v28 }
 0x483   : > { %v3185_v14 = vadd.f32 %v3184_v41, %v2976_v23 }
 0x484   : > { %v14347_v33 = vpop.f32.mrf.mxu3  ;;  %v3609_v52 = vpop.f32.mrf.mxu2 }
 0x485   : > { %v3610_v29 = vadd.f32 %v3609_v52, %v3401_v19  ;;  %v14349_v30 = vpop.f32.mrf.mxu1  ;;  %v14351_v0 = vpop.f32.mrf.mxu0 }
 0x487   : > { %v3835_v24 = vmax.f32 %v3610_v29, 0.0  ;;  %v3175_v29 = vadd.f32 %v14288_v34, %v2966_v53  ;;  %v2978_v34 = vadd.f32 %v2977_v57, %v19552_v55 }
 0x488   : > { %3467 = vmatmul.bf16.gmra.mxu0 %v19558_v1 }
 0x489   : > { %v14357_v62 = vmax.f32 %v4123_v32, %v3835_v24  ;;  %9667 = vmatmul.msk.bf16.gmra.mxu2 %vm1979_vm9, %v19559_v44  ;;  %v19560_v24 = vld [vmem:[#allocation55_spill] sm:$0xff]  ;;  %v3806_v32 = vmax.f32 %v3175_v29, 0.0  ;;  %v19561_v29 = vld [vmem:[#allocation60_spill] sm:$0xff] }
 0x48a   : > { %v3406_v7 = vadd.f32 %v14255_v16, %v19560_v24 }
 0x48b   : > { %v4110_v16 = vmax.f32 %v14249_v35, %v3806_v32  ;;  %v19563_v35 = vld [vmem:[#allocation72_spill] sm:$0xff] }
 0x48c   : > { %v14363_v19 = vpop.f32.mrf.mxu3  ;;  %v3612_v52 = vpop.f32.mrf.mxu2 }
 0x48d   : > { %v3613_v4 = vadd.f32 %v3612_v52, %v3404_v36  ;;  %v2985_v39 = vpop.f32.mrf.mxu1  ;;  %v14366_v59 = vpop.f32.mrf.mxu0  ;;  %v3822_v36 = vmax.f32 %v3185_v14, 0.0  ;;  %v3409_v14 = vadd.f32 %v14266_v38, %v19561_v29 }
 0x48e   : > { %v2986_v18 = vadd.f32 %v2985_v39, %v19557_v61  ;;  %v3187_v39 = vadd.f32 %v3186_v25, %v2978_v34  ;;  %v19565_v25 = vld [vmem:[#allocation57_spill] sm:$0xff] }
 0x48f   : > { %v3839_v56 = vmax.f32 %v3613_v4, 0.0  ;;  %v4126_v23 = vmax.f32 %v4110_v16, %v3822_v36  ;;  %v2981_v16 = vadd.f32 %v14336_v6, %v19553_v15 }
 0x490   : > { %3024 = vmatmul.bf16.gmra.mxu1 %v19538_v8 }
 0x491   : > { %v14370_v43 = vmax.f32 %v4127_v2, %v3839_v56  ;;  %9627 = vmatmul.msk.bf16.gmra.mxu3 %vm1979_vm9, %v19559_v44  ;;  %v3177_v2 = vadd.f32 %v14299_v40, %v2968_v17  ;;  %v19564_v40 = vld [vmem:[#allocation61_spill] sm:$0xff] }
 0x493   : > { %v3810_v28 = vmax.f32 %v3177_v2, 0.0 }
 0x494   : > { %v3194_v4 = vpop.f32.mrf.mxu3  ;;  %v3614_v46 = vpop.f32.mrf.mxu2 }
 0x495   : > { %v3195_v41 = vadd.f32 %v3194_v4, %v2986_v18  ;;  %v3615_v53 = vadd.f32 %v3614_v46, %v3406_v7  ;;  %v2987_v61 = vpop.f32.mrf.mxu1  ;;  %v14381_v8 = vpop.f32.mrf.mxu0  ;;  %v3826_v18 = vmax.f32 %v3187_v39, 0.0  ;;  %v4114_v38 = vmax.f32 %v14259_v10, %v3810_v28  ;;  %v19567_v39 = vld [vmem:[#allocation62_spill] sm:$0xff]  ;;  %v19570_v28 = vld [vmem:[#allocation69_spill] sm:$0xff] }
 0x496   : > { %v2988_v57 = vadd.f32 %v2987_v61, %v19560_v24 }
 0x497   : > { %v3838_v44 = vmax.f32 %v3195_v41, 0.0  ;;  %v3843_v52 = vmax.f32 %v3615_v53, 0.0  ;;  %v4130_v4 = vmax.f32 %v4114_v38, %v3826_v18  ;;  %v2973_v41 = vadd.f32 %v14309_v13, %v19548_v12 }
 0x498   : > { %3472 = vmatmul.bf16.gmra.mxu0 %v19563_v35 }
 0x499   : > { %v14385_v5 = vmax.f32 %v4126_v23, %v3838_v44  ;;  %v14387_v55 = vmax.f32 %v4131_v45, %v3843_v52  ;;  %9668 = vmatmul.msk.bf16.gmra.mxu2 %vm1979_vm9, %v19564_v40  ;;  %v3182_v6 = vadd.f32 %v14320_v3, %v2973_v41  ;;  %v10666_v3 = vld [vmem:[%s18788_s3 + $0x78] sm:$0xff] }
 0x49a   : > { %5986 = vmatpush.bf16.msra.mxu3 %v10666_v3 }
 0x49b   : > { %19562 = vst [vmem:[#allocation28_spill] sm:$0xff] %v14385_v5  ;;  %v11047_v56 = vpack.i.bf16 %v14385_v5, %v19565_v25 }
 0x49c   : > { %v3196_v7 = vpop.f32.mrf.mxu3  ;;  %v3617_v32 = vpop.f32.mrf.mxu2 }
 0x49d   : > { %v3197_v17 = vadd.f32 %v3196_v7, %v2988_v57  ;;  %v3618_v36 = vadd.f32 %v3617_v32, %v3409_v14  ;;  %11048 = vrot.lane.b32.xlu1 %v11047_v56, %s11546_s19  ;;  %11043 = vrot.lane.b32.xlu2 %v11047_v56, %s11547_s20  ;;  %v2990_v45 = vpop.f32.mrf.mxu1  ;;  %v14399_v34 = vpop.f32.mrf.mxu0  ;;  %v19569_v14 = vld [vmem:[#allocation76_spill] sm:$0xff] }
 0x49e   : > { %11038 = vrot.lane.b32.xlu0 %v11047_v56, %s11548_s21  ;;  %v2991_v53 = vadd.f32 %v2990_v45, %v19561_v29 }
 0x49f   : > { %v3842_v24 = vmax.f32 %v3197_v17, 0.0  ;;  %v3847_v46 = vmax.f32 %v3618_v36, 0.0 }
 0x4a0   : > { %3029 = vmatmul.bf16.gmra.mxu1 %v19542_v47  ;;  %v2983_v47 = vadd.f32 %v14349_v30, %v19556_v42  ;;  %v3818_v42 = vmax.f32 %v3182_v6, 0.0 }
 0x4a1   : > { %v14403_v2 = vmax.f32 %v4130_v4, %v3842_v24  ;;  %v14406_v10 = vmax.f32 %v14342_v58, %v3847_v46  ;;  %9628 = vmatmul.msk.bf16.gmra.mxu3 %vm1979_vm9, %v19564_v40  ;;  %v3190_v58 = vadd.f32 %v14347_v33, %v2981_v16  ;;  %v19568_v33 = vld [vmem:[#allocation66_spill] sm:$0xff]  ;;  %v14450_v46 = vpop.permute.xlu2 %10898 }
 0x4a2   : > { %v3192_v44 = vadd.f32 %v14363_v19, %v2983_v47  ;;  %v3414_v29 = vadd.f32 %v14292_v51, %v19568_v33  ;;  %v10681_v40 = vld [vmem:[%s18788_s3 + $0xf0] sm:$0xff]  ;;  %v14439_v19 = vpop.permute.xlu1 %10893  ;;  %v4122_v38 = vmax.f32 %v14282_v60, %v3818_v42  ;;  %19573 = vst [vmem:[#allocation25_spill] sm:$0xff] %v14450_v46 }
 0x4a3   : > { %19566 = vst [vmem:[#allocation22_spill] sm:$0xff] %v14403_v2  ;;  %v11057_v61 = vpack.i.bf16 %v14403_v2, %v19567_v39  ;;  %v3830_v30 = vmax.f32 %v3190_v58, 0.0  ;;  %6085 = vmatpush.bf16.msra.mxu2 %v10681_v40  ;;  %v19577_v58 = vld [vmem:[#allocation70_spill] sm:$0xff] }
 0x4a4   : > { %v3199_v23 = vpop.f32.mrf.mxu3  ;;  %v14416_v15 = vpop.f32.mrf.mxu2  ;;  %19571 = vst [vmem:[#allocation23_spill] sm:$0xff] %v14439_v19  ;;  %v3834_v18 = vmax.f32 %v3192_v44, 0.0 }
 0x4a5   : > { %11058 = vrot.lane.b32.xlu1 %v11057_v61, %s11548_s21  ;;  %11053 = vrot.lane.b32.xlu2 %v11047_v56, %s11552_s24  ;;  %v2992_v12 = vpop.f32.mrf.mxu1  ;;  %v14425_v13 = vpop.f32.mrf.mxu0  ;;  %v3200_v52 = vadd.f32 %v3199_v23, %v2991_v53  ;;  %v19572_v56 = vld [vmem:[#allocation63_spill] sm:$0xff]  ;;  %v4134_v17 = vmax.f32 %v14315_v26, %v3830_v30 }
 0x4a6   : > { %11063 = vrot.lane.b32.xlu0 %v11057_v61, %s11547_s20  ;;  %v2993_v7 = vadd.f32 %v2992_v12, %v19572_v56  ;;  %v4138_v16 = vmax.f32 %v4122_v38, %v3834_v18  ;;  %v19575_v23 = vld [vmem:[#allocation71_spill] sm:$0xff]  ;;  %v19578_v12 = vld [vmem:[#allocation65_spill] sm:$0xff]  ;;  %v19582_v18 = vld [vmem:[#allocation80_spill] sm:$0xff] }
 0x4a7   : > { %v3846_v57 = vmax.f32 %v3200_v52, 0.0  ;;  %v3416_v60 = vadd.f32 %v14301_v48, %v19575_v23 }
 0x4a8   : > { %3477 = vmatmul.bf16.gmra.mxu0 %v19569_v14 }
 0x4a9   : > { %9669 = vmatmul.msk.bf16.gmra.mxu2 %vm1979_vm9, %v19570_v28  ;;  %v14452_v41 = vmax.f32 %v4134_v17, %v3846_v57  ;;  %v14483_v30 = vpop.permute.xlu2 %10913  ;;  %v19583_v57 = vld [vmem:[#allocation74_spill] sm:$0xff] }
 0x4aa   : > { %v14471_v3 = vpop.permute.xlu1 %10903  ;;  %19580 = vst [vmem:[#allocation29_spill] sm:$0xff] %v14483_v30  ;;  %v19604_v30 = vld [vmem:[#allocation83_spill] sm:$0xff] }
 0x4ab   : > { %19574 = vst [vmem:[#allocation32_spill] sm:$0xff] %v14452_v41  ;;  %v11077_v48 = vpack.i.bf16 %v14452_v41, %v19578_v12 }
 0x4ac   : > { %v3201_v51 = vpop.f32.mrf.mxu3  ;;  %v3622_v32 = vpop.f32.mrf.mxu2  ;;  %19579 = vst [vmem:[#allocation27_spill] sm:$0xff] %v14471_v3 }
 0x4ad   : > { %v3202_v36 = vadd.f32 %v3201_v51, %v2993_v7  ;;  %v14444_v45 = vadd.f32 %v3622_v32, %v3414_v29  ;;  %11068 = vrot.lane.b32.xlu2 %v11057_v61, %s11546_s19  ;;  %v2995_v4 = vpop.f32.mrf.mxu1  ;;  %v14448_v24 = vpop.f32.mrf.mxu0  ;;  %v3411_v7 = vadd.f32 %v14277_v49, %v19572_v56 }
 0x4ae   : > { %11073 = vrot.lane.b32.xlu0 %v11057_v61, %s11552_s24  ;;  %v2996_v6 = vadd.f32 %v2995_v4, %v19568_v33  ;;  %v10674_v61 = vld [vmem:[%s18788_s3 + $0xb8] sm:$0xff] }
 0x4af   : > { %v3850_v53 = vmax.f32 %v3202_v36, 0.0  ;;  %6035 = vmatpush.bf16.msra.mxu0 %v10674_v61  ;;  %v3620_v56 = vadd.f32 %v14416_v15, %v3411_v7  ;;  %v10658_v61 = vld [vmem:[%s18788_s3 + $0x38] sm:$0xff]  ;;  %v14521_v15 = vpack.i.bf16 %v14387_v55, %v14370_v43 }
 0x4b0   : > { %3034 = vmatmul.bf16.gmra.mxu1 %v19546_v63 }
 0x4b1   : > { %v14456_v26 = vmax.f32 %v4138_v16, %v3850_v53  ;;  %9629 = vmatmul.msk.bf16.gmra.mxu3 %vm1979_vm9, %v19570_v28  ;;  %v19581_v28 = vld [vmem:[#allocation73_spill] sm:$0xff]  ;;  %v14503_v16 = vpop.permute.xlu0 %10908  ;;  %v14508_v53 = vpop.permute.xlu2 %10923  ;;  %5937 = vmatpush.bf16.msra.mxu1 %v10658_v61 }
 0x4b2   : > { %v3419_v40 = vadd.f32 %v14311_v20, %v19581_v28  ;;  %19584 = vst [vmem:[#allocation36_spill] sm:$0xff] %v14503_v16  ;;  %v14505_v49 = vpop.permute.xlu1 %10928  ;;  %v19628_v16 = vld [vmem:[#allocation99_spill] sm:$0xff] }
 0x4b3   : > { %19576 = vst [vmem:[#allocation26_spill] sm:$0xff] %v14456_v26  ;;  %v14467_v47 = vpack.i.bf16 %v14456_v26, %v19577_v58 }
 0x4b4   : > { %v3204_v44 = vpop.f32.mrf.mxu3  ;;  %v3624_v52 = vpop.f32.mrf.mxu2  ;;  %19585 = vst [vmem:[#allocation30_spill] sm:$0xff] %v14505_v49 }
 0x4b5   : > { %v14473_v63 = vadd.f32 %v3204_v44, %v2996_v6  ;;  %v14475_v33 = vadd.f32 %v3624_v52, %v3416_v60  ;;  %11103 = vrot.lane.b32.xlu1 %v14467_v47, %s11547_s20  ;;  %11078 = vrot.lane.b32.xlu2 %v11077_v48, %s11548_s21  ;;  %v2997_v29 = vpop.f32.mrf.mxu1  ;;  %v14481_v42 = vpop.f32.mrf.mxu0  ;;  %19586 = vst [vmem:[#allocation31_spill] sm:$0xff] %v14508_v53 }
 0x4b6   : > { %11083 = vrot.lane.b32.xlu0 %v11077_v48, %s11547_s20  ;;  %v2998_v51 = vadd.f32 %v2997_v29, %v19575_v23  ;;  %v19587_v23 = vld [vmem:[#allocation75_spill] sm:$0xff] }
 0x4b7   : > { %v3421_v60 = vadd.f32 %v14322_v54, %v19587_v23 }
 0x4b8   : > { %3482 = vmatmul.bf16.gmra.mxu0 %v19582_v18 }
 0x4b9   : > { %9670 = vmatmul.msk.bf16.gmra.mxu2 %vm1979_vm9, %v19583_v57 }
 0x4bc   : > { %v3206_v32 = vpop.f32.mrf.mxu3  ;;  %v3627_v38 = vpop.f32.mrf.mxu2 }
 0x4bd   : > { %v14493_v17 = vadd.f32 %v3206_v32, %v2998_v51  ;;  %v14495_v36 = vadd.f32 %v3627_v38, %v3419_v40  ;;  %11113 = vrot.lane.b32.xlu1 %v14467_v47, %s11552_s24  ;;  %11088 = vrot.lane.b32.xlu2 %v11077_v48, %s11546_s19  ;;  %v3000_v20 = vpop.f32.mrf.mxu1  ;;  %v14501_v4 = vpop.f32.mrf.mxu0  ;;  %v19591_v32 = vld [vmem:[#allocation77_spill] sm:$0xff] }
 0x4be   : > { %11093 = vrot.lane.b32.xlu0 %v11077_v48, %s11552_s24  ;;  %v3001_v6 = vadd.f32 %v3000_v20, %v19581_v28  ;;  %v3851_v48 = vmax.f32 %v3620_v56, 0.0  ;;  %v14535_v40 = vpop.permute.xlu0 %10918  ;;  %v14542_v51 = vpop.permute.xlu2 %10938  ;;  %v3424_v38 = vadd.f32 %v14329_v50, %v19591_v32  ;;  %v19592_v20 = vld [vmem:[#allocation84_spill] sm:$0xff]  ;;  %v19593_v56 = vld [vmem:[#allocation78_spill] sm:$0xff] }
 0x4bf   : > { %19588 = vst [vmem:[#allocation33_spill] sm:$0xff] %v14535_v40 }
 0x4c0   : > { %3039 = vmatmul.bf16.gmra.mxu1 %v19550_v37  ;;  %v14540_v7 = vmax.f32 %v14357_v62, %v3851_v48  ;;  %19590 = vst [vmem:[#allocation34_spill] sm:$0xff] %v14542_v51  ;;  %v3855_v62 = vmax.f32 %v14444_v45, 0.0 }
 0x4c1   : > { %9630 = vmatmul.msk.bf16.gmra.mxu3 %vm1979_vm9, %v19583_v57  ;;  %v14537_v57 = vpop.permute.xlu1 %10933 }
 0x4c2   : > { %19589 = vst [vmem:[#allocation39_spill] sm:$0xff] %v14537_v57 }
 0x4c4   : > { %v3209_v44 = vpop.f32.mrf.mxu3  ;;  %v3629_v52 = vpop.f32.mrf.mxu2 }
 0x4c5   : > { %v14523_v54 = vadd.f32 %v3209_v44, %v3001_v6  ;;  %v14525_v29 = vadd.f32 %v3629_v52, %v3421_v60  ;;  %11123 = vrot.lane.b32.xlu1 %v14521_v15, %s11547_s20  ;;  %11133 = vrot.lane.b32.xlu2 %v14521_v15, %s11552_s24  ;;  %v3002_v37 = vpop.f32.mrf.mxu1  ;;  %v14533_v28 = vpop.f32.mrf.mxu0  ;;  %v14552_v6 = vpack.i.bf16 %v14540_v7, %v14406_v10 }
 0x4c6   : > { %11098 = vrot.lane.b32.xlu0 %v14467_v47, %s11548_s21  ;;  %v3003_v60 = vadd.f32 %v3002_v37, %v19587_v23  ;;  %v14565_v37 = vpop.permute.xlu0 %10953  ;;  %v14569_v45 = vpop.permute.xlu2 %10973 }
 0x4c7   : > { %19594 = vst [vmem:[#allocation35_spill] sm:$0xff] %v14565_v37 }
 0x4c8   : > { %3487 = vmatmul.bf16.gmra.mxu0 %v19592_v20  ;;  %19596 = vst [vmem:[#allocation43_spill] sm:$0xff] %v14569_v45 }
 0x4c9   : > { %9671 = vmatmul.msk.bf16.gmra.mxu2 %vm1979_vm9, %v19593_v56  ;;  %v14567_v57 = vpop.permute.xlu1 %10943 }
 0x4ca   : > { %19595 = vst [vmem:[#allocation37_spill] sm:$0xff] %v14567_v57 }
 0x4cc   : > { %v3211_v61 = vpop.f32.mrf.mxu3  ;;  %v3632_v44 = vpop.f32.mrf.mxu2 }
 0x4cd   : > { %v14555_v48 = vadd.f32 %v3211_v61, %v3003_v60  ;;  %v3633_v52 = vadd.f32 %v3632_v44, %v3424_v38  ;;  %11138 = vrot.lane.b32.xlu1 %v14552_v6, %s11548_s21  ;;  %11143 = vrot.lane.b32.xlu2 %v14552_v6, %s11547_s20  ;;  %v3005_v50 = vpop.f32.mrf.mxu1  ;;  %v14563_v23 = vpop.f32.mrf.mxu0  ;;  %v19597_v38 = vld [vmem:[#allocation79_spill] sm:$0xff] }
 0x4ce   : > { %11108 = vrot.lane.b32.xlu0 %v14467_v47, %s11546_s19  ;;  %v3426_v60 = vadd.f32 %v14338_v21, %v19597_v38  ;;  %v3006_v44 = vadd.f32 %v3005_v50, %v19591_v32  ;;  %v19599_v50 = vld [vmem:[#allocation81_spill] sm:$0xff]  ;;  %v14600_v53 = vpop.permute.xlu2 %10983 }
 0x4cf   : > { %v3871_v51 = vmax.f32 %v3633_v52, 0.0  ;;  %v3859_v52 = vmax.f32 %v14475_v33, 0.0  ;;  %v3429_v33 = vadd.f32 %v14351_v0, %v19599_v50  ;;  %19603 = vst [vmem:[#allocation41_spill] sm:$0xff] %v14600_v53  ;;  %v3431_v53 = vadd.f32 %v14366_v59, %v19604_v30 }
 0x4d0   : > { %3044 = vmatmul.bf16.gmra.mxu1 %v19554_v31  ;;  %v3854_v31 = vmax.f32 %v14473_v63, 0.0  ;;  %v3867_v59 = vmax.f32 %v14525_v29, 0.0 }
 0x4d1   : > { %v14573_v61 = vmax.f32 %v3855_v62, %v3871_v51  ;;  %9631 = vmatmul.msk.bf16.gmra.mxu3 %vm1979_vm9, %v19593_v56  ;;  %v14587_v56 = vpop.permute.xlu0 %10963  ;;  %v14598_v45 = vpop.permute.xlu1 %10948 }
 0x4d2   : > { %19598 = vst [vmem:[#allocation38_spill] sm:$0xff] %v14587_v56  ;;  %v3863_v56 = vmax.f32 %v14495_v36, 0.0 }
 0x4d3   : > { %19602 = vst [vmem:[#allocation40_spill] sm:$0xff] %v14598_v45 }
 0x4d4   : > { %v3214_v47 = vpop.f32.mrf.mxu3  ;;  %v3634_v49 = vpop.f32.mrf.mxu2 }
 0x4d5   : > { %v3215_v37 = vadd.f32 %v3214_v47, %v3006_v44  ;;  %v3635_v57 = vadd.f32 %v3634_v49, %v3426_v60  ;;  %11148 = vrot.lane.b32.xlu1 %v14552_v6, %s11546_s19  ;;  %v3007_v21 = vpop.f32.mrf.mxu1  ;;  %v14584_v51 = vpop.f32.mrf.mxu0  ;;  %v19600_v60 = vld [vmem:[#allocation87_spill] sm:$0xff]  ;;  %v19601_v47 = vld [vmem:[#allocation82_spill] sm:$0xff] }
 0x4d6   : > { %11118 = vrot.lane.b32.xlu0 %v14521_v15, %s11548_s21  ;;  %v3008_v63 = vadd.f32 %v3007_v21, %v19597_v38 }
 0x4d7   : > { %v3870_v32 = vmax.f32 %v3215_v37, 0.0  ;;  %v3875_v62 = vmax.f32 %v3635_v57, 0.0 }
 0x4d8   : > { %3492 = vmatmul.bf16.gmra.mxu0 %v19600_v60 }
 0x4d9   : > { %v14591_v44 = vmax.f32 %v3854_v31, %v3870_v32  ;;  %v14593_v49 = vmax.f32 %v3859_v52, %v3875_v62  ;;  %9672 = vmatmul.msk.bf16.gmra.mxu2 %vm1979_vm9, %v19601_v47  ;;  %v3858_v62 = vmax.f32 %v14493_v17, 0.0 }
 0x4dc   : > { %v3216_v57 = vpop.f32.mrf.mxu3  ;;  %v3637_v37 = vpop.f32.mrf.mxu2 }
 0x4dd   : > { %v3217_v0 = vadd.f32 %v3216_v57, %v3008_v63  ;;  %v3638_v31 = vadd.f32 %v3637_v37, %v3429_v33  ;;  %v3010_v52 = vpop.f32.mrf.mxu1  ;;  %v14606_v32 = vpop.f32.mrf.mxu0 }
 0x4de   : > { %11128 = vrot.lane.b32.xlu0 %v14521_v15, %s11546_s19  ;;  %v3011_v36 = vadd.f32 %v3010_v52, %v19599_v50  ;;  %v14619_v15 = vpop.permute.xlu0 %10968  ;;  %v14621_v63 = vpop.permute.xlu1 %10958  ;;  %v3862_v50 = vmax.f32 %v14523_v54, 0.0  ;;  %v19608_v52 = vld [vmem:[#allocation91_spill] sm:$0xff] }
 0x4df   : > { %v3874_v40 = vmax.f32 %v3217_v0, 0.0  ;;  %v3879_v45 = vmax.f32 %v3638_v31, 0.0  ;;  %19605 = vst [vmem:[#allocation47_spill] sm:$0xff] %v14619_v15  ;;  %v14623_v57 = vpop.permute.xlu2 %11008  ;;  %v19614_v15 = vld [vmem:[#allocation88_spill] sm:$0xff] }
 0x4e0   : > { %3049 = vmatmul.bf16.gmra.mxu1 %v19558_v1  ;;  %19606 = vst [vmem:[#allocation42_spill] sm:$0xff] %v14621_v63 }
 0x4e1   : > { %v14611_v38 = vmax.f32 %v3858_v62, %v3874_v40  ;;  %v14613_v21 = vmax.f32 %v3863_v56, %v3879_v45  ;;  %9632 = vmatmul.msk.bf16.gmra.mxu3 %vm1979_vm9, %v19601_v47  ;;  %19607 = vst [vmem:[#allocation44_spill] sm:$0xff] %v14623_v57  ;;  %v19609_v62 = vld [vmem:[#allocation86_spill] sm:$0xff] }
 0x4e4   : > { %v3219_v33 = vpop.f32.mrf.mxu3  ;;  %v3639_v17 = vpop.f32.mrf.mxu2 }
 0x4e5   : > { %v3220_v40 = vadd.f32 %v3219_v33, %v3011_v36  ;;  %v3640_v45 = vadd.f32 %v3639_v17, %v3431_v53  ;;  %v3012_v56 = vpop.f32.mrf.mxu1  ;;  %v14628_v1 = vpop.f32.mrf.mxu0  ;;  %v19611_v53 = vld [vmem:[#allocation85_spill] sm:$0xff] }
 0x4e6   : > { %11153 = vrot.lane.b32.xlu0 %v14552_v6, %s11552_s24  ;;  %v14636_v29 = vpop.permute.xlu0 %10978  ;;  %v3434_v6 = vadd.f32 %v14381_v8, %v19611_v53  ;;  %v3013_v36 = vadd.f32 %v3012_v56, %v19604_v30  ;;  %v14641_v54 = vpop.permute.xlu1 %10988  ;;  %v3436_v8 = vadd.f32 %v14399_v34, %v19614_v15 }
 0x4e7   : > { %v3878_v47 = vmax.f32 %v3220_v40, 0.0  ;;  %v3883_v37 = vmax.f32 %v3640_v45, 0.0  ;;  %19610 = vst [vmem:[#allocation46_spill] sm:$0xff] %v14636_v29  ;;  %v14643_v40 = vpop.permute.xlu2 %11018 }
 0x4e8   : > { %3497 = vmatmul.bf16.gmra.mxu0 %v19608_v52  ;;  %19612 = vst [vmem:[#allocation51_spill] sm:$0xff] %v14641_v54 }
 0x4e9   : > { %v14631_v0 = vmax.f32 %v3862_v50, %v3878_v47  ;;  %v4171_v31 = vmax.f32 %v3867_v59, %v3883_v37  ;;  %9673 = vmatmul.msk.bf16.gmra.mxu2 %vm1979_vm9, %v19609_v62  ;;  %19613 = vst [vmem:[#allocation45_spill] sm:$0xff] %v14643_v40  ;;  %v3866_v37 = vmax.f32 %v14555_v48, 0.0 }
 0x4ec   : > { %v3221_v33 = vpop.f32.mrf.mxu3  ;;  %v3642_v17 = vpop.f32.mrf.mxu2 }
 0x4ed   : > { %v3222_v45 = vadd.f32 %v3221_v33, %v3013_v36  ;;  %v3643_v59 = vadd.f32 %v3642_v17, %v3434_v6  ;;  %v14645_v50 = vpop.f32.mrf.mxu1  ;;  %v14647_v47 = vpop.f32.mrf.mxu0 }
 0x4ee   : > { %v14660_v6 = vpop.permute.xlu0 %10993  ;;  %v14664_v33 = vpop.permute.xlu1 %10998 }
 0x4ef   : > { %v3882_v29 = vmax.f32 %v3222_v45, 0.0  ;;  %v3887_v57 = vmax.f32 %v3643_v59, 0.0  ;;  %19615 = vst [vmem:[#allocation48_spill] sm:$0xff] %v14660_v6  ;;  %v14666_v17 = vpop.permute.xlu2 %11033  ;;  %v10665_v59 = vld [vmem:[%s18788_s3 + $0x70] sm:$0xff] }
 0x4f0   : > { %3054 = vmatmul.bf16.gmra.mxu1 %v19563_v35  ;;  %19616 = vst [vmem:[#allocation50_spill] sm:$0xff] %v14664_v33  ;;  %5987 = vmatpush.bf16.msra.mxu3 %v10665_v59 }
 0x4f1   : > { %v14652_v30 = vmax.f32 %v3866_v37, %v3882_v29  ;;  %v14655_v56 = vmax.f32 %v14573_v61, %v3887_v57  ;;  %9633 = vmatmul.msk.bf16.gmra.mxu3 %vm1979_vm9, %v19609_v62  ;;  %19617 = vst [vmem:[#allocation56_spill] sm:$0xff] %v14666_v17  ;;  %v19618_v57 = vld [vmem:[#allocation95_spill] sm:$0xff]  ;;  %v19619_v62 = vld [vmem:[#allocation90_spill] sm:$0xff]  ;;  %v19620_v37 = vld [vmem:[#allocation89_spill] sm:$0xff] }
 0x4f4   : > { %v14662_v36 = vpop.f32.mrf.mxu3  ;;  %v3644_v48 = vpop.f32.mrf.mxu2 }
 0x4f5   : > { %v3645_v34 = vadd.f32 %v3644_v48, %v3436_v8  ;;  %v14668_v29 = vpop.f32.mrf.mxu1  ;;  %v14670_v45 = vpop.f32.mrf.mxu0  ;;  %v3439_v8 = vadd.f32 %v14425_v13, %v19620_v37  ;;  %v10673_v13 = vld [vmem:[%s18788_s3 + $0xb0] sm:$0xff] }
 0x4f6   : > { %v14693_v54 = vpop.permute.xlu0 %11003  ;;  %6036 = vmatpush.bf16.msra.mxu0 %v10673_v13  ;;  %v10680_v13 = vld [vmem:[%s18788_s3 + $0xe8] sm:$0xff] }
 0x4f7   : > { %v3891_v61 = vmax.f32 %v3645_v34, 0.0  ;;  %v14685_v34 = vpop.permute.xlu1 %11013  ;;  %19623 = vst [vmem:[#allocation53_spill] sm:$0xff] %v14693_v54  ;;  %6086 = vmatpush.bf16.msra.mxu2 %v10680_v13 }
 0x4f8   : > { %3502 = vmatmul.bf16.gmra.mxu0 %v19618_v57  ;;  %19621 = vst [vmem:[#allocation49_spill] sm:$0xff] %v14685_v34 }
 0x4f9   : > { %v14673_v35 = vmax.f32 %v14593_v49, %v3891_v61  ;;  %9674 = vmatmul.msk.bf16.gmra.mxu2 %vm1979_vm9, %v19619_v62  ;;  %v14687_v49 = vpop.permute.xlu2 %11043 }
 0x4fa   : > { %19622 = vst [vmem:[#allocation52_spill] sm:$0xff] %v14687_v49 }
 0x4fc   : > { %v14683_v48 = vpop.f32.mrf.mxu3  ;;  %v3647_v17 = vpop.f32.mrf.mxu2 }
 0x4fd   : > { %v3648_v61 = vadd.f32 %v3647_v17, %v3439_v8  ;;  %v14689_v40 = vpop.f32.mrf.mxu1  ;;  %v14691_v33 = vpop.f32.mrf.mxu0  ;;  %v19624_v17 = vld [vmem:[#allocation92_spill] sm:$0xff] }
 0x4fe   : > { %v3441_v59 = vadd.f32 %v14448_v24, %v19624_v17  ;;  %v14714_v3 = vpop.permute.xlu0 %11028  ;;  %v19629_v24 = vld [vmem:[#allocation93_spill] sm:$0xff] }
 0x4ff   : > { %v3895_v6 = vmax.f32 %v3648_v61, 0.0  ;;  %19627 = vst [vmem:[#allocation55_spill] sm:$0xff] %v14714_v3 }
 0x500   : > { %3059 = vmatmul.bf16.gmra.mxu1 %v19569_v14 }
 0x501   : > { %v14696_v63 = vmax.f32 %v14613_v21, %v3895_v6  ;;  %9634 = vmatmul.msk.bf16.gmra.mxu3 %vm1979_vm9, %v19619_v62  ;;  %v14710_v6 = vpop.permute.xlu1 %11023  ;;  %v14712_v14 = vpop.permute.xlu2 %11053 }
 0x502   : > { %19625 = vst [vmem:[#allocation64_spill] sm:$0xff] %v14710_v6 }
 0x503   : > { %19626 = vst [vmem:[#allocation54_spill] sm:$0xff] %v14712_v14 }
 0x504   : > { %v14706_v8 = vpop.f32.mrf.mxu3  ;;  %v3649_v61 = vpop.f32.mrf.mxu2 }
 0x505   : > { %v3650_v34 = vadd.f32 %v3649_v61, %v3441_v59  ;;  %v3022_v54 = vpop.f32.mrf.mxu1  ;;  %v14708_v21 = vpop.f32.mrf.mxu0  ;;  %v19630_v59 = vld [vmem:[#allocation94_spill] sm:$0xff] }
 0x506   : > { %v3444_v61 = vadd.f32 %v14481_v42, %v19630_v59  ;;  %v3023_v6 = vadd.f32 %v3022_v54, %v19624_v17  ;;  %v19169_v42 = vunpack.i.h.bf16 %v14687_v49  ;;  %v19168_v54 = vunpack.i.l.bf16 %v14687_v49 }
 0x507   : > { %v3899_v62 = vmax.f32 %v3650_v34, 0.0 }
 0x508   : > { %3507 = vmatmul.bf16.gmra.mxu0 %v19628_v16 }
 0x509   : > { %v14716_v19 = vmax.f32 %v4171_v31, %v3899_v62  ;;  %9675 = vmatmul.msk.bf16.gmra.mxu2 %vm1979_vm9, %v19629_v24  ;;  %v10657_v31 = vld [vmem:[%s18788_s3 + $0x30] sm:$0xff]  ;;  %v14740_v13 = vpop.permute.xlu2 %11068 }
 0x50a   : > { %5938 = vmatpush.bf16.msra.mxu1 %v10657_v31  ;;  %19634 = vst [vmem:[#allocation57_spill] sm:$0xff] %v14740_v13 }
 0x50c   : > { %v3231_v34 = vpop.f32.mrf.mxu3  ;;  %v3652_v46 = vpop.f32.mrf.mxu2 }
 0x50d   : > { %v3232_v62 = vadd.f32 %v3231_v34, %v3023_v6  ;;  %v3653_v3 = vadd.f32 %v3652_v46, %v3444_v61  ;;  %v14730_v26 = vpop.f32.mrf.mxu1  ;;  %v14732_v41 = vpop.f32.mrf.mxu0  ;;  %v19635_v34 = vld [vmem:[#allocation96_spill] sm:$0xff] }
 0x50e   : > { %19631 = vst [vmem:[#allocation60_spill] sm:$0xff] %v14732_v41  ;;  %v3446_v31 = vadd.f32 %v14501_v4, %v19635_v34  ;;  %v4847_v4 = vsel %vm483_vm4, %v19168_v54, %v19169_v42  ;;  %v19641_v42 = vld [vmem:[#allocation104_spill] sm:$0xff] }
 0x50f   : > { %v3898_v27 = vmax.f32 %v3232_v62, 0.0  ;;  %v3903_v22 = vmax.f32 %v3653_v3, 0.0  ;;  %v14734_v5 = vpop.permute.xlu1 %11048 }
 0x510   : > { %19632 = vst [vmem:[#allocation72_spill] sm:$0xff] %v14734_v5  ;;  %v14738_v17 = vpop.permute.xlu0 %11038  ;;  %3064 = vmatmul.bf16.gmra.mxu1 %v19582_v18 }
 0x511   : > { %19633 = vst [vmem:[#allocation61_spill] sm:$0xff] %v14738_v17  ;;  %v14743_v6 = vmax.f32 %v14652_v30, %v3898_v27  ;;  %v14746_v46 = vmax.f32 %v14655_v56, %v3903_v22  ;;  %v19163_v61 = vunpack.i.h.bf16 %v14738_v17  ;;  %v19162_v3 = vunpack.i.l.bf16 %v14738_v17  ;;  %9635 = vmatmul.msk.bf16.gmra.mxu3 %vm1979_vm9, %v19629_v24 }
 0x512   : > { %v19180_v17 = vunpack.i.h.bf16 %v14712_v14 }
 0x513   : > { %v4542_v22 = vsel %vm430_vm5, %v19162_v3, %v19163_v61  ;;  %v19642_v3 = vld [vmem:[#allocation97_spill] sm:$0xff] }
 0x514   : > { %v4654_v30 = vmax.f32 %v19565_v25, %v4542_v22  ;;  %v14763_v56 = vpop.f32.mrf.mxu3  ;;  %v3654_v18 = vpop.f32.mrf.mxu2  ;;  %v19637_v25 = vunpack.i.h.bf16 %v14734_v5  ;;  %v19638_v22 = vunpack.i.l.bf16 %v14734_v5 }
 0x515   : > { %v3655_v24 = vadd.f32 %v3654_v18, %v3446_v31  ;;  %v14770_v27 = vpop.f32.mrf.mxu1  ;;  %v14772_v2 = vpop.f32.mrf.mxu0 }
 0x516   : > { %v4959_v62 = vmax.f32 %v4654_v30, %v4847_v4  ;;  %19636 = vst [vmem:[#allocation62_spill] sm:$0xff] %v14772_v2  ;;  %v5152_v61 = vsel %vm536_vm3, %v19638_v22, %v19637_v25  ;;  %v19643_v25 = vld [vmem:[#allocation98_spill] sm:$0xff]  ;;  %v14807_v5 = vpop.permute.xlu2 %11078 }
 0x517   : > { %v3907_v11 = vmax.f32 %v3655_v24, 0.0  ;;  %v14781_v49 = vpop.permute.xlu1 %11058  ;;  %v3449_v22 = vadd.f32 %v14533_v28, %v19643_v25  ;;  %19645 = vst [vmem:[#allocation69_spill] sm:$0xff] %v14807_v5 }
 0x518   : > { %19639 = vst [vmem:[#allocation66_spill] sm:$0xff] %v14781_v49  ;;  %v5264_v54 = vmax.f32 %v4959_v62, %v5152_v61  ;;  %v19175_v31 = vunpack.i.h.bf16 %v14781_v49  ;;  %v19174_v30 = vunpack.i.l.bf16 %v14781_v49  ;;  %v14785_v18 = vpop.permute.xlu0 %11063  ;;  %3512 = vmatmul.bf16.gmra.mxu0 %v19641_v42  ;;  %v19183_v42 = vunpack.i.h.bf16 %v14740_v13 }
 0x519   : > { %19640 = vst [vmem:[#allocation76_spill] sm:$0xff] %v14785_v18  ;;  %v14788_v4 = vmax.f32 %v14673_v35, %v3907_v11  ;;  %9676 = vmatmul.msk.bf16.gmra.mxu2 %vm1979_vm9, %v19642_v3  ;;  %v19184_v62 = vunpack.i.h.bf16 %v14785_v18  ;;  %v19181_v24 = vunpack.i.l.bf16 %v14785_v18  ;;  %v19644_v11 = vunpack.i.l.bf16 %v14712_v14 }
 0x51a   : > { %v4545_v61 = vsel %vm430_vm5, %v19174_v30, %v19175_v31  ;;  %v19182_v14 = vunpack.i.l.bf16 %v14740_v13 }
 0x51b   : > { %v5457_v35 = vsel %vm589_vm8, %v19644_v11, %v19180_v17  ;;  %v4658_v9 = vmax.f32 %v19567_v39, %v4545_v61  ;;  %v4850_v30 = vsel %vm483_vm4, %v19181_v24, %v19184_v62 }
 0x51c   : > { %v14815_v31 = vpop.f32.mrf.mxu3  ;;  %v3657_v49 = vpop.f32.mrf.mxu2  ;;  %v14817_v28 = vmax.f32 %v5264_v54, %v5457_v35  ;;  %v5155_v54 = vsel %vm536_vm3, %v19182_v14, %v19183_v42  ;;  %v19193_v14 = vunpack.i.l.bf16 %v14807_v5 }
 0x51d   : > { %v4963_v11 = vmax.f32 %v4658_v9, %v4850_v30  ;;  %v3658_v17 = vadd.f32 %v3657_v49, %v3449_v22  ;;  %v14821_v2 = vpop.f32.mrf.mxu1  ;;  %v14823_v39 = vpop.f32.mrf.mxu0  ;;  %v19194_v22 = vunpack.i.h.bf16 %v14807_v5  ;;  %v19653_v5 = vld [vmem:[#allocation102_spill] sm:$0xff] }
 0x51e   : > { %19646 = vst [vmem:[#allocation63_spill] sm:$0xff] %v14817_v28 }
 0x51f   : > { %v3911_v61 = vmax.f32 %v3658_v17, 0.0  ;;  %v5268_v49 = vmax.f32 %v4963_v11, %v5155_v54  ;;  %v19648_v17 = vld [vmem:[#allocation100_spill] sm:$0xff] }
 0x520   : > { %v14825_v41 = vpop.permute.xlu0 %11073  ;;  %3069 = vmatmul.bf16.gmra.mxu1 %v19592_v20  ;;  %v3451_v30 = vadd.f32 %v14563_v23, %v19648_v17 }
 0x521   : > { %19647 = vst [vmem:[#allocation71_spill] sm:$0xff] %v14825_v41  ;;  %v14833_v35 = vmax.f32 %v14696_v63, %v3911_v61  ;;  %v19186_v24 = vunpack.i.h.bf16 %v14825_v41  ;;  %v19185_v9 = vunpack.i.l.bf16 %v14825_v41  ;;  %9636 = vmatmul.msk.bf16.gmra.mxu3 %vm1979_vm9, %v19642_v3  ;;  %v14853_v3 = vpop.permute.xlu2 %11088 }
 0x523   : > { %v5460_v63 = vsel %vm589_vm8, %v19185_v9, %v19186_v24 }
 0x524   : > { %v14849_v61 = vmax.f32 %v5268_v49, %v5460_v63  ;;  %v14851_v20 = vpop.f32.mrf.mxu3  ;;  %v3659_v42 = vpop.f32.mrf.mxu2  ;;  %v4548_v49 = vsel %vm430_vm5, %v19193_v14, %v19194_v22  ;;  %v19654_v14 = vld [vmem:[#allocation101_spill] sm:$0xff] }
 0x525   : > { %v3660_v11 = vadd.f32 %v3659_v42, %v3451_v30  ;;  %v14857_v54 = vpop.f32.mrf.mxu1  ;;  %v14859_v62 = vpop.f32.mrf.mxu0  ;;  %v3454_v22 = vadd.f32 %v14584_v51, %v19654_v14  ;;  %v3016_v42 = vadd.f32 %v14645_v50, %v19611_v53  ;;  %v19655_v51 = vunpack.i.h.bf16 %v14853_v3 }
 0x526   : > { %19649 = vst [vmem:[#allocation70_spill] sm:$0xff] %v14849_v61  ;;  %v19652_v61 = vld [vmem:[#allocation112_spill] sm:$0xff] }
 0x527   : > { %v3915_v63 = vmax.f32 %v3660_v11, 0.0  ;;  %v14866_v9 = vpop.permute.xlu1 %11103  ;;  %v4662_v11 = vmax.f32 %v19578_v12, %v4548_v49  ;;  %v3225_v18 = vadd.f32 %v14662_v36, %v3016_v42  ;;  %v3026_v12 = vadd.f32 %v14730_v26, %v19630_v59 }
 0x528   : > { %19650 = vst [vmem:[#allocation65_spill] sm:$0xff] %v14866_v9  ;;  %v14869_v41 = vpop.permute.xlu0 %11083  ;;  %3517 = vmatmul.bf16.gmra.mxu0 %v19652_v61  ;;  %v19656_v49 = vunpack.i.l.bf16 %v14853_v3 }
 0x529   : > { %19651 = vst [vmem:[#allocation73_spill] sm:$0xff] %v14869_v41  ;;  %v14873_v30 = vmax.f32 %v14716_v19, %v3915_v63  ;;  %v19202_v23 = vunpack.i.h.bf16 %v14869_v41  ;;  %v19201_v28 = vunpack.i.l.bf16 %v14869_v41  ;;  %9677 = vmatmul.msk.bf16.gmra.mxu2 %vm1979_vm9, %v19653_v5  ;;  %v3886_v42 = vmax.f32 %v3225_v18, 0.0 }
 0x52a   : > { %v5158_v53 = vsel %vm536_vm3, %v19656_v49, %v19655_v51 }
 0x52b   : > { %v4853_v19 = vsel %vm483_vm4, %v19201_v28, %v19202_v23 }
 0x52c   : > { %v4967_v63 = vmax.f32 %v4662_v11, %v4853_v19  ;;  %v14890_v24 = vpop.f32.mrf.mxu3  ;;  %v3662_v13 = vpop.f32.mrf.mxu2  ;;  %v3235_v11 = vadd.f32 %v14763_v56, %v3026_v12  ;;  %v19658_v56 = vld [vmem:[#allocation103_spill] sm:$0xff] }
 0x52d   : > { %v3663_v50 = vadd.f32 %v3662_v13, %v3454_v22  ;;  %v3035_v61 = vpop.f32.mrf.mxu1  ;;  %v14900_v41 = vpop.f32.mrf.mxu0  ;;  %v3018_v13 = vadd.f32 %v14668_v29, %v19614_v15  ;;  %v3456_v22 = vadd.f32 %v14606_v32, %v19658_v56  ;;  %v4174_v32 = vmax.f32 %v14591_v44, %v3886_v42 }
 0x52e   : > { %v5272_v28 = vmax.f32 %v4967_v63, %v5158_v53  ;;  %v3902_v63 = vmax.f32 %v3235_v11, 0.0  ;;  %v3036_v18 = vadd.f32 %v3035_v61, %v19654_v14  ;;  %v14931_v29 = vpop.permute.xlu2 %11133 }
 0x52f   : > { %v3919_v19 = vmax.f32 %v3663_v50, 0.0  ;;  %v14903_v23 = vpop.permute.xlu1 %11113 }
 0x530   : > { %v14905_v36 = vpop.permute.xlu0 %11093  ;;  %3074 = vmatmul.bf16.gmra.mxu1 %v19600_v60  ;;  %v3227_v60 = vadd.f32 %v14683_v48, %v3018_v13 }
 0x531   : > { %v14908_v26 = vmax.f32 %v14746_v46, %v3919_v19  ;;  %v19205_v59 = vunpack.i.h.bf16 %v14905_v36  ;;  %v19203_v51 = vunpack.i.l.bf16 %v14905_v36  ;;  %9637 = vmatmul.msk.bf16.gmra.mxu3 %vm1979_vm9, %v19653_v5  ;;  %v3028_v5 = vadd.f32 %v14770_v27, %v19635_v34  ;;  %v19660_v34 = vld [vmem:[#allocation108_spill] sm:$0xff] }
 0x532   : > { %v4190_v19 = vmax.f32 %v4174_v32, %v3902_v63  ;;  %v3459_v27 = vadd.f32 %v14628_v1, %v19660_v34  ;;  %v19664_v63 = vld [vmem:[#allocation120_spill] sm:$0xff]  ;;  %v3021_v1 = vadd.f32 %v14689_v40, %v19620_v37  ;;  %v19666_v32 = vld [vmem:[#allocation105_spill] sm:$0xff] }
 0x533   : > { %19657 = vst [vmem:[#allocation80_spill] sm:$0xff] %v14908_v26  ;;  %v5463_v46 = vsel %vm589_vm8, %v19203_v51, %v19205_v59  ;;  %v3237_v53 = vadd.f32 %v14815_v31, %v3028_v5  ;;  %v19210_v5 = vunpack.i.h.bf16 %v14866_v9 }
 0x534   : > { %v3244_v12 = vpop.f32.mrf.mxu3  ;;  %v3664_v49 = vpop.f32.mrf.mxu2  ;;  %v14928_v15 = vmax.f32 %v5272_v28, %v5463_v46  ;;  %v3890_v28 = vmax.f32 %v3227_v60, 0.0  ;;  %v3230_v40 = vadd.f32 %v14706_v8, %v3021_v1 }
 0x535   : > { %v3245_v14 = vadd.f32 %v3244_v12, %v3036_v18  ;;  %v3665_v61 = vadd.f32 %v3664_v49, %v3456_v22  ;;  %v3037_v50 = vpop.f32.mrf.mxu1  ;;  %v14934_v11 = vpop.f32.mrf.mxu0  ;;  %v19665_v18 = vld [vmem:[#allocation109_spill] sm:$0xff]  ;;  %v3906_v60 = vmax.f32 %v3237_v53, 0.0  ;;  %v19207_v12 = vunpack.i.l.bf16 %v14866_v9 }
 0x536   : > { %19659 = vst [vmem:[#allocation74_spill] sm:$0xff] %v14928_v15  ;;  %v14979_v8 = vpop.permute.xlu2 %11143 }
 0x537   : > { %v3918_v48 = vmax.f32 %v3245_v14, 0.0  ;;  %v3923_v13 = vmax.f32 %v3665_v61, 0.0  ;;  %v14936_v51 = vpop.permute.xlu1 %11123  ;;  %v4178_v61 = vmax.f32 %v14611_v38, %v3890_v28  ;;  %v3894_v28 = vmax.f32 %v3230_v40, 0.0 }
 0x538   : > { %v14940_v46 = vpop.permute.xlu0 %11098  ;;  %3522 = vmatmul.bf16.gmra.mxu0 %v19664_v63  ;;  %v19211_v40 = vunpack.i.h.bf16 %v14979_v8 }
 0x539   : > { %19661 = vst [vmem:[#allocation75_spill] sm:$0xff] %v14940_v46  ;;  %v14942_v44 = vmax.f32 %v4190_v19, %v3918_v48  ;;  %v14945_v42 = vmax.f32 %v14788_v4, %v3923_v13  ;;  %v19212_v31 = vunpack.i.h.bf16 %v14940_v46  ;;  %v19204_v22 = vunpack.i.l.bf16 %v14940_v46  ;;  %9678 = vmatmul.msk.bf16.gmra.mxu2 %vm1979_vm9, %v19665_v18 }
 0x53a   : > { %v3038_v4 = vadd.f32 %v3037_v50, %v19658_v56  ;;  %v3031_v56 = vadd.f32 %v14821_v2, %v19643_v25  ;;  %v4194_v13 = vmax.f32 %v4178_v61, %v3906_v60 }
 0x53b   : > { %19662 = vst [vmem:[#allocation77_spill] sm:$0xff] %v14942_v44  ;;  %v4551_v49 = vsel %vm430_vm5, %v19204_v22, %v19212_v31  ;;  %v11157_v14 = vpack.i.bf16 %v14942_v44, %v19666_v32 }
 0x53c   : > { %19663 = vst [vmem:[#allocation84_spill] sm:$0xff] %v14945_v42  ;;  %v4666_v37 = vmax.f32 %v19577_v58, %v4551_v49  ;;  %v3246_v53 = vpop.f32.mrf.mxu3  ;;  %v3667_v19 = vpop.f32.mrf.mxu2  ;;  %v3240_v38 = vadd.f32 %v14851_v20, %v3031_v56  ;;  %v4856_v58 = vsel %vm483_vm4, %v19207_v12, %v19210_v5  ;;  %v19209_v56 = vunpack.i.l.bf16 %v14979_v8  ;;  %v19672_v5 = vld [vmem:[#allocation124_spill] sm:$0xff] }
 0x53d   : > { %v3247_v50 = vadd.f32 %v3246_v53, %v3038_v4  ;;  %v3668_v48 = vadd.f32 %v3667_v19, %v3459_v27  ;;  %11158 = vrot.lane.b32.xlu1 %v11157_v14, %s11548_s21  ;;  %11163 = vrot.lane.b32.xlu2 %v11157_v14, %s11547_s20  ;;  %v3040_v22 = vpop.f32.mrf.mxu1  ;;  %v14971_v59 = vpop.f32.mrf.mxu0 }
 0x53e   : > { %v14987_v20 = vmax.f32 %v4666_v37, %v4856_v58  ;;  %v19669_v58 = vld [vmem:[#allocation110_spill] sm:$0xff] }
 0x53f   : > { %v3922_v2 = vmax.f32 %v3247_v50, 0.0  ;;  %v3927_v25 = vmax.f32 %v3668_v48, 0.0  ;;  %v14981_v27 = vpop.permute.xlu1 %11138  ;;  %v3910_v50 = vmax.f32 %v3240_v38, 0.0  ;;  %v3041_v48 = vadd.f32 %v3040_v22, %v19660_v34 }
 0x540   : > { %v19215_v1 = vunpack.i.h.bf16 %v14981_v27  ;;  %v19216_v60 = vunpack.i.l.bf16 %v14981_v27  ;;  %v14985_v4 = vpop.permute.xlu0 %11108  ;;  %3079 = vmatmul.bf16.gmra.mxu1 %v19608_v52 }
 0x541   : > { %v14989_v49 = vmax.f32 %v4194_v13, %v3922_v2  ;;  %v14992_v61 = vmax.f32 %v14833_v35, %v3927_v25  ;;  %v19208_v53 = vunpack.i.h.bf16 %v14985_v4  ;;  %v19206_v19 = vunpack.i.l.bf16 %v14985_v4  ;;  %9638 = vmatmul.msk.bf16.gmra.mxu3 %vm1979_vm9, %v19665_v18 }
 0x542   : > { %v4668_v37 = vmax.f32 %v14540_v7, %v19215_v1  ;;  %v4664_v35 = vmax.f32 %v14406_v10, %v19216_v60  ;;  %v4182_v25 = vmax.f32 %v14631_v0, %v3894_v28  ;;  %v10664_v28 = vld [vmem:[%s18788_s3 + $0x68] sm:$0xff] }
 0x543   : > { %19667 = vst [vmem:[#allocation78_spill] sm:$0xff] %v14989_v49  ;;  %v15012_v18 = vpack.i.bf16 %v14989_v49, %v19669_v58  ;;  %v5161_v10 = vsel %vm536_vm3, %v19206_v19, %v19208_v53  ;;  %v19670_v53 = vld [vmem:[#allocation114_spill] sm:$0xff]  ;;  %5988 = vmatpush.bf16.msra.mxu3 %v10664_v28  ;;  %v19675_v28 = vld [vmem:[#allocation111_spill] sm:$0xff] }
 0x544   : > { %19668 = vst [vmem:[#allocation79_spill] sm:$0xff] %v14992_v61  ;;  %v3249_v13 = vpop.f32.mrf.mxu3  ;;  %v15008_v52 = vpop.f32.mrf.mxu2  ;;  %v4969_v2 = vmax.f32 %v4664_v35, %v19209_v56  ;;  %v4973_v7 = vmax.f32 %v4668_v37, %v19211_v40  ;;  %v4198_v37 = vmax.f32 %v4182_v25, %v3910_v50  ;;  %v5276_v12 = vmax.f32 %v14987_v20, %v5161_v10 }
 0x545   : > { %v3250_v34 = vadd.f32 %v3249_v13, %v3041_v48  ;;  %11168 = vrot.lane.b32.xlu1 %v11157_v14, %s11546_s19  ;;  %11173 = vrot.lane.b32.xlu2 %v11157_v14, %s11552_s24  ;;  %v3042_v22 = vpop.f32.mrf.mxu1  ;;  %v15028_v38 = vpop.f32.mrf.mxu0  ;;  %v3033_v48 = vadd.f32 %v14857_v54, %v19648_v17  ;;  %v3464_v50 = vadd.f32 %v14670_v45, %v19670_v53  ;;  %v19673_v17 = vld [vmem:[#allocation117_spill] sm:$0xff]  ;;  %v19220_v40 = vunpack.i.h.bf16 %v14936_v51 }
 0x546   : > { %11183 = vrot.lane.b32.xlu0 %v15012_v18, %s11547_s20  ;;  %v19219_v10 = vunpack.i.l.bf16 %v14936_v51 }
 0x547   : > { %v3926_v35 = vmax.f32 %v3250_v34, 0.0  ;;  %v15030_v0 = vpop.permute.xlu1 %11148  ;;  %v3242_v54 = vadd.f32 %v14890_v24, %v3033_v48  ;;  %v19224_v24 = vunpack.i.h.bf16 %v14903_v23 }
 0x548   : > { %v19214_v13 = vunpack.i.h.bf16 %v15030_v0  ;;  %v19213_v14 = vunpack.i.l.bf16 %v15030_v0  ;;  %v15039_v19 = vpop.permute.xlu0 %11118  ;;  %3527 = vmatmul.bf16.gmra.mxu0 %v19672_v5 }
 0x549   : > { %v15044_v25 = vmax.f32 %v4198_v37, %v3926_v35  ;;  %v19218_v34 = vunpack.i.h.bf16 %v15039_v19  ;;  %v19217_v56 = vunpack.i.l.bf16 %v15039_v19  ;;  %9679 = vmatmul.msk.bf16.gmra.mxu2 %vm1979_vm9, %v19673_v17 }
 0x54a   : > { %v5274_v20 = vmax.f32 %v4969_v2, %v19213_v14  ;;  %v5278_v45 = vmax.f32 %v4973_v7, %v19214_v13  ;;  %v19674_v14 = vld [vmem:[#allocation113_spill] sm:$0xff]  ;;  %v3043_v13 = vadd.f32 %v3042_v22, %v19675_v28 }
 0x54b   : > { %19671 = vst [vmem:[#allocation81_spill] sm:$0xff] %v15044_v25  ;;  %v4660_v37 = vmax.f32 %v14387_v55, %v19218_v34  ;;  %v4656_v35 = vmax.f32 %v14370_v43, %v19217_v56  ;;  %v11202_v7 = vpack.i.bf16 %v15044_v25, %v19674_v14  ;;  %v19676_v34 = vld [vmem:[#allocation119_spill] sm:$0xff] }
 0x54c   : > { %v3251_v31 = vpop.f32.mrf.mxu3  ;;  %v3672_v2 = vpop.f32.mrf.mxu2  ;;  %v3466_v48 = vadd.f32 %v14691_v33, %v19676_v34  ;;  %v19225_v33 = vunpack.i.h.bf16 %v14931_v29 }
 0x54d   : > { %v15069_v1 = vadd.f32 %v3672_v2, %v3464_v50  ;;  %11178 = vrot.lane.b32.xlu2 %v15012_v18, %s11548_s21  ;;  %v4961_v55 = vmax.f32 %v4656_v35, %v19219_v10  ;;  %v4965_v43 = vmax.f32 %v4660_v37, %v19220_v40  ;;  %11203 = vrot.lane.b32.xlu1 %v11202_v7, %s11547_s20  ;;  %v3045_v60 = vpop.f32.mrf.mxu1  ;;  %v15080_v56 = vpop.f32.mrf.mxu0  ;;  %v3914_v50 = vmax.f32 %v3242_v54, 0.0  ;;  %v10672_v37 = vld [vmem:[%s18788_s3 + $0xa8] sm:$0xff] }
 0x54e   : > { %11193 = vrot.lane.b32.xlu0 %v15012_v18, %s11552_s24  ;;  %v3252_v22 = vadd.f32 %v3251_v31, %v3043_v13  ;;  %v19677_v31 = vunpack.i.l.bf16 %v14903_v23  ;;  %v19226_v54 = vunpack.i.l.bf16 %v14931_v29  ;;  %v3046_v35 = vadd.f32 %v3045_v60, %v19670_v53  ;;  %6037 = vmatpush.bf16.msra.mxu0 %v10672_v37 }
 0x54f   : > { %v4202_v44 = vmax.f32 %v14743_v6, %v3914_v50  ;;  %v19684_v50 = vld [vmem:[#allocation122_spill] sm:$0xff] }
 0x550   : > { %v15082_v2 = vpop.permute.xlu0 %11128  ;;  %3084 = vmatmul.bf16.gmra.mxu1 %v19618_v57  ;;  %v5466_v13 = vsel %vm589_vm8, %v19677_v31, %v19224_v24  ;;  %v3930_v57 = vmax.f32 %v3252_v22, 0.0  ;;  %v19683_v22 = vld [vmem:[#allocation128_spill] sm:$0xff] }
 0x551   : > { %v19229_v10 = vunpack.i.l.bf16 %v15082_v2  ;;  %9639 = vmatmul.msk.bf16.gmra.mxu3 %vm1979_vm9, %v19673_v17  ;;  %v15101_v40 = vmax.f32 %v5276_v12, %v5466_v13  ;;  %v19679_v25 = vunpack.i.h.bf16 %v15082_v2 }
 0x553   : > { %19678 = vst [vmem:[#allocation87_spill] sm:$0xff] %v15101_v40  ;;  %v5266_v17 = vmax.f32 %v4961_v55, %v19229_v10  ;;  %v5270_v49 = vmax.f32 %v4965_v43, %v19679_v25  ;;  %v15127_v55 = vmax.f32 %v4202_v44, %v3930_v57  ;;  %v10656_v44 = vld [vmem:[%s18788_s3 + $0x28] sm:$0xff]  ;;  %v3935_v10 = vmax.f32 %v15069_v1, 0.0 }
 0x554   : > { %v3254_v14 = vpop.f32.mrf.mxu3  ;;  %v3674_v31 = vpop.f32.mrf.mxu2  ;;  %5939 = vmatpush.bf16.msra.mxu1 %v10656_v44 }
 0x555   : > { %v15111_v24 = vmax.f32 %v5266_v17, %v19226_v54  ;;  %v15115_v12 = vmax.f32 %v5270_v49, %v19225_v33  ;;  %v15117_v60 = vadd.f32 %v3254_v14, %v3046_v35  ;;  %v15119_v53 = vadd.f32 %v3674_v31, %v3466_v48  ;;  %11188 = vrot.lane.b32.xlu2 %v15012_v18, %s11546_s19  ;;  %v3047_v6 = vpop.f32.mrf.mxu1  ;;  %v15125_v25 = vpop.f32.mrf.mxu0  ;;  %v19685_v35 = vld [vmem:[#allocation121_spill] sm:$0xff]  ;;  %v19688_v31 = vld [vmem:[#allocation118_spill] sm:$0xff] }
 0x556   : > { %11213 = vrot.lane.b32.xlu1 %v11202_v7, %s11552_s24  ;;  %11198 = vrot.lane.b32.xlu0 %v11202_v7, %s11548_s21  ;;  %19682 = vst [vmem:[#allocation91_spill] sm:$0xff] %v15127_v55  ;;  %v3469_v37 = vadd.f32 %v14708_v21, %v19685_v35  ;;  %v3048_v13 = vadd.f32 %v3047_v6, %v19676_v34 }
 0x557   : > { %19680 = vst [vmem:[#allocation82_spill] sm:$0xff] %v15111_v24  ;;  %v11222_v14 = vpack.i.bf16 %v15127_v55, %v19688_v31  ;;  %v3461_v54 = vadd.f32 %v14647_v47, %v19675_v28  ;;  %v10679_v47 = vld [vmem:[%s18788_s3 + $0xe0] sm:$0xff]  ;;  %v19689_v28 = vld [vmem:[#allocation123_spill] sm:$0xff]  ;;  %v19723_v55 = vld [vmem:[#allocation22_spill] sm:$0xff] }
 0x558   : > { %19681 = vst [vmem:[#allocation83_spill] sm:$0xff] %v15115_v12  ;;  %v15131_v43 = vpop.permute.xlu0 %11153  ;;  %3532 = vmatmul.bf16.gmra.mxu0 %v19683_v22  ;;  %6087 = vmatpush.bf16.msra.mxu2 %v10679_v47  ;;  %v19693_v47 = vld [vmem:[#allocation126_spill] sm:$0xff] }
 0x559   : > { %v19227_v48 = vunpack.i.h.bf16 %v15131_v43  ;;  %v19228_v18 = vunpack.i.l.bf16 %v15131_v43  ;;  %9680 = vmatmul.msk.bf16.gmra.mxu2 %vm1979_vm9, %v19684_v50  ;;  %v3670_v44 = vadd.f32 %v15008_v52, %v3461_v54  ;;  %v11237_v52 = vpack.i.bf16 %v14945_v42, %v14908_v26  ;;  %v19704_v26 = vld [vmem:[#allocation139_spill] sm:$0xff] }
 0x55b   : > { %v15148_v57 = vmax.f32 %v5278_v45, %v19227_v48  ;;  %v15152_v17 = vmax.f32 %v5274_v20, %v19228_v18 }
 0x55c   : > { %v3256_v49 = vpop.f32.mrf.mxu3  ;;  %v3677_v33 = vpop.f32.mrf.mxu2 }
 0x55d   : > { %19686 = vst [vmem:[#allocation86_spill] sm:$0xff] %v15148_v57  ;;  %v15158_v21 = vadd.f32 %v3256_v49, %v3048_v13  ;;  %v15160_v34 = vadd.f32 %v3677_v33, %v3469_v37  ;;  %11223 = vrot.lane.b32.xlu2 %v11222_v14, %s11547_s20  ;;  %v3050_v20 = vpop.f32.mrf.mxu1  ;;  %v15167_v6 = vpop.f32.mrf.mxu0  ;;  %v19690_v33 = vld [vmem:[#allocation60_spill] sm:$0xff]  ;;  %v3931_v37 = vmax.f32 %v3670_v44, 0.0  ;;  %v19719_v57 = vunpack.i.l.bf16 %v15039_v19 }
 0x55e   : > { %19687 = vst [vmem:[#allocation85_spill] sm:$0xff] %v15152_v17  ;;  %11218 = vrot.lane.b32.xlu1 %v11222_v14, %s11548_s21  ;;  %11208 = vrot.lane.b32.xlu0 %v11202_v7, %s11546_s19  ;;  %v3471_v49 = vadd.f32 %v19690_v33, %v19689_v28  ;;  %v3051_v7 = vadd.f32 %v3050_v20, %v19685_v35  ;;  %v19692_v20 = vld [vmem:[#allocation132_spill] sm:$0xff]  ;;  %v19694_v33 = vld [vmem:[#allocation125_spill] sm:$0xff] }
 0x55f   : > { %v15189_v44 = vmax.f32 %v14873_v30, %v3931_v37 }
 0x560   : > { %3089 = vmatmul.bf16.gmra.mxu1 %v19628_v16 }
 0x561   : > { %9640 = vmatmul.msk.bf16.gmra.mxu3 %vm1979_vm9, %v19684_v50  ;;  %19691 = vst [vmem:[#allocation88_spill] sm:$0xff] %v15189_v44 }
 0x564   : > { %v3259_v13 = vpop.f32.mrf.mxu3  ;;  %v3679_v45 = vpop.f32.mrf.mxu2 }
 0x565   : > { %v15181_v16 = vadd.f32 %v3259_v13, %v3051_v7  ;;  %v15183_v54 = vadd.f32 %v3679_v45, %v3471_v49  ;;  %11233 = vrot.lane.b32.xlu2 %v11222_v14, %s11552_s24  ;;  %v3052_v50 = vpop.f32.mrf.mxu1  ;;  %v15191_v35 = vpop.f32.mrf.mxu0  ;;  %v19695_v45 = vld [vmem:[#allocation62_spill] sm:$0xff] }
 0x566   : > { %11228 = vrot.lane.b32.xlu1 %v11222_v14, %s11546_s19  ;;  %11238 = vrot.lane.b32.xlu0 %v11237_v52, %s11548_s21  ;;  %v3474_v49 = vadd.f32 %v19695_v45, %v19694_v33  ;;  %v3053_v7 = vadd.f32 %v3052_v50, %v19689_v28  ;;  %v11257_v14 = vpack.i.bf16 %v15189_v44, %v14992_v61  ;;  %v19696_v50 = vld [vmem:[#allocation104_spill] sm:$0xff] }
 0x568   : > { %3537 = vmatmul.bf16.gmra.mxu0 %v19692_v20 }
 0x569   : > { %9681 = vmatmul.msk.bf16.gmra.mxu2 %vm1979_vm9, %v19693_v47 }
 0x56c   : > { %v3261_v13 = vpop.f32.mrf.mxu3  ;;  %v3682_v48 = vpop.f32.mrf.mxu2 }
 0x56d   : > { %v15201_v18 = vadd.f32 %v3261_v13, %v3053_v7  ;;  %v3683_v30 = vadd.f32 %v3682_v48, %v3474_v49  ;;  %11258 = vrot.lane.b32.xlu2 %v11257_v14, %s11548_s21  ;;  %v3055_v37 = vpop.f32.mrf.mxu1  ;;  %v15209_v28 = vpop.f32.mrf.mxu0  ;;  %v19697_v48 = vld [vmem:[#allocation127_spill] sm:$0xff] }
 0x56e   : > { %11243 = vrot.lane.b32.xlu1 %v11237_v52, %s11547_s20  ;;  %11248 = vrot.lane.b32.xlu0 %v11237_v52, %s11546_s19  ;;  %v3476_v49 = vadd.f32 %v14823_v39, %v19697_v48  ;;  %v3056_v7 = vadd.f32 %v3055_v37, %v19694_v33  ;;  %v19698_v33 = vld [vmem:[#allocation135_spill] sm:$0xff]  ;;  %v19699_v37 = vld [vmem:[#allocation130_spill] sm:$0xff] }
 0x56f   : > { %v3951_v45 = vmax.f32 %v3683_v30, 0.0  ;;  %v3939_v30 = vmax.f32 %v15119_v53, 0.0 }
 0x570   : > { %3094 = vmatmul.bf16.gmra.mxu1 %v19696_v50 }
 0x571   : > { %v15207_v15 = vmax.f32 %v3935_v10, %v3951_v45  ;;  %9641 = vmatmul.msk.bf16.gmra.mxu3 %vm1979_vm9, %v19693_v47  ;;  %v3934_v10 = vmax.f32 %v15117_v60, 0.0 }
 0x574   : > { %v3264_v13 = vpop.f32.mrf.mxu3  ;;  %v3684_v61 = vpop.f32.mrf.mxu2 }
 0x575   : > { %v3265_v44 = vadd.f32 %v3264_v13, %v3056_v7  ;;  %v3685_v40 = vadd.f32 %v3684_v61, %v3476_v49  ;;  %11268 = vrot.lane.b32.xlu2 %v11257_v14, %s11546_s19  ;;  %v3057_v1 = vpop.f32.mrf.mxu1  ;;  %v19700_v61 = vld [vmem:[#allocation129_spill] sm:$0xff]  ;;  %v15231_v7 = vpop.f32.mrf.mxu0 }
 0x576   : > { %11253 = vrot.lane.b32.xlu0 %v11237_v52, %s11552_s24  ;;  %v3479_v49 = vadd.f32 %v14859_v62, %v19700_v61  ;;  %v3058_v52 = vadd.f32 %v3057_v1, %v19697_v48  ;;  %v19701_v1 = vld [vmem:[#allocation112_spill] sm:$0xff] }
 0x577   : > { %v3950_v45 = vmax.f32 %v3265_v44, 0.0  ;;  %v3955_v47 = vmax.f32 %v3685_v40, 0.0 }
 0x578   : > { %3542 = vmatmul.bf16.gmra.mxu0 %v19698_v33 }
 0x579   : > { %v15221_v50 = vmax.f32 %v3934_v10, %v3950_v45  ;;  %v15223_v39 = vmax.f32 %v3939_v30, %v3955_v47  ;;  %9682 = vmatmul.msk.bf16.gmra.mxu2 %vm1979_vm9, %v19699_v37  ;;  %v3938_v10 = vmax.f32 %v15158_v21, 0.0  ;;  %v3943_v30 = vmax.f32 %v15160_v34, 0.0 }
 0x57c   : > { %v3266_v60 = vpop.f32.mrf.mxu3  ;;  %v3687_v53 = vpop.f32.mrf.mxu2 }
 0x57d   : > { %v3267_v44 = vadd.f32 %v3266_v60, %v3058_v52  ;;  %v3688_v40 = vadd.f32 %v3687_v53, %v3479_v49  ;;  %11273 = vrot.lane.b32.xlu2 %v11257_v14, %s11552_s24  ;;  %v3060_v13 = vpop.f32.mrf.mxu1  ;;  %v19702_v49 = vld [vmem:[#allocation131_spill] sm:$0xff]  ;;  %v15247_v53 = vpop.f32.mrf.mxu0 }
 0x57e   : > { %11263 = vrot.lane.b32.xlu0 %v11257_v14, %s11547_s20  ;;  %v3481_v52 = vadd.f32 %v14900_v41, %v19702_v49  ;;  %v3061_v14 = vadd.f32 %v3060_v13, %v19700_v61  ;;  %v19705_v41 = vld [vmem:[#allocation134_spill] sm:$0xff]  ;;  %v10671_v61 = vld [vmem:[%s18788_s3 + $0xa0] sm:$0xff]  ;;  %v19706_v13 = vld [vmem:[#allocation133_spill] sm:$0xff] }
 0x57f   : > { %v3954_v45 = vmax.f32 %v3267_v44, 0.0  ;;  %v3959_v47 = vmax.f32 %v3688_v40, 0.0  ;;  %6038 = vmatpush.bf16.msra.mxu0 %v10671_v61 }
 0x580   : > { %3099 = vmatmul.bf16.gmra.mxu1 %v19701_v1 }
 0x581   : > { %v15237_v62 = vmax.f32 %v3938_v10, %v3954_v45  ;;  %v15239_v48 = vmax.f32 %v3943_v30, %v3959_v47  ;;  %9642 = vmatmul.msk.bf16.gmra.mxu3 %vm1979_vm9, %v19699_v37  ;;  %v3942_v10 = vmax.f32 %v15181_v16, 0.0  ;;  %v3947_v30 = vmax.f32 %v15183_v54, 0.0  ;;  %v10670_v54 = vld [vmem:[%s18788_s3 + $0x98] sm:$0xff] }
 0x583   : > { %6039 = vmatpush.bf16.msra.mxu0 %v10670_v54 }
 0x584   : > { %v3269_v60 = vpop.f32.mrf.mxu3  ;;  %v3689_v21 = vpop.f32.mrf.mxu2 }
 0x585   : > { %v3270_v34 = vadd.f32 %v3269_v60, %v3061_v14  ;;  %v3690_v44 = vadd.f32 %v3689_v21, %v3481_v52  ;;  %v3062_v40 = vpop.f32.mrf.mxu1  ;;  %v3484_v52 = vadd.f32 %v14934_v11, %v19706_v13 }
 0x586   : > { %v3063_v16 = vadd.f32 %v3062_v40, %v19702_v49  ;;  %v10669_v40 = vld [vmem:[%s18788_s3 + $0x90] sm:$0xff] }
 0x587   : > { %v3958_v45 = vmax.f32 %v3270_v34, 0.0  ;;  %v3963_v47 = vmax.f32 %v3690_v44, 0.0  ;;  %6040 = vmatpush.bf16.msra.mxu0 %v10669_v40 }
 0x588   : > { %3547 = vmatmul.bf16.gmra.mxu0 %v19704_v26 }
 0x589   : > { %v15251_v1 = vmax.f32 %v3942_v10, %v3958_v45  ;;  %v4235_v37 = vmax.f32 %v3947_v30, %v3963_v47  ;;  %9683 = vmatmul.msk.bf16.gmra.mxu2 %vm1979_vm9, %v19705_v41  ;;  %v3946_v10 = vmax.f32 %v15201_v18, 0.0  ;;  %v15268_v30 = vpop.f32.mrf.mxu0  ;;  %v19708_v18 = vld [vmem:[#allocation136_spill] sm:$0xff] }
 0x58a   : > { %v3486_v61 = vadd.f32 %v14971_v59, %v19708_v18  ;;  %v19710_v59 = vld [vmem:[#allocation4_spill] sm:$0xff] }
 0x58b   : > { %19703 = vst [vmem:[#allocation95_spill] sm:$0xff] %v15251_v1  ;;  %v19725_v1 = vld [vmem:[#allocation5_spill] sm:$0xff] }
 0x58c   : > { %v3271_v14 = vpop.f32.mrf.mxu3  ;;  %v3692_v60 = vpop.f32.mrf.mxu2 }
 0x58d   : > { %v3272_v21 = vadd.f32 %v3271_v14, %v3063_v16  ;;  %v3693_v34 = vadd.f32 %v3692_v60, %v3484_v52  ;;  %v15265_v44 = vpop.f32.mrf.mxu1  ;;  %v10668_v52 = vld [vmem:[%s18788_s3 + $0x88] sm:$0xff] }
 0x58e   : > { %6041 = vmatpush.bf16.msra.mxu0 %v10668_v52 }
 0x58f   : > { %v3962_v45 = vmax.f32 %v3272_v21, 0.0  ;;  %v3967_v47 = vmax.f32 %v3693_v34, 0.0  ;;  %v19711_v34 = vld [vmem:[#allocation138_spill] sm:$0xff] }
 0x590   : > { %3104 = vmatmul.bf16.gmra.mxu1 %v19664_v63 }
 0x591   : > { %v15270_v11 = vmax.f32 %v3946_v10, %v3962_v45  ;;  %v15273_v49 = vmax.f32 %v15207_v15, %v3967_v47  ;;  %9643 = vmatmul.msk.bf16.gmra.mxu3 %vm1979_vm9, %v19705_v41  ;;  %v15292_v60 = vpop.f32.mrf.mxu0  ;;  %v10667_v10 = vld [vmem:[%s18788_s3 + $0x80] sm:$0xff]  ;;  %v19712_v47 = vld [vmem:[#allocation137_spill] sm:$0xff] }
 0x592   : > { %19709 = vst [vmem:[#allocation89_spill] sm:$0xff] %v15292_v60  ;;  %v10663_v45 = vld [vmem:[%s18788_s3 + $0x60] sm:$0xff]  ;;  %v3489_v40 = vadd.f32 %v15028_v38, %v19712_v47  ;;  %6042 = vmatpush.bf16.msra.mxu0 %v10667_v10 }
 0x593   : > { %19707 = vst [vmem:[#allocation90_spill] sm:$0xff] %v15270_v11  ;;  %5989 = vmatpush.bf16.msra.mxu3 %v10663_v45  ;;  %v19714_v38 = vld [vmem:[#allocation140_spill] sm:$0xff] }
 0x594   : > { %v15286_v16 = vpop.f32.mrf.mxu3  ;;  %v3694_v15 = vpop.f32.mrf.mxu2  ;;  %v3491_v10 = vadd.f32 %v15080_v56, %v19714_v38  ;;  %v19724_v11 = vld [vmem:[#allocation28_spill] sm:$0xff] }
 0x595   : > { %v3695_v54 = vadd.f32 %v3694_v15, %v3486_v61  ;;  %v15288_v63 = vpop.f32.mrf.mxu1 }
 0x597   : > { %v3971_v14 = vmax.f32 %v3695_v54, 0.0  ;;  %v15290_v41 = vpop.permute.xlu2 %11163 }
 0x598   : > { %3552 = vmatmul.bf16.gmra.mxu0 %v19710_v59 }
 0x599   : > { %v15295_v21 = vmax.f32 %v15223_v39, %v3971_v14  ;;  %9684 = vmatmul.msk.bf16.gmra.mxu2 %vm1979_vm9, %v19711_v34  ;;  %v15322_v45 = vpop.f32.mrf.mxu0 }
 0x59a   : > { %19715 = vst [vmem:[#allocation99_spill] sm:$0xff] %v15322_v45 }
 0x59c   : > { %v15308_v39 = vpop.f32.mrf.mxu3  ;;  %v3697_v61 = vpop.f32.mrf.mxu2 }
 0x59d   : > { %v3698_v52 = vadd.f32 %v3697_v61, %v3489_v40  ;;  %v15310_v15 = vpop.f32.mrf.mxu1  ;;  %v19716_v61 = vunpack.i.h.bf16 %v15039_v19  ;;  %v10655_v19 = vld [vmem:[%s18788_s3 + $0x20] sm:$0xff] }
 0x59e   : > { %5940 = vmatpush.bf16.msra.mxu1 %v10655_v19  ;;  %v19741_v19 = vunpack.i.l.bf16 %v14931_v29 }
 0x59f   : > { %v3975_v54 = vmax.f32 %v3698_v52, 0.0  ;;  %v15315_v42 = vpop.permute.xlu2 %11173  ;;  %v19717_v52 = vld [vmem:[#allocation66_spill] sm:$0xff] }
 0x5a0   : > { %19713 = vst [vmem:[#allocation92_spill] sm:$0xff] %v15315_v42  ;;  %3109 = vmatmul.bf16.gmra.mxu1 %v19672_v5  ;;  %v19720_v5 = vld [vmem:[#allocation61_spill] sm:$0xff] }
 0x5a1   : > { %v15313_v14 = vmax.f32 %v15239_v48, %v3975_v54  ;;  %9644 = vmatmul.msk.bf16.gmra.mxu3 %vm1979_vm9, %v19711_v34  ;;  %v19718_v48 = vunpack.i.h.bf16 %v19717_v52  ;;  %v19721_v24 = vunpack.i.h.bf16 %v19720_v5  ;;  %v19726_v52 = vld [vmem:[#allocation142_spill] sm:$0xff] }
 0x5a3   : > { %v4546_v54 = vsel %vm430_vm5, %v19718_v48, %v19716_v61  ;;  %v4543_v34 = vsel %vm430_vm5, %v19721_v24, %v19719_v57  ;;  %v19727_v24 = vunpack.i.l.bf16 %v14936_v51  ;;  %v19728_v57 = vld [vmem:[#allocation52_spill] sm:$0xff]  ;;  %v19734_v61 = vld [vmem:[#allocation57_spill] sm:$0xff] }
 0x5a4   : > { %v15324_v17 = vpop.f32.mrf.mxu3  ;;  %v3699_v40 = vpop.f32.mrf.mxu2  ;;  %v4659_v59 = vmax.f32 %v19723_v55, %v4546_v54  ;;  %v4655_v45 = vmax.f32 %v19724_v11, %v4543_v34  ;;  %v19730_v55 = vunpack.i.h.bf16 %v14936_v51  ;;  %v19731_v11 = vld [vmem:[#allocation76_spill] sm:$0xff]  ;;  %v19735_v48 = vunpack.i.h.bf16 %v19734_v61 }
 0x5a5   : > { %v3700_v12 = vadd.f32 %v3699_v40, %v3491_v10  ;;  %v15336_v60 = vpop.f32.mrf.mxu1  ;;  %v19729_v10 = vunpack.i.h.bf16 %v19728_v57  ;;  %v19736_v34 = vunpack.i.l.bf16 %v15082_v2  ;;  %v15374_v61 = vpop.f32.mrf.mxu0 }
 0x5a6   : > { %19722 = vst [vmem:[#allocation93_spill] sm:$0xff] %v15336_v60  ;;  %v19739_v60 = vld [vmem:[#allocation141_spill] sm:$0xff] }
 0x5a7   : > { %v3979_v56 = vmax.f32 %v3700_v12, 0.0  ;;  %v4848_v12 = vsel %vm483_vm4, %v19729_v10, %v19727_v24  ;;  %v3494_v24 = vadd.f32 %v15125_v25, %v19739_v60  ;;  %v15370_v51 = vpop.permute.xlu2 %11178  ;;  %19740 = vst [vmem:[#allocation94_spill] sm:$0xff] %v15374_v61  ;;  %v19243_v25 = vunpack.i.h.bf16 %v15290_v41 }
 0x5a8   : > { %3557 = vmatmul.bf16.gmra.mxu0 %v19725_v1  ;;  %v19733_v1 = vunpack.i.h.bf16 %v15082_v2  ;;  %v4960_v10 = vmax.f32 %v4655_v45, %v4848_v12  ;;  %v19742_v12 = vld [vmem:[#allocation54_spill] sm:$0xff] }
 0x5a9   : > { %v15340_v26 = vmax.f32 %v4235_v37, %v3979_v56  ;;  %9685 = vmatmul.msk.bf16.gmra.mxu2 %vm1979_vm9, %v19726_v52  ;;  %v19732_v37 = vunpack.i.h.bf16 %v19731_v11  ;;  %v19737_v56 = vld [vmem:[#allocation72_spill] sm:$0xff] }
 0x5aa   : > { %v5156_v54 = vsel %vm536_vm3, %v19735_v48, %v19733_v1  ;;  %v19738_v5 = vunpack.i.h.bf16 %v19737_v56 }
 0x5ab   : > { %v4851_v40 = vsel %vm483_vm4, %v19732_v37, %v19730_v55 }
 0x5ac   : > { %v5153_v57 = vsel %vm536_vm3, %v19738_v5, %v19736_v34  ;;  %v4964_v55 = vmax.f32 %v4659_v59, %v4851_v40  ;;  %v15372_v37 = vpop.f32.mrf.mxu3  ;;  %v3702_v11 = vpop.f32.mrf.mxu2  ;;  %v19743_v40 = vunpack.i.h.bf16 %v19742_v12 }
 0x5ad   : > { %v3703_v1 = vadd.f32 %v3702_v11, %v3494_v24  ;;  %v5265_v48 = vmax.f32 %v4960_v10, %v5153_v57  ;;  %v15376_v38 = vpop.f32.mrf.mxu1  ;;  %v19744_v11 = vunpack.i.h.bf16 %v14931_v29  ;;  %v15432_v61 = vpop.f32.mrf.mxu0 }
 0x5ae   : > { %v5269_v2 = vmax.f32 %v4964_v55, %v5156_v54  ;;  %v5458_v57 = vsel %vm589_vm8, %v19743_v40, %v19741_v19  ;;  %v19745_v54 = vld [vmem:[#allocation71_spill] sm:$0xff]  ;;  %v19747_v19 = vld [vmem:[#allocation144_spill] sm:$0xff]  ;;  %19755 = vst [vmem:[#allocation97_spill] sm:$0xff] %v15432_v61 }
 0x5af   : > { %v3983_v56 = vmax.f32 %v3703_v1, 0.0  ;;  %v15378_v5 = vpop.permute.xlu1 %11158  ;;  %v19746_v24 = vunpack.i.h.bf16 %v19745_v54  ;;  %v5570_v1 = vmax.f32 %v5265_v48, %v5458_v57  ;;  %v3496_v40 = vadd.f32 %v15167_v6, %v19747_v19  ;;  %v15417_v57 = vpop.permute.xlu2 %11188 }
 0x5b0   : > { %v19242_v45 = vunpack.i.h.bf16 %v15378_v5  ;;  %v19241_v59 = vunpack.i.l.bf16 %v15378_v5  ;;  %3114 = vmatmul.bf16.gmra.mxu1 %v19683_v22  ;;  %19749 = vst [vmem:[#allocation96_spill] sm:$0xff] %v15417_v57  ;;  %v19750_v6 = vunpack.i.l.bf16 %v14981_v27  ;;  %v19765_v54 = vunpack.i.h.bf16 %v15315_v42 }
 0x5b1   : > { %v5461_v10 = vsel %vm589_vm8, %v19746_v24, %v19744_v11  ;;  %v15395_v55 = vmax.f32 %v15273_v49, %v3983_v56  ;;  %9645 = vmatmul.msk.bf16.gmra.mxu3 %vm1979_vm9, %v19726_v52  ;;  %v19748_v52 = vunpack.i.l.bf16 %v15290_v41 }
 0x5b2   : > { %v5574_v34 = vmax.f32 %v5269_v2, %v5461_v10  ;;  %v4554_v29 = vsel %vm430_vm5, %v19241_v59, %v19242_v45  ;;  %v19751_v59 = vld [vmem:[#allocation69_spill] sm:$0xff] }
 0x5b3   : > { %v4670_v22 = vmax.f32 %v19666_v32, %v4554_v29  ;;  %v4859_v56 = vsel %vm483_vm4, %v19748_v52, %v19243_v25  ;;  %v19752_v45 = vunpack.i.h.bf16 %v19751_v59  ;;  %v19753_v32 = vunpack.i.h.bf16 %v14981_v27 }
 0x5b4   : > { %v15415_v48 = vpop.f32.mrf.mxu3  ;;  %v3704_v2 = vpop.f32.mrf.mxu2  ;;  %v19754_v29 = vunpack.i.h.bf16 %v14940_v46  ;;  %v5634_v27 = vpack.c.bf16 %v5574_v34, %v5570_v1  ;;  %v19759_v34 = vld [vmem:[#allocation145_spill] sm:$0xff]  ;;  %v19760_v1 = vld [vmem:[#allocation32_spill] sm:$0xff] }
 0x5b5   : > { %v3705_v24 = vadd.f32 %v3704_v2, %v3496_v40  ;;  %v4975_v10 = vmax.f32 %v4670_v22, %v4859_v56  ;;  %v4549_v49 = vsel %vm430_vm5, %v19752_v45, %v19750_v6  ;;  %v15429_v52 = vpop.f32.mrf.mxu1  ;;  %v19756_v40 = vunpack.i.h.bf16 %v15370_v51  ;;  %v19762_v6 = vld [vmem:[#allocation146_spill] sm:$0xff] }
 0x5b6   : > { %v4552_v11 = vsel %vm430_vm5, %v19754_v29, %v19753_v32  ;;  %v19757_v22 = vunpack.i.l.bf16 %v15370_v51 }
 0x5b7   : > { %v3987_v2 = vmax.f32 %v3705_v24, 0.0  ;;  %v15439_v45 = vpop.permute.xlu1 %11168  ;;  %v3499_v24 = vadd.f32 %v15191_v35, %v19762_v6  ;;  %v19768_v35 = vunpack.i.h.bf16 %v14866_v9  ;;  %v19776_v9 = vunpack.i.h.bf16 %v14853_v3 }
 0x5b8   : > { %v4557_v56 = vsel %vm430_vm5, %v19757_v22, %v19756_v40  ;;  %19758 = vst [vmem:[#allocation98_spill] sm:$0xff] %v15439_v45  ;;  %v19246_v29 = vunpack.i.h.bf16 %v15439_v45  ;;  %v19245_v25 = vunpack.i.l.bf16 %v15439_v45  ;;  %v15445_v59 = vpop.permute.xlu0 %11183  ;;  %6043 = vmatmul.bf16.vlgmr.msra.gmra.mxu0 %v5634_v27  ;;  %v4663_v22 = vmax.f32 %v19760_v1, %v4549_v49 }
 0x5b9   : > { %v15449_v12 = vmax.f32 %v15295_v21, %v3987_v2  ;;  %9686 = vmatmul.msk.bf16.gmra.mxu2 %vm1979_vm9, %v19759_v34  ;;  %v4674_v32 = vmax.f32 %v19669_v58, %v4557_v56  ;;  %v19761_v21 = vld [vmem:[#allocation26_spill] sm:$0xff]  ;;  %v19763_v40 = vunpack.i.h.bf16 %v15445_v59  ;;  %v19764_v61 = vunpack.i.l.bf16 %v15445_v59 }
 0x5ba   : > { %v5164_v46 = vsel %vm536_vm3, %v19245_v25, %v19246_v29  ;;  %v4667_v2 = vmax.f32 %v19761_v21, %v4552_v11  ;;  %v19766_v25 = vunpack.i.l.bf16 %v15315_v42  ;;  %v19767_v21 = vunpack.i.h.bf16 %v14979_v8 }
 0x5bb   : > { %v4862_v27 = vsel %vm483_vm4, %v19764_v61, %v19763_v40  ;;  %v5280_v49 = vmax.f32 %v4975_v10, %v5164_v46  ;;  %v19769_v45 = vunpack.i.h.bf16 %v15417_v57  ;;  %v19770_v46 = vunpack.i.l.bf16 %v15417_v57 }
 0x5bc   : > { %v4979_v1 = vmax.f32 %v4674_v32, %v4862_v27  ;;  %v15470_v58 = vpop.f32.mrf.mxu3  ;;  %v3707_v56 = vpop.f32.mrf.mxu2  ;;  %v5469_v11 = vsel %vm589_vm8, %v19766_v25, %v19765_v54  ;;  %v4857_v29 = vsel %vm483_vm4, %v19768_v35, %v19767_v21  ;;  %v19772_v40 = vunpack.i.l.bf16 %v14979_v8  ;;  %v19773_v27 = vld [vmem:[#allocation73_spill] sm:$0xff] }
 0x5bd   : > { %v5167_v61 = vsel %vm536_vm3, %v19770_v46, %v19769_v45  ;;  %v3708_v10 = vadd.f32 %v3707_v56, %v3499_v24  ;;  %v15487_v32 = vmax.f32 %v5280_v49, %v5469_v11  ;;  %v19774_v42 = vunpack.i.h.bf16 %v19773_v27  ;;  %v15504_v24 = vpop.f32.mrf.mxu1 }
 0x5be   : > { %v19775_v54 = vunpack.i.l.bf16 %v15030_v0  ;;  %v19777_v35 = vunpack.i.h.bf16 %v15030_v0  ;;  %v19778_v57 = vunpack.i.h.bf16 %v14985_v4  ;;  %v5284_v49 = vmax.f32 %v4979_v1, %v5167_v61  ;;  %v15520_v1 = vpop.f32.mrf.mxu0 }
 0x5bf   : > { %19771 = vst [vmem:[#allocation100_spill] sm:$0xff] %v15487_v32  ;;  %v4854_v25 = vsel %vm483_vm4, %v19774_v42, %v19772_v40  ;;  %v3991_v8 = vmax.f32 %v3708_v10, 0.0  ;;  %v4972_v11 = vmax.f32 %v4667_v2, %v4857_v29  ;;  %v15506_v46 = vpop.permute.xlu1 %11203  ;;  %v19779_v40 = vunpack.i.l.bf16 %v15131_v43 }
 0x5c0   : > { %v5159_v21 = vsel %vm536_vm3, %v19776_v9, %v19775_v54  ;;  %v5162_v45 = vsel %vm536_vm3, %v19778_v57, %v19777_v35  ;;  %v4968_v56 = vmax.f32 %v4663_v22, %v4854_v25  ;;  %v15508_v42 = vpop.permute.xlu0 %11193  ;;  %v19780_v9 = vunpack.i.h.bf16 %v14905_v36  ;;  %19783 = vst [vmem:[#allocation102_spill] sm:$0xff] %v15520_v1  ;;  %3119 = vmatmul.bf16.gmra.mxu1 %v19692_v20  ;;  %v19784_v25 = vld [vmem:[#allocation147_spill] sm:$0xff] }
 0x5c1   : > { %v19781_v54 = vunpack.i.h.bf16 %v15131_v43  ;;  %v19782_v57 = vunpack.i.h.bf16 %v14903_v23  ;;  %v15523_v29 = vmax.f32 %v15313_v14, %v3991_v8  ;;  %9646 = vmatmul.msk.bf16.gmra.mxu3 %vm1979_vm9, %v19759_v34  ;;  %v5277_v2 = vmax.f32 %v4972_v11, %v5162_v45  ;;  %v10678_v43 = vld [vmem:[%s18788_s3 + $0xd8] sm:$0xff] }
 0x5c2   : > { %v5464_v0 = vsel %vm589_vm8, %v19780_v9, %v19779_v40  ;;  %v5273_v22 = vmax.f32 %v4968_v56, %v5159_v21  ;;  %v19255_v61 = vunpack.i.h.bf16 %v15508_v42  ;;  %v19254_v10 = vunpack.i.l.bf16 %v15508_v42  ;;  %6088 = vmatpush.bf16.msra.mxu2 %v10678_v43 }
 0x5c3   : > { %v5467_v35 = vsel %vm589_vm8, %v19782_v57, %v19781_v54  ;;  %v3501_v40 = vadd.f32 %v15209_v28, %v19784_v25  ;;  %v19788_v57 = vld [vmem:[#allocation113_spill] sm:$0xff] }
 0x5c4   : > { %v5578_v14 = vmax.f32 %v5273_v22, %v5464_v0  ;;  %v5582_v8 = vmax.f32 %v5277_v2, %v5467_v35  ;;  %v15535_v20 = vpop.f32.mrf.mxu3  ;;  %v3709_v9 = vpop.f32.mrf.mxu2  ;;  %v5472_v34 = vsel %vm589_vm8, %v19254_v10, %v19255_v61  ;;  %v19786_v22 = vld [vmem:[#allocation149_spill] sm:$0xff] }
 0x5c5   : > { %v3710_v21 = vadd.f32 %v3709_v9, %v3501_v40  ;;  %v15542_v45 = vmax.f32 %v5284_v49, %v5472_v34  ;;  %v15544_v56 = vpop.f32.mrf.mxu1  ;;  %v3066_v49 = vadd.f32 %v15265_v44, %v19706_v13  ;;  %v19787_v9 = vld [vmem:[#allocation148_spill] sm:$0xff]  ;;  %v3076_v13 = vadd.f32 %v15376_v38, %v19739_v60 }
 0x5c6   : > { %v5638_v54 = vpack.c.bf16 %v5582_v8, %v5578_v14  ;;  %v15561_v40 = vpop.f32.mrf.mxu0  ;;  %v15563_v14 = vpop.permute.xlu2 %11223  ;;  %v3504_v34 = vadd.f32 %v15231_v7, %v19787_v9  ;;  %v19789_v8 = vld [vmem:[#allocation143_spill] sm:$0xff]  ;;  %v19790_v60 = vunpack.i.h.bf16 %v15506_v46  ;;  %v19791_v38 = vunpack.i.l.bf16 %v15506_v46 }
 0x5c7   : > { %19785 = vst [vmem:[#allocation101_spill] sm:$0xff] %v15542_v45  ;;  %v3995_v11 = vmax.f32 %v3710_v21, 0.0  ;;  %v3275_v21 = vadd.f32 %v15286_v16, %v3066_v49  ;;  %v3285_v61 = vadd.f32 %v15415_v48, %v3076_v13  ;;  %v3506_v16 = vadd.f32 %v15247_v53, %v19789_v8 }
 0x5c8   : > { %v15546_v28 = vpop.permute.xlu1 %11213  ;;  %v15548_v0 = vpop.permute.xlu0 %11198  ;;  %6048 = vmatmul.bf16.gmra.mxu0 %v5638_v54  ;;  %v4865_v49 = vsel %vm483_vm4, %v19791_v38, %v19790_v60 }
 0x5c9   : > { %v15553_v35 = vmax.f32 %v15340_v26, %v3995_v11  ;;  %9687 = vmatmul.msk.bf16.gmra.mxu2 %vm1979_vm9, %v19786_v22  ;;  %v19257_v2 = vunpack.i.h.bf16 %v15548_v0  ;;  %v19256_v43 = vunpack.i.l.bf16 %v15548_v0  ;;  %v3966_v1 = vmax.f32 %v3275_v21, 0.0 }
 0x5ca   : > { %v3982_v21 = vmax.f32 %v3285_v61, 0.0 }
 0x5cb   : > { %v4560_v44 = vsel %vm430_vm5, %v19256_v43, %v19257_v2  ;;  %v19261_v43 = vunpack.i.h.bf16 %v15563_v14 }
 0x5cc   : > { %v15577_v11 = vpop.f32.mrf.mxu3  ;;  %v3712_v54 = vpop.f32.mrf.mxu2  ;;  %v4678_v10 = vmax.f32 %v19788_v57, %v4560_v44 }
 0x5cd   : > { %v3713_v26 = vadd.f32 %v3712_v54, %v3504_v34  ;;  %v3085_v7 = vpop.f32.mrf.mxu1  ;;  %v19259_v34 = vunpack.i.l.bf16 %v15563_v14 }
 0x5ce   : > { %v4983_v48 = vmax.f32 %v4678_v10, %v4865_v49  ;;  %v3086_v49 = vadd.f32 %v3085_v7, %v19787_v9  ;;  %v15622_v9 = vpop.f32.mrf.mxu0  ;;  %v15624_v7 = vpop.permute.xlu2 %11233 }
 0x5cf   : > { %v3999_v2 = vmax.f32 %v3713_v26, 0.0  ;;  %v3068_v26 = vadd.f32 %v15288_v63, %v19708_v18  ;;  %v4238_v18 = vmax.f32 %v15221_v50, %v3966_v1  ;;  %19793 = vst [vmem:[#allocation108_spill] sm:$0xff] %v15622_v9  ;;  %v10654_v1 = vld [vmem:[%s18788_s3 + $0x18] sm:$0xff] }
 0x5d0   : > { %v15589_v32 = vpop.permute.xlu1 %11218  ;;  %v15591_v57 = vpop.permute.xlu0 %11208  ;;  %3124 = vmatmul.bf16.gmra.mxu1 %v19698_v33 }
 0x5d1   : > { %v19262_v13 = vunpack.i.h.bf16 %v15589_v32  ;;  %v19260_v53 = vunpack.i.l.bf16 %v15589_v32  ;;  %v19264_v44 = vunpack.i.h.bf16 %v15591_v57  ;;  %9647 = vmatmul.msk.bf16.gmra.mxu3 %vm1979_vm9, %v19786_v22  ;;  %v15603_v54 = vmax.f32 %v15395_v55, %v3999_v2  ;;  %5941 = vmatpush.bf16.msra.mxu1 %v10654_v1 }
 0x5d2   : > { %v19263_v10 = vunpack.i.l.bf16 %v15591_v57  ;;  %v3277_v63 = vadd.f32 %v15308_v39, %v3068_v26  ;;  %v4868_v2 = vsel %vm483_vm4, %v19259_v34, %v19261_v43  ;;  %v3071_v26 = vadd.f32 %v15310_v15, %v19712_v47 }
 0x5d3   : > { %19792 = vst [vmem:[#allocation103_spill] sm:$0xff] %v15603_v54  ;;  %v4563_v33 = vsel %vm430_vm5, %v19260_v53, %v19262_v13  ;;  %v4254_v13 = vmax.f32 %v4238_v18, %v3982_v21 }
 0x5d4   : > { %v4682_v55 = vmax.f32 %v19688_v31, %v4563_v33  ;;  %v3294_v61 = vpop.f32.mrf.mxu3  ;;  %v3714_v22 = vpop.f32.mrf.mxu2  ;;  %v5170_v50 = vsel %vm536_vm3, %v19263_v10, %v19264_v44  ;;  %v3078_v33 = vadd.f32 %v15429_v52, %v19747_v19  ;;  %v10653_v52 = vld [vmem:[%s18788_s3 + $0x10] sm:$0xff]  ;;  %v3970_v21 = vmax.f32 %v3277_v63, 0.0  ;;  %v19803_v63 = vld [vmem:[#allocation152_spill] sm:$0xff]  ;;  %v19805_v10 = vld [vmem:[#allocation93_spill] sm:$0xff] }
 0x5d5   : > { %v3295_v39 = vadd.f32 %v3294_v61, %v3086_v49  ;;  %v3715_v31 = vadd.f32 %v3714_v22, %v3506_v16  ;;  %v3087_v34 = vpop.f32.mrf.mxu1  ;;  %v5288_v43 = vmax.f32 %v4983_v48, %v5170_v50  ;;  %v19794_v16 = vunpack.i.h.bf16 %v15546_v28  ;;  %v19802_v50 = vld [vmem:[#allocation156_spill] sm:$0xff]  ;;  %5942 = vmatpush.bf16.msra.mxu1 %v10653_v52 }
 0x5d6   : > { %v15638_v53 = vmax.f32 %v4682_v55, %v4868_v2  ;;  %v19795_v49 = vunpack.i.l.bf16 %v15546_v28  ;;  %v3280_v22 = vadd.f32 %v15324_v17, %v3071_v26  ;;  %v3287_v47 = vadd.f32 %v15470_v58, %v3078_v33  ;;  %v19800_v2 = vld [vmem:[#allocation157_spill] sm:$0xff]  ;;  %v19804_v52 = vld [vmem:[#allocation140_spill] sm:$0xff] }
 0x5d7   : > { %v3998_v38 = vmax.f32 %v3295_v39, 0.0  ;;  %v4003_v60 = vmax.f32 %v3715_v31, 0.0  ;;  %v19801_v17 = vld [vmem:[#allocation25_spill] sm:$0xff]  ;;  %v3509_v39 = vadd.f32 %v15268_v30, %v19802_v50  ;;  %v3088_v31 = vadd.f32 %v3087_v34, %v19789_v8 }
 0x5d8   : > { %v5475_v61 = vsel %vm589_vm8, %v19795_v49, %v19794_v16  ;;  %v15647_v15 = vpop.permute.xlu1 %11228  ;;  %v15649_v19 = vpop.permute.xlu0 %11238  ;;  %v3986_v26 = vmax.f32 %v3287_v47, 0.0  ;;  %v3081_v30 = vadd.f32 %v15504_v24, %v19762_v6  ;;  %v4242_v33 = vmax.f32 %v15237_v62, %v3970_v21  ;;  %v19806_v6 = vld [vmem:[#allocation36_spill] sm:$0xff] }
 0x5d9   : > { %19796 = vst [vmem:[#allocation120_spill] sm:$0xff] %v15649_v19  ;;  %v15654_v48 = vmax.f32 %v5288_v43, %v5475_v61  ;;  %v15656_v18 = vmax.f32 %v4254_v13, %v3998_v38  ;;  %v15659_v55 = vmax.f32 %v15449_v12, %v4003_v60  ;;  %9688 = vmatmul.msk.bf16.gmra.mxu2 %vm1979_vm9, %v19800_v2  ;;  %v19266_v1 = vunpack.i.h.bf16 %v15647_v15  ;;  %v10652_v12 = vld [vmem:[%s18788_s3 + $0x8] sm:$0xff]  ;;  %v15688_v60 = vpop.f32.mrf.mxu0  ;;  %v15690_v62 = vpop.permute.xlu2 %11258 }
 0x5da   : > { %v19265_v43 = vunpack.i.l.bf16 %v15647_v15  ;;  %v3974_v38 = vmax.f32 %v3280_v22, 0.0  ;;  %v19267_v16 = vunpack.i.l.bf16 %v15649_v19  ;;  %v3073_v44 = vadd.f32 %v19805_v10, %v19804_v52  ;;  %19807 = vst [vmem:[#allocation114_spill] sm:$0xff] %v15688_v60  ;;  %5943 = vmatpush.bf16.msra.mxu1 %v10652_v12  ;;  %v10677_v12 = vld [vmem:[%s18788_s3 + $0xd0] sm:$0xff] }
 0x5db   : > { %19797 = vst [vmem:[#allocation109_spill] sm:$0xff] %v15654_v48  ;;  %v15671_v13 = vpack.i.bf16 %v15656_v18, %v19803_v63  ;;  %v3290_v22 = vadd.f32 %v15535_v20, %v3081_v30  ;;  %v19808_v20 = vld [vmem:[#allocation23_spill] sm:$0xff]  ;;  %v4258_v52 = vmax.f32 %v4242_v33, %v3986_v26  ;;  %6089 = vmatpush.bf16.msra.mxu2 %v10677_v12  ;;  %v19819_v12 = vld [vmem:[#allocation77_spill] sm:$0xff]  ;;  %v19834_v63 = vld [vmem:[#allocation96_spill] sm:$0xff]  ;;  %v19283_v60 = vunpack.i.h.bf16 %v15690_v62 }
 0x5dc   : > { %19798 = vst [vmem:[#allocation105_spill] sm:$0xff] %v15656_v18  ;;  %v3296_v8 = vpop.f32.mrf.mxu3  ;;  %v3717_v34 = vpop.f32.mrf.mxu2  ;;  %v15697_v21 = vsel %vm536_vm3, %v19265_v43, %v19266_v1  ;;  %v19809_v30 = vld [vmem:[#allocation95_spill] sm:$0xff]  ;;  %v19815_v43 = vunpack.i.h.bf16 %v15649_v19  ;;  %v19816_v1 = vunpack.i.h.bf16 %v15370_v51 }
 0x5dd   : > { %19799 = vst [vmem:[#allocation110_spill] sm:$0xff] %v15659_v55  ;;  %v3297_v49 = vadd.f32 %v3296_v8, %v3088_v31  ;;  %v3718_v61 = vadd.f32 %v3717_v34, %v3509_v39  ;;  %11278 = vrot.lane.b32.xlu2 %v15671_v13, %s11548_s21  ;;  %v3090_v58 = vpop.f32.mrf.mxu1  ;;  %v4246_v8 = vmax.f32 %v19809_v30, %v3974_v38  ;;  %v3990_v30 = vmax.f32 %v3290_v22, 0.0 }
 0x5de   : > { %v15702_v34 = vadd.f32 %v15372_v37, %v3073_v44  ;;  %11283 = vrot.lane.b32.xlu0 %v15671_v13, %s11547_s20  ;;  %v19812_v37 = vunpack.i.h.bf16 %v15378_v5  ;;  %v4558_v31 = vsel %vm430_vm5, %v19816_v1, %v19815_v43  ;;  %v3083_v22 = vadd.f32 %v15544_v56, %v19784_v25 }
 0x5df   : > { %v4002_v39 = vmax.f32 %v3297_v49, 0.0  ;;  %v4007_v10 = vmax.f32 %v3718_v61, 0.0  ;;  %v10651_v49 = vld [vmem:[%s18788_s3] sm:$0xff]  ;;  %v19814_v61 = vld [vmem:[#allocation139_spill] sm:$0xff]  ;;  %v19818_v1 = vunpack.i.h.bf16 %v15290_v41 }
 0x5e0   : > { %v15706_v24 = vpop.permute.xlu1 %11243  ;;  %v15708_v47 = vpop.permute.xlu0 %11248  ;;  %v4555_v44 = vsel %vm430_vm5, %v19812_v37, %v19267_v16  ;;  %3129 = vmatmul.bf16.gmra.mxu1 %v19814_v61  ;;  %v3091_v61 = vadd.f32 %v3090_v58, %v19802_v50  ;;  %v3292_v50 = vadd.f32 %v15577_v11, %v3083_v22  ;;  %v4262_v11 = vmax.f32 %v4246_v8, %v3990_v30  ;;  %v10661_v8 = vld [vmem:[%s18788_s3 + $0x50] sm:$0xff] }
 0x5e1   : > { %19810 = vst [vmem:[#allocation124_spill] sm:$0xff] %v15706_v24  ;;  %v15722_v38 = vmax.f32 %v15523_v29, %v4007_v10  ;;  %v19269_v26 = vunpack.i.h.bf16 %v15706_v24  ;;  %v19268_v33 = vunpack.i.l.bf16 %v15706_v24  ;;  %9648 = vmatmul.msk.bf16.gmra.mxu3 %vm1979_vm9, %v19800_v2  ;;  %v15734_v37 = vmax.f32 %v4258_v52, %v4002_v39  ;;  %v10662_v29 = vld [vmem:[%s18788_s3 + $0x58] sm:$0xff]  ;;  %v10676_v10 = vld [vmem:[%s18788_s3 + $0xc8] sm:$0xff]  ;;  %5944 = vmatpush.bf16.msra.mxu1 %v10651_v49  ;;  %v19822_v52 = vld [vmem:[#allocation158_spill] sm:$0xff] }
 0x5e2   : > { %19811 = vst [vmem:[#allocation117_spill] sm:$0xff] %v15708_v47  ;;  %v5292_v2 = vmax.f32 %v15638_v53, %v15697_v21  ;;  %v19272_v39 = vunpack.i.h.bf16 %v15624_v7  ;;  %v4671_v16 = vmax.f32 %v19819_v12, %v4555_v44  ;;  %v19820_v53 = vunpack.i.h.bf16 %v15445_v59  ;;  %5990 = vmatpush.bf16.msra.mxu3 %v10662_v29  ;;  %v19821_v21 = vld [vmem:[#allocation78_spill] sm:$0xff]  ;;  %6090 = vmatpush.bf16.msra.mxu2 %v10676_v10  ;;  %v15794_v10 = vpop.f32.mrf.mxu0  ;;  %v19840_v24 = vld [vmem:[#allocation92_spill] sm:$0xff] }
 0x5e3   : > { %19813 = vst [vmem:[#allocation111_spill] sm:$0xff] %v15722_v38  ;;  %v4860_v43 = vsel %vm483_vm4, %v19818_v1, %v19268_v33  ;;  %v4675_v49 = vmax.f32 %v19821_v21, %v4558_v31  ;;  %v10895_v29 = vunpack.i.l.bf16 %v19808_v20  ;;  %v19823_v21 = vld [vmem:[#allocation150_spill] sm:$0xff]  ;;  %v19824_v1 = vld [vmem:[#allocation99_spill] sm:$0xff] }
 0x5e4   : > { %19817 = vst [vmem:[#allocation119_spill] sm:$0xff] %v15734_v37  ;;  %v4863_v25 = vsel %vm483_vm4, %v19820_v53, %v19269_v26  ;;  %v3299_v56 = vpop.f32.mrf.mxu3  ;;  %v15760_v58 = vpop.f32.mrf.mxu2  ;;  %v4976_v44 = vmax.f32 %v4671_v16, %v4860_v43  ;;  %v15770_v53 = vpack.i.bf16 %v15734_v37, %v19822_v52  ;;  %v19832_v52 = vld [vmem:[#allocation165_spill] sm:$0xff] }
 0x5e5   : > { %v3300_v33 = vadd.f32 %v3299_v56, %v3091_v61  ;;  %11288 = vrot.lane.b32.xlu2 %v15671_v13, %s11546_s19  ;;  %v3092_v26 = vpop.f32.mrf.mxu1  ;;  %v4980_v22 = vmax.f32 %v4675_v49, %v4863_v25  ;;  %v3514_v61 = vadd.f32 %v19824_v1, %v19823_v21  ;;  %v3978_v56 = vmax.f32 %v15702_v34, 0.0  ;;  %19827 = vst [vmem:[#allocation122_spill] sm:$0xff] %v15794_v10  ;;  %v15796_v25 = vpop.permute.xlu2 %11268  ;;  %v19829_v49 = vld [vmem:[#allocation98_spill] sm:$0xff]  ;;  %v19838_v37 = vld [vmem:[#allocation161_spill] sm:$0xff] }
 0x5e6   : > { %11303 = vrot.lane.b32.xlu1 %v15770_v53, %s11547_s20  ;;  %11293 = vrot.lane.b32.xlu0 %v15671_v13, %s11552_s24  ;;  %v19826_v34 = vunpack.i.l.bf16 %v15624_v7  ;;  %v19828_v13 = vunpack.i.l.bf16 %v15708_v47  ;;  %v19830_v1 = vunpack.i.h.bf16 %v19829_v49  ;;  %v19835_v10 = vunpack.i.h.bf16 %v19834_v63 }
 0x5e7   : > { %v4006_v31 = vmax.f32 %v3300_v33, 0.0  ;;  %v10675_v33 = vld [vmem:[%s18788_s3 + $0xc0] sm:$0xff]  ;;  %5991 = vmatpush.bf16.msra.mxu3 %v10661_v8 }
 0x5e8   : > { %v15781_v43 = vpop.permute.xlu0 %11253  ;;  %v5478_v30 = vsel %vm589_vm8, %v19826_v34, %v19272_v39  ;;  %v5165_v16 = vsel %vm536_vm3, %v19830_v1, %v19828_v13  ;;  %v3994_v34 = vmax.f32 %v3292_v50, 0.0  ;;  %v19833_v39 = vunpack.i.h.bf16 %v15708_v47  ;;  %6091 = vmatpush.bf16.msra.mxu2 %v10675_v33  ;;  %v19837_v13 = vld [vmem:[#allocation153_spill] sm:$0xff] }
 0x5e9   : > { %19825 = vst [vmem:[#allocation128_spill] sm:$0xff] %v15781_v43  ;;  %v15803_v12 = vmax.f32 %v4262_v11, %v4006_v31  ;;  %9689 = vmatmul.msk.bf16.gmra.mxu2 %vm1979_vm9, %v19832_v52  ;;  %v5281_v45 = vmax.f32 %v4976_v44, %v5165_v16  ;;  %v10660_v11 = vld [vmem:[%s18788_s3 + $0x48] sm:$0xff]  ;;  %v15817_v31 = vmax.f32 %v5292_v2, %v5478_v30  ;;  %v19839_v47 = vunpack.i.l.bf16 %v15781_v43  ;;  %v19842_v16 = vld [vmem:[#allocation66_spill] sm:$0xff] }
 0x5ea   : > { %v5168_v9 = vsel %vm536_vm3, %v19835_v10, %v19833_v39  ;;  %v3093_v1 = vadd.f32 %v3092_v26, %v19837_v13  ;;  %v19841_v39 = vunpack.i.h.bf16 %v19840_v24  ;;  %v19843_v8 = vunpack.i.l.bf16 %v19842_v16  ;;  %v19845_v30 = vld [vmem:[#allocation90_spill] sm:$0xff]  ;;  %v19848_v16 = vld [vmem:[#allocation27_spill] sm:$0xff] }
 0x5eb   : > { %19831 = vst [vmem:[#allocation121_spill] sm:$0xff] %v15803_v12  ;;  %v15822_v50 = vpack.i.bf16 %v15803_v12, %v19838_v37  ;;  %v5285_v18 = vmax.f32 %v4980_v22, %v5168_v9  ;;  %v19844_v33 = vunpack.i.h.bf16 %v19808_v20  ;;  %v4250_v10 = vmax.f32 %v19845_v30, %v3978_v56  ;;  %5992 = vmatpush.bf16.msra.mxu3 %v10660_v11 }
 0x5ec   : > { %19836 = vst [vmem:[#allocation118_spill] sm:$0xff] %v15817_v31  ;;  %v5470_v44 = vsel %vm589_vm8, %v19841_v39, %v19839_v47  ;;  %v3301_v26 = vpop.f32.mrf.mxu3  ;;  %v3722_v19 = vpop.f32.mrf.mxu2  ;;  %v19846_v12 = vunpack.i.h.bf16 %v15781_v43  ;;  %v19847_v9 = vunpack.i.h.bf16 %v15508_v42  ;;  %v10906_v56 = vunpack.i.h.bf16 %v19848_v16 }
 0x5ed   : > { %v4544_v2 = vsel %vm430_vm5, %v19844_v33, %v19843_v8  ;;  %v5586_v37 = vmax.f32 %v5281_v45, %v5470_v44  ;;  %v3302_v47 = vadd.f32 %v3301_v26, %v3093_v1  ;;  %v15841_v39 = vadd.f32 %v3722_v19, %v3514_v61  ;;  %11318 = vrot.lane.b32.xlu2 %v15822_v50, %s11548_s21  ;;  %v19849_v8 = vld [vmem:[#allocation61_spill] sm:$0xff]  ;;  %v3095_v43 = vpop.f32.mrf.mxu1 }
 0x5ee   : > { %v5473_v22 = vsel %vm589_vm8, %v19847_v9, %v19846_v12  ;;  %v19850_v33 = vunpack.i.l.bf16 %v19849_v8  ;;  %v19851_v12 = vunpack.i.l.bf16 %v15690_v62  ;;  %v19852_v45 = vunpack.i.h.bf16 %v15548_v0  ;;  %v19854_v9 = vld [vmem:[#allocation59_spill] sm:$0xff]  ;;  %11313 = vrot.lane.b32.xlu1 %v15770_v53, %s11552_s24  ;;  %11298 = vrot.lane.b32.xlu0 %v15770_v53, %s11548_s21 }
 0x5ef   : > { %v5590_v20 = vmax.f32 %v5285_v18, %v5473_v22  ;;  %v4266_v19 = vmax.f32 %v4250_v10, %v3994_v34  ;;  %v19853_v61 = vunpack.i.h.bf16 %v15589_v32  ;;  %v4010_v44 = vmax.f32 %v3302_v47, 0.0  ;;  %v19856_v22 = vld [vmem:[#allocation58_spill] sm:$0xff]  ;;  %v19866_v10 = vld [vmem:[#allocation91_spill] sm:$0xff] }
 0x5f0   : > { %v4541_v30 = vsel %vm430_vm5, %v10895_v29, %v19850_v33  ;;  %v4561_v1 = vsel %vm430_vm5, %v19852_v45, %v19851_v12  ;;  %v10905_v26 = vunpack.i.l.bf16 %v19848_v16  ;;  %v4657_v29 = vmax.f32 %v19854_v9, %v4544_v2  ;;  %v15865_v11 = vpop.permute.xlu0 %11263  ;;  %v19858_v16 = vld [vmem:[#allocation4_spill] sm:$0xff]  ;;  %v15893_v2 = vpop.f32.mrf.mxu0 }
 0x5f1   : > { %v4564_v18 = vsel %vm430_vm5, %v19853_v61, %v19283_v60  ;;  %19855 = vst [vmem:[#allocation123_spill] sm:$0xff] %v15865_v11  ;;  %v5642_v34 = vpack.c.bf16 %v5590_v20, %v5586_v37  ;;  %v4653_v8 = vmax.f32 %v19856_v22, %v4541_v30  ;;  %v15870_v33 = vmax.f32 %v4266_v19, %v4010_v44  ;;  %v10659_v37 = vld [vmem:[%s18788_s3 + $0x40] sm:$0xff]  ;;  %v19865_v22 = vld [vmem:[#allocation81_spill] sm:$0xff] }
 0x5f2   : > { %3134 = vmatmul.bf16.gmra.mxu1 %v19858_v16  ;;  %9649 = vmatmul.msk.bf16.gmra.mxu3 %vm1979_vm9, %v19832_v52  ;;  %v19859_v20 = vld [vmem:[#allocation52_spill] sm:$0xff]  ;;  %v19861_v45 = vunpack.i.l.bf16 %v19801_v17  ;;  %v19864_v44 = vunpack.i.h.bf16 %v19801_v17  ;;  %v4679_v16 = vmax.f32 %v19865_v22, %v4561_v1  ;;  %v4683_v52 = vmax.f32 %v19866_v10, %v4564_v18  ;;  %v19874_v60 = vld [vmem:[#allocation57_spill] sm:$0xff] }
 0x5f3   : > { %19857 = vst [vmem:[#allocation60_spill] sm:$0xff] %v15870_v33  ;;  %v19860_v12 = vunpack.i.l.bf16 %v19859_v20  ;;  %v19862_v19 = vld [vmem:[#allocation76_spill] sm:$0xff]  ;;  %6053 = vmatmul.bf16.gmra.mxu0 %v5642_v34  ;;  %v15895_v20 = vpop.permute.xlu2 %11273  ;;  %v3096_v47 = vadd.f32 %v3095_v43, %v19823_v21  ;;  %v19871_v1 = vunpack.i.h.bf16 %v15506_v46  ;;  %5993 = vmatpush.bf16.msra.mxu3 %v10659_v37  ;;  %v19873_v21 = vld [vmem:[#allocation167_spill] sm:$0xff]  ;;  %v19875_v48 = vunpack.i.l.bf16 %v19874_v60 }
 0x5f4   : > { %v19863_v61 = vunpack.i.l.bf16 %v19862_v19  ;;  %19867 = vst [vmem:[#allocation132_spill] sm:$0xff] %v15895_v20  ;;  %v19870_v19 = vunpack.i.l.bf16 %v15865_v11  ;;  %v15908_v22 = vpop.f32.mrf.mxu2  ;;  %v15912_v43 = vpack.i.bf16 %v15870_v33, %v19873_v21  ;;  %v19288_v31 = vunpack.i.h.bf16 %v15796_v25  ;;  %v19876_v37 = vld [vmem:[#allocation72_spill] sm:$0xff] }
 0x5f5   : > { %v4846_v30 = vsel %vm483_vm4, %v19861_v45, %v19860_v12  ;;  %v19868_v12 = vunpack.i.h.bf16 %v15865_v11  ;;  %v19869_v45 = vunpack.i.h.bf16 %v15563_v14  ;;  %19872 = vst [vmem:[#allocation126_spill] sm:$0xff] %v15908_v22  ;;  %v3097_v60 = vpop.f32.mrf.mxu1 }
 0x5f6   : > { %v4849_v9 = vsel %vm483_vm4, %v19864_v44, %v19863_v61  ;;  %v4866_v18 = vsel %vm483_vm4, %v19871_v1, %v19870_v19  ;;  %v3304_v44 = vpop.f32.mrf.mxu3  ;;  %11343 = vrot.lane.b32.xlu2 %v15912_v43, %s11547_s20  ;;  %v19290_v1 = vunpack.i.l.bf16 %v15895_v20  ;;  %11323 = vrot.lane.b32.xlu1 %v15822_v50, %s11547_s20 }
 0x5f7   : > { %v4869_v17 = vsel %vm483_vm4, %v19869_v45, %v19868_v12  ;;  %v4962_v34 = vmax.f32 %v4657_v29, %v4849_v9  ;;  %v4984_v61 = vmax.f32 %v4679_v16, %v4866_v18  ;;  %v5154_v12 = vsel %vm536_vm3, %v10906_v56, %v19875_v48  ;;  %v19878_v16 = vld [vmem:[#allocation71_spill] sm:$0xff]  ;;  %11308 = vrot.lane.b32.xlu0 %v15770_v53, %s11546_s19 }
 0x5f8   : > { %v4988_v10 = vmax.f32 %v4683_v52, %v4869_v17  ;;  %v4958_v45 = vmax.f32 %v4653_v8, %v4846_v30  ;;  %v15918_v11 = vadd.f32 %v3304_v44, %v3096_v47  ;;  %v19877_v29 = vunpack.i.l.bf16 %v19876_v37  ;;  %v15966_v21 = vpop.f32.mrf.mxu0 }
 0x5f9   : > { %v19879_v52 = vunpack.i.l.bf16 %v19878_v16  ;;  %v19880_v17 = vunpack.i.h.bf16 %v19806_v6  ;;  %v19881_v48 = vunpack.i.l.bf16 %v15796_v25  ;;  %v19882_v56 = vunpack.i.h.bf16 %v15591_v57  ;;  %v19884_v16 = vld [vmem:[#allocation171_spill] sm:$0xff] }
 0x5fa   : > { %v5151_v9 = vsel %vm536_vm3, %v10905_v26, %v19877_v29  ;;  %v19883_v26 = vunpack.i.h.bf16 %v15647_v15  ;;  %v5267_v18 = vmax.f32 %v4962_v34, %v5154_v12  ;;  %9690 = vmatmul.msk.bf16.gmra.mxu2 %vm1979_vm9, %v19884_v16  ;;  %v19888_v12 = vld [vmem:[#allocation168_spill] sm:$0xff]  ;;  %v19889_v53 = vunpack.i.h.bf16 %v15546_v28 }
 0x5fb   : > { %v5459_v19 = vsel %vm589_vm8, %v19880_v17, %v19879_v52  ;;  %v5171_v8 = vsel %vm536_vm3, %v19882_v56, %v19881_v48  ;;  %v5263_v29 = vmax.f32 %v4958_v45, %v5151_v9  ;;  %v19885_v52 = vld [vmem:[#allocation29_spill] sm:$0xff]  ;;  %v10910_v48 = vunpack.i.l.bf16 %v19806_v6 }
 0x5fc   : > { %v5174_v47 = vsel %vm536_vm3, %v19883_v26, %v19288_v31  ;;  %v5289_v44 = vmax.f32 %v4984_v61, %v5171_v8  ;;  %v10916_v17 = vunpack.i.h.bf16 %v19885_v52  ;;  %v5572_v56 = vmax.f32 %v5267_v18, %v5459_v19  ;;  %v19886_v26 = vld [vmem:[#allocation170_spill] sm:$0xff]  ;;  %v19887_v31 = vld [vmem:[#allocation97_spill] sm:$0xff] }
 0x5fd   : > { %v5293_v37 = vmax.f32 %v4988_v10, %v5174_v47  ;;  %v3519_v34 = vadd.f32 %v19887_v31, %v19886_v26  ;;  %v3098_v30 = vadd.f32 %v3097_v60, %v19888_v12  ;;  %v5476_v10 = vsel %vm589_vm8, %v19889_v53, %v19290_v1  ;;  %v19892_v8 = vld [vmem:[#allocation54_spill] sm:$0xff]  ;;  %v3727_v31 = vpop.f32.mrf.mxu2  ;;  %v19894_v1 = vld [vmem:[#allocation75_spill] sm:$0xff] }
 0x5fe   : > { %v19890_v61 = vunpack.i.h.bf16 %v15895_v20  ;;  %v19891_v45 = vunpack.i.h.bf16 %v15624_v7  ;;  %v19893_v6 = vunpack.i.l.bf16 %v19892_v8  ;;  %v3306_v47 = vpop.f32.mrf.mxu3  ;;  %v5594_v18 = vmax.f32 %v5289_v44, %v5476_v10  ;;  %11353 = vrot.lane.b32.xlu2 %v15912_v43, %s11552_s24  ;;  %11333 = vrot.lane.b32.xlu1 %v15822_v50, %s11552_s24 }
 0x5ff   : > { %v15968_v22 = vadd.f32 %v3306_v47, %v3098_v30  ;;  %v15970_v53 = vadd.f32 %v3727_v31, %v3519_v34  ;;  %v19895_v12 = vunpack.i.l.bf16 %v19894_v1  ;;  %11328 = vrot.lane.b32.xlu0 %v15822_v50, %s11546_s19  ;;  %v19897_v1 = vld [vmem:[#allocation33_spill] sm:$0xff]  ;;  %v19898_v34 = vld [vmem:[#allocation68_spill] sm:$0xff] }
 0x600   : > { %v5479_v9 = vsel %vm589_vm8, %v19891_v45, %v19890_v61  ;;  %v5456_v19 = vsel %vm589_vm8, %v10910_v48, %v19893_v6  ;;  %v19896_v61 = vld [vmem:[#allocation89_spill] sm:$0xff]  ;;  %v3100_v48 = vpop.f32.mrf.mxu1 }
 0x601   : > { %v5598_v60 = vmax.f32 %v5293_v37, %v5479_v9  ;;  %v5568_v33 = vmax.f32 %v5263_v29, %v5456_v19  ;;  %v4550_v20 = vsel %vm430_vm5, %v10916_v17, %v19895_v12  ;;  %v3511_v45 = vadd.f32 %v19896_v61, %v19837_v13  ;;  %v19902_v9 = vld [vmem:[#allocation65_spill] sm:$0xff] }
 0x602   : > { %v10915_v37 = vunpack.i.l.bf16 %v19885_v52  ;;  %v10921_v17 = vunpack.i.h.bf16 %v19897_v1  ;;  %v4665_v13 = vmax.f32 %v19898_v34, %v4550_v20  ;;  %9650 = vmatmul.msk.bf16.gmra.mxu3 %vm1979_vm9, %v19884_v16  ;;  %v10920_v52 = vunpack.i.l.bf16 %v19897_v1  ;;  %v19907_v1 = vld [vmem:[#allocation30_spill] sm:$0xff] }
 0x603   : > { %v5632_v44 = vpack.c.bf16 %v5572_v56, %v5568_v33  ;;  %v3720_v29 = vadd.f32 %v15760_v58, %v3511_v45  ;;  %v5646_v30 = vpack.c.bf16 %v5598_v60, %v5594_v18  ;;  %v19899_v33 = vld [vmem:[#allocation31_spill] sm:$0xff]  ;;  %v19900_v58 = vld [vmem:[#allocation69_spill] sm:$0xff]  ;;  %v19903_v50 = vunpack.i.l.bf16 %v19902_v9 }
 0x604   : > { %v10926_v56 = vunpack.i.h.bf16 %v19899_v33  ;;  %v19901_v12 = vunpack.i.l.bf16 %v19900_v58  ;;  %v3101_v6 = vadd.f32 %v3100_v48, %v19886_v26  ;;  %v19904_v20 = vunpack.i.l.bf16 %v19773_v27  ;;  %v19906_v45 = vld [vmem:[#allocation67_spill] sm:$0xff]  ;;  %v16017_v48 = vpop.f32.mrf.mxu0 }
 0x605   : > { %5945 = vmatmul.bf16.vlgmr.msra.gmra.mxu1 %v5632_v44  ;;  %6058 = vmatmul.bf16.gmra.mxu0 %v5646_v30  ;;  %v4855_v8 = vsel %vm483_vm4, %v10921_v17, %v19903_v50  ;;  %v19905_v19 = vunpack.i.l.bf16 %v14985_v4  ;;  %v4011_v31 = vmax.f32 %v3720_v29, 0.0  ;;  %v16004_v60 = vpop.f32.mrf.mxu2  ;;  %v16008_v61 = vpack.i.bf16 %v15659_v55, %v15603_v54  ;;  %v20010_v54 = vld [vmem:[#allocation12_spill] sm:$0xff]  ;;  %v20018_v55 = vld [vmem:[#allocation173_spill] sm:$0xff] }
 0x606   : > { %v4547_v10 = vsel %vm430_vm5, %v10915_v37, %v19901_v12  ;;  %v4852_v16 = vsel %vm483_vm4, %v10920_v52, %v19904_v20  ;;  %v3309_v18 = vpop.f32.mrf.mxu3  ;;  %v4970_v26 = vmax.f32 %v4665_v13, %v4855_v8  ;;  %v10925_v30 = vunpack.i.l.bf16 %v19899_v33  ;;  %11348 = vrot.lane.b32.xlu1 %v15912_v43, %s11546_s19  ;;  %v19909_v13 = vld [vmem:[#allocation83_spill] sm:$0xff]  ;;  %v19910_v52 = vld [vmem:[#allocation82_spill] sm:$0xff]  ;;  %v19915_v8 = vld [vmem:[#allocation160_spill] sm:$0xff] }
 0x607   : > { %v5160_v47 = vsel %vm536_vm3, %v10926_v56, %v19905_v19  ;;  %v4661_v44 = vmax.f32 %v19906_v45, %v4547_v10  ;;  %v16011_v37 = vadd.f32 %v3309_v18, %v3101_v6  ;;  %11363 = vrot.lane.b32.xlu2 %v16008_v61, %s11547_s20  ;;  %v10931_v17 = vunpack.i.h.bf16 %v19907_v1  ;;  %11338 = vrot.lane.b32.xlu0 %v15912_v43, %s11548_s21 }
 0x608   : > { %v16015_v27 = vpop.f32.mrf.mxu1  ;;  %v5275_v29 = vmax.f32 %v4970_v26, %v5160_v47  ;;  %v10930_v34 = vunpack.i.l.bf16 %v19907_v1  ;;  %v16023_v56 = vmax.f32 %v15553_v35, %v4011_v31  ;;  %v19911_v58 = vpack.c.bf16 %v19909_v13, %v19910_v52  ;;  %v19916_v47 = vld [vmem:[#allocation39_spill] sm:$0xff] }
 0x609   : > { %v4966_v4 = vmax.f32 %v4661_v44, %v4852_v16  ;;  %v19912_v33 = vunpack.i.l.bf16 %v14853_v3  ;;  %v19913_v10 = vunpack.i.l.bf16 %v14905_v36  ;;  %v19914_v9 = vunpack.i.l.bf16 %v14903_v23  ;;  %v19921_v52 = vld [vmem:[#allocation63_spill] sm:$0xff] }
 0x60a   : > { %19908 = vst [vmem:[#allocation125_spill] sm:$0xff] %v16023_v56  ;;  %9815 = vmatmul.msk.bf16.vlgmr.msra.gmra.mxu2 %vm5912_vm10, %v19911_v58  ;;  %v3524_v43 = vadd.f32 %v15561_v40, %v19915_v8  ;;  %v16048_v3 = vpack.i.bf16 %v16023_v56, %v15722_v38  ;;  %v10935_v36 = vunpack.i.l.bf16 %v19916_v47  ;;  %v10936_v23 = vunpack.i.h.bf16 %v19916_v47 }
 0x60b   : > { %v5157_v12 = vsel %vm536_vm3, %v10925_v30, %v19912_v33  ;;  %v5462_v35 = vsel %vm589_vm8, %v10930_v34, %v19913_v10  ;;  %v5465_v50 = vsel %vm589_vm8, %v10931_v17, %v19914_v9  ;;  %v19917_v40 = vunpack.i.l.bf16 %v15378_v5  ;;  %v19918_v30 = vld [vmem:[#allocation34_spill] sm:$0xff]  ;;  %v19925_v9 = vld [vmem:[#allocation37_spill] sm:$0xff] }
 0x60c   : > { %v5271_v6 = vmax.f32 %v4966_v4, %v5157_v12  ;;  %v5580_v20 = vmax.f32 %v5275_v29, %v5465_v50  ;;  %v4015_v26 = vmax.f32 %v15841_v39, 0.0  ;;  %v10941_v1 = vunpack.i.h.bf16 %v19918_v30  ;;  %v16066_v13 = vpop.f32.mrf.mxu0  ;;  %v19920_v39 = vld [vmem:[#allocation70_spill] sm:$0xff] }
 0x60d   : > { %v3732_v19 = vpop.f32.mrf.mxu2  ;;  %v4553_v44 = vsel %vm430_vm5, %v10935_v36, %v19917_v40  ;;  %v19919_v17 = vunpack.i.l.bf16 %v15370_v51  ;;  %v19922_v58 = vpack.c.bf16 %v19920_v39, %v19921_v52  ;;  %v19923_v33 = vld [vmem:[#allocation106_spill] sm:$0xff]  ;;  %v19924_v51 = vunpack.i.l.bf16 %v15445_v59 }
 0x60e   : > { %v16044_v16 = vpop.f32.mrf.mxu3  ;;  %v3733_v31 = vadd.f32 %v3732_v19, %v3524_v43  ;;  %v5576_v18 = vmax.f32 %v5271_v6, %v5462_v35  ;;  %11358 = vrot.lane.b32.xlu1 %v16008_v61, %s11548_s21  ;;  %v4669_v12 = vmax.f32 %v19923_v33, %v4553_v44  ;;  %v10940_v35 = vunpack.i.l.bf16 %v19918_v30  ;;  %v19926_v43 = vld [vmem:[#allocation107_spill] sm:$0xff] }
 0x60f   : > { %11378 = vrot.lane.b32.xlu2 %v16048_v3, %s11548_s21  ;;  %v4556_v34 = vsel %vm430_vm5, %v10936_v23, %v19919_v17  ;;  %11373 = vrot.lane.b32.xlu0 %v16008_v61, %s11552_s24  ;;  %v4861_v10 = vsel %vm483_vm4, %v10941_v1, %v19924_v51  ;;  %v10945_v50 = vunpack.i.l.bf16 %v19925_v9  ;;  %v10946_v19 = vunpack.i.h.bf16 %v19925_v9  ;;  %v19938_v9 = vld [vmem:[#allocation114_spill] sm:$0xff] }
 0x610   : > { %v3105_v45 = vpop.f32.mrf.mxu1  ;;  %v4031_v4 = vmax.f32 %v3733_v31, 0.0  ;;  %v5636_v29 = vpack.c.bf16 %v5580_v20, %v5576_v18  ;;  %v4673_v6 = vmax.f32 %v19926_v43, %v4556_v34  ;;  %v19927_v31 = vunpack.i.l.bf16 %v15290_v41 }
 0x611   : > { %v3106_v20 = vadd.f32 %v3105_v45, %v19915_v8  ;;  %v19928_v59 = vunpack.i.l.bf16 %v19829_v49  ;;  %v19930_v1 = vunpack.i.l.bf16 %v19834_v63  ;;  %v19931_v34 = vunpack.i.l.bf16 %v15508_v42  ;;  %v19939_v42 = vld [vmem:[#allocation120_spill] sm:$0xff] }
 0x612   : > { %v16068_v5 = vmax.f32 %v4015_v26, %v4031_v4  ;;  %5994 = vmatmul.bf16.vlgmr.msra.gmra.mxu3 %v19922_v58  ;;  %v4858_v18 = vsel %vm483_vm4, %v10940_v35, %v19927_v31  ;;  %v4978_v40 = vmax.f32 %v4673_v6, %v4861_v10  ;;  %v19929_v26 = vld [vmem:[#allocation40_spill] sm:$0xff]  ;;  %v19933_v58 = vld [vmem:[#allocation85_spill] sm:$0xff]  ;;  %v19937_v35 = vld [vmem:[#allocation175_spill] sm:$0xff]  ;;  %v19940_v43 = vunpack.i.h.bf16 %v19939_v42 }
 0x613   : > { %v5163_v23 = vsel %vm536_vm3, %v10945_v50, %v19928_v59  ;;  %v10951_v4 = vunpack.i.h.bf16 %v19929_v26  ;;  %v4974_v45 = vmax.f32 %v4669_v12, %v4858_v18  ;;  %v10950_v41 = vunpack.i.l.bf16 %v19929_v26  ;;  %v19935_v12 = vld [vmem:[#allocation35_spill] sm:$0xff]  ;;  %v19941_v6 = vld [vmem:[#allocation84_spill] sm:$0xff] }
 0x614   : > { %v5166_v49 = vsel %vm536_vm3, %v10946_v19, %v19930_v1  ;;  %v10956_v51 = vunpack.i.h.bf16 %v19935_v12  ;;  %v3529_v50 = vadd.f32 %v19938_v9, %v19937_v35  ;;  %v19942_v19 = vunpack.i.l.bf16 %v19939_v42  ;;  %v16125_v18 = vpop.f32.mrf.mxu0  ;;  %v19954_v42 = vld [vmem:[#allocation74_spill] sm:$0xff] }
 0x615   : > { %5950 = vmatmul.bf16.gmra.mxu1 %v5636_v29  ;;  %v16082_v36 = vpop.f32.mrf.mxu2  ;;  %v4014_v29 = vmax.f32 %v15918_v11, 0.0  ;;  %v5279_v17 = vmax.f32 %v4974_v45, %v5163_v23  ;;  %v5471_v39 = vsel %vm589_vm8, %v10951_v4, %v19931_v34  ;;  %v19932_v11 = vld [vmem:[#allocation86_spill] sm:$0xff]  ;;  %v5283_v63 = vmax.f32 %v4978_v40, %v5166_v49  ;;  %v19945_v45 = vld [vmem:[#allocation124_spill] sm:$0xff] }
 0x616   : > { %v3314_v47 = vpop.f32.mrf.mxu3  ;;  %11368 = vrot.lane.b32.xlu1 %v16008_v61, %s11546_s19  ;;  %v19934_v33 = vpack.c.bf16 %v19932_v11, %v19933_v58  ;;  %v19936_v61 = vunpack.i.l.bf16 %v19840_v24  ;;  %v10955_v23 = vunpack.i.l.bf16 %v19935_v12  ;;  %v19944_v26 = vunpack.i.l.bf16 %v15589_v32  ;;  %v19950_v12 = vld [vmem:[#allocation117_spill] sm:$0xff] }
 0x617   : > { %v3315_v44 = vadd.f32 %v3314_v47, %v3106_v20  ;;  %11388 = vrot.lane.b32.xlu2 %v16048_v3, %s11546_s19  ;;  %11383 = vrot.lane.b32.xlu0 %v16048_v3, %s11547_s20  ;;  %v4676_v20 = vmax.f32 %v19941_v6, %v19940_v43  ;;  %v19943_v47 = vld [vmem:[#allocation80_spill] sm:$0xff]  ;;  %v5588_v59 = vmax.f32 %v5283_v63, %v5471_v39  ;;  %v19948_v39 = vunpack.i.l.bf16 %v15548_v0  ;;  %v19953_v0 = vld [vmem:[#allocation87_spill] sm:$0xff] }
 0x618   : > { %v16093_v8 = vpop.f32.mrf.mxu1  ;;  %v5468_v10 = vsel %vm589_vm8, %v10950_v41, %v19936_v61  ;;  %v4672_v31 = vmax.f32 %v19943_v47, %v19942_v19  ;;  %v4562_v4 = vsel %vm430_vm5, %v10956_v51, %v19944_v26  ;;  %v19947_v41 = vunpack.i.h.bf16 %v19945_v45  ;;  %v19949_v63 = vld [vmem:[#allocation116_spill] sm:$0xff]  ;;  %v19958_v47 = vld [vmem:[#allocation115_spill] sm:$0xff] }
 0x619   : > { %v4030_v30 = vmax.f32 %v3315_v44, 0.0  ;;  %v5584_v44 = vmax.f32 %v5279_v17, %v5468_v10  ;;  %v4559_v11 = vsel %vm430_vm5, %v10955_v23, %v19948_v39  ;;  %v4023_v58 = vmax.f32 %v15970_v53, 0.0  ;;  %v19956_v53 = vld [vmem:[#allocation38_spill] sm:$0xff] }
 0x61a   : > { %9816 = vmatmul.msk.bf16.gmra.mxu2 %vm5912_vm10, %v19934_v33  ;;  %v4981_v1 = vmax.f32 %v4676_v20, %v19947_v41  ;;  %v4681_v32 = vmax.f32 %v19949_v63, %v4562_v4  ;;  %v19951_v51 = vunpack.i.l.bf16 %v19950_v12  ;;  %v19952_v10 = vunpack.i.h.bf16 %v19950_v12  ;;  %v19957_v20 = vld [vmem:[#allocation42_spill] sm:$0xff] }
 0x61b   : > { %v16107_v52 = vmax.f32 %v4014_v29, %v4030_v30  ;;  %v19946_v29 = vunpack.i.l.bf16 %v19945_v45  ;;  %v5640_v17 = vpack.c.bf16 %v5588_v59, %v5584_v44  ;;  %v19955_v43 = vpack.c.bf16 %v19953_v0, %v19954_v42  ;;  %v19959_v59 = vld [vmem:[#allocation128_spill] sm:$0xff] }
 0x61c   : > { %v5286_v9 = vmax.f32 %v4981_v1, %v19952_v10  ;;  %v10966_v6 = vunpack.i.h.bf16 %v19956_v53  ;;  %v10961_v19 = vunpack.i.h.bf16 %v19957_v20  ;;  %v19960_v23 = vunpack.i.l.bf16 %v19959_v59  ;;  %v19968_v42 = vld [vmem:[#allocation88_spill] sm:$0xff] }
 0x61d   : > { %v3737_v24 = vpop.f32.mrf.mxu2  ;;  %v4977_v30 = vmax.f32 %v4672_v31, %v19946_v29  ;;  %v4677_v31 = vmax.f32 %v19958_v47, %v4559_v11  ;;  %v19961_v44 = vunpack.i.h.bf16 %v19959_v59  ;;  %v10965_v45 = vunpack.i.l.bf16 %v19956_v53  ;;  %v19970_v53 = vld [vmem:[#allocation79_spill] sm:$0xff] }
 0x61e   : > { %v16128_v40 = vpop.f32.mrf.mxu3  ;;  %v3738_v49 = vadd.f32 %v3737_v24, %v3529_v50  ;;  %11393 = vrot.lane.b32.xlu1 %v16048_v3, %s11552_s24  ;;  %v10960_v3 = vunpack.i.l.bf16 %v19957_v20  ;;  %v19962_v29 = vunpack.i.l.bf16 %v15563_v14  ;;  %v19963_v41 = vunpack.i.l.bf16 %v15647_v15  ;;  %v19973_v59 = vld [vmem:[#allocation123_spill] sm:$0xff] }
 0x61f   : > { %v5282_v61 = vmax.f32 %v4977_v30, %v19951_v51  ;;  %v5591_v26 = vmax.f32 %v5286_v9, %v19961_v44  ;;  %v19964_v11 = vunpack.i.l.bf16 %v15506_v46  ;;  %v4022_v12 = vmax.f32 %v16011_v37, 0.0  ;;  %v19966_v9 = vld [vmem:[#allocation47_spill] sm:$0xff] }
 0x620   : > { %v3110_v34 = vpop.f32.mrf.mxu1  ;;  %v4039_v33 = vmax.f32 %v3738_v49, 0.0  ;;  %v4867_v30 = vsel %vm483_vm4, %v10961_v19, %v19962_v29  ;;  %v5172_v1 = vsel %vm536_vm3, %v10966_v6, %v19963_v41  ;;  %v10971_v46 = vunpack.i.h.bf16 %v19966_v9 }
 0x621   : > { %v5587_v24 = vmax.f32 %v5282_v61, %v19960_v23  ;;  %v3111_v4 = vadd.f32 %v3110_v34, %v19937_v35  ;;  %v4986_v34 = vmax.f32 %v4681_v32, %v4867_v30  ;;  %v19967_v0 = vunpack.i.h.bf16 %v15690_v62 }
 0x622   : > { %v16148_v50 = vmax.f32 %v4023_v58, %v4039_v33  ;;  %5999 = vmatmul.bf16.gmra.mxu3 %v19955_v43  ;;  %v4864_v58 = vsel %vm483_vm4, %v10960_v3, %v19964_v11  ;;  %v16174_v33 = vpop.f32.mrf.mxu0  ;;  %v19969_v32 = vunpack.i.l.bf16 %v15690_v62  ;;  %v10970_v37 = vunpack.i.l.bf16 %v19966_v9 }
 0x623   : > { %v4982_v15 = vmax.f32 %v4677_v31, %v4864_v58  ;;  %v5643_v61 = vpack.c.bf16 %v5591_v26, %v5587_v24  ;;  %v5291_v10 = vmax.f32 %v4986_v34, %v5172_v1  ;;  %v4684_v43 = vmax.f32 %v19968_v42, %v19967_v0  ;;  %v19972_v31 = vld [vmem:[#allocation159_spill] sm:$0xff] }
 0x624   : > { %v19971_v19 = vunpack.i.l.bf16 %v15624_v7  ;;  %v3534_v3 = vadd.f32 %v15893_v2, %v19972_v31  ;;  %v19974_v23 = vunpack.i.h.bf16 %v19973_v59  ;;  %v19975_v62 = vunpack.i.l.bf16 %v19973_v59  ;;  %v19988_v59 = vld [vmem:[#allocation118_spill] sm:$0xff] }
 0x625   : > { %5955 = vmatmul.bf16.gmra.mxu1 %v5640_v17  ;;  %v16169_v39 = vpop.f32.mrf.mxu2  ;;  %v19965_v17 = vunpack.i.l.bf16 %v15591_v57  ;;  %v4680_v57 = vmax.f32 %v19970_v53, %v19969_v32  ;;  %v19976_v29 = vunpack.i.l.bf16 %v15546_v28  ;;  %v19977_v2 = vunpack.i.h.bf16 %v15796_v25  ;;  %v19980_v28 = vld [vmem:[#allocation101_spill] sm:$0xff]  ;;  %v19986_v32 = vld [vmem:[#allocation8_spill] sm:$0xff] }
 0x626   : > { %v3319_v49 = vpop.f32.mrf.mxu3  ;;  %v5477_v47 = vsel %vm589_vm8, %v10971_v46, %v19971_v19  ;;  %v4989_v24 = vmax.f32 %v4684_v43, %v19974_v23  ;;  %v19978_v11 = vunpack.i.l.bf16 %v15796_v25  ;;  %v3539_v53 = vadd.f32 %v16017_v48, %v19986_v32  ;;  %v19989_v23 = vld [vmem:[#allocation109_spill] sm:$0xff] }
 0x627   : > { %v3320_v35 = vadd.f32 %v3319_v49, %v3111_v4  ;;  %v5169_v14 = vsel %vm536_vm3, %v10965_v45, %v19965_v17  ;;  %v4985_v44 = vmax.f32 %v4680_v57, %v19975_v62  ;;  %v5596_v26 = vmax.f32 %v5291_v10, %v5477_v47 }
 0x628   : > { %v16179_v63 = vpop.f32.mrf.mxu1  ;;  %v5287_v20 = vmax.f32 %v4982_v15, %v5169_v14  ;;  %v5474_v30 = vsel %vm589_vm8, %v10970_v37, %v19976_v29  ;;  %v5294_v49 = vmax.f32 %v4989_v24, %v19977_v2  ;;  %v19981_v15 = vld [vmem:[#allocation100_spill] sm:$0xff]  ;;  %v19990_v24 = vpack.c.bf16 %v19988_v59, %v19989_v23  ;;  %v19999_v23 = vld [vmem:[#allocation94_spill] sm:$0xff] }
 0x629   : > { %v4038_v51 = vmax.f32 %v3320_v35, 0.0  ;;  %v5290_v58 = vmax.f32 %v4985_v44, %v19978_v11  ;;  %v19998_v59 = vld [vmem:[#allocation168_spill] sm:$0xff] }
 0x62a   : > { %9817 = vmatmul.msk.bf16.gmra.mxu2 %vm5912_vm10, %v5643_v61  ;;  %v5592_v41 = vmax.f32 %v5287_v20, %v5474_v30  ;;  %v16213_v35 = vpop.f32.mrf.mxu0  ;;  %v20001_v11 = vld [vmem:[#allocation108_spill] sm:$0xff] }
 0x62b   : > { %v16189_v6 = vmax.f32 %v4022_v12, %v4038_v51  ;;  %v19982_v12 = vpack.c.bf16 %v19980_v28, %v19981_v15  ;;  %v19983_v51 = vld [vmem:[#allocation132_spill] sm:$0xff]  ;;  %v19994_v28 = vld [vmem:[#allocation41_spill] sm:$0xff]  ;;  %v20000_v15 = vld [vmem:[#allocation151_spill] sm:$0xff] }
 0x62c   : > { %v5644_v17 = vpack.c.bf16 %v5596_v26, %v5592_v41  ;;  %v19984_v61 = vunpack.i.l.bf16 %v19983_v51  ;;  %v19985_v9 = vunpack.i.h.bf16 %v19983_v51  ;;  %v19995_v51 = vld [vmem:[#allocation44_spill] sm:$0xff] }
 0x62d   : > { %v3742_v45 = vpop.f32.mrf.mxu2 }
 0x62e   : > { %v16202_v4 = vpop.f32.mrf.mxu3  ;;  %v3743_v7 = vadd.f32 %v3742_v45, %v3534_v3  ;;  %v5595_v10 = vmax.f32 %v5290_v58, %v19984_v61  ;;  %v5599_v46 = vmax.f32 %v5294_v49, %v19985_v9  ;;  %v19993_v49 = vld [vmem:[#allocation43_spill] sm:$0xff]  ;;  %v19996_v9 = vld [vmem:[#allocation46_spill] sm:$0xff]  ;;  %v3108_v61 = vadd.f32 %v16093_v8, %v20000_v15 }
 0x630   : > { %v16207_v1 = vpop.f32.mrf.mxu1  ;;  %v4047_v34 = vmax.f32 %v3743_v7, 0.0  ;;  %v5647_v43 = vpack.c.bf16 %v5599_v46, %v5595_v10  ;;  %v20003_v46 = vld [vmem:[#allocation48_spill] sm:$0xff]  ;;  %v3317_v56 = vadd.f32 %v16128_v40, %v3108_v61 }
 0x631   : > { %v20016_v61 = vld [vmem:[#allocation176_spill] sm:$0xff] }
 0x632   : > { %v16216_v14 = vmax.f32 %v16068_v5, %v4047_v34  ;;  %6004 = vmatmul.bf16.gmra.mxu3 %v19982_v12  ;;  %v16231_v5 = vpop.f32.mrf.mxu0  ;;  %v3526_v12 = vadd.f32 %v20001_v11, %v20000_v15  ;;  %v20023_v15 = vld [vmem:[#allocation166_spill] sm:$0xff] }
 0x634   : > { %19979 = vst [vmem:[#allocation62_spill] sm:$0xff] %v16216_v14  ;;  %v20006_v14 = vld [vmem:[#allocation102_spill] sm:$0xff]  ;;  %v3735_v11 = vadd.f32 %v16082_v36, %v3526_v12  ;;  %v20013_v36 = vld [vmem:[#allocation11_spill] sm:$0xff]  ;;  %v20014_v12 = vld [vmem:[#allocation13_spill] sm:$0xff] }
 0x635   : > { %5960 = vmatmul.bf16.gmra.mxu1 %v5644_v17  ;;  %v16227_v0 = vpop.f32.mrf.mxu2  ;;  %v16317_v40 = vadd.f32 %v20014_v12, %v20013_v36  ;;  %v3536_v17 = vadd.f32 %v15966_v21, %v20018_v55  ;;  %v3116_v12 = vadd.f32 %v16207_v1, %v19972_v31  ;;  %v4018_v1 = vmax.f32 %v15968_v22, 0.0 }
 0x636   : > { %v16225_v25 = vpop.f32.mrf.mxu3 }
 0x637   : > { %v16252_v48 = vpop.permute.xlu2 %11278  ;;  %20015 = vst [vmem:[#allocation131_spill] sm:$0xff] %v16317_v40 }
 0x638   : > { %v16229_v42 = vpop.f32.mrf.mxu1 }
 0x63a   : > { %9818 = vmatmul.msk.bf16.gmra.mxu2 %vm5912_vm10, %v5647_v43  ;;  %v16246_v62 = vpop.f32.mrf.mxu0  ;;  %v20009_v43 = vld [vmem:[#allocation20_spill] sm:$0xff] }
 0x63d   : > { %v3747_v20 = vpop.f32.mrf.mxu2 }
 0x63e   : > { %v16236_v57 = vpop.f32.mrf.mxu3  ;;  %v3748_v37 = vadd.f32 %v3747_v20, %v3539_v53  ;;  %v19997_v53 = vld [vmem:[#allocation51_spill] sm:$0xff]  ;;  %v20004_v20 = vld [vmem:[#allocation50_spill] sm:$0xff] }
 0x63f   : > { %v16264_v41 = vpop.permute.xlu2 %11288 }
 0x640   : > { %v16238_v19 = vpop.f32.mrf.mxu1  ;;  %v4055_v47 = vmax.f32 %v3748_v37, 0.0  ;;  %19992 = vst [vmem:[#allocation135_spill] sm:$0xff] %v16264_v41 }
 0x642   : > { %v16241_v3 = vmax.f32 %v16148_v50, %v4055_v47  ;;  %6009 = vmatmul.bf16.gmra.mxu3 %v19990_v24  ;;  %v16260_v50 = vpop.f32.mrf.mxu0  ;;  %v3516_v24 = vadd.f32 %v19999_v23, %v19998_v59  ;;  %v20005_v47 = vld [vmem:[#allocation172_spill] sm:$0xff]  ;;  %v20007_v59 = vld [vmem:[#allocation126_spill] sm:$0xff] }
 0x643   : > { %v3521_v38 = vadd.f32 %v20006_v14, %v20005_v47 }
 0x644   : > { %19987 = vst [vmem:[#allocation104_spill] sm:$0xff] %v16241_v3  ;;  %v3725_v23 = vadd.f32 %v20007_v59, %v3516_v24  ;;  %v16307_v3 = vadd.f32 %v20010_v54, %v20009_v43  ;;  %v20017_v59 = vld [vmem:[#allocation122_spill] sm:$0xff] }
 0x645   : > { %v16250_v26 = vpop.f32.mrf.mxu2  ;;  %v16324_v54 = vadd.f32 %v16004_v60, %v3521_v38  ;;  %v20020_v43 = vld [vmem:[#allocation6_spill] sm:$0xff]  ;;  %v16341_v38 = vadd.f32 %v16125_v18, %v20023_v15  ;;  %v4035_v60 = vmax.f32 %v3735_v11, 0.0 }
 0x646   : > { %v16248_v44 = vpop.f32.mrf.mxu3  ;;  %19991 = vst [vmem:[#allocation127_spill] sm:$0xff] %v16250_v26  ;;  %v3103_v26 = vadd.f32 %v16015_v27, %v20005_v47  ;;  %v16328_v27 = vadd.f32 %v16066_v13, %v20020_v43  ;;  %v4019_v21 = vmax.f32 %v3725_v23, 0.0  ;;  %v4034_v13 = vmax.f32 %v3317_v56, 0.0  ;;  %v20025_v11 = vld [vmem:[#allocation10_spill] sm:$0xff] }
 0x647   : > { %v16301_v8 = vpop.permute.xlu2 %11318  ;;  %20011 = vst [vmem:[#allocation129_spill] sm:$0xff] %v16307_v3  ;;  %v3113_v3 = vadd.f32 %v16179_v63, %v20016_v61  ;;  %v3745_v63 = vadd.f32 %v16227_v0, %v3536_v17  ;;  %v20027_v0 = vld [vmem:[#allocation7_spill] sm:$0xff]  ;;  %v20029_v17 = vld [vmem:[#allocation169_spill] sm:$0xff] }
 0x648   : > { %v16254_v45 = vpop.f32.mrf.mxu1  ;;  %20019 = vst [vmem:[#allocation134_spill] sm:$0xff] %v16324_v54  ;;  %v3312_v47 = vadd.f32 %v16044_v16, %v3103_v26  ;;  %v3325_v16 = vadd.f32 %v16225_v25, %v3116_v12  ;;  %v11280_v26 = vunpack.i.l.bf16 %v16252_v48  ;;  %v16366_v22 = vadd.f32 %v16246_v62, %v20029_v17 }
 0x649   : > { %20021 = vst [vmem:[#allocation133_spill] sm:$0xff] %v16328_v27  ;;  %v3322_v27 = vadd.f32 %v16202_v4, %v3113_v3  ;;  %v16358_v4 = vadd.f32 %v16213_v35, %v20025_v11  ;;  %v16362_v3 = vadd.f32 %v16231_v5, %v20027_v0  ;;  %v4291_v12 = vmax.f32 %v4019_v21, %v4035_v60 }
 0x64a   : > { %v16290_v10 = vpop.f32.mrf.mxu0  ;;  %v4026_v25 = vmax.f32 %v3312_v47, 0.0  ;;  %20030 = vst [vmem:[#allocation22_spill] sm:$0xff] %v16366_v22  ;;  %v3118_v35 = vadd.f32 %v16229_v42, %v20018_v55  ;;  %v4046_v54 = vmax.f32 %v3325_v16, 0.0  ;;  %v20033_v5 = vunpack.i.l.bf16 %v19993_v49 }
 0x64b   : > { %20002 = vst [vmem:[#allocation130_spill] sm:$0xff] %v16290_v10  ;;  %v3531_v10 = vadd.f32 %v20017_v59, %v20016_v61  ;;  %v20024_v61 = vld [vmem:[#allocation164_spill] sm:$0xff]  ;;  %v4042_v47 = vmax.f32 %v3322_v27, 0.0  ;;  %v20034_v60 = vunpack.i.h.bf16 %v16252_v48  ;;  %v3121_v55 = vadd.f32 %v16238_v19, %v19986_v32 }
 0x64c   : > { %v16352_v23 = vadd.f32 %v16174_v33, %v20024_v61  ;;  %20026 = vst [vmem:[#allocation138_spill] sm:$0xff] %v16358_v4  ;;  %v16368_v33 = vmax.f32 %v4018_v1, %v4034_v13  ;;  %v4051_v4 = vmax.f32 %v3745_v63, 0.0  ;;  %v16387_v13 = vadd.f32 %v16236_v57, %v3118_v35 }
 0x64d   : > { %v16258_v30 = vpop.f32.mrf.mxu2  ;;  %20028 = vst [vmem:[#allocation137_spill] sm:$0xff] %v16362_v3  ;;  %v4565_v3 = vsel %vm430_vm5, %v20033_v5, %v11280_v26  ;;  %v11290_v16 = vunpack.i.l.bf16 %v16264_v41  ;;  %v16403_v57 = vadd.f32 %v16169_v39, %v3531_v10  ;;  %v16409_v19 = vadd.f32 %v16248_v44, %v3121_v55 }
 0x64e   : > { %v16256_v29 = vpop.f32.mrf.mxu3  ;;  %v16415_v42 = vmax.f32 %v16107_v52, %v4046_v54  ;;  %v16417_v1 = vmax.f32 %v4291_v12, %v4051_v4  ;;  %v20043_v52 = vunpack.i.l.bf16 %v19994_v28  ;;  %v20045_v12 = vunpack.i.l.bf16 %v19996_v9 }
 0x64f   : > { %20036 = vst [vmem:[#allocation142_spill] sm:$0xff] %v16403_v57 }
 0x650   : > { %v16262_v7 = vpop.f32.mrf.mxu1  ;;  %v16266_v2 = vpop.permute.xlu0 %11283  ;;  %20038 = vst [vmem:[#allocation144_spill] sm:$0xff] %v16417_v1  ;;  %v5175_v54 = vsel %vm536_vm3, %v20043_v52, %v11290_v16  ;;  %v3123_v52 = vadd.f32 %v16254_v45, %v20020_v43  ;;  %v20048_v45 = vunpack.i.h.bf16 %v19996_v9 }
 0x651   : > { %v16392_v27 = vpop.permute.xlu2 %11343  ;;  %v11285_v63 = vunpack.i.l.bf16 %v16266_v2  ;;  %v19299_v35 = vunpack.i.h.bf16 %v16266_v2 }
 0x652   : > { %v3560_v56 = vpop.f32.mrf.mxu0 }
 0x653   : > { %v16406_v32 = vadd.f32 %v3560_v56, %v20013_v36  ;;  %v20040_v36 = vld [vmem:[#allocation154_spill] sm:$0xff] }
 0x654   : > { %v4685_v56 = vmax.f32 %v20040_v36, %v4565_v3  ;;  %v4870_v3 = vsel %vm483_vm4, %v20045_v12, %v11285_v63  ;;  %v20046_v36 = vld [vmem:[#allocation155_spill] sm:$0xff]  ;;  %v20047_v12 = vld [vmem:[#allocation158_spill] sm:$0xff] }
 0x655   : > { %v16271_v34 = vpop.f32.mrf.mxu2  ;;  %20037 = vst [vmem:[#allocation141_spill] sm:$0xff] %v16406_v32  ;;  %v20041_v32 = vld [vmem:[#allocation152_spill] sm:$0xff] }
 0x656   : > { %v16269_v58 = vpop.f32.mrf.mxu3 }
 0x658   : > { %v16281_v37 = vpop.f32.mrf.mxu1  ;;  %v16311_v14 = vpop.permute.xlu1 %11303 }
 0x659   : > { %20012 = vst [vmem:[#allocation112_spill] sm:$0xff] %v16311_v14  ;;  %v16313_v24 = vpop.permute.xlu0 %11293 }
 0x65d   : > { %v16337_v59 = vpop.f32.mrf.mxu2 }
 0x65e   : > { %v16335_v40 = vpop.f32.mrf.mxu3  ;;  %20022 = vst [vmem:[#allocation136_spill] sm:$0xff] %v16337_v59  ;;  %v20031_v59 = vld [vmem:[#allocation174_spill] sm:$0xff] }
 0x65f   : > { %v16372_v18 = vadd.f32 %v16260_v50, %v20031_v59  ;;  %v4566_v50 = vsel %vm430_vm5, %v11280_v26, %v20034_v60  ;;  %v16412_v60 = vmax.f32 %v4026_v25, %v4042_v47 }
 0x660   : > { %v16347_v31 = vpop.f32.mrf.mxu1  ;;  %v16379_v62 = vpop.permute.xlu1 %11313  ;;  %v4686_v44 = vmax.f32 %v20041_v32, %v4566_v50  ;;  %v11305_v50 = vunpack.i.l.bf16 %v16311_v14 }
 0x661   : > { %20032 = vst [vmem:[#allocation28_spill] sm:$0xff] %v16372_v18  ;;  %v16381_v21 = vpop.permute.xlu0 %11298  ;;  %v11315_v9 = vunpack.i.l.bf16 %v16379_v62 }
 0x662   : > { %v11300_v5 = vunpack.i.l.bf16 %v16381_v21  ;;  %v20042_v25 = vunpack.i.h.bf16 %v16381_v21  ;;  %v4873_v43 = vsel %vm483_vm4, %v20048_v45, %v11305_v50  ;;  %v20051_v45 = vunpack.i.h.bf16 %v19994_v28 }
 0x663   : > { %v20054_v28 = vunpack.i.l.bf16 %v20003_v46 }
 0x664   : > { %v4569_v47 = vsel %vm430_vm5, %v11300_v5, %v20042_v25 }
 0x665   : > { %v16400_v26 = vpop.f32.mrf.mxu2  ;;  %v4690_v55 = vmax.f32 %v20047_v12, %v4569_v47 }
 0x666   : > { %v16398_v22 = vpop.f32.mrf.mxu3  ;;  %20035 = vst [vmem:[#allocation5_spill] sm:$0xff] %v16400_v26  ;;  %v20039_v26 = vunpack.i.h.bf16 %v19993_v49  ;;  %v20044_v49 = vunpack.i.h.bf16 %v16264_v41 }
 0x668   : > { %v4568_v39 = vsel %vm430_vm5, %v20039_v26, %v11300_v5  ;;  %v16422_v10 = vpop.f32.mrf.mxu1  ;;  %v5176_v4 = vsel %vm536_vm3, %v11290_v16, %v20044_v49  ;;  %v4054_v26 = vmax.f32 %v16409_v19, 0.0  ;;  %v4871_v5 = vsel %vm483_vm4, %v11285_v63, %v19299_v35  ;;  %v16451_v57 = vpop.permute.xlu1 %11323 }
 0x669   : > { %v4689_v25 = vmax.f32 %v20046_v36, %v4568_v39  ;;  %v11320_v49 = vunpack.i.l.bf16 %v16301_v8  ;;  %v16453_v19 = vpop.permute.xlu0 %11308  ;;  %v3126_v63 = vadd.f32 %v16262_v7, %v20023_v15  ;;  %v4990_v35 = vmax.f32 %v4685_v56, %v4870_v3  ;;  %v16471_v56 = vpop.permute.xlu2 %11353 }
 0x66a   : > { %v11295_v39 = vunpack.i.l.bf16 %v16313_v24  ;;  %v4991_v36 = vmax.f32 %v4686_v44, %v4871_v5  ;;  %v11311_v16 = vunpack.i.h.bf16 %v16453_v19  ;;  %v11310_v47 = vunpack.i.l.bf16 %v16453_v19 }
 0x66b   : > { %v20050_v7 = vunpack.i.h.bf16 %v16311_v14  ;;  %v4994_v3 = vmax.f32 %v4689_v25, %v4873_v43  ;;  %v3332_v5 = vadd.f32 %v16256_v29, %v3123_v52  ;;  %v20052_v44 = vunpack.i.l.bf16 %v19997_v53 }
 0x66c   : > { %v5178_v32 = vsel %vm536_vm3, %v20051_v45, %v11310_v47  ;;  %v20053_v25 = vunpack.i.h.bf16 %v16313_v24  ;;  %v16492_v52 = vsel %vm430_vm5, %v20054_v28, %v11320_v49  ;;  %v5295_v43 = vmax.f32 %v4990_v35, %v5175_v54 }
 0x66d   : > { %v16466_v1 = vpop.f32.mrf.mxu2  ;;  %v4874_v15 = vsel %vm483_vm4, %v11305_v50, %v20050_v7  ;;  %v3335_v50 = vadd.f32 %v16269_v58, %v3126_v63  ;;  %v5299_v14 = vmax.f32 %v4994_v3, %v5178_v32  ;;  %v5480_v41 = vsel %vm589_vm8, %v20052_v44, %v11295_v39 }
 0x66e   : > { %v16464_v12 = vpop.f32.mrf.mxu3  ;;  %20049 = vst [vmem:[#allocation145_spill] sm:$0xff] %v16466_v1  ;;  %v5179_v1 = vsel %vm536_vm3, %v11310_v47, %v11311_v16  ;;  %v4995_v18 = vmax.f32 %v4690_v55, %v4874_v15  ;;  %v5481_v29 = vsel %vm589_vm8, %v11295_v39, %v20053_v25  ;;  %v5296_v47 = vmax.f32 %v4991_v36, %v5176_v4 }
 0x66f   : > { %v20055_v58 = vunpack.i.h.bf16 %v16301_v8  ;;  %v16501_v63 = vadd.f32 %v16258_v30, %v16341_v38  ;;  %v20056_v15 = vunpack.i.h.bf16 %v19997_v53  ;;  %v20057_v44 = vunpack.i.h.bf16 %v16379_v62 }
 0x670   : > { %v3135_v7 = vpop.f32.mrf.mxu1  ;;  %v5300_v55 = vmax.f32 %v4995_v18, %v5179_v1  ;;  %v16509_v35 = vpop.permute.xlu1 %11333  ;;  %v5600_v1 = vmax.f32 %v5295_v43, %v5480_v41  ;;  %v5601_v4 = vmax.f32 %v5296_v47, %v5481_v29  ;;  %v4058_v36 = vmax.f32 %v3332_v5, 0.0 }
 0x671   : > { %v16497_v32 = vsel %vm430_vm5, %v11320_v49, %v20055_v58  ;;  %v5483_v39 = vsel %vm589_vm8, %v20056_v15, %v11315_v9  ;;  %v5484_v3 = vsel %vm589_vm8, %v11315_v9, %v20057_v44  ;;  %v16511_v18 = vpop.permute.xlu0 %11328  ;;  %v4062_v45 = vmax.f32 %v3335_v50, 0.0 }
 0x672   : > { %v5604_v54 = vmax.f32 %v5299_v14, %v5483_v39  ;;  %v5605_v49 = vmax.f32 %v5300_v55, %v5484_v3  ;;  %v3128_v30 = vadd.f32 %v16281_v37, %v20024_v61  ;;  %v3136_v53 = vadd.f32 %v3135_v7, %v20029_v17  ;;  %v20059_v17 = vld [vmem:[#allocation162_spill] sm:$0xff]  ;;  %v20060_v7 = vld [vmem:[#allocation161_spill] sm:$0xff] }
 0x673   : > { %v19303_v38 = vunpack.i.h.bf16 %v16392_v27  ;;  %v11345_v25 = vunpack.i.l.bf16 %v16392_v27  ;;  %v20058_v41 = vmax.f32 %v16387_v13, 0.0  ;;  %v16524_v5 = vmax.f32 %v16189_v6, %v4054_v26 }
 0x674   : > { %v5648_v9 = vpack.c.bf16 %v5604_v54, %v5600_v1  ;;  %v5649_v28 = vpack.c.bf16 %v5605_v49, %v5601_v4  ;;  %v3337_v37 = vadd.f32 %v16335_v40, %v3128_v30  ;;  %v4693_v50 = vmax.f32 %v20059_v17, %v16492_v52  ;;  %v16538_v40 = vpop.permute.xlu2 %11363 }
 0x675   : > { %v16518_v15 = vpop.f32.mrf.mxu2  ;;  %v4306_v14 = vmax.f32 %v16368_v33, %v20058_v41  ;;  %v4694_v29 = vmax.f32 %v20060_v7, %v16497_v32  ;;  %v16533_v43 = vadd.f32 %v16271_v34, %v16352_v23  ;;  %v11355_v13 = vunpack.i.l.bf16 %v16471_v56 }
 0x676   : > { %v3344_v58 = vpop.f32.mrf.mxu3  ;;  %5965 = vmatmul.bf16.gmra.mxu1 %v5648_v9  ;;  %6014 = vmatmul.bf16.gmra.mxu3 %v5649_v28  ;;  %v4318_v33 = vmax.f32 %v16415_v42, %v4062_v45  ;;  %v11325_v26 = vunpack.i.l.bf16 %v16451_v57  ;;  %v16542_v47 = vmax.f32 %v16412_v60, %v4058_v36  ;;  %v20061_v55 = vunpack.i.h.bf16 %v20004_v20 }
 0x677   : > { %v3345_v61 = vadd.f32 %v3344_v58, %v3136_v53  ;;  %v4880_v23 = vsel %vm483_vm4, %v11345_v25, %v19303_v38  ;;  %v19302_v32 = vunpack.i.h.bf16 %v16471_v56  ;;  %v4066_v39 = vmax.f32 %v3337_v37, 0.0  ;;  %v20064_v37 = vld [vmem:[#allocation14_spill] sm:$0xff] }
 0x678   : > { %v4879_v34 = vsel %vm483_vm4, %v20061_v55, %v11345_v25  ;;  %v3131_v42 = vadd.f32 %v16347_v31, %v20025_v11  ;;  %v19305_v44 = vunpack.i.h.bf16 %v16451_v57  ;;  %v3137_v60 = vpop.f32.mrf.mxu1  ;;  %v4067_v1 = vmax.f32 %v16533_v43, 0.0  ;;  %v16559_v49 = vpop.permute.xlu1 %11348 }
 0x679   : > { %v4078_v52 = vmax.f32 %v3345_v61, 0.0  ;;  %v11365_v54 = vunpack.i.l.bf16 %v16538_v40  ;;  %v11330_v4 = vunpack.i.l.bf16 %v16511_v18  ;;  %v16561_v36 = vpop.permute.xlu0 %11338  ;;  %v20062_v45 = vunpack.i.h.bf16 %v19995_v51 }
 0x67a   : > { %v16567_v31 = vadd.f32 %v16398_v22, %v3131_v42  ;;  %v20063_v11 = vunpack.i.l.bf16 %v20004_v20  ;;  %v11341_v25 = vunpack.i.h.bf16 %v16561_v36  ;;  %v11340_v9 = vunpack.i.l.bf16 %v16561_v36 }
 0x67b   : > { %v16554_v3 = vmax.f32 %v4318_v33, %v4078_v52  ;;  %v5489_v30 = vsel %vm589_vm8, %v20062_v45, %v11355_v13  ;;  %v3138_v28 = vadd.f32 %v3137_v60, %v20031_v59  ;;  %v4322_v17 = vmax.f32 %v4306_v14, %v4066_v39  ;;  %v20065_v33 = vld [vmem:[#allocation53_spill] sm:$0xff]  ;;  %v20068_v45 = vld [vmem:[#allocation163_spill] sm:$0xff] }
 0x67c   : > { %v4876_v53 = vsel %vm483_vm4, %v20063_v11, %v11325_v26  ;;  %v4877_v22 = vsel %vm483_vm4, %v11325_v26, %v19305_v44  ;;  %v19304_v20 = vunpack.i.h.bf16 %v16511_v18  ;;  %v5490_v7 = vsel %vm589_vm8, %v11355_v13, %v19302_v32  ;;  %v20069_v11 = vld [vmem:[#allocation167_spill] sm:$0xff] }
 0x67d   : > { %v16575_v41 = vpop.f32.mrf.mxu2  ;;  %v11407_v61 = vpack.i.bf16 %v16554_v3, %v20064_v37  ;;  %v20066_v52 = vunpack.i.l.bf16 %v20065_v33  ;;  %v20067_v55 = vunpack.i.h.bf16 %v20003_v46  ;;  %v4575_v14 = vsel %vm430_vm5, %v11340_v9, %v11341_v25 }
 0x67e   : > { %v3346_v58 = vpop.f32.mrf.mxu3  ;;  %v4998_v26 = vmax.f32 %v4693_v50, %v4876_v53  ;;  %v11350_v60 = vunpack.i.l.bf16 %v16559_v49  ;;  %v4698_v32 = vmax.f32 %v20069_v11, %v4575_v14  ;;  %v20070_v46 = vunpack.i.h.bf16 %v16266_v2 }
 0x67f   : > { %v5181_v59 = vsel %vm536_vm3, %v20066_v52, %v11330_v4  ;;  %v4574_v42 = vsel %vm430_vm5, %v20067_v55, %v11340_v9  ;;  %v3347_v39 = vadd.f32 %v3346_v58, %v3138_v28  ;;  %11408 = vrot.lane.b32.xlu1 %v11407_v61, %s11546_s19  ;;  %11403 = vrot.lane.b32.xlu2 %v11407_v61, %s11547_s20  ;;  %v4070_v28 = vmax.f32 %v16567_v31, 0.0 }
 0x680   : > { %v4697_v13 = vmax.f32 %v20068_v45, %v4574_v42  ;;  %11398 = vrot.lane.b32.xlu0 %v11407_v61, %s11548_s21  ;;  %v16606_v9 = vsel %vm483_vm4, %v20070_v46, %v11365_v54  ;;  %v11335_v50 = vunpack.i.l.bf16 %v16509_v35  ;;  %v3133_v58 = vadd.f32 %v16422_v10, %v20027_v0  ;;  %v11359_v31 = vpop.permute.xlu1 %11358 }
 0x681   : > { %v4082_v53 = vmax.f32 %v3347_v39, 0.0  ;;  %v11351_v52 = vunpack.i.h.bf16 %v16559_v49  ;;  %v5303_v42 = vmax.f32 %v4998_v26, %v5181_v59  ;;  %v4999_v14 = vmax.f32 %v4694_v29, %v4877_v22  ;;  %v20072_v29 = vld [vmem:[#allocation16_spill] sm:$0xff]  ;;  %v16634_v26 = vpop.permute.xlu0 %11373 }
 0x682   : > { %v5002_v55 = vmax.f32 %v4697_v13, %v4879_v34  ;;  %v11336_v45 = vunpack.i.h.bf16 %v16509_v35  ;;  %v5182_v2 = vsel %vm536_vm3, %v11330_v4, %v19304_v20  ;;  %v20071_v46 = vunpack.i.h.bf16 %v20065_v33  ;;  %v20077_v20 = vld [vmem:[#allocation129_spill] sm:$0xff]  ;;  %v20112_v35 = vld [vmem:[#allocation138_spill] sm:$0xff] }
 0x683   : > { %v16617_v11 = vmax.f32 %v4322_v17, %v4082_v53  ;;  %v11361_v6 = vunpack.i.h.bf16 %v11359_v31  ;;  %v11360_v0 = vunpack.i.l.bf16 %v11359_v31  ;;  %v5003_v10 = vmax.f32 %v4698_v32, %v4880_v23  ;;  %v16636_v32 = vpop.permute.xlu2 %11378  ;;  %v16638_v53 = vpop.f32.mrf.mxu1  ;;  %v20074_v31 = vld [vmem:[#allocation110_spill] sm:$0xff] }
 0x684   : > { %v5184_v39 = vsel %vm536_vm3, %v20071_v46, %v11350_v60  ;;  %v20073_v4 = vunpack.i.l.bf16 %v19995_v51  ;;  %v5185_v33 = vsel %vm536_vm3, %v11350_v60, %v11351_v52  ;;  %v5304_v23 = vmax.f32 %v4999_v14, %v5182_v2 }
 0x685   : > { %v16622_v34 = vpop.f32.mrf.mxu2  ;;  %v16626_v22 = vpack.i.bf16 %v16617_v11, %v20072_v29  ;;  %v5307_v59 = vmax.f32 %v5002_v55, %v5184_v39  ;;  %v4692_v46 = vmax.f32 %v20074_v31, %v11361_v6  ;;  %v20075_v55 = vunpack.i.h.bf16 %v16252_v48  ;;  %v20076_v39 = vld [vmem:[#allocation103_spill] sm:$0xff]  ;;  %v16660_v31 = vpop.f32.mrf.mxu0 }
 0x686   : > { %v3349_v38 = vpop.f32.mrf.mxu3  ;;  %v5486_v17 = vsel %vm589_vm8, %v20073_v4, %v11335_v50  ;;  %v4688_v4 = vmax.f32 %v20076_v39, %v11360_v0  ;;  %v11366_v60 = vunpack.i.h.bf16 %v16538_v40  ;;  %v5308_v2 = vmax.f32 %v5003_v10, %v5185_v33  ;;  %v20079_v39 = vld [vmem:[#allocation105_spill] sm:$0xff]  ;;  %v20082_v40 = vld [vmem:[#allocation135_spill] sm:$0xff] }
 0x687   : > { %v5608_v13 = vmax.f32 %v5303_v42, %v5486_v17  ;;  %v4567_v51 = vsel %vm430_vm5, %v20075_v55, %v11360_v0  ;;  %v3350_v44 = vadd.f32 %v3349_v38, %v20077_v20  ;;  %11418 = vrot.lane.b32.xlu1 %v16626_v22, %s11548_s21  ;;  %v20078_v42 = vunpack.i.h.bf16 %v16381_v21  ;;  %11413 = vrot.lane.b32.xlu2 %v11407_v61, %s11552_s24 }
 0x688   : > { %11423 = vrot.lane.b32.xlu0 %v16626_v22, %s11547_s20  ;;  %v5612_v48 = vmax.f32 %v5307_v59, %v5489_v30  ;;  %v4326_v0 = vmax.f32 %v16524_v5, %v4070_v28  ;;  %v3342_v38 = vadd.f32 %v16464_v12, %v3133_v58  ;;  %v5487_v17 = vsel %vm589_vm8, %v11335_v50, %v11336_v45  ;;  %v20080_v30 = vld [vmem:[#allocation119_spill] sm:$0xff]  ;;  %v11369_v5 = vpop.permute.xlu1 %11368 }
 0x689   : > { %v4570_v14 = vsel %vm430_vm5, %v20078_v42, %v11361_v6  ;;  %v4086_v20 = vmax.f32 %v3350_v44, 0.0  ;;  %v11380_v21 = vunpack.i.l.bf16 %v16636_v32  ;;  %v5609_v61 = vmax.f32 %v5304_v23, %v5487_v17 }
 0x68a   : > { %v5652_v6 = vpack.c.bf16 %v5612_v48, %v5608_v13  ;;  %v5613_v55 = vmax.f32 %v5308_v2, %v5490_v7  ;;  %v4687_v42 = vmax.f32 %v20079_v39, %v4567_v51  ;;  %v4691_v10 = vmax.f32 %v20080_v30, %v4570_v14  ;;  %v20081_v14 = vld [vmem:[#allocation24_spill] sm:$0xff]  ;;  %v11384_v39 = vpop.permute.xlu0 %11383 }
 0x68b   : > { %v16665_v59 = vmax.f32 %v4326_v0, %v4086_v20  ;;  %v4993_v12 = vmax.f32 %v4688_v4, %v11365_v54  ;;  %v11371_v28 = vunpack.i.h.bf16 %v11369_v5  ;;  %v11370_v50 = vunpack.i.l.bf16 %v11369_v5  ;;  %v16696_v5 = vpop.f32.mrf.mxu1  ;;  %v11389_v43 = vpop.permute.xlu2 %11388 }
 0x68c   : > { %5970 = vmatmul.bf16.gmra.mxu1 %v5652_v6  ;;  %v5653_v44 = vpack.c.bf16 %v5613_v55, %v5609_v61  ;;  %v4997_v58 = vmax.f32 %v4692_v46, %v11366_v60  ;;  %v4074_v33 = vmax.f32 %v3342_v38, 0.0  ;;  %v11376_v13 = vunpack.i.h.bf16 %v16634_v26  ;;  %v20084_v46 = vld [vmem:[#allocation112_spill] sm:$0xff] }
 0x68d   : > { %v11375_v7 = vunpack.i.l.bf16 %v16634_v26  ;;  %v16671_v51 = vpop.f32.mrf.mxu2  ;;  %v16675_v48 = vpack.i.bf16 %v16665_v59, %v20081_v14  ;;  %v20083_v54 = vunpack.i.h.bf16 %v20082_v40  ;;  %v5298_v2 = vmax.f32 %v4993_v12, %v11370_v50  ;;  %v20087_v12 = vld [vmem:[#allocation131_spill] sm:$0xff] }
 0x68e   : > { %v3351_v23 = vpop.f32.mrf.mxu3  ;;  %6019 = vmatmul.bf16.gmra.mxu3 %v5653_v44  ;;  %v5302_v0 = vmax.f32 %v4997_v58, %v11371_v28  ;;  %v20085_v38 = vunpack.i.h.bf16 %v20084_v46  ;;  %v5180_v26 = vsel %vm536_vm3, %v11311_v16, %v11371_v28  ;;  %v4992_v17 = vmax.f32 %v4687_v42, %v16606_v9  ;;  %v20093_v46 = vld [vmem:[#allocation121_spill] sm:$0xff] }
 0x68f   : > { %v5177_v4 = vsel %vm536_vm3, %v20083_v54, %v11370_v50  ;;  %11438 = vrot.lane.b32.xlu1 %v16675_v48, %s11548_s21  ;;  %v11381_v6 = vunpack.i.h.bf16 %v16636_v32  ;;  %v5603_v61 = vmax.f32 %v5298_v2, %v11375_v7  ;;  %11428 = vrot.lane.b32.xlu2 %v16626_v22, %s11546_s19  ;;  %v4330_v16 = vmax.f32 %v16542_v47, %v4074_v33  ;;  %v20088_v32 = vld [vmem:[#allocation28_spill] sm:$0xff]  ;;  %v6046_v54 = vpop.f32.mrf.mxu0  ;;  %v20092_v2 = vld [vmem:[#allocation125_spill] sm:$0xff] }
 0x690   : > { %v4875_v20 = vsel %vm483_vm4, %v20085_v38, %v11366_v60  ;;  %v5607_v55 = vmax.f32 %v5302_v0, %v11376_v13  ;;  %v20086_v60 = vunpack.i.h.bf16 %v16301_v8  ;;  %v3352_v44 = vadd.f32 %v3351_v23, %v20087_v12  ;;  %11433 = vrot.lane.b32.xlu0 %v16626_v22, %s11552_s24  ;;  %v20091_v22 = vld [vmem:[#allocation144_spill] sm:$0xff]  ;;  %v20094_v38 = vld [vmem:[#allocation111_spill] sm:$0xff] }
 0x691   : > { %v4996_v30 = vmax.f32 %v4691_v10, %v4875_v20  ;;  %v5297_v9 = vmax.f32 %v4992_v17, %v5177_v4  ;;  %v3765_v42 = vadd.f32 %v16518_v15, %v20088_v32  ;;  %v20089_v10 = vunpack.i.h.bf16 %v16313_v24 }
 0x692   : > { %v4573_v19 = vsel %vm430_vm5, %v20086_v60, %v11380_v21  ;;  %v5651_v28 = vpack.c.bf16 %v5607_v55, %v5603_v61  ;;  %v11386_v58 = vunpack.i.h.bf16 %v11384_v39  ;;  %v4090_v40 = vmax.f32 %v3352_v44, 0.0  ;;  %v20097_v44 = vld [vmem:[#allocation21_spill] sm:$0xff] }
 0x693   : > { %v5301_v50 = vmax.f32 %v4996_v30, %v5180_v26  ;;  %v5482_v8 = vsel %vm589_vm8, %v20089_v10, %v11375_v7  ;;  %v20090_v47 = vunpack.i.h.bf16 %v16379_v62  ;;  %v4323_v4 = vmax.f32 %v20091_v22, %v4067_v1  ;;  %v20095_v26 = vld [vmem:[#allocation22_spill] sm:$0xff]  ;;  %v20096_v62 = vld [vmem:[#allocation145_spill] sm:$0xff] }
 0x694   : > { %v5602_v23 = vmax.f32 %v5297_v9, %v5482_v8  ;;  %v4700_v15 = vmax.f32 %v20092_v2, %v11381_v6  ;;  %v11385_v0 = vunpack.i.l.bf16 %v11384_v39  ;;  %9819 = vmatmul.msk.bf16.gmra.mxu2 %vm5912_vm10, %v5651_v28  ;;  %v4695_v7 = vmax.f32 %v20093_v46, %v4573_v19  ;;  %v11394_v19 = vpop.permute.xlu1 %11393  ;;  %v20098_v9 = vld [vmem:[#allocation142_spill] sm:$0xff] }
 0x695   : > { %v5485_v33 = vsel %vm589_vm8, %v20090_v47, %v11376_v13  ;;  %v4696_v20 = vmax.f32 %v20094_v38, %v11380_v21  ;;  %v3763_v17 = vadd.f32 %v20096_v62, %v20095_v26  ;;  %v16718_v13 = vmax.f32 %v4330_v16, %v4090_v40  ;;  %v6095_v55 = vpop.f32.mrf.mxu2  ;;  %v20104_v38 = vld [vmem:[#allocation133_spill] sm:$0xff] }
 0x696   : > { %v5606_v24 = vmax.f32 %v5301_v50, %v5485_v33  ;;  %v5995_v61 = vpop.f32.mrf.mxu3  ;;  %v4083_v30 = vmax.f32 %v3765_v42, 0.0  ;;  %v4576_v39 = vsel %vm430_vm5, %v11341_v25, %v11381_v6  ;;  %v5005_v12 = vmax.f32 %v4700_v15, %v11386_v58 }
 0x697   : > { %v5996_v60 = vadd.f32 %v5995_v61, %v16638_v53  ;;  %v16726_v21 = vpack.i.bf16 %v16718_v13, %v20097_v44  ;;  %v4043_v16 = vmax.f32 %v20098_v9, 0.0  ;;  %v20099_v32 = vunpack.i.h.bf16 %v16451_v57  ;;  %11448 = vrot.lane.b32.xlu2 %v16675_v48, %s11546_s19  ;;  %v20101_v57 = vld [vmem:[#allocation60_spill] sm:$0xff] }
 0x698   : > { %v5650_v1 = vpack.c.bf16 %v5606_v24, %v5602_v23  ;;  %v5001_v42 = vmax.f32 %v4696_v20, %v11385_v0  ;;  %v4079_v36 = vmax.f32 %v3763_v17, 0.0  ;;  %v11391_v25 = vunpack.i.h.bf16 %v11389_v43  ;;  %11443 = vrot.lane.b32.xlu0 %v16675_v48, %s11547_s20  ;;  %v20103_v23 = vld [vmem:[#allocation62_spill] sm:$0xff]  ;;  %v20105_v20 = vld [vmem:[#allocation127_spill] sm:$0xff] }
 0x699   : > { %v4878_v28 = vsel %vm483_vm4, %v20099_v32, %v11385_v0  ;;  %v6045_v53 = vadd.f32 %v16660_v31, %v5996_v60  ;;  %v11390_v6 = vunpack.i.l.bf16 %v11389_v43  ;;  %v20100_v50 = vunpack.i.h.bf16 %v16392_v27  ;;  %11458 = vrot.lane.b32.xlu1 %v16726_v21, %s11547_s20 }
 0x69a   : > { %6063 = vmatmul.bf16.gmra.mxu0 %v5650_v1  ;;  %v4699_v8 = vmax.f32 %v20101_v57, %v4576_v39  ;;  %v11396_v40 = vunpack.i.h.bf16 %v11394_v19  ;;  %v11395_v31 = vunpack.i.l.bf16 %v11394_v19  ;;  %v20102_v33 = vmax.f32 %v16501_v63, 0.0  ;;  %v20108_v39 = vld [vmem:[#allocation137_spill] sm:$0xff] }
 0x69b   : > { %v4881_v10 = vsel %vm483_vm4, %v20100_v50, %v11386_v58  ;;  %v6094_v47 = vadd.f32 %v16671_v51, %v6045_v53  ;;  %v16747_v2 = vmax.f32 %v4323_v4, %v4083_v30  ;;  %v5000_v27 = vmax.f32 %v4695_v7, %v4878_v28  ;;  %v5951_v58 = vpop.f32.mrf.mxu1  ;;  %v6049_v30 = vpop.f32.mrf.mxu0  ;;  %v20110_v28 = vld [vmem:[#allocation20_spill] sm:$0xff] }
 0x69c   : > { %v4319_v22 = vmax.f32 %v20103_v23, %v20102_v33  ;;  %v5004_v15 = vmax.f32 %v4699_v8, %v4881_v10  ;;  %v5306_v0 = vmax.f32 %v5001_v42, %v11390_v6  ;;  %v5310_v24 = vmax.f32 %v5005_v12, %v11391_v25  ;;  %v20109_v12 = vld [vmem:[#allocation5_spill] sm:$0xff]  ;;  %v20111_v42 = vld [vmem:[#allocation130_spill] sm:$0xff] }
 0x69d   : > { %v16749_v46 = vpack.c.bf16 %v6094_v47, %v6094_v47  ;;  %v3750_v26 = vadd.f32 %v20105_v20, %v20104_v38  ;;  %v20106_v51 = vunpack.i.h.bf16 %v16511_v18  ;;  %v5186_v4 = vsel %vm536_vm3, %v11351_v52, %v11391_v25  ;;  %v6098_v1 = vpop.f32.mrf.mxu2  ;;  %v20113_v25 = vld [vmem:[#allocation136_spill] sm:$0xff]  ;;  %v20115_v8 = vld [vmem:[#allocation134_spill] sm:$0xff] }
 0x69e   : > { %v16753_v62 = vmax.f32 %v4319_v22, %v4079_v36  ;;  %v5997_v7 = vpop.f32.mrf.mxu3  ;;  %v5611_v17 = vmax.f32 %v5306_v0, %v11395_v31  ;;  %v5615_v61 = vmax.f32 %v5310_v24, %v11396_v40  ;;  %v5488_v18 = vsel %vm589_vm8, %v11336_v45, %v11395_v31 }
 0x69f   : > { %v5183_v63 = vsel %vm536_vm3, %v20106_v51, %v11390_v6  ;;  %6150 = vst.msk [vmem:[#allocation3] sm:$0xf] %vm6149_vm11, %v16749_v46  ;;  %v5998_v43 = vadd.f32 %v5997_v7, %v16696_v5  ;;  %v20107_v49 = vunpack.i.h.bf16 %v16471_v56  ;;  %v3760_v19 = vadd.f32 %v20109_v12, %v20108_v39  ;;  %11453 = vrot.lane.b32.xlu2 %v16726_v21, %s11548_s21  ;;  %v20114_v6 = vld [vmem:[#allocation141_spill] sm:$0xff]  ;;  %v20117_v51 = vld [vmem:[#allocation104_spill] sm:$0xff] }
 0x6a0   : > { %v11472_v60 = vpack.i.bf16 %v16747_v2, %v16753_v62  ;;  %v5305_v5 = vmax.f32 %v5000_v27, %v5183_v63  ;;  %v5309_v32 = vmax.f32 %v5004_v15, %v5186_v4  ;;  %v3559_v53 = vadd.f32 %v20111_v42, %v20110_v28  ;;  %11463 = vrot.lane.b32.xlu0 %v16726_v21, %s11546_s19 }
 0x6a1   : > { %v5491_v52 = vsel %vm589_vm8, %v20107_v49, %v11396_v40  ;;  %v6047_v9 = vadd.f32 %v6046_v54, %v5998_v43  ;;  %v4059_v36 = vmax.f32 %v3750_v26, 0.0  ;;  %v3758_v45 = vadd.f32 %v20113_v25, %v20112_v35 }
 0x6a2   : > { %v3770_v56 = vadd.f32 %v16622_v34, %v20114_v6  ;;  %11473 = vrot.lane.b32.xlu1 %v11472_v60, %s11547_s20  ;;  %v5655_v50 = vpack.c.bf16 %v5615_v61, %v5611_v17  ;;  %v5610_v10 = vmax.f32 %v5305_v5, %v5488_v18  ;;  %v5614_v57 = vmax.f32 %v5309_v32, %v5491_v52  ;;  %v20118_v5 = vld [vmem:[#allocation17_spill] sm:$0xff] }
 0x6a3   : > { %v6096_v54 = vadd.f32 %v6095_v55, %v6047_v9  ;;  %v20116_v40 = vmax.f32 %v20115_v8, 0.0  ;;  %v4075_v47 = vmax.f32 %v3760_v19, 0.0  ;;  %v3768_v33 = vadd.f32 %v16575_v41, %v3559_v53  ;;  %v5953_v27 = vpop.f32.mrf.mxu1  ;;  %v6051_v41 = vpop.f32.mrf.mxu0 }
 0x6a4   : > { %9820 = vmatmul.msk.bf16.gmra.mxu2 %vm5912_vm10, %v5655_v50  ;;  %v4071_v22 = vmax.f32 %v3758_v45, 0.0  ;;  %v4091_v0 = vmax.f32 %v3770_v56, 0.0  ;;  %v5654_v55 = vpack.c.bf16 %v5614_v57, %v5610_v10 }
 0x6a5   : > { %v4299_v31 = vmax.f32 %v20116_v40, %v4043_v16  ;;  %v16788_v23 = vpack.c.bf16 %v6096_v54, %v6096_v54  ;;  %v4087_v20 = vmax.f32 %v3768_v33, 0.0  ;;  %v6100_v26 = vpop.f32.mrf.mxu2 }
 0x6a6   : > { %v6000_v15 = vpop.f32.mrf.mxu3  ;;  %v4327_v63 = vmax.f32 %v20117_v51, %v4071_v22 }
 0x6a7   : > { %v4315_v34 = vmax.f32 %v4299_v31, %v4059_v36  ;;  %6151 = vst.msk [vmem:[#allocation3 + $0x4] sm:$0xf] %vm6149_vm11, %v16788_v23  ;;  %v6001_v24 = vadd.f32 %v6000_v15, %v5951_v58  ;;  %11498 = vrot.lane.b32.xlu2 %v11472_v60, %s11552_s24 }
 0x6a8   : > { %11468 = vrot.lane.b32.xlu0 %v11472_v60, %s11548_s21  ;;  %v16800_v17 = vmax.f32 %v4327_v63, %v4087_v20 }
 0x6a9   : > { %v4331_v38 = vmax.f32 %v4315_v34, %v4075_v47  ;;  %v6050_v16 = vadd.f32 %v6049_v30, %v6001_v24 }
 0x6aa   : > { %6068 = vmatmul.bf16.gmra.mxu0 %v5654_v55  ;;  %11488 = vrot.lane.b32.xlu1 %v16726_v21, %s11552_s24 }
 0x6ab   : > { %v16798_v4 = vmax.f32 %v4331_v38, %v4091_v0  ;;  %v6099_v7 = vadd.f32 %v6098_v1, %v6050_v16  ;;  %v5956_v21 = vpop.f32.mrf.mxu1  ;;  %v6054_v49 = vpop.f32.mrf.mxu0 }
 0x6ad   : > { %v16802_v58 = vpack.c.bf16 %v6099_v7, %v6099_v7  ;;  %v11507_v30 = vpack.i.bf16 %v16798_v4, %v16800_v17  ;;  %v6103_v52 = vpop.f32.mrf.mxu2 }
 0x6ae   : > { %v6002_v61 = vpop.f32.mrf.mxu3 }
 0x6af   : > { %6152 = vst.msk [vmem:[#allocation3 + $0x8] sm:$0xf] %vm6149_vm11, %v16802_v58  ;;  %v6003_v43 = vadd.f32 %v6002_v61, %v5953_v27  ;;  %11508 = vrot.lane.b32.xlu2 %v11507_v30, %s11547_s20 }
 0x6b0   : > { %11478 = vrot.lane.b32.xlu0 %v11472_v60, %s11546_s19 }
 0x6b1   : > { %v6052_v18 = vadd.f32 %v6051_v41, %v6003_v43 }
 0x6b2   : > { %11503 = vrot.lane.b32.xlu1 %v11507_v30, %s11548_s21 }
 0x6b3   : > { %v6101_v1 = vadd.f32 %v6100_v26, %v6052_v18  ;;  %v5958_v32 = vpop.f32.mrf.mxu1  ;;  %v6056_v28 = vpop.f32.mrf.mxu0  ;;  %v20119_v26 = vld [vmem:[#allocation49_spill] sm:$0xff] }
 0x6b4   : > { %v11015_v51 = vunpack.i.l.bf16 %v20119_v26  ;;  %v11016_v43 = vunpack.i.h.bf16 %v20119_v26 }
 0x6b5   : > { %v16811_v39 = vpack.c.bf16 %v6101_v1, %v6101_v1  ;;  %v6105_v53 = vpop.f32.mrf.mxu2 }
 0x6b6   : > { %v6005_v12 = vpop.f32.mrf.mxu3 }
 0x6b7   : > { %6153 = vst.msk [vmem:[#allocation3 + $0xc] sm:$0xf] %vm6149_vm11, %v16811_v39  ;;  %v6006_v19 = vadd.f32 %v6005_v12, %v5956_v21  ;;  %11513 = vrot.lane.b32.xlu2 %v20118_v5, %s11546_s19 }
 0x6b8   : > { %11483 = vrot.lane.b32.xlu0 %v16675_v48, %s11552_s24 }
 0x6b9   : > { %v6055_v9 = vadd.f32 %v6054_v49, %v6006_v19  ;;  %v20121_v19 = vld [vmem:[#allocation9_spill] sm:$0xff] }
 0x6ba   : > { %11518 = vrot.lane.b32.xlu1 %v11507_v30, %s11546_s19 }
 0x6bb   : > { %v6104_v60 = vadd.f32 %v6103_v52, %v6055_v9  ;;  %v5961_v6 = vpop.f32.mrf.mxu1  ;;  %v6059_v56 = vpop.f32.mrf.mxu0  ;;  %v20120_v52 = vld [vmem:[#allocation45_spill] sm:$0xff] }
 0x6bc   : > { %v11020_v12 = vunpack.i.l.bf16 %v20120_v52 }
 0x6bd   : > { %v16820_v42 = vpack.c.bf16 %v6104_v60, %v6104_v60  ;;  %v6108_v10 = vpop.f32.mrf.mxu2 }
 0x6be   : > { %v6007_v36 = vpop.f32.mrf.mxu3 }
 0x6bf   : > { %6154 = vst.msk [vmem:[#allocation3 + $0x10] sm:$0xf] %vm6149_vm11, %v16820_v42  ;;  %v6008_v35 = vadd.f32 %v6007_v36, %v5958_v32 }
 0x6c0   : > { %11493 = vrot.lane.b32.xlu0 %v20118_v5, %s11547_s20 }
 0x6c1   : > { %v6057_v25 = vadd.f32 %v6056_v28, %v6008_v35  ;;  %v11021_v35 = vunpack.i.h.bf16 %v20120_v52 }
 0x6c2   : > { %11528 = vrot.lane.b32.xlu1 %v20118_v5, %s11552_s24 }
 0x6c3   : > { %v6106_v45 = vadd.f32 %v6105_v53, %v6057_v25  ;;  %v5963_v31 = vpop.f32.mrf.mxu1  ;;  %v6061_v34 = vpop.f32.mrf.mxu0  ;;  %v20122_v25 = vld [vmem:[#allocation18_spill] sm:$0xff] }
 0x6c5   : > { %v16828_v48 = vpack.c.bf16 %v6106_v45, %v6106_v45  ;;  %v6110_v27 = vpop.f32.mrf.mxu2 }
 0x6c6   : > { %v6010_v54 = vpop.f32.mrf.mxu3 }
 0x6c7   : > { %6155 = vst.msk [vmem:[#allocation3 + $0x14] sm:$0xf] %vm6149_vm11, %v16828_v48  ;;  %v6011_v50 = vadd.f32 %v6010_v54, %v5961_v6 }
 0x6c8   : > { %11523 = vrot.lane.b32.xlu0 %v11507_v30, %s11552_s24 }
 0x6c9   : > { %v6060_v57 = vadd.f32 %v6059_v56, %v6011_v50 }
 0x6cb   : > { %v6109_v8 = vadd.f32 %v6108_v10, %v6060_v57  ;;  %v20123_v10 = vld [vmem:[#allocation64_spill] sm:$0xff] }
 0x6cc   : > { %v11025_v57 = vunpack.i.l.bf16 %v20123_v10 }
 0x6cd   : > { %v16833_v40 = vpack.c.bf16 %v6109_v8, %v6109_v8 }
 0x6ce   : > { %v6012_v47 = vpop.f32.mrf.mxu3 }
 0x6cf   : > { %6156 = vst.msk [vmem:[#allocation3 + $0x18] sm:$0xf] %vm6149_vm11, %v16833_v40  ;;  %v6013_v33 = vadd.f32 %v6012_v47, %v5963_v31  ;;  %6258 = vrot.lane.b32.xlu1 %v16833_v40, %s11547_s20 }
 0x6d1   : > { %v6062_v22 = vadd.f32 %v6061_v34, %v6013_v33 }
 0x6d3   : > { %v6111_v15 = vadd.f32 %v6110_v27, %v6062_v22  ;;  %v11026_v27 = vunpack.i.h.bf16 %v20123_v10 }
 0x6d5   : > { %v16839_v0 = vpack.c.bf16 %v6111_v15, %v6111_v15 }
 0x6d7   : > { %6157 = vst.msk [vmem:[#allocation3 + $0x1c] sm:$0xf] %vm6149_vm11, %v16839_v0  ;;  %6260 = vrot.lane.b32.xlu2 %v16839_v0, %s11547_s20 }
 0x6d9   : > { %v16845_v55 = vpop.permute.xlu2 %11403 }
 0x6da   : > { %v11406_v21 = vunpack.i.h.bf16 %v16845_v55  ;;  %v11405_v18 = vunpack.i.l.bf16 %v16845_v55 }
 0x6dc   : > { %v4883_v56 = vsel %vm483_vm4, %v11405_v18, %v11406_v21 }
 0x6e1   : > { %v16847_v24 = vpop.permute.xlu2 %11413 }
 0x6e9   : > { %v16856_v63 = vpop.permute.xlu2 %11428 }
 0x6ea   : > { %v19312_v47 = vunpack.i.h.bf16 %v16856_v63  ;;  %v11430_v33 = vunpack.i.l.bf16 %v16856_v63  ;;  %v20127_v55 = vunpack.i.h.bf16 %v16856_v63 }
 0x6f1   : > { %v16849_v38 = vpop.permute.xlu1 %11408  ;;  %v16892_v34 = vpop.permute.xlu2 %11448 }
 0x6f2   : > { %v16851_v20 = vpop.permute.xlu0 %11398  ;;  %v19311_v54 = vunpack.i.h.bf16 %v16849_v38  ;;  %v11410_v50 = vunpack.i.l.bf16 %v16849_v38 }
 0x6f3   : > { %v11401_v16 = vunpack.i.h.bf16 %v16851_v20  ;;  %v11400_v41 = vunpack.i.l.bf16 %v16851_v20 }
 0x6f5   : > { %v4577_v7 = vsel %vm430_vm5, %v11015_v51, %v11400_v41  ;;  %v4578_v61 = vsel %vm430_vm5, %v11400_v41, %v11401_v16  ;;  %v11416_v51 = vunpack.i.h.bf16 %v16847_v24 }
 0x6f6   : > { %v4701_v9 = vmax.f32 %v20121_v19, %v4577_v7  ;;  %v4702_v5 = vmax.f32 %v20064_v37, %v4578_v61  ;;  %v4882_v37 = vsel %vm483_vm4, %v11020_v12, %v11405_v18  ;;  %v11415_v7 = vunpack.i.l.bf16 %v16847_v24  ;;  %v20124_v18 = vld [vmem:[#allocation55_spill] sm:$0xff] }
 0x6f7   : > { %v5187_v61 = vsel %vm536_vm3, %v11025_v57, %v11410_v50  ;;  %v11030_v52 = vunpack.i.l.bf16 %v20124_v18 }
 0x6f8   : > { %v5006_v8 = vmax.f32 %v4701_v9, %v4882_v37  ;;  %v5007_v31 = vmax.f32 %v4702_v5, %v4883_v56  ;;  %v5190_v5 = vsel %vm536_vm3, %v11026_v27, %v11430_v33  ;;  %v5493_v37 = vsel %vm589_vm8, %v11415_v7, %v11416_v51 }
 0x6f9   : > { %v16863_v30 = vpop.permute.xlu1 %11418 }
 0x6fa   : > { %v11421_v49 = vunpack.i.h.bf16 %v16863_v30  ;;  %v11420_v1 = vunpack.i.l.bf16 %v16863_v30  ;;  %v16872_v32 = vpop.permute.xlu0 %11423  ;;  %v5311_v19 = vmax.f32 %v5006_v8, %v5187_v61 }
 0x6fb   : > { %v19313_v53 = vunpack.i.h.bf16 %v16872_v32  ;;  %v11425_v36 = vunpack.i.l.bf16 %v16872_v32  ;;  %v20126_v24 = vunpack.i.h.bf16 %v16872_v32 }
 0x6fc   : > { %v4580_v60 = vsel %vm430_vm5, %v11016_v43, %v11420_v1  ;;  %v4581_v28 = vsel %vm430_vm5, %v11420_v1, %v11421_v49  ;;  %v5188_v43 = vsel %vm536_vm3, %v11410_v50, %v19311_v54  ;;  %v11031_v1 = vunpack.i.h.bf16 %v20124_v18 }
 0x6fd   : > { %v4705_v45 = vmax.f32 %v20122_v25, %v4580_v60  ;;  %v4706_v6 = vmax.f32 %v20072_v29, %v4581_v28  ;;  %v4885_v29 = vsel %vm483_vm4, %v11021_v35, %v11425_v36  ;;  %v4886_v22 = vsel %vm483_vm4, %v11425_v36, %v19313_v53 }
 0x6fe   : > { %v5312_v9 = vmax.f32 %v5007_v31, %v5188_v43  ;;  %v5191_v60 = vsel %vm536_vm3, %v11430_v33, %v19312_v47 }
 0x6ff   : > { %v5010_v15 = vmax.f32 %v4705_v45, %v4885_v29  ;;  %v5011_v41 = vmax.f32 %v4706_v6, %v4886_v22  ;;  %v5492_v45 = vsel %vm589_vm8, %v11030_v52, %v11415_v7  ;;  %v16925_v29 = vpop.permute.xlu2 %11453 }
 0x700   : > { %v5616_v50 = vmax.f32 %v5311_v19, %v5492_v45  ;;  %v5617_v57 = vmax.f32 %v5312_v9, %v5493_v37 }
 0x701   : > { %v16899_v26 = vpop.permute.xlu1 %11438  ;;  %v5315_v35 = vmax.f32 %v5010_v15, %v5190_v5  ;;  %v5316_v25 = vmax.f32 %v5011_v41, %v5191_v60  ;;  %v6015_v15 = vpop.f32.mrf.mxu3 }
 0x702   : > { %v16909_v12 = vpop.permute.xlu0 %11433  ;;  %v5966_v41 = vpop.f32.mrf.mxu1  ;;  %v19308_v45 = vunpack.i.h.bf16 %v16899_v26 }
 0x703   : > { %v19310_v28 = vunpack.i.h.bf16 %v16909_v12  ;;  %v11435_v36 = vunpack.i.l.bf16 %v16909_v12  ;;  %v6016_v43 = vadd.f32 %v6015_v15, %v5966_v41  ;;  %v20129_v63 = vunpack.i.h.bf16 %v16909_v12 }
 0x705   : > { %v5495_v6 = vsel %vm589_vm8, %v11031_v1, %v11435_v36  ;;  %v5496_v56 = vsel %vm589_vm8, %v11435_v36, %v19310_v28  ;;  %v19306_v36 = vunpack.i.h.bf16 %v16925_v29 }
 0x706   : > { %v5620_v10 = vmax.f32 %v5315_v35, %v5495_v6  ;;  %v5621_v8 = vmax.f32 %v5316_v25, %v5496_v56  ;;  %v19307_v35 = vunpack.i.l.bf16 %v16925_v29  ;;  %v19309_v6 = vunpack.i.l.bf16 %v16899_v26 }
 0x707   : > { %v16935_v18 = vpop.permute.xlu2 %11498 }
 0x708   : > { %v5656_v31 = vpack.c.bf16 %v5620_v10, %v5616_v50  ;;  %v5657_v33 = vpack.c.bf16 %v5621_v8, %v5617_v57  ;;  %v20125_v8 = vld [vmem:[#allocation56_spill] sm:$0xff] }
 0x709   : > { %v6017_v19 = vpop.f32.mrf.mxu3 }
 0x70a   : > { %v16929_v27 = vpop.permute.xlu0 %11443  ;;  %5975 = vmatmul.bf16.gmra.mxu1 %v5656_v31  ;;  %6024 = vmatmul.bf16.gmra.mxu3 %v5657_v33  ;;  %v5968_v5 = vpop.f32.mrf.mxu1  ;;  %v11501_v33 = vunpack.i.h.bf16 %v16935_v18 }
 0x70b   : > { %v16927_v22 = vpop.permute.xlu1 %11458  ;;  %v6018_v50 = vadd.f32 %v6017_v19, %v5968_v5  ;;  %v19316_v41 = vunpack.i.l.bf16 %v16929_v27 }
 0x70c   : > { %v19315_v5 = vunpack.i.h.bf16 %v16927_v22 }
 0x711   : > { %v6020_v31 = vpop.f32.mrf.mxu3 }
 0x712   : > { %v16933_v61 = vpop.permute.xlu0 %11463 }
 0x714   : > { %v16931_v7 = vpop.permute.xlu1 %11473 }
 0x715   : > { %v11476_v28 = vunpack.i.h.bf16 %v16931_v7  ;;  %v11475_v54 = vunpack.i.l.bf16 %v16931_v7 }
 0x717   : > { %v6064_v1 = vpop.f32.mrf.mxu0  ;;  %v6113_v9 = vpop.f32.mrf.mxu2 }
 0x718   : > { %v6065_v52 = vadd.f32 %v6064_v1, %v6016_v43  ;;  %v16957_v43 = vsel %vm430_vm5, %v19307_v35, %v19306_v36  ;;  %v11500_v1 = vunpack.i.l.bf16 %v16935_v18  ;;  %v5971_v35 = vpop.f32.mrf.mxu1 }
 0x71a   : > { %v6114_v60 = vadd.f32 %v6113_v9, %v6065_v52  ;;  %v11469_v56 = vpop.permute.xlu0 %11468  ;;  %v16960_v52 = vpop.permute.xlu2 %11508  ;;  %v4584_v9 = vsel %vm430_vm5, %v19309_v6, %v19308_v45  ;;  %v4714_v6 = vmax.f32 %v20097_v44, %v16957_v43 }
 0x71b   : > { %v11471_v10 = vunpack.i.h.bf16 %v11469_v56  ;;  %v11470_v57 = vunpack.i.l.bf16 %v11469_v56  ;;  %v19314_v56 = vunpack.i.h.bf16 %v16929_v27  ;;  %v4710_v47 = vmax.f32 %v20081_v14, %v4584_v9 }
 0x71c   : > { %v16939_v25 = vpack.c.bf16 %v6114_v60, %v6114_v60  ;;  %v16943_v37 = vpop.permute.xlu1 %11488  ;;  %v11460_v60 = vunpack.i.l.bf16 %v16927_v22  ;;  %v5494_v14 = vsel %vm589_vm8, %v11416_v51, %v11500_v1  ;;  %v4887_v51 = vsel %vm483_vm4, %v20126_v24, %v11476_v28 }
 0x71d   : > { %v4708_v30 = vmax.f32 %v16747_v2, %v11471_v10  ;;  %v4889_v2 = vsel %vm483_vm4, %v19316_v41, %v19314_v56  ;;  %v11490_v9 = vunpack.i.l.bf16 %v16943_v37  ;;  %v20128_v24 = vunpack.i.h.bf16 %v16849_v38 }
 0x71e   : > { %6158 = vst.msk [vmem:[#allocation3 + $0x20] sm:$0xf] %vm6149_vm11, %v16939_v25  ;;  %6262 = vrot.lane.b32.xlu0 %v16939_v25, %s11547_s20  ;;  %v4892_v44 = vsel %vm483_vm4, %v11460_v60, %v19315_v5 }
 0x71f   : > { %v6066_v15 = vpop.f32.mrf.mxu0  ;;  %v6115_v36 = vpop.f32.mrf.mxu2 }
 0x720   : > { %v6067_v19 = vadd.f32 %v6066_v15, %v6018_v50  ;;  %v4582_v50 = vsel %vm430_vm5, %v11421_v49, %v11471_v10  ;;  %v4579_v15 = vsel %vm430_vm5, %v11401_v16, %v11470_v57  ;;  %v4704_v49 = vmax.f32 %v16753_v62, %v11470_v57 }
 0x721   : > { %v4707_v20 = vmax.f32 %v16617_v11, %v4582_v50  ;;  %v4703_v16 = vmax.f32 %v16554_v3, %v4579_v15  ;;  %v6021_v62 = vadd.f32 %v6020_v31, %v5971_v35  ;;  %v4884_v3 = vsel %vm483_vm4, %v11406_v21, %v11475_v54 }
 0x722   : > { %v6116_v45 = vadd.f32 %v6115_v36, %v6067_v19  ;;  %v11479_v7 = vpop.permute.xlu0 %11478  ;;  %v11466_v35 = vunpack.i.h.bf16 %v16933_v61  ;;  %v11491_v57 = vunpack.i.h.bf16 %v16943_v37  ;;  %v5009_v43 = vmax.f32 %v4704_v49, %v11475_v54 }
 0x723   : > { %v11481_v11 = vunpack.i.h.bf16 %v11479_v7  ;;  %v11480_v36 = vunpack.i.l.bf16 %v11479_v7  ;;  %v5013_v19 = vmax.f32 %v4708_v30, %v11476_v28  ;;  %v5008_v32 = vmax.f32 %v4703_v16, %v4884_v3  ;;  %v17023_v7 = vpop.permute.xlu2 %11513  ;;  %v6022_v28 = vpop.f32.mrf.mxu3 }
 0x724   : > { %v16985_v53 = vpack.c.bf16 %v6116_v45, %v6116_v45  ;;  %v16994_v18 = vpop.permute.xlu1 %11503  ;;  %v11465_v45 = vunpack.i.l.bf16 %v16933_v61  ;;  %v5012_v15 = vmax.f32 %v4707_v20, %v4887_v51  ;;  %v5015_v54 = vmax.f32 %v4710_v47, %v4889_v2 }
 0x725   : > { %v5192_v21 = vsel %vm536_vm3, %v20127_v55, %v11481_v11  ;;  %v5189_v56 = vsel %vm536_vm3, %v20128_v24, %v11480_v36  ;;  %v5314_v5 = vmax.f32 %v5009_v43, %v11480_v36  ;;  %v5318_v41 = vmax.f32 %v5013_v19, %v11481_v11  ;;  %v5973_v55 = vpop.f32.mrf.mxu1 }
 0x726   : > { %6159 = vst.msk [vmem:[#allocation3 + $0x24] sm:$0xf] %vm6149_vm11, %v16985_v53  ;;  %6198 = vrot.lane.b32.xlu0 %v16939_v25, %s11548_s21  ;;  %6264 = vrot.lane.b32.xlu1 %v16985_v53, %s11547_s20  ;;  %v5313_v30 = vmax.f32 %v5008_v32, %v5189_v56  ;;  %v5317_v49 = vmax.f32 %v5012_v15, %v5192_v21  ;;  %v11035_v47 = vunpack.i.l.bf16 %v20125_v8  ;;  %v20132_v21 = vunpack.i.l.bf16 %v16925_v29 }
 0x727   : > { %v6069_v10 = vpop.f32.mrf.mxu0  ;;  %v6118_v50 = vpop.f32.mrf.mxu2  ;;  %v5197_v38 = vsel %vm536_vm3, %v11465_v45, %v11466_v35  ;;  %v5619_v20 = vmax.f32 %v5314_v5, %v11500_v1  ;;  %v5623_v16 = vmax.f32 %v5318_v41, %v11501_v33  ;;  %v5019_v2 = vmax.f32 %v4714_v6, %v4892_v44 }
 0x728   : > { %v6070_v31 = vadd.f32 %v6069_v10, %v6021_v62  ;;  %v5497_v10 = vsel %vm589_vm8, %v20129_v63, %v11501_v33  ;;  %v5618_v12 = vmax.f32 %v5313_v30, %v5494_v14  ;;  %v6023_v51 = vadd.f32 %v6022_v28, %v5973_v55 }
 0x729   : > { %v5622_v3 = vmax.f32 %v5317_v49, %v5497_v10  ;;  %v5502_v6 = vsel %vm589_vm8, %v11490_v9, %v11491_v57  ;;  %v20130_v33 = vunpack.i.h.bf16 %v16892_v34  ;;  %v20131_v41 = vunpack.i.l.bf16 %v16892_v34 }
 0x72a   : > { %v6119_v62 = vadd.f32 %v6118_v50, %v6070_v31  ;;  %v17041_v11 = vpop.permute.xlu0 %11483  ;;  %v5659_v14 = vpack.c.bf16 %v5623_v16, %v5619_v20  ;;  %v5324_v19 = vmax.f32 %v5019_v2, %v5197_v38  ;;  %v20133_v50 = vunpack.i.h.bf16 %v20125_v8  ;;  %v20135_v20 = vld [vmem:[#allocation15_spill] sm:$0xff] }
 0x72b   : > { %v11486_v31 = vunpack.i.h.bf16 %v17041_v11  ;;  %v11485_v1 = vunpack.i.l.bf16 %v17041_v11  ;;  %v5194_v5 = vsel %vm536_vm3, %v20131_v41, %v20130_v33  ;;  %v5658_v43 = vpack.c.bf16 %v5622_v3, %v5618_v12 }
 0x72c   : > { %v17036_v36 = vpack.c.bf16 %v6119_v62, %v6119_v62  ;;  %v17039_v56 = vpop.permute.xlu1 %11518  ;;  %v4586_v32 = vsel %vm430_vm5, %v20133_v50, %v20132_v21  ;;  %v5320_v24 = vmax.f32 %v5015_v54, %v5194_v5  ;;  %v20134_v62 = vunpack.i.l.bf16 %v16899_v26  ;;  %9821 = vmatmul.msk.bf16.gmra.mxu2 %vm5912_vm10, %v5659_v14 }
 0x72d   : > { %6073 = vmatmul.bf16.gmra.mxu0 %v5658_v43  ;;  %v5499_v49 = vsel %vm589_vm8, %v11485_v1, %v11486_v31  ;;  %v5629_v63 = vmax.f32 %v5324_v19, %v5502_v6  ;;  %v11506_v8 = vunpack.i.h.bf16 %v16994_v18  ;;  %v11505_v10 = vunpack.i.l.bf16 %v16994_v18 }
 0x72e   : > { %6160 = vst.msk [vmem:[#allocation3 + $0x28] sm:$0xf] %vm6149_vm11, %v17036_v36  ;;  %6200 = vrot.lane.b32.xlu1 %v16985_v53, %s11548_s21  ;;  %6266 = vrot.lane.b32.xlu2 %v17036_v36, %s11547_s20  ;;  %v4583_v28 = vsel %vm430_vm5, %v11035_v47, %v20134_v62  ;;  %v5625_v55 = vmax.f32 %v5320_v24, %v5499_v49  ;;  %v20136_v47 = vld [vmem:[#allocation19_spill] sm:$0xff]  ;;  %v11510_v6 = vunpack.i.l.bf16 %v16960_v52  ;;  %v11516_v33 = vunpack.i.h.bf16 %v17023_v7 }
 0x72f   : > { %v6071_v44 = vpop.f32.mrf.mxu0  ;;  %v6120_v30 = vpop.f32.mrf.mxu2  ;;  %v4713_v16 = vmax.f32 %v20135_v20, %v4586_v32  ;;  %v4709_v2 = vmax.f32 %v20136_v47, %v4583_v28  ;;  %v11515_v18 = vunpack.i.l.bf16 %v17023_v7  ;;  %v20138_v43 = vunpack.i.h.bf16 %v16925_v29 }
 0x730   : > { %v6072_v15 = vadd.f32 %v6071_v44, %v6023_v51  ;;  %v5661_v3 = vpack.c.bf16 %v5629_v63, %v5625_v55  ;;  %v11511_v51 = vunpack.i.h.bf16 %v16960_v52  ;;  %v20137_v44 = vunpack.i.h.bf16 %v16899_v26 }
 0x731   : > { %v6261_v38 = vpop.permute.xlu2 %6260  ;;  %v4588_v19 = vsel %vm430_vm5, %v20138_v43, %v11506_v8  ;;  %v4716_v52 = vmax.f32 %v16798_v4, %v11506_v8  ;;  %v4712_v7 = vmax.f32 %v16800_v17, %v11505_v10  ;;  %v11521_v26 = vunpack.i.h.bf16 %v17039_v56 }
 0x732   : > { %v6121_v54 = vadd.f32 %v6120_v30, %v6072_v15  ;;  %6301 = vst.msk [vmem:[#allocation3 + $0x9c] sm:$0xf] %vm6149_vm11, %v6261_v38  ;;  %v11494_v5 = vpop.permute.xlu0 %11493  ;;  %v4585_v14 = vsel %vm430_vm5, %v20137_v44, %v11505_v10  ;;  %6029 = vmatmul.bf16.gmra.mxu3 %v5661_v3  ;;  %v11520_v32 = vunpack.i.l.bf16 %v17039_v56  ;;  %v20139_v62 = vunpack.i.l.bf16 %v16929_v27 }
 0x733   : > { %v11496_v21 = vunpack.i.h.bf16 %v11494_v5  ;;  %v11495_v50 = vunpack.i.l.bf16 %v11494_v5  ;;  %v4711_v4 = vmax.f32 %v16665_v59, %v4585_v14  ;;  %v4715_v17 = vmax.f32 %v16718_v13, %v4588_v19 }
 0x734   : > { %v17080_v12 = vpack.c.bf16 %v6121_v54, %v6121_v54  ;;  %v11529_v41 = vpop.permute.xlu1 %11528  ;;  %v20140_v56 = vunpack.i.h.bf16 %v16927_v22  ;;  %v20141_v8 = vunpack.i.h.bf16 %v16929_v27  ;;  %v5196_v59 = vsel %vm536_vm3, %v11516_v33, %v11465_v45 }
 0x735   : > { %v11531_v29 = vunpack.i.h.bf16 %v11529_v41  ;;  %v11530_v15 = vunpack.i.l.bf16 %v11529_v41  ;;  %v4891_v24 = vsel %vm483_vm4, %v11496_v21, %v11460_v60  ;;  %v4888_v28 = vsel %vm483_vm4, %v11495_v50, %v20139_v62 }
 0x736   : > { %6161 = vst.msk [vmem:[#allocation3 + $0x2c] sm:$0xf] %vm6149_vm11, %v17080_v12  ;;  %6202 = vrot.lane.b32.xlu2 %v17036_v36, %s11548_s21  ;;  %6268 = vrot.lane.b32.xlu0 %v17080_v12, %s11547_s20  ;;  %v5018_v30 = vmax.f32 %v4713_v16, %v4891_v24  ;;  %v5014_v49 = vmax.f32 %v4709_v2, %v4888_v28  ;;  %v20142_v60 = vunpack.i.l.bf16 %v16892_v34  ;;  %v20143_v22 = vunpack.i.h.bf16 %v16892_v34 }
 0x737   : > { %v4893_v63 = vsel %vm483_vm4, %v20140_v56, %v11511_v51  ;;  %v4890_v10 = vsel %vm483_vm4, %v20141_v8, %v11510_v6  ;;  %v5017_v55 = vmax.f32 %v4712_v7, %v11510_v6  ;;  %v5021_v13 = vmax.f32 %v4716_v52, %v11511_v51 }
 0x738   : > { %v5193_v54 = vsel %vm536_vm3, %v11515_v18, %v20142_v60  ;;  %v5323_v20 = vmax.f32 %v5018_v30, %v5196_v59  ;;  %v5195_v16 = vsel %vm536_vm3, %v20143_v22, %v11520_v32  ;;  %v5198_v27 = vsel %vm536_vm3, %v11466_v35, %v11521_v26 }
 0x739   : > { %v5319_v38 = vmax.f32 %v5014_v49, %v5193_v54  ;;  %v5498_v47 = vsel %vm589_vm8, %v11530_v15, %v11485_v1  ;;  %v5501_v45 = vsel %vm589_vm8, %v11531_v29, %v11490_v9  ;;  %v5016_v6 = vmax.f32 %v4711_v4, %v4890_v10 }
 0x73a   : > { %v11524_v2 = vpop.permute.xlu0 %11523  ;;  %v5628_v51 = vmax.f32 %v5323_v20, %v5501_v45  ;;  %v5020_v33 = vmax.f32 %v4715_v17, %v4893_v63  ;;  %v5322_v34 = vmax.f32 %v5017_v55, %v11520_v32  ;;  %v5326_v18 = vmax.f32 %v5021_v13, %v11521_v26 }
 0x73b   : > { %v5624_v3 = vmax.f32 %v5319_v38, %v5498_v47  ;;  %v11526_v41 = vunpack.i.h.bf16 %v11524_v2  ;;  %v11525_v5 = vunpack.i.l.bf16 %v11524_v2  ;;  %v5321_v35 = vmax.f32 %v5016_v6, %v5195_v16 }
 0x73c   : > { %v5325_v44 = vmax.f32 %v5020_v33, %v5198_v27 }
 0x73d   : > { %v5660_v61 = vpack.c.bf16 %v5628_v51, %v5624_v3  ;;  %v5631_v1 = vmax.f32 %v5326_v18, %v11526_v41  ;;  %v5627_v14 = vmax.f32 %v5322_v34, %v11525_v5  ;;  %v5500_v9 = vsel %vm589_vm8, %v11486_v31, %v11525_v5 }
 0x73e   : > { %6204 = vrot.lane.b32.xlu0 %v17080_v12, %s11548_s21  ;;  %v5503_v43 = vsel %vm589_vm8, %v11491_v57, %v11526_v41  ;;  %v5626_v19 = vmax.f32 %v5321_v35, %v5500_v9  ;;  %v10796_v9 = vld [vmem:[#allocation3 + $0x10] sm:$0xff] }
 0x73f   : > { %5980 = vmatmul.bf16.gmra.mxu1 %v5660_v61  ;;  %v5630_v21 = vmax.f32 %v5325_v44, %v5503_v43  ;;  %v5663_v50 = vpack.c.bf16 %v5631_v1, %v5627_v14  ;;  %v10799_v44 = vld [vmem:[#allocation3 + $0x28] sm:$0xff]  ;;  %v10798_v1 = vld [vmem:[#allocation3 + $0x20] sm:$0xff]  ;;  %v10797_v14 = vld [vmem:[#allocation3 + $0x18] sm:$0xff] }
 0x740   : > { %v10795_v43 = vld [vmem:[#allocation3 + $0x8] sm:$0xff] }
 0x741   : > { %v6259_v52 = vpop.permute.xlu1 %6258  ;;  %v5662_v7 = vpack.c.bf16 %v5630_v21, %v5626_v19  ;;  %9822 = vmatmul.msk.bf16.gmra.mxu2 %vm5912_vm10, %v5663_v50  ;;  %v9825_v19 = vld [vmem:[%s18789_s4] sm:$0xf]  ;;  %v10685_v21 = vld [vmem:[%s18789_s4 + $0x18] sm:$0xf0] }
 0x742   : > { %6300 = vst.msk [vmem:[#allocation3 + $0x98] sm:$0xf] %vm6149_vm11, %v6259_v52  ;;  %v10794_v50 = vld [vmem:[#allocation3] sm:$0xff]  ;;  %v9826_v52 = vor.u32 %v10685_v21, %v9825_v19 }
 0x743   : > { %6078 = vmatmul.bf16.gmra.mxu0 %v5662_v7  ;;  %v9853_v7 = vld [vmem:[%s18789_s4 + $0x38] sm:$0xf] }
 0x787   : > { %v5976_v24 = vpop.f32.mrf.mxu1 }
 0x788   : > { %v6267_v26 = vpop.permute.xlu2 %6266 }
 0x789   : > { %6304 = vst.msk [vmem:[#allocation3 + $0xa8] sm:$0xf] %vm6149_vm11, %v6267_v26  ;;  %v10692_v26 = vld [vmem:[%s18789_s4 + $0x50] sm:$0xf0] }
 0x78d   : > { %v6025_v15 = vpop.f32.mrf.mxu3 }
 0x78e   : > { %v6026_v28 = vadd.f32 %v6025_v15, %v5976_v24  ;;  %v9909_v15 = vld [vmem:[%s18789_s4 + $0xa8] sm:$0xf]  ;;  %v10706_v24 = vld [vmem:[%s18789_s4 + $0xc0] sm:$0xf0] }
 0x78f   : > { %v5978_v63 = vpop.f32.mrf.mxu1 }
 0x790   : > { %v6263_v11 = vpop.permute.xlu0 %6262  ;;  %v6203_v37 = vpop.permute.xlu2 %6202 }
 0x791   : > { %6302 = vst.msk [vmem:[#allocation3 + $0xa0] sm:$0xf] %vm6149_vm11, %v6263_v11  ;;  %v9854_v11 = vor.u32 %v10692_v26, %v9853_v7 }
 0x792   : > { %6240 = vst.msk [vmem:[#allocation3 + $0x68] sm:$0xf] %vm6149_vm11, %v6203_v37  ;;  %v9881_v37 = vld [vmem:[%s18789_s4 + $0x70] sm:$0xf] }
 0x795   : > { %v6027_v56 = vpop.f32.mrf.mxu3 }
 0x796   : > { %v6028_v60 = vadd.f32 %v6027_v56, %v5978_v63  ;;  %v10713_v56 = vld [vmem:[%s18789_s4 + $0xf8] sm:$0xf0] }
 0x798   : > { %v6199_v57 = vpop.permute.xlu0 %6198  ;;  %v6265_v31 = vpop.permute.xlu1 %6264 }
 0x799   : > { %6238 = vst.msk [vmem:[#allocation3 + $0x60] sm:$0xf] %vm6149_vm11, %v6199_v57  ;;  %v10699_v57 = vld [vmem:[%s18789_s4 + $0x88] sm:$0xf0] }
 0x79a   : > { %6303 = vst.msk [vmem:[#allocation3 + $0xa4] sm:$0xf] %vm6149_vm11, %v6265_v31  ;;  %v9882_v31 = vor.u32 %v10699_v57, %v9881_v37 }
 0x7a0   : > { %v6201_v32 = vpop.permute.xlu1 %6200 }
 0x7a1   : > { %6239 = vst.msk [vmem:[#allocation3 + $0x64] sm:$0xf] %vm6149_vm11, %v6201_v32 }
 0x7a8   : > { %v6269_v29 = vpop.permute.xlu0 %6268 }
 0x7a9   : > { %6305 = vst.msk [vmem:[#allocation3 + $0xac] sm:$0xf] %vm6149_vm11, %v6269_v29 }
 0x7aa   : > { %v6074_v62 = vpop.f32.mrf.mxu0 }
 0x7ab   : > { %v6075_v17 = vadd.f32 %v6074_v62, %v6026_v28  ;;  %v9910_v62 = vor.u32 %v10706_v24, %v9909_v15  ;;  %v10686_v15 = vld [vmem:[%s18789_s4 + $0x20] sm:$0xf0] }
 0x7af   : > { %v6123_v30 = vpop.f32.mrf.mxu2 }
 0x7b0   : > { %v6205_v4 = vpop.permute.xlu0 %6204  ;;  %v6124_v49 = vadd.f32 %v6123_v30, %v6075_v17 }
 0x7b1   : > { %6241 = vst.msk [vmem:[#allocation3 + $0x6c] sm:$0xf] %vm6149_vm11, %v6205_v4 }
 0x7b2   : > { %v17152_v8 = vpack.c.bf16 %v6124_v49, %v6124_v49  ;;  %v6076_v10 = vpop.f32.mrf.mxu0  ;;  %v9937_v49 = vld [vmem:[%s18789_s4 + $0xe0] sm:$0xf] }
 0x7b3   : > { %v6077_v54 = vadd.f32 %v6076_v10, %v6028_v60  ;;  %v9938_v63 = vor.u32 %v10713_v56, %v9937_v49 }
 0x7b4   : > { %6162 = vst.msk [vmem:[#allocation3 + $0x30] sm:$0xf] %vm6149_vm11, %v17152_v8  ;;  %6270 = vrot.lane.b32.xlu1 %v17152_v8, %s11547_s20 }
 0x7b5   : > { %v6030_v20 = vpop.f32.mrf.mxu3 }
 0x7b7   : > { %v6125_v59 = vpop.f32.mrf.mxu2 }
 0x7b8   : > { %v6126_v55 = vadd.f32 %v6125_v59, %v6077_v54 }
 0x7ba   : > { %v17158_v13 = vpack.c.bf16 %v6126_v55, %v6126_v55 }
 0x7bc   : > { %v5981_v38 = vpop.f32.mrf.mxu1  ;;  %6163 = vst.msk [vmem:[#allocation3 + $0x34] sm:$0xf] %vm6149_vm11, %v17158_v13  ;;  %6206 = vrot.lane.b32.xlu1 %v17152_v8, %s11548_s21  ;;  %6272 = vrot.lane.b32.xlu2 %v17158_v13, %s11547_s20 }
 0x7bd   : > { %v6031_v16 = vadd.f32 %v6030_v20, %v5981_v38  ;;  %v6032_v51 = vpop.f32.mrf.mxu3  ;;  %v9965_v20 = vld [vmem:[%s18789_s4 + $0x118] sm:$0xf] }
 0x7c0   : > { %v6079_v22 = vpop.f32.mrf.mxu0 }
 0x7c1   : > { %v6080_v27 = vadd.f32 %v6079_v22, %v6031_v16  ;;  %v10720_v22 = vld [vmem:[%s18789_s4 + $0x130] sm:$0xf0] }
 0x7c2   : > { %v9966_v16 = vor.u32 %v10720_v22, %v9965_v20  ;;  %v9861_v22 = vld [vmem:[%s18789_s4 + $0x40] sm:$0xf] }
 0x7c3   : > { %v10800_v35 = vld [vmem:[#allocation3 + $0x30] sm:$0xff] }
 0x7c4   : > { %v6128_v47 = vpop.f32.mrf.mxu2  ;;  %6194 = vrot.lane.b32.xlu1 %v16833_v40, %s11548_s21  ;;  %6208 = vrot.lane.b32.xlu2 %v17158_v13, %s11548_s21  ;;  %v5983_v2 = vpop.f32.mrf.mxu1 }
 0x7c5   : > { %v6129_v45 = vadd.f32 %v6128_v47, %v6080_v27  ;;  %v6033_v33 = vadd.f32 %v6032_v51, %v5983_v2 }
 0x7c7   : > { %v17170_v3 = vpack.c.bf16 %v6129_v45, %v6129_v45 }
 0x7c8   : > { %v6081_v6 = vpop.f32.mrf.mxu0 }
 0x7c9   : > { %6164 = vst.msk [vmem:[#allocation3 + $0x38] sm:$0xf] %vm6149_vm11, %v17170_v3  ;;  %6210 = vrot.lane.b32.xlu0 %v17170_v3, %s11548_s21  ;;  %v6082_v34 = vadd.f32 %v6081_v6, %v6033_v33 }
 0x7cc   : > { %v6130_v18 = vpop.f32.mrf.mxu2  ;;  %6274 = vrot.lane.b32.xlu2 %v17170_v3, %s11547_s20 }
 0x7cd   : > { %v6131_v41 = vadd.f32 %v6130_v18, %v6082_v34 }
 0x7cf   : > { %v17178_v5 = vpack.c.bf16 %v6131_v41, %v6131_v41  ;;  %v10727_v41 = vld [vmem:[%s18789_s4 + $0x168] sm:$0xf0] }
 0x7d1   : > { %6165 = vst.msk [vmem:[#allocation3 + $0x3c] sm:$0xf] %vm6149_vm11, %v17178_v5  ;;  %6212 = vrot.lane.b32.xlu1 %v17178_v5, %s11548_s21  ;;  %6276 = vrot.lane.b32.xlu0 %v17178_v5, %s11547_s20 }
 0x7d4   : > { %6254 = vrot.lane.b32.xlu2 %v16820_v42, %s11547_s20 }
 0x7d8   : > { %v10801_v61 = vld [vmem:[#allocation3 + $0x38] sm:$0xff] }
 0x7d9   : > { %6252 = vrot.lane.b32.xlu1 %v16811_v39, %s11547_s20  ;;  %6256 = vrot.lane.b32.xlu0 %v16828_v48, %s11547_s20 }
 0x7da   : > { %7910 = vmatpush.bf16.msrb.mxu1 %v10801_v61  ;;  %v10807_v61 = vld [vmem:[#allocation3 + $0x68] sm:$0xff] }
 0x7dc   : > { %6196 = vrot.lane.b32.xlu2 %v16839_v0, %s11548_s21 }
 0x7de   : > { %7911 = vmatpush.bf16.msrb.mxu1 %v10800_v35  ;;  %v10815_v35 = vld [vmem:[#allocation3 + $0xa8] sm:$0xff] }
 0x7e1   : > { %6246 = vrot.lane.b32.xlu1 %v16749_v46, %s11547_s20  ;;  %6250 = vrot.lane.b32.xlu0 %v16802_v58, %s11547_s20 }
 0x7e2   : > { %7912 = vmatpush.bf16.msrb.mxu1 %v10799_v44 }
 0x7e4   : > { %6190 = vrot.lane.b32.xlu2 %v16820_v42, %s11548_s21 }
 0x7e6   : > { %7913 = vmatpush.bf16.msrb.mxu1 %v10798_v1 }
 0x7e9   : > { %6188 = vrot.lane.b32.xlu1 %v16811_v39, %s11548_s21  ;;  %6192 = vrot.lane.b32.xlu0 %v16828_v48, %s11548_s21 }
 0x7ea   : > { %7914 = vmatpush.bf16.msrb.mxu1 %v10797_v14  ;;  %v10806_v14 = vld [vmem:[#allocation3 + $0x60] sm:$0xff] }
 0x7ec   : > { %6248 = vrot.lane.b32.xlu2 %v16788_v23, %s11547_s20  ;;  %s10514_s20 = sshll.u32 %s20151_s14, 4 }
 0x7ee   : > { %7915 = vmatpush.bf16.msrb.mxu1 %v10796_v9  ;;  %v10814_v9 = vld [vmem:[#allocation3 + $0xa0] sm:$0xff] }
 0x7f1   : > { %6338 = vrot.lane.b32.xlu1 %v17170_v3, %s11546_s19  ;;  %6186 = vrot.lane.b32.xlu0 %v16802_v58, %s11548_s21 }
 0x7f2   : > { %7916 = vmatpush.bf16.msrb.mxu1 %v10795_v43 }
 0x7f4   : > { %6182 = vrot.lane.b32.xlu2 %v16749_v46, %s11548_s21 }
 0x7f6   : > { %7917 = vmatpush.bf16.msrb.mxu1 %v10794_v50  ;;  %v10813_v50 = vld [vmem:[#allocation3 + $0x98] sm:$0xff] }
 0x7f9   : > { %6336 = vrot.lane.b32.xlu1 %v17158_v13, %s11546_s19  ;;  %6184 = vrot.lane.b32.xlu0 %v16788_v23, %s11548_s21 }
 0x7fa   : > { %7918 = vmatmul.bf16.vlgmr.msrb.gmra.mxu1 %v9826_v52 }
 0x7fc   : > { %6330 = vrot.lane.b32.xlu2 %v17036_v36, %s11546_s19 }
 0x801   : > { %6326 = vrot.lane.b32.xlu1 %v16939_v25, %s11546_s19  ;;  %6334 = vrot.lane.b32.xlu0 %v17152_v8, %s11546_s19 }
 0x804   : > { %6328 = vrot.lane.b32.xlu2 %v16985_v53, %s11546_s19 }
 0x809   : > { %6398 = vrot.lane.b32.xlu1 %v17152_v8, %s11552_s24  ;;  %6332 = vrot.lane.b32.xlu0 %v17080_v12, %s11546_s19 }
 0x80a   : > { %7923 = vmatmul.bf16.gmra.mxu1 %v9854_v11  ;;  %v10021_v11 = vld [vmem:[%s18789_s4 + $0x188] sm:$0xf] }
 0x80c   : > { %6322 = vrot.lane.b32.xlu2 %v16833_v40, %s11546_s19 }
 0x811   : > { %6394 = vrot.lane.b32.xlu1 %v17036_v36, %s11552_s24  ;;  %6402 = vrot.lane.b32.xlu0 %v17170_v3, %s11552_s24 }
 0x814   : > { %6400 = vrot.lane.b32.xlu2 %v17158_v13, %s11552_s24 }
 0x816   : > { %v6273_v32 = vpop.permute.xlu2 %6272 }
 0x817   : > { %6307 = vst.msk [vmem:[#allocation3 + $0xb4] sm:$0xf] %vm6149_vm11, %v6273_v32 }
 0x819   : > { %6528 = vrot.lane.b32.xlu1 %v17158_v13, %s11549_s22  ;;  %6324 = vrot.lane.b32.xlu0 %v16839_v0, %s11546_s19 }
 0x81a   : > { %7928 = vmatmul.bf16.gmra.mxu1 %v9882_v31 }
 0x81c   : > { %6318 = vrot.lane.b32.xlu2 %v16820_v42, %s11546_s19 }
 0x81e   : > { %v6209_v29 = vpop.permute.xlu2 %6208 }
 0x81f   : > { %6243 = vst.msk [vmem:[#allocation3 + $0x74] sm:$0xf] %vm6149_vm11, %v6209_v29  ;;  %v9833_v29 = vld [vmem:[%s18789_s4 + $0x8] sm:$0xf] }
 0x821   : > { %6390 = vrot.lane.b32.xlu1 %v16939_v25, %s11552_s24  ;;  %6530 = vrot.lane.b32.xlu0 %v17170_v3, %s11549_s22 }
 0x824   : > { %6396 = vrot.lane.b32.xlu2 %v17080_v12, %s11552_s24 }
 0x826   : > { %v6271_v28 = vpop.permute.xlu1 %6270  ;;  %v6275_v4 = vpop.permute.xlu2 %6274 }
 0x827   : > { %6306 = vst.msk [vmem:[#allocation3 + $0xb0] sm:$0xf] %vm6149_vm11, %v6271_v28 }
 0x828   : > { %6308 = vst.msk [vmem:[#allocation3 + $0xb8] sm:$0xf] %vm6149_vm11, %v6275_v4  ;;  %v9834_v4 = vor.u32 %v10686_v15, %v9833_v29 }
 0x829   : > { %6310 = vrot.lane.b32.xlu1 %v16749_v46, %s11546_s19  ;;  %6320 = vrot.lane.b32.xlu0 %v16828_v48, %s11546_s19 }
 0x82a   : > { %7933 = vmatmul.bf16.gmra.mxu1 %v9910_v62 }
 0x82c   : > { %6314 = vrot.lane.b32.xlu2 %v16802_v58, %s11546_s19 }
 0x82e   : > { %v6207_v17 = vpop.permute.xlu1 %6206  ;;  %v6255_v30 = vpop.permute.xlu2 %6254  ;;  %v10816_v33 = vld [vmem:[#allocation3 + $0xb0] sm:$0xff] }
 0x82f   : > { %6242 = vst.msk [vmem:[#allocation3 + $0x70] sm:$0xf] %vm6149_vm11, %v6207_v17 }
 0x830   : > { %6298 = vst.msk [vmem:[#allocation3 + $0x90] sm:$0xf] %vm6149_vm11, %v6255_v30 }
 0x831   : > { %6388 = vrot.lane.b32.xlu1 %v16839_v0, %s11552_s24  ;;  %6526 = vrot.lane.b32.xlu0 %v17152_v8, %s11549_s22 }
 0x834   : > { %6392 = vrot.lane.b32.xlu2 %v16985_v53, %s11552_s24 }
 0x836   : > { %v6195_v10 = vpop.permute.xlu1 %6194  ;;  %v6197_v60 = vpop.permute.xlu2 %6196  ;;  %v10808_v6 = vld [vmem:[#allocation3 + $0x70] sm:$0xff] }
 0x837   : > { %6236 = vst.msk [vmem:[#allocation3 + $0x58] sm:$0xf] %vm6149_vm11, %v6195_v10  ;;  %v10049_v10 = vld [vmem:[%s18789_s4 + $0x1c0] sm:$0xf] }
 0x838   : > { %6237 = vst.msk [vmem:[#allocation3 + $0x5c] sm:$0xf] %vm6149_vm11, %v6197_v60  ;;  %v10741_v60 = vld [vmem:[%s18789_s4 + $0x1d8] sm:$0xf0] }
 0x839   : > { %6518 = vrot.lane.b32.xlu1 %v16939_v25, %s11549_s22  ;;  %6316 = vrot.lane.b32.xlu0 %v16811_v39, %s11546_s19 }
 0x83a   : > { %7938 = vmatmul.bf16.gmra.mxu1 %v9938_v63  ;;  %v9827_v63 = vld [vmem:[%s18789_s4 + $0x1c] sm:$0xf0] }
 0x83b   : > { %v6211_v54 = vpop.permute.xlu0 %6210 }
 0x83c   : > { %6244 = vst.msk [vmem:[#allocation3 + $0x78] sm:$0xf] %vm6149_vm11, %v6211_v54  ;;  %6522 = vrot.lane.b32.xlu2 %v17036_v36, %s11549_s22 }
 0x83e   : > { %v6191_v59 = vpop.permute.xlu2 %6190 }
 0x83f   : > { %6234 = vst.msk [vmem:[#allocation3 + $0x50] sm:$0xf] %vm6149_vm11, %v6191_v59  ;;  %v10805_v21 = vld [vmem:[#allocation3 + $0x58] sm:$0xff] }
 0x841   : > { %6384 = vrot.lane.b32.xlu1 %v16828_v48, %s11552_s24  ;;  %6466 = vrot.lane.b32.xlu0 %v17170_v3, %s11550_s23 }
 0x843   : > { %v6213_v55 = vpop.permute.xlu1 %6212  ;;  %v6277_v38 = vpop.permute.xlu0 %6276 }
 0x844   : > { %6245 = vst.msk [vmem:[#allocation3 + $0x7c] sm:$0xf] %vm6149_vm11, %v6213_v55  ;;  %6312 = vrot.lane.b32.xlu2 %v16788_v23, %s11546_s19  ;;  %v10050_v55 = vor.u32 %v10741_v60, %v10049_v10  ;;  %v6820_v10 = vld [vmem:[%s18790_s5 + $0x70] sm:$0xff] }
 0x845   : > { %6309 = vst.msk [vmem:[#allocation3 + $0xbc] sm:$0xf] %vm6149_vm11, %v6277_v38 }
 0x846   : > { %v6249_v27 = vpop.permute.xlu2 %6248 }
 0x847   : > { %6295 = vst.msk [vmem:[#allocation3 + $0x84] sm:$0xf] %vm6149_vm11, %v6249_v27 }
 0x849   : > { %6514 = vrot.lane.b32.xlu1 %v16833_v40, %s11549_s22  ;;  %6524 = vrot.lane.b32.xlu0 %v17080_v12, %s11549_s22 }
 0x84a   : > { %7943 = vmatmul.bf16.gmra.mxu1 %v9966_v16  ;;  %v10693_v16 = vld [vmem:[%s18789_s4 + $0x58] sm:$0xf0] }
 0x84b   : > { %v6253_v47 = vpop.permute.xlu1 %6252  ;;  %v6257_v45 = vpop.permute.xlu0 %6256  ;;  %v10809_v2 = vld [vmem:[#allocation3 + $0x78] sm:$0xff] }
 0x84c   : > { %6297 = vst.msk [vmem:[#allocation3 + $0x8c] sm:$0xf] %vm6149_vm11, %v6253_v47  ;;  %v10817_v3 = vld [vmem:[#allocation3 + $0xb8] sm:$0xff]  ;;  %7999 = vmatpush.bf16.msrb.mxu3 %v10809_v2  ;;  %6462 = vrot.lane.b32.xlu2 %v17152_v8, %s11550_s23  ;;  %v9993_v8 = vld [vmem:[%s18789_s4 + $0x150] sm:$0xf]  ;;  %v9862_v47 = vor.u32 %v10693_v16, %v9861_v22 }
 0x84d   : > { %6299 = vst.msk [vmem:[#allocation3 + $0x94] sm:$0xf] %vm6149_vm11, %v6257_v45  ;;  %8088 = vmatpush.bf16.msrb.mxu0 %v10817_v3  ;;  %v9994_v44 = vor.u32 %v10727_v41, %v9993_v8 }
 0x84e   : > { %v6183_v51 = vpop.permute.xlu2 %6182 }
 0x84f   : > { %6230 = vst.msk [vmem:[#allocation3 + $0x40] sm:$0xf] %vm6149_vm11, %v6183_v51  ;;  %v9855_v51 = vld [vmem:[%s18789_s4 + $0x54] sm:$0xf0] }
 0x850   : > { %8000 = vmatpush.bf16.msrb.mxu3 %v10808_v6  ;;  %v10077_v6 = vld [vmem:[%s18789_s4 + $0x1f8] sm:$0xf] }
 0x851   : > { %6380 = vrot.lane.b32.xlu1 %v16811_v39, %s11552_s24  ;;  %6386 = vrot.lane.b32.xlu0 %v16833_v40, %s11552_s24 }
 0x852   : > { %8089 = vmatpush.bf16.msrb.mxu0 %v10816_v33  ;;  %v10748_v33 = vld [vmem:[%s18789_s4 + $0x210] sm:$0xf0] }
 0x853   : > { %v6247_v34 = vpop.permute.xlu1 %6246  ;;  %v6251_v18 = vpop.permute.xlu0 %6250 }
 0x854   : > { %6294 = vst.msk [vmem:[#allocation3 + $0x80] sm:$0xf] %vm6149_vm11, %v6247_v34  ;;  %6520 = vrot.lane.b32.xlu2 %v16985_v53, %s11549_s22  ;;  %8001 = vmatpush.bf16.msrb.mxu3 %v10807_v61  ;;  %v9889_v61 = vld [vmem:[%s18789_s4 + $0x78] sm:$0xf] }
 0x855   : > { %6296 = vst.msk [vmem:[#allocation3 + $0x88] sm:$0xf] %vm6149_vm11, %v6251_v18  ;;  %v10078_v18 = vor.u32 %v10748_v33, %v10077_v6  ;;  %v6828_v6 = vld [vmem:[%s18790_s5 + $0xb0] sm:$0xff] }
 0x856   : > { %8090 = vmatpush.bf16.msrb.mxu0 %v10815_v35  ;;  %v6331_v1 = vpop.permute.xlu2 %6330  ;;  %v10700_v35 = vld [vmem:[%s18789_s4 + $0x90] sm:$0xf0] }
 0x857   : > { %6368 = vst.msk [vmem:[#allocation3 + $0xe8] sm:$0xf] %vm6149_vm11, %v6331_v1  ;;  %v9890_v1 = vor.u32 %v10700_v35, %v9889_v61  ;;  %v9973_v61 = vld [vmem:[%s18789_s4 + $0x120] sm:$0xf]  ;;  %v10721_v35 = vld [vmem:[%s18789_s4 + $0x138] sm:$0xf0] }
 0x858   : > { %8002 = vmatpush.bf16.msrb.mxu3 %v10806_v14 }
 0x859   : > { %6510 = vrot.lane.b32.xlu1 %v16820_v42, %s11549_s22  ;;  %6464 = vrot.lane.b32.xlu0 %v17158_v13, %s11550_s23  ;;  %v10812_v13 = vld [vmem:[#allocation3 + $0x90] sm:$0xff] }
 0x85a   : > { %7948 = vmatmul.bf16.gmra.mxu1 %v9994_v44  ;;  %8091 = vmatpush.bf16.msrb.mxu0 %v10814_v9 }
 0x85b   : > { %v6189_v43 = vpop.permute.xlu1 %6188  ;;  %v6193_v19 = vpop.permute.xlu0 %6192  ;;  %v10810_v24 = vld [vmem:[#allocation3 + $0x80] sm:$0xff] }
 0x85c   : > { %6233 = vst.msk [vmem:[#allocation3 + $0x4c] sm:$0xf] %vm6149_vm11, %v6189_v43  ;;  %6458 = vrot.lane.b32.xlu2 %v17036_v36, %s11550_s23  ;;  %8003 = vmatpush.bf16.msrb.mxu3 %v10805_v21  ;;  %v10734_v36 = vld [vmem:[%s18789_s4 + $0x1a0] sm:$0xf0]  ;;  %v10811_v57 = vld [vmem:[#allocation3 + $0x88] sm:$0xff] }
 0x85d   : > { %6235 = vst.msk [vmem:[#allocation3 + $0x54] sm:$0xf] %vm6149_vm11, %v6193_v19  ;;  %v10022_v31 = vor.u32 %v10734_v36, %v10021_v11  ;;  %v9883_v19 = vld [vmem:[%s18789_s4 + $0x8c] sm:$0xf0] }
 0x85e   : > { %8092 = vmatpush.bf16.msrb.mxu0 %v10813_v50  ;;  %v6329_v52 = vpop.permute.xlu2 %6328  ;;  %v10105_v21 = vld [vmem:[%s18789_s4 + $0x230] sm:$0xf] }
 0x85f   : > { %6367 = vst.msk [vmem:[#allocation3 + $0xe4] sm:$0xf] %vm6149_vm11, %v6329_v52 }
 0x861   : > { %6376 = vrot.lane.b32.xlu1 %v16788_v23, %s11552_s24  ;;  %6382 = vrot.lane.b32.xlu0 %v16820_v42, %s11552_s24 }
 0x862   : > { %8093 = vmatpush.bf16.msrb.mxu0 %v10812_v13 }
 0x863   : > { %v6339_v7 = vpop.permute.xlu1 %6338  ;;  %v6187_v26 = vpop.permute.xlu0 %6186 }
 0x864   : > { %6372 = vst.msk [vmem:[#allocation3 + $0xf8] sm:$0xf] %vm6149_vm11, %v6339_v7  ;;  %v10804_v37 = vld [vmem:[#allocation3 + $0x50] sm:$0xff]  ;;  %6516 = vrot.lane.b32.xlu2 %v16839_v0, %s11549_s22 }
 0x865   : > { %6232 = vst.msk [vmem:[#allocation3 + $0x48] sm:$0xf] %vm6149_vm11, %v6187_v26  ;;  %8004 = vmatpush.bf16.msrb.mxu3 %v10804_v37  ;;  %v9917_v7 = vld [vmem:[%s18789_s4 + $0xb0] sm:$0xf]  ;;  %v10707_v26 = vld [vmem:[%s18789_s4 + $0xc8] sm:$0xf0] }
 0x866   : > { %8094 = vmatpush.bf16.msrb.mxu0 %v10811_v57  ;;  %v6323_v32 = vpop.permute.xlu2 %6322  ;;  %v9918_v37 = vor.u32 %v10707_v26, %v9917_v7  ;;  %v6812_v57 = vld [vmem:[%s18790_s5 + $0x30] sm:$0xff]  ;;  %v10189_v7 = vld [vmem:[%s18789_s4 + $0x2d8] sm:$0xf] }
 0x867   : > { %6364 = vst.msk [vmem:[#allocation3 + $0xd8] sm:$0xf] %vm6149_vm11, %v6323_v32  ;;  %v6813_v32 = vld [vmem:[%s18790_s5 + $0x38] sm:$0xff]  ;;  %v10776_v26 = vld [vmem:[%s18789_s4 + $0x2f0] sm:$0xf0] }
 0x869   : > { %6404 = vrot.lane.b32.xlu1 %v17178_v5, %s11552_s24  ;;  %6460 = vrot.lane.b32.xlu0 %v17080_v12, %s11550_s23  ;;  %v10682_v12 = vld [vmem:[%s18789_s4 + $0x4] sm:$0xf] }
 0x86a   : > { %7953 = vmatmul.bf16.gmra.mxu1 %v10022_v31  ;;  %8095 = vmatpush.bf16.msrb.mxu0 %v10810_v24  ;;  %v9830_v59 = vor.u32 %v10682_v12, %v9827_v63  ;;  %v9911_v24 = vld [vmem:[%s18789_s4 + $0xc4] sm:$0xf0]  ;;  %v10714_v63 = vld [vmem:[%s18789_s4 + $0x100] sm:$0xf0] }
 0x86b   : > { %v6337_v62 = vpop.permute.xlu1 %6336  ;;  %v6185_v28 = vpop.permute.xlu0 %6184 }
 0x86c   : > { %6371 = vst.msk [vmem:[#allocation3 + $0xf4] sm:$0xf] %vm6149_vm11, %v6337_v62  ;;  %v10803_v17 = vld [vmem:[#allocation3 + $0x48] sm:$0xff]  ;;  %6340 = vrot.lane.b32.xlu2 %v17178_v5, %s11546_s19 }
 0x86d   : > { %6231 = vst.msk [vmem:[#allocation3 + $0x44] sm:$0xf] %vm6149_vm11, %v6185_v28  ;;  %8005 = vmatpush.bf16.msrb.mxu3 %v10803_v17  ;;  %8096 = vmatmul.bf16.vlgmr.msrb.gmra.mxu0 %v9834_v4  ;;  %v10133_v62 = vld [vmem:[%s18789_s4 + $0x268] sm:$0xf]  ;;  %v6821_v4 = vld [vmem:[%s18790_s5 + $0x78] sm:$0xff] }
 0x86e   : > { %v6401_v30 = vpop.permute.xlu2 %6400  ;;  %v6811_v28 = vld [vmem:[%s18790_s5 + $0x28] sm:$0xff] }
 0x86f   : > { %6435 = vst.msk [vmem:[#allocation3 + $0x134] sm:$0xf] %vm6149_vm11, %v6401_v30 }
 0x871   : > { %6532 = vrot.lane.b32.xlu1 %v17178_v5, %s11549_s22  ;;  %6378 = vrot.lane.b32.xlu0 %v16802_v58, %s11552_s24 }
 0x873   : > { %v6327_v49 = vpop.permute.xlu1 %6326  ;;  %v6335_v56 = vpop.permute.xlu0 %6334 }
 0x874   : > { %6366 = vst.msk [vmem:[#allocation3 + $0xe0] sm:$0xf] %vm6149_vm11, %v6327_v49  ;;  %v10802_v54 = vld [vmem:[#allocation3 + $0x40] sm:$0xff]  ;;  %6454 = vrot.lane.b32.xlu2 %v16939_v25, %s11550_s23 }
 0x875   : > { %6370 = vst.msk [vmem:[#allocation3 + $0xf0] sm:$0xf] %vm6149_vm11, %v6335_v56  ;;  %8006 = vmatpush.bf16.msrb.mxu3 %v10802_v54  ;;  %v9945_v56 = vld [vmem:[%s18789_s4 + $0xe8] sm:$0xf] }
 0x876   : > { %v6319_v20 = vpop.permute.xlu2 %6318 }
 0x877   : > { %v17404_v38 = vpop.f32.mrf.mxu1  ;;  %6362 = vst.msk [vmem:[#allocation3 + $0xd0] sm:$0xf] %vm6149_vm11, %v6319_v20  ;;  %v6829_v20 = vld [vmem:[%s18790_s5 + $0xb8] sm:$0xff] }
 0x878   : > { %8007 = vmatmul.bf16.vlgmr.msrb.gmra.mxu3 %v9830_v59  ;;  %v9946_v59 = vor.u32 %v10714_v63, %v9945_v56  ;;  %v6816_v63 = vld [vmem:[%s18790_s5 + $0x50] sm:$0xff] }
 0x879   : > { %6468 = vrot.lane.b32.xlu1 %v17178_v5, %s11550_s23  ;;  %6456 = vrot.lane.b32.xlu0 %v16985_v53, %s11550_s23  ;;  %v10689_v53 = vld [vmem:[%s18789_s4 + $0x3c] sm:$0xf] }
 0x87a   : > { %7958 = vmatmul.bf16.gmra.mxu1 %v10050_v55  ;;  %v9858_v34 = vor.u32 %v10689_v53, %v9855_v51  ;;  %v6837_v55 = vld [vmem:[%s18790_s5 + $0xf8] sm:$0xff]  ;;  %v9939_v53 = vld [vmem:[%s18789_s4 + $0xfc] sm:$0xf0]  ;;  %v6827_v51 = vld [vmem:[%s18790_s5 + $0xa8] sm:$0xff] }
 0x87b   : > { %v6399_v25 = vpop.permute.xlu1 %6398  ;;  %v6333_v27 = vpop.permute.xlu0 %6332 }
 0x87c   : > { %6434 = vst.msk [vmem:[#allocation3 + $0x130] sm:$0xf] %vm6149_vm11, %v6399_v25  ;;  %6512 = vrot.lane.b32.xlu2 %v16828_v48, %s11549_s22  ;;  %v6819_v25 = vld [vmem:[%s18790_s5 + $0x68] sm:$0xff]  ;;  %v10824_v56 = vld [vmem:[#allocation3 + $0xf0] sm:$0xff] }
 0x87d   : > { %6369 = vst.msk [vmem:[#allocation3 + $0xec] sm:$0xf] %vm6149_vm11, %v6333_v27  ;;  %8101 = vmatmul.bf16.gmra.mxu0 %v9862_v47  ;;  %v10710_v27 = vld [vmem:[%s18789_s4 + $0xe4] sm:$0xf] }
 0x87e   : > { %v6397_v2 = vpop.permute.xlu2 %6396  ;;  %v9942_v33 = vor.u32 %v10710_v27, %v9939_v53 }
 0x87f   : > { %v17421_v45 = vpop.f32.mrf.mxu1  ;;  %6433 = vst.msk [vmem:[#allocation3 + $0x12c] sm:$0xf] %vm6149_vm11, %v6397_v2 }
 0x881   : > { %6506 = vrot.lane.b32.xlu1 %v16802_v58, %s11549_s22  ;;  %6374 = vrot.lane.b32.xlu0 %v16749_v46, %s11552_s24 }
 0x883   : > { %v6395_v5 = vpop.permute.xlu1 %6394  ;;  %v6403_v3 = vpop.permute.xlu0 %6402 }
 0x884   : > { %6432 = vst.msk [vmem:[#allocation3 + $0x128] sm:$0xf] %vm6149_vm11, %v6395_v5  ;;  %6450 = vrot.lane.b32.xlu2 %v16833_v40, %s11550_s23  ;;  %v10161_v5 = vld [vmem:[%s18789_s4 + $0x2a0] sm:$0xf] }
 0x885   : > { %6436 = vst.msk [vmem:[#allocation3 + $0x138] sm:$0xf] %vm6149_vm11, %v6403_v3  ;;  %v10769_v3 = vld [vmem:[%s18789_s4 + $0x2b8] sm:$0xf0] }
 0x886   : > { %v6315_v41 = vpop.permute.xlu2 %6314 }
 0x887   : > { %v17444_v8 = vpop.f32.mrf.mxu1  ;;  %6360 = vst.msk [vmem:[#allocation3 + $0xc8] sm:$0xf] %vm6149_vm11, %v6315_v41 }
 0x888   : > { %8012 = vmatmul.bf16.gmra.mxu3 %v9858_v34  ;;  %v10162_v34 = vor.u32 %v10769_v3, %v10161_v5  ;;  %v10823_v5 = vld [vmem:[#allocation3 + $0xe8] sm:$0xff]  ;;  %v10029_v3 = vld [vmem:[%s18789_s4 + $0x190] sm:$0xf] }
 0x889   : > { %6448 = vrot.lane.b32.xlu1 %v16828_v48, %s11550_s23  ;;  %6452 = vrot.lane.b32.xlu0 %v16839_v0, %s11550_s23  ;;  %v10696_v48 = vld [vmem:[%s18789_s4 + $0x74] sm:$0xf] }
 0x88a   : > { %7963 = vmatmul.bf16.gmra.mxu1 %v10078_v18 }
 0x88b   : > { %v6529_v40 = vpop.permute.xlu1 %6528  ;;  %v6325_v44 = vpop.permute.xlu0 %6324 }
 0x88c   : > { %6563 = vst.msk [vmem:[#allocation3 + $0x1b4] sm:$0xf] %vm6149_vm11, %v6529_v40  ;;  %6508 = vrot.lane.b32.xlu2 %v16811_v39, %s11549_s22  ;;  %v6810_v40 = vld [vmem:[%s18790_s5 + $0x20] sm:$0xff] }
 0x88d   : > { %6365 = vst.msk [vmem:[#allocation3 + $0xdc] sm:$0xf] %vm6149_vm11, %v6325_v44  ;;  %8106 = vmatmul.bf16.gmra.mxu0 %v9890_v1 }
 0x88e   : > { %v6393_v9 = vpop.permute.xlu2 %6392 }
 0x88f   : > { %v17461_v14 = vpop.f32.mrf.mxu1  ;;  %6431 = vst.msk [vmem:[#allocation3 + $0x124] sm:$0xf] %vm6149_vm11, %v6393_v9  ;;  %v9974_v9 = vor.u32 %v10721_v35, %v9973_v61  ;;  %v10822_v61 = vld [vmem:[#allocation3 + $0xe0] sm:$0xff] }
 0x890   : > { %v6814_v35 = vld [vmem:[%s18790_s5 + $0x40] sm:$0xff] }
 0x891   : > { %6442 = vrot.lane.b32.xlu1 %v16802_v58, %s11550_s23  ;;  %6446 = vrot.lane.b32.xlu0 %v16820_v42, %s11550_s23  ;;  %v10755_v58 = vld [vmem:[%s18789_s4 + $0x248] sm:$0xf0]  ;;  %v9886_v42 = vor.u32 %v10696_v48, %v9883_v19  ;;  %v6817_v48 = vld [vmem:[%s18790_s5 + $0x58] sm:$0xff] }
 0x892   : > { %v10106_v50 = vor.u32 %v10755_v58, %v10105_v21  ;;  %v6836_v21 = vld [vmem:[%s18790_s5 + $0xf0] sm:$0xff]  ;;  %v10717_v58 = vld [vmem:[%s18789_s4 + $0x11c] sm:$0xf] }
 0x893   : > { %v6391_v0 = vpop.permute.xlu1 %6390  ;;  %v6531_v43 = vpop.permute.xlu0 %6530 }
 0x894   : > { %6430 = vst.msk [vmem:[#allocation3 + $0x120] sm:$0xf] %vm6149_vm11, %v6391_v0  ;;  %6502 = vrot.lane.b32.xlu2 %v16749_v46, %s11549_s22  ;;  %v6818_v0 = vld [vmem:[%s18790_s5 + $0x60] sm:$0xff] }
 0x895   : > { %6564 = vst.msk [vmem:[#allocation3 + $0x1b8] sm:$0xf] %vm6149_vm11, %v6531_v43 }
 0x896   : > { %v6523_v13 = vpop.permute.xlu2 %6522 }
 0x897   : > { %v17484_v52 = vpop.f32.mrf.mxu1  ;;  %6560 = vst.msk [vmem:[#allocation3 + $0x1a8] sm:$0xf] %vm6149_vm11, %v6523_v13  ;;  %v9967_v13 = vld [vmem:[%s18789_s4 + $0x134] sm:$0xf0] }
 0x898   : > { %8017 = vmatmul.bf16.gmra.mxu3 %v9886_v42 }
 0x899   : > { %6440 = vrot.lane.b32.xlu1 %v16788_v23, %s11550_s23  ;;  %6504 = vrot.lane.b32.xlu0 %v16788_v23, %s11549_s22 }
 0x89a   : > { %7968 = vmatmul.bf16.gmra.mxu1 %v10106_v50 }
 0x89b   : > { %v6311_v11 = vpop.permute.xlu1 %6310  ;;  %v6321_v36 = vpop.permute.xlu0 %6320 }
 0x89c   : > { %6358 = vst.msk [vmem:[#allocation3 + $0xc0] sm:$0xf] %vm6149_vm11, %v6311_v11  ;;  %6444 = vrot.lane.b32.xlu2 %v16811_v39, %s11550_s23  ;;  %v10703_v39 = vld [vmem:[%s18789_s4 + $0xac] sm:$0xf]  ;;  %v6808_v11 = vld [vmem:[%s18790_s5 + $0x10] sm:$0xff] }
 0x89d   : > { %6363 = vst.msk [vmem:[#allocation3 + $0xd4] sm:$0xf] %vm6149_vm11, %v6321_v36  ;;  %8111 = vmatmul.bf16.gmra.mxu0 %v9918_v37  ;;  %v9914_v17 = vor.u32 %v10703_v39, %v9911_v24  ;;  %v6809_v36 = vld [vmem:[%s18790_s5 + $0x18] sm:$0xff]  ;;  %v9970_v37 = vor.u32 %v10717_v58, %v9967_v13  ;;  %v10245_v13 = vld [vmem:[%s18789_s4 + $0x348] sm:$0xf] }
 0x89e   : > { %v6313_v23 = vpop.permute.xlu2 %6312  ;;  %v10001_v39 = vld [vmem:[%s18789_s4 + $0x158] sm:$0xf] }
 0x89f   : > { %v17504_v31 = vpop.f32.mrf.mxu1  ;;  %6359 = vst.msk [vmem:[#allocation3 + $0xc4] sm:$0xf] %vm6149_vm11, %v6313_v23 }
 0x8a1   : > { %6870 = vperm.xlu1 %10890, %v6812_v57   ;;  %6438 = vrot.lane.b32.xlu0 %v16749_v46, %s11550_s23  ;;  %v10762_v46 = vld [vmem:[%s18789_s4 + $0x280] sm:$0xf0]  ;;  %v10190_v57 = vor.u32 %v10776_v26, %v10189_v7  ;;  %s359_s23 = scalar_lea.vmem %s18795_s10, %s10514_s20 }
 0x8a2   : > { %v10134_v30 = vor.u32 %v10762_v46, %v10133_v62  ;;  %v10790_v7 = vld [vmem:[%s18789_s4 + $0x360] sm:$0xf0] }
 0x8a3   : > { %v6389_v29 = vpop.permute.xlu1 %6388  ;;  %v6527_v15 = vpop.permute.xlu0 %6526  ;;  %v6822_v26 = vld [vmem:[%s18790_s5 + $0x80] sm:$0xff] }
 0x8a4   : > { %6429 = vst.msk [vmem:[#allocation3 + $0x11c] sm:$0xf] %vm6149_vm11, %v6389_v29  ;;  %6875 = vperm.xlu2 %10891, %v6813_v32   ;;  %v10728_v29 = vld [vmem:[%s18789_s4 + $0x170] sm:$0xf0] }
 0x8a5   : > { %6562 = vst.msk [vmem:[#allocation3 + $0x1b0] sm:$0xf] %vm6149_vm11, %v6527_v15  ;;  %v6826_v15 = vld [vmem:[%s18790_s5 + $0xa0] sm:$0xff]  ;;  %v10002_v46 = vor.u32 %v10728_v29, %v10001_v39  ;;  %v10057_v29 = vld [vmem:[%s18789_s4 + $0x1c8] sm:$0xf] }
 0x8a6   : > { %v6463_v49 = vpop.permute.xlu2 %6462 }
 0x8a7   : > { %v17532_v12 = vpop.f32.mrf.mxu1  ;;  %6498 = vst.msk [vmem:[#allocation3 + $0x170] sm:$0xf] %vm6149_vm11, %v6463_v49 }
 0x8a8   : > { %8022 = vmatmul.bf16.gmra.mxu3 %v9914_v17 }
 0x8a9   : > { %6865 = vperm.xlu1 %10890, %v6811_v28   ;;  %6915 = vperm.xlu0 %10889, %v6821_v4   ;;  %v6834_v28 = vld [vmem:[%s18790_s5 + $0xe0] sm:$0xff]  ;;  %v6835_v4 = vld [vmem:[%s18790_s5 + $0xe8] sm:$0xff] }
 0x8aa   : > { %7973 = vmatmul.bf16.gmra.mxu1 %v10134_v30 }
 0x8ab   : > { %v6519_v60 = vpop.permute.xlu1 %6518  ;;  %v6317_v54 = vpop.permute.xlu0 %6316 }
 0x8ac   : > { %6558 = vst.msk [vmem:[#allocation3 + $0x1a0] sm:$0xf] %vm6149_vm11, %v6519_v60  ;;  %6910 = vperm.xlu2 %10891, %v6820_v10  }
 0x8ad   : > { %6361 = vst.msk [vmem:[#allocation3 + $0xcc] sm:$0xf] %vm6149_vm11, %v6317_v54  ;;  %8116 = vmatmul.bf16.gmra.mxu0 %v9946_v59  ;;  %v10724_v54 = vld [vmem:[%s18789_s4 + $0x154] sm:$0xf]  ;;  %v9995_v59 = vld [vmem:[%s18789_s4 + $0x16c] sm:$0xf0] }
 0x8ae   : > { %v6521_v16 = vpop.permute.xlu2 %6520  ;;  %v9998_v27 = vor.u32 %v10724_v54, %v9995_v59  ;;  %v10831_v54 = vld [vmem:[#allocation3 + $0x128] sm:$0xff]  ;;  %v6832_v59 = vld [vmem:[%s18790_s5 + $0xd0] sm:$0xff] }
 0x8af   : > { %v17552_v22 = vpop.f32.mrf.mxu1  ;;  %6559 = vst.msk [vmem:[#allocation3 + $0x1a4] sm:$0xf] %vm6149_vm11, %v6521_v16  ;;  %v6824_v16 = vld [vmem:[%s18790_s5 + $0x90] sm:$0xff] }
 0x8b1   : > { %6995 = vperm.xlu1 %10890, %v6837_v55   ;;  %6955 = vperm.xlu0 %10889, %v6829_v20   ;;  %v10217_v55 = vld [vmem:[%s18789_s4 + $0x310] sm:$0xf]  ;;  %v10783_v20 = vld [vmem:[%s18789_s4 + $0x328] sm:$0xf0] }
 0x8b3   : > { %v6385_v47 = vpop.permute.xlu1 %6384  ;;  %v6467_v2 = vpop.permute.xlu0 %6466 }
 0x8b4   : > { %6427 = vst.msk [vmem:[#allocation3 + $0x114] sm:$0xf] %vm6149_vm11, %v6385_v47  ;;  %6905 = vperm.xlu2 %10891, %v6819_v25   ;;  %v6825_v25 = vld [vmem:[%s18790_s5 + $0x98] sm:$0xff]  ;;  %v10819_v39 = vld [vmem:[#allocation3 + $0xc8] sm:$0xff] }
 0x8b5   : > { %6500 = vst.msk [vmem:[#allocation3 + $0x178] sm:$0xf] %vm6149_vm11, %v6467_v2  ;;  %v10218_v2 = vor.u32 %v10783_v20, %v10217_v55 }
 0x8b6   : > { %v6459_v41 = vpop.permute.xlu2 %6458 }
 0x8b7   : > { %v17578_v18 = vpop.f32.mrf.mxu1  ;;  %6496 = vst.msk [vmem:[#allocation3 + $0x168] sm:$0xf] %vm6149_vm11, %v6459_v41 }
 0x8b8   : > { %8027 = vmatmul.bf16.gmra.mxu3 %v9942_v33 }
 0x8b9   : > { %6945 = vperm.xlu1 %10890, %v6827_v51   ;;  %6950 = vperm.xlu0 %10889, %v6828_v6   ;;  %v10735_v51 = vld [vmem:[%s18789_s4 + $0x1a8] sm:$0xf0] }
 0x8ba   : > { %7978 = vmatmul.bf16.gmra.mxu1 %v10162_v34  ;;  %v6807_v6 = vld [vmem:[%s18790_s5 + $0x8] sm:$0xff]  ;;  %v10030_v41 = vor.u32 %v10735_v51, %v10029_v3  ;;  %v10738_v3 = vld [vmem:[%s18789_s4 + $0x1c4] sm:$0xf]  ;;  %v10051_v51 = vld [vmem:[%s18789_s4 + $0x1dc] sm:$0xf0] }
 0x8bb   : > { %v6515_v44 = vpop.permute.xlu1 %6514  ;;  %v6525_v1 = vpop.permute.xlu0 %6524 }
 0x8bc   : > { %6556 = vst.msk [vmem:[#allocation3 + $0x198] sm:$0xf] %vm6149_vm11, %v6515_v44  ;;  %6860 = vperm.xlu2 %10891, %v6810_v40   ;;  %v6815_v40 = vld [vmem:[%s18790_s5 + $0x48] sm:$0xff] }
 0x8bd   : > { %6561 = vst.msk [vmem:[#allocation3 + $0x1ac] sm:$0xf] %vm6149_vm11, %v6525_v1  ;;  %8121 = vmatmul.bf16.gmra.mxu0 %v9974_v9  ;;  %v10821_v9 = vld [vmem:[#allocation3 + $0xd8] sm:$0xff] }
 0x8be   : > { %v6517_v19 = vpop.permute.xlu2 %6516 }
 0x8bf   : > { %v17598_v43 = vpop.f32.mrf.mxu1  ;;  %6557 = vst.msk [vmem:[#allocation3 + $0x19c] sm:$0xf] %vm6149_vm11, %v6517_v19 }
 0x8c1   : > { %6895 = vperm.xlu1 %10890, %v6817_v48   ;;  %6900 = vperm.xlu0 %10889, %v6818_v0   ;;  %v6833_v48 = vld [vmem:[%s18790_s5 + $0xd8] sm:$0xff]  ;;  %v10820_v0 = vld [vmem:[#allocation3 + $0xd0] sm:$0xff] }
 0x8c3   : > { %v6381_v42 = vpop.permute.xlu1 %6380  ;;  %v6387_v50 = vpop.permute.xlu0 %6386 }
 0x8c4   : > { %6425 = vst.msk [vmem:[#allocation3 + $0x10c] sm:$0xf] %vm6149_vm11, %v6381_v42  ;;  %6990 = vperm.xlu2 %10891, %v6836_v21   ;;  %v10731_v42 = vld [vmem:[%s18789_s4 + $0x18c] sm:$0xf] }
 0x8c5   : > { %6428 = vst.msk [vmem:[#allocation3 + $0x118] sm:$0xf] %vm6149_vm11, %v6387_v50  ;;  %v10023_v50 = vld [vmem:[%s18789_s4 + $0x1a4] sm:$0xf0] }
 0x8c6   : > { %v6341_v32 = vpop.permute.xlu2 %6340 }
 0x8c7   : > { %v17624_v23 = vpop.f32.mrf.mxu1  ;;  %6373 = vst.msk [vmem:[#allocation3 + $0xfc] sm:$0xf] %vm6149_vm11, %v6341_v32 }
 0x8c8   : > { %8032 = vmatmul.bf16.gmra.mxu3 %v9970_v37 }
 0x8c9   : > { %6850 = vperm.xlu1 %10890, %v6808_v11   ;;  %6855 = vperm.xlu0 %10889, %v6809_v36   ;;  %v6806_v11 = vld [vmem:[%s18790_s5] sm:$0xff]  ;;  %v10026_v36 = vor.u32 %v10731_v42, %v10023_v50 }
 0x8ca   : > { %7983 = vmatmul.bf16.gmra.mxu1 %v10190_v57  ;;  %v10246_v57 = vor.u32 %v10790_v7, %v10245_v13 }
 0x8cb   : > { %v6511_v24 = vpop.permute.xlu1 %6510  ;;  %v6465_v62 = vpop.permute.xlu0 %6464 }
 0x8cc   : > { %6554 = vst.msk [vmem:[#allocation3 + $0x190] sm:$0xf] %vm6149_vm11, %v6511_v24  ;;  %6940 = vperm.xlu2 %10891, %v6826_v15   ;;  %v10742_v15 = vld [vmem:[%s18789_s4 + $0x1e0] sm:$0xf0]  ;;  %v10832_v24 = vld [vmem:[#allocation3 + $0x130] sm:$0xff] }
 0x8cd   : > { %6499 = vst.msk [vmem:[#allocation3 + $0x174] sm:$0xf] %vm6149_vm11, %v6465_v62  ;;  %8126 = vmatmul.bf16.gmra.mxu0 %v10002_v46  ;;  %v10683_v62 = vld [vmem:[%s18789_s4 + $0xc] sm:$0xf]  ;;  %v9835_v46 = vld [vmem:[%s18789_s4 + $0x24] sm:$0xf0] }
 0x8ce   : > { %v6455_v30 = vpop.permute.xlu2 %6454  ;;  %v10825_v49 = vld [vmem:[#allocation3 + $0xf8] sm:$0xff] }
 0x8cf   : > { %v17644_v17 = vpop.f32.mrf.mxu1  ;;  %6494 = vst.msk [vmem:[#allocation3 + $0x160] sm:$0xf] %vm6149_vm11, %v6455_v30  ;;  %8177 = vmatpush.bf16.msrb.mxu2 %v10825_v49 }
 0x8d1   : > { %6980 = vperm.xlu1 %10890, %v6834_v28   ;;  %6985 = vperm.xlu0 %10889, %v6835_v4   ;;  %v6823_v28 = vld [vmem:[%s18790_s5 + $0x88] sm:$0xff] }
 0x8d3   : > { %v6377_v10 = vpop.permute.xlu1 %6376  ;;  %v6383_v60 = vpop.permute.xlu0 %6382  ;;  %8178 = vmatpush.bf16.msrb.mxu2 %v10824_v56  ;;  %v10058_v56 = vor.u32 %v10742_v15, %v10057_v29 }
 0x8d4   : > { %6423 = vst.msk [vmem:[#allocation3 + $0x104] sm:$0xf] %vm6149_vm11, %v6377_v10  ;;  %6890 = vperm.xlu2 %10891, %v6816_v63   ;;  %v10818_v63 = vld [vmem:[#allocation3 + $0xc0] sm:$0xff] }
 0x8d5   : > { %6426 = vst.msk [vmem:[#allocation3 + $0x110] sm:$0xf] %vm6149_vm11, %v6383_v60  ;;  %v9838_v60 = vor.u32 %v10683_v62, %v9835_v46  ;;  %v9841_v62 = vld [vmem:[%s18789_s4 + $0x10] sm:$0xf]  ;;  %v10687_v46 = vld [vmem:[%s18789_s4 + $0x28] sm:$0xf0] }
 0x8d6   : > { %v6513_v53 = vpop.permute.xlu2 %6512 }
 0x8d7   : > { %v17670_v47 = vpop.f32.mrf.mxu1  ;;  %6555 = vst.msk [vmem:[#allocation3 + $0x194] sm:$0xf] %vm6149_vm11, %v6513_v53  ;;  %8179 = vmatpush.bf16.msrb.mxu2 %v10823_v5 }
 0x8d8   : > { %8037 = vmatmul.bf16.gmra.mxu3 %v9998_v27  ;;  %v6831_v27 = vld [vmem:[%s18790_s5 + $0xc8] sm:$0xff] }
 0x8d9   : > { %6930 = vperm.xlu1 %10890, %v6824_v16   ;;  %6935 = vperm.xlu0 %10889, %v6825_v25   ;;  %v10848_v16 = vld [vmem:[#allocation3 + $0x1b0] sm:$0xff]  ;;  %v10830_v25 = vld [vmem:[#allocation3 + $0x120] sm:$0xff] }
 0x8da   : > { %7988 = vmatmul.bf16.gmra.mxu1 %v10218_v2 }
 0x8db   : > { %v6405_v33 = vpop.permute.xlu1 %6404  ;;  %v6461_v34 = vpop.permute.xlu0 %6460  ;;  %8180 = vmatpush.bf16.msrb.mxu2 %v10822_v61  ;;  %v10054_v61 = vor.u32 %v10738_v3, %v10051_v51  ;;  %v10697_v3 = vld [vmem:[%s18789_s4 + $0x7c] sm:$0xf]  ;;  %v9891_v51 = vld [vmem:[%s18789_s4 + $0x94] sm:$0xf0] }
 0x8dc   : > { %6437 = vst.msk [vmem:[#allocation3 + $0x13c] sm:$0xf] %vm6149_vm11, %v6405_v33  ;;  %6845 = vperm.xlu2 %10891, %v6807_v6   ;;  %v10847_v33 = vld [vmem:[#allocation3 + $0x1a8] sm:$0xff] }
 0x8dd   : > { %6497 = vst.msk [vmem:[#allocation3 + $0x16c] sm:$0xf] %vm6149_vm11, %v6461_v34  ;;  %8131 = vmatmul.bf16.gmra.mxu0 %v10030_v41  ;;  %v10829_v34 = vld [vmem:[#allocation3 + $0x118] sm:$0xff]  ;;  %v6830_v41 = vld [vmem:[%s18790_s5 + $0xc0] sm:$0xff] }
 0x8de   : > { %v6451_v1 = vpop.permute.xlu2 %6450  ;;  %v10844_v29 = vld [vmem:[#allocation3 + $0x190] sm:$0xff] }
 0x8df   : > { %v17690_v44 = vpop.f32.mrf.mxu1  ;;  %6492 = vst.msk [vmem:[#allocation3 + $0x158] sm:$0xf] %vm6149_vm11, %v6451_v1  ;;  %8181 = vmatpush.bf16.msrb.mxu2 %v10821_v9  ;;  %v10846_v9 = vld [vmem:[#allocation3 + $0x1a0] sm:$0xff] }
 0x8e1   : > { %6880 = vperm.xlu1 %10890, %v6814_v35   ;;  %6885 = vperm.xlu0 %10889, %v6815_v40   ;;  %v10840_v40 = vld [vmem:[#allocation3 + $0x170] sm:$0xff] }
 0x8e3   : > { %v6533_v19 = vpop.permute.xlu1 %6532  ;;  %v6379_v21 = vpop.permute.xlu0 %6378  ;;  %v10833_v58 = vld [vmem:[#allocation3 + $0x138] sm:$0xff]  ;;  %8182 = vmatpush.bf16.msrb.mxu2 %v10820_v0 }
 0x8e4   : > { %6565 = vst.msk [vmem:[#allocation3 + $0x1bc] sm:$0xf] %vm6149_vm11, %v6533_v19  ;;  %8266 = vmatpush.bf16.msra.mxu1 %v10833_v58  ;;  %6975 = vperm.xlu2 %10891, %v6833_v48   ;;  %v10085_v48 = vld [vmem:[%s18789_s4 + $0x200] sm:$0xf]  ;;  %v10749_v0 = vld [vmem:[%s18789_s4 + $0x218] sm:$0xf0] }
 0x8e5   : > { %6424 = vst.msk [vmem:[#allocation3 + $0x108] sm:$0xf] %vm6149_vm11, %v6379_v21  ;;  %v10828_v19 = vld [vmem:[#allocation3 + $0x110] sm:$0xff]  ;;  %v10690_v21 = vld [vmem:[%s18789_s4 + $0x44] sm:$0xf]  ;;  %v10839_v13 = vld [vmem:[#allocation3 + $0x168] sm:$0xff]  ;;  %v10086_v7 = vor.u32 %v10749_v0, %v10085_v48 }
 0x8e6   : > { %v6509_v32 = vpop.permute.xlu2 %6508  ;;  %v9863_v58 = vld [vmem:[%s18789_s4 + $0x5c] sm:$0xf0] }
 0x8e7   : > { %v17716_v37 = vpop.f32.mrf.mxu1  ;;  %6553 = vst.msk [vmem:[#allocation3 + $0x18c] sm:$0xf] %vm6149_vm11, %v6509_v32  ;;  %8183 = vmatpush.bf16.msrb.mxu2 %v10819_v39 }
 0x8e8   : > { %8042 = vmatmul.bf16.gmra.mxu3 %v10026_v36  ;;  %8267 = vmatpush.bf16.msra.mxu1 %v10832_v24 }
 0x8e9   : > { %6920 = vperm.xlu1 %10890, %v6822_v26   ;;  %6840 = vperm.xlu0 %10889, %v6806_v11   ;;  %v10845_v11 = vld [vmem:[#allocation3 + $0x198] sm:$0xff] }
 0x8ea   : > { %7993 = vmatmul.bf16.gmra.mxu1 %v10246_v57  ;;  %v17735_v10 = vpop.f32.mrf.mxu0  ;;  %v9866_v57 = vor.u32 %v10690_v21, %v9863_v58  ;;  %v10694_v21 = vld [vmem:[%s18789_s4 + $0x60] sm:$0xf0] }
 0x8eb   : > { %v6469_v4 = vpop.permute.xlu1 %6468  ;;  %v6457_v30 = vpop.permute.xlu0 %6456  ;;  %v10849_v49 = vld [vmem:[#allocation3 + $0x1b8] sm:$0xff]  ;;  %8184 = vmatpush.bf16.msrb.mxu2 %v10818_v63 }
 0x8ec   : > { %6501 = vst.msk [vmem:[#allocation3 + $0x17c] sm:$0xf] %vm6149_vm11, %v6469_v4  ;;  %8444 = vmatpush.bf16.msra.mxu0 %v10849_v49  ;;  %6925 = vperm.xlu2 %10891, %v6823_v28   ;;  %v10827_v32 = vld [vmem:[#allocation3 + $0x108] sm:$0xff]  ;;  %v9842_v49 = vor.u32 %v10687_v46, %v9841_v62  ;;  %v10079_v63 = vld [vmem:[%s18789_s4 + $0x214] sm:$0xf0] }
 0x8ed   : > { %6495 = vst.msk [vmem:[#allocation3 + $0x164] sm:$0xf] %vm6149_vm11, %v6457_v30  ;;  %8136 = vmatmul.bf16.gmra.mxu0 %v10058_v56  ;;  %8268 = vmatpush.bf16.msra.mxu1 %v10831_v54  ;;  %v10745_v56 = vld [vmem:[%s18789_s4 + $0x1fc] sm:$0xf]  ;;  %v10141_v62 = vld [vmem:[%s18789_s4 + $0x270] sm:$0xf] }
 0x8ee   : > { %v6503_v20 = vpop.permute.xlu2 %6502  ;;  %8185 = vmatmul.bf16.vlgmr.msrb.gmra.mxu2 %v9838_v60  ;;  %v10763_v46 = vld [vmem:[%s18789_s4 + $0x288] sm:$0xf0] }
 0x8ef   : > { %v17741_v55 = vpop.f32.mrf.mxu1  ;;  %6550 = vst.msk [vmem:[#allocation3 + $0x180] sm:$0xf] %vm6149_vm11, %v6503_v20 }
 0x8f0   : > { %8445 = vmatpush.bf16.msra.mxu0 %v10848_v16  ;;  %v10082_v16 = vor.u32 %v10745_v56, %v10079_v63 }
 0x8f1   : > { %6970 = vperm.xlu0 %10889, %v6832_v59   ;;  %8269 = vmatpush.bf16.msra.mxu1 %v10830_v25 }
 0x8f2   : > { %v17754_v6 = vpop.f32.mrf.mxu0 }
 0x8f3   : > { %v6507_v2 = vpop.permute.xlu1 %6506  ;;  %v6375_v53 = vpop.permute.xlu0 %6374  ;;  %v10841_v5 = vld [vmem:[#allocation3 + $0x178] sm:$0xff] }
 0x8f4   : > { %6552 = vst.msk [vmem:[#allocation3 + $0x188] sm:$0xf] %vm6149_vm11, %v6507_v2  ;;  %8355 = vmatpush.bf16.msra.mxu2 %v10841_v5  ;;  %10866 = vmatpush.bf16.msra.mxu3 %v10841_v5  ;;  %v10838_v24 = vld [vmem:[#allocation3 + $0x160] sm:$0xff]  ;;  %v10113_v2 = vld [vmem:[%s18789_s4 + $0x238] sm:$0xf] }
 0x8f5   : > { %6422 = vst.msk [vmem:[#allocation3 + $0x100] sm:$0xf] %vm6149_vm11, %v6375_v53  ;;  %6965 = vperm.xlu2 %10891, %v6831_v27   ;;  %8446 = vmatpush.bf16.msra.mxu0 %v10847_v33  ;;  %v10756_v53 = vld [vmem:[%s18789_s4 + $0x250] sm:$0xf0] }
 0x8f6   : > { %v6445_v1 = vpop.permute.xlu2 %6444  ;;  %8270 = vmatpush.bf16.msra.mxu1 %v10829_v34 }
 0x8f7   : > { %v17760_v35 = vpop.f32.mrf.mxu1  ;;  %6489 = vst.msk [vmem:[#allocation3 + $0x14c] sm:$0xf] %vm6149_vm11, %v6445_v1  ;;  %v9894_v1 = vor.u32 %v10697_v3, %v9891_v51 }
 0x8f8   : > { %8356 = vmatpush.bf16.msra.mxu2 %v10840_v40  ;;  %8047 = vmatmul.bf16.gmra.mxu3 %v10054_v61 }
 0x8f9   : > { %6960 = vperm.xlu0 %10889, %v6830_v41   ;;  %8447 = vmatpush.bf16.msra.mxu0 %v10846_v9  ;;  %v10114_v41 = vor.u32 %v10756_v53, %v10113_v2 }
 0x8fa   : > { %10867 = vmatpush.bf16.msra.mxu3 %v10840_v40  ;;  %8271 = vmatpush.bf16.msra.mxu1 %v10828_v19  ;;  %v17776_v26 = vpop.f32.mrf.mxu0  ;;  %v9869_v19 = vld [vmem:[%s18789_s4 + $0x48] sm:$0xf] }
 0x8fb   : > { %v6449_v42 = vpop.permute.xlu1 %6448  ;;  %v6453_v50 = vpop.permute.xlu0 %6452  ;;  %v10843_v59 = vld [vmem:[#allocation3 + $0x188] sm:$0xff] }
 0x8fc   : > { %6491 = vst.msk [vmem:[#allocation3 + $0x154] sm:$0xf] %vm6149_vm11, %v6449_v42  ;;  %v17779_v36 = vpop.f32.mrf.mxu3  ;;  %8357 = vmatpush.bf16.msra.mxu2 %v10839_v13  ;;  %v10826_v28 = vld [vmem:[#allocation3 + $0x100] sm:$0xff] }
 0x8fd   : > { %6493 = vst.msk [vmem:[#allocation3 + $0x15c] sm:$0xf] %vm6149_vm11, %v6453_v50  ;;  %8448 = vmatpush.bf16.msra.mxu0 %v10845_v11  ;;  %v9870_v50 = vor.u32 %v10694_v21, %v9869_v19 }
 0x8fe   : > { %10868 = vmatpush.bf16.msra.mxu3 %v10839_v13  ;;  %8141 = vmatmul.bf16.gmra.mxu0 %v10086_v7  ;;  %v17783_v15 = vpop.permute.xlu2 %6875  ;;  %v10752_v13 = vld [vmem:[%s18789_s4 + $0x234] sm:$0xf]  ;;  %v10107_v7 = vld [vmem:[%s18789_s4 + $0x24c] sm:$0xf0] }
 0x8ff   : > { %v17781_v39 = vpop.f32.mrf.mxu1  ;;  %8272 = vmatpush.bf16.msra.mxu1 %v10827_v32  ;;  %8190 = vmatmul.bf16.gmra.mxu2 %v9866_v57 }
 0x900   : > { %8358 = vmatpush.bf16.msra.mxu2 %v10838_v24 }
 0x901   : > { %8449 = vmatpush.bf16.msra.mxu0 %v10844_v29  ;;  %v10110_v29 = vor.u32 %v10752_v13, %v10107_v7  ;;  %v10169_v7 = vld [vmem:[%s18789_s4 + $0x2a8] sm:$0xf] }
 0x902   : > { %10869 = vmatpush.bf16.msra.mxu3 %v10838_v24  ;;  %v17798_v60 = vpop.f32.mrf.mxu0 }
 0x903   : > { %v6443_v4 = vpop.permute.xlu1 %6442  ;;  %v6447_v30 = vpop.permute.xlu0 %6446  ;;  %8273 = vmatpush.bf16.msra.mxu1 %v10826_v28 }
 0x904   : > { %6488 = vst.msk [vmem:[#allocation3 + $0x148] sm:$0xf] %vm6149_vm11, %v6443_v4  ;;  %v10837_v54 = vld [vmem:[#allocation3 + $0x158] sm:$0xff]  ;;  %v17801_v20 = vpop.f32.mrf.mxu3  ;;  %v10704_v4 = vld [vmem:[%s18789_s4 + $0xb4] sm:$0xf] }
 0x905   : > { %6490 = vst.msk [vmem:[#allocation3 + $0x150] sm:$0xf] %vm6149_vm11, %v6447_v30  ;;  %8359 = vmatpush.bf16.msra.mxu2 %v10837_v54  ;;  %8450 = vmatpush.bf16.msra.mxu0 %v10843_v59  ;;  %v9919_v30 = vld [vmem:[%s18789_s4 + $0xcc] sm:$0xf0] }
 0x906   : > { %8274 = vmatmul.bf16.vlgmr.msra.gmra.mxu1 %v9842_v49  ;;  %10870 = vmatpush.bf16.msra.mxu3 %v10837_v54  ;;  %v6911_v27 = vpop.permute.xlu2 %6910  ;;  %v10142_v54 = vor.u32 %v10763_v46, %v10141_v62  ;;  %v9922_v53 = vor.u32 %v10704_v4, %v9919_v30  ;;  %v9947_v62 = vld [vmem:[%s18789_s4 + $0x104] sm:$0xf0] }
 0x907   : > { %v17803_v25 = vpop.f32.mrf.mxu1  ;;  %v17812_v5 = vadd.f32 %v17716_v37, %v6911_v27 }
 0x908   : > { %8052 = vmatmul.bf16.gmra.mxu3 %v10082_v16 }
 0x90a   : > { %v8107_v61 = vpop.f32.mrf.mxu0 }
 0x90b   : > { %v6441_v33 = vpop.permute.xlu1 %6440  ;;  %v6505_v34 = vpop.permute.xlu0 %6504  ;;  %v10835_v0 = vld [vmem:[#allocation3 + $0x148] sm:$0xff] }
 0x90c   : > { %6487 = vst.msk [vmem:[#allocation3 + $0x144] sm:$0xf] %vm6149_vm11, %v6441_v33  ;;  %v10836_v40 = vld [vmem:[#allocation3 + $0x150] sm:$0xff]  ;;  %v17822_v37 = vpop.f32.mrf.mxu3  ;;  %v9897_v33 = vld [vmem:[%s18789_s4 + $0x80] sm:$0xf] }
 0x90d   : > { %6551 = vst.msk [vmem:[#allocation3 + $0x184] sm:$0xf] %vm6149_vm11, %v6505_v34  ;;  %8360 = vmatpush.bf16.msra.mxu2 %v10836_v40  ;;  %10871 = vmatpush.bf16.msra.mxu3 %v10836_v40 }
 0x90e   : > { %8146 = vmatmul.bf16.gmra.mxu0 %v10114_v41  ;;  %v17826_v48 = vpop.permute.xlu2 %6905 }
 0x90f   : > { %v17824_v9 = vpop.f32.mrf.mxu1  ;;  %8195 = vmatmul.bf16.gmra.mxu2 %v9894_v1  ;;  %v10759_v1 = vld [vmem:[%s18789_s4 + $0x26c] sm:$0xf] }
 0x911   : > { %8361 = vmatpush.bf16.msra.mxu2 %v10835_v0  ;;  %10872 = vmatpush.bf16.msra.mxu3 %v10835_v0  ;;  %v10135_v0 = vld [vmem:[%s18789_s4 + $0x284] sm:$0xf0] }
 0x912   : > { %v8109_v11 = vpop.f32.mrf.mxu0 }
 0x913   : > { %v6871_v58 = vpop.permute.xlu1 %6870  ;;  %v6439_v42 = vpop.permute.xlu0 %6438 }
 0x914   : > { %6486 = vst.msk [vmem:[#allocation3 + $0x140] sm:$0xf] %vm6149_vm11, %v6439_v42  ;;  %v10842_v57 = vld [vmem:[#allocation3 + $0x180] sm:$0xff]  ;;  %v17841_v32 = vpop.f32.mrf.mxu3  ;;  %v7935_v30 = vadd.f32 %v17532_v12, %v6871_v58 }
 0x915   : > { %8451 = vmatpush.bf16.msra.mxu0 %v10842_v57  ;;  %v10770_v57 = vld [vmem:[%s18789_s4 + $0x2c0] sm:$0xf0] }
 0x916   : > { %8279 = vmatmul.bf16.gmra.mxu1 %v9870_v50  ;;  %v6861_v28 = vpop.permute.xlu2 %6860  ;;  %v10138_v50 = vor.u32 %v10759_v1, %v10135_v0  ;;  %v10170_v4 = vor.u32 %v10770_v57, %v10169_v7  ;;  %v10777_v7 = vld [vmem:[%s18789_s4 + $0x2f8] sm:$0xf0] }
 0x917   : > { %v17843_v24 = vpop.f32.mrf.mxu1  ;;  %v7930_v59 = vadd.f32 %v17484_v52, %v6861_v28  ;;  %v10701_v52 = vld [vmem:[%s18789_s4 + $0x98] sm:$0xf0] }
 0x918   : > { %8057 = vmatmul.bf16.gmra.mxu3 %v10110_v29  ;;  %v9898_v40 = vor.u32 %v10701_v52, %v9897_v33  ;;  %v10766_v33 = vld [vmem:[%s18789_s4 + $0x2a4] sm:$0xf]  ;;  %v10163_v52 = vld [vmem:[%s18789_s4 + $0x2bc] sm:$0xf0] }
 0x91a   : > { %v8112_v27 = vpop.f32.mrf.mxu0 }
 0x91b   : > { %v6866_v49 = vpop.permute.xlu1 %6865  ;;  %v6916_v56 = vpop.permute.xlu0 %6915  ;;  %v10834_v63 = vld [vmem:[#allocation3 + $0x140] sm:$0xff] }
 0x91c   : > { %v17859_v16 = vadd.f32 %v17741_v55, %v6916_v56  ;;  %v8018_v2 = vpop.f32.mrf.mxu3  ;;  %8362 = vmatpush.bf16.msra.mxu2 %v10834_v63  ;;  %10873 = vmatpush.bf16.msra.mxu3 %v10834_v63  ;;  %v7932_v19 = vadd.f32 %v17504_v31, %v6866_v49  ;;  %v10711_v31 = vld [vmem:[%s18789_s4 + $0xec] sm:$0xf] }
 0x91d   : > { %v8019_v3 = vadd.f32 %v8018_v2, %v7930_v59  ;;  %v9950_v56 = vor.u32 %v10711_v31, %v9947_v62  ;;  %v9925_v59 = vld [vmem:[%s18789_s4 + $0xb8] sm:$0xf]  ;;  %v10708_v2 = vld [vmem:[%s18789_s4 + $0xd0] sm:$0xf0] }
 0x91e   : > { %8151 = vmatmul.bf16.gmra.mxu0 %v10142_v54 }
 0x91f   : > { %v17861_v51 = vpop.f32.mrf.mxu1  ;;  %v17869_v34 = vadd.f32 %v8107_v61, %v8019_v3  ;;  %8200 = vmatmul.bf16.gmra.mxu2 %v9922_v53  ;;  %v9926_v3 = vor.u32 %v10708_v2, %v9925_v59 }
 0x922   : > { %v8114_v21 = vpop.f32.mrf.mxu0 }
 0x923   : > { %v17871_v55 = vpop.permute.xlu1 %6995  ;;  %v17873_v41 = vpop.permute.xlu0 %6955 }
 0x924   : > { %20144 = vst [vmem:[#allocation32_spill] sm:$0xff] %v17871_v55  ;;  %v8020_v42 = vpop.f32.mrf.mxu3 }
 0x925   : > { %v8021_v61 = vadd.f32 %v8020_v42, %v7932_v19  ;;  %v10166_v42 = vor.u32 %v10766_v33, %v10163_v52  ;;  %v9953_v52 = vld [vmem:[%s18789_s4 + $0xf0] sm:$0xf] }
 0x926   : > { %8284 = vmatmul.bf16.gmra.mxu1 %v9898_v40  ;;  %v7937_v40 = vadd.f32 %v17552_v22, %v17783_v15  ;;  %v10718_v22 = vld [vmem:[%s18789_s4 + $0x124] sm:$0xf]  ;;  %v9975_v15 = vld [vmem:[%s18789_s4 + $0x13c] sm:$0xf0] }
 0x927   : > { %v17882_v13 = vpop.f32.mrf.mxu1  ;;  %v17890_v29 = vadd.f32 %v8109_v11, %v8021_v61 }
 0x928   : > { %8062 = vmatmul.bf16.gmra.mxu3 %v10138_v50  ;;  %v10197_v50 = vld [vmem:[%s18789_s4 + $0x2e0] sm:$0xf] }
 0x92a   : > { %v17903_v49 = vpop.f32.mrf.mxu0 }
 0x92b   : > { %v17898_v46 = vpop.permute.xlu1 %6945  ;;  %v17900_v28 = vpop.permute.xlu0 %6950 }
 0x92c   : > { %v8023_v11 = vpop.f32.mrf.mxu3 }
 0x92d   : > { %v8024_v63 = vadd.f32 %v8023_v11, %v7935_v30 }
 0x92e   : > { %8156 = vmatmul.bf16.gmra.mxu0 %v10170_v4  ;;  %v10198_v4 = vor.u32 %v10777_v7, %v10197_v50 }
 0x92f   : > { %v17905_v54 = vpop.f32.mrf.mxu1  ;;  %v17913_v53 = vadd.f32 %v8112_v27, %v8024_v63  ;;  %8205 = vmatmul.bf16.gmra.mxu2 %v9950_v56  ;;  %v17929_v27 = vpop.permute.xlu2 %6990 }
 0x930   : > { %20145 = vst [vmem:[#allocation26_spill] sm:$0xff] %v17929_v27  ;;  %v10253_v27 = vld [vmem:[%s18789_s4 + $0x350] sm:$0xf] }
 0x932   : > { %v17927_v1 = vpop.f32.mrf.mxu0 }
 0x933   : > { %v17915_v12 = vpop.permute.xlu1 %6895  ;;  %v17917_v58 = vpop.permute.xlu0 %6900 }
 0x934   : > { %v8025_v0 = vpop.f32.mrf.mxu3 }
 0x935   : > { %v8026_v19 = vadd.f32 %v8025_v0, %v7937_v40 }
 0x936   : > { %8289 = vmatmul.bf16.gmra.mxu1 %v9926_v3 }
 0x937   : > { %v17931_v61 = vpop.f32.mrf.mxu1  ;;  %v17939_v57 = vadd.f32 %v8114_v21, %v8026_v19  ;;  %v9978_v21 = vor.u32 %v10718_v22, %v9975_v15  ;;  %v17951_v3 = vpop.permute.xlu2 %6940  ;;  %v10773_v19 = vld [vmem:[%s18789_s4 + $0x2dc] sm:$0xf]  ;;  %v10225_v22 = vld [vmem:[%s18789_s4 + $0x318] sm:$0xf]  ;;  %v10784_v15 = vld [vmem:[%s18789_s4 + $0x330] sm:$0xf0] }
 0x938   : > { %8067 = vmatmul.bf16.gmra.mxu3 %v10166_v42  ;;  %v10191_v42 = vld [vmem:[%s18789_s4 + $0x2f4] sm:$0xf0] }
 0x939   : > { %v10194_v7 = vor.u32 %v10773_v19, %v10191_v42  ;;  %v9981_v42 = vld [vmem:[%s18789_s4 + $0x128] sm:$0xf] }
 0x93a   : > { %v8122_v56 = vpop.f32.mrf.mxu0 }
 0x93b   : > { %v6851_v31 = vpop.permute.xlu1 %6850  ;;  %v6856_v62 = vpop.permute.xlu0 %6855 }
 0x93c   : > { %v7925_v30 = vadd.f32 %v17444_v8, %v6851_v31  ;;  %v7927_v11 = vadd.f32 %v17461_v14, %v6856_v62  ;;  %v8028_v63 = vpop.f32.mrf.mxu3  ;;  %v10715_v8 = vld [vmem:[%s18789_s4 + $0x108] sm:$0xf0]  ;;  %v10725_v62 = vld [vmem:[%s18789_s4 + $0x15c] sm:$0xf] }
 0x93d   : > { %v9954_v0 = vor.u32 %v10715_v8, %v9953_v52 }
 0x93e   : > { %v8014_v59 = vadd.f32 %v17822_v37, %v7925_v30  ;;  %v8016_v2 = vadd.f32 %v17841_v32, %v7927_v11  ;;  %8161 = vmatmul.bf16.gmra.mxu0 %v10198_v4  ;;  %v10003_v4 = vld [vmem:[%s18789_s4 + $0x174] sm:$0xf0] }
 0x93f   : > { %v17953_v33 = vpop.f32.mrf.mxu1  ;;  %8210 = vmatmul.bf16.gmra.mxu2 %v9978_v21  ;;  %v6891_v31 = vpop.permute.xlu2 %6890  ;;  %v10226_v21 = vor.u32 %v10784_v15, %v10225_v22  ;;  %v10006_v8 = vor.u32 %v10725_v62, %v10003_v4  ;;  %v7947_v62 = vadd.f32 %v17644_v17, %v17915_v12  ;;  %v10732_v12 = vld [vmem:[%s18789_s4 + $0x194] sm:$0xf] }
 0x940   : > { %v17962_v14 = vadd.f32 %v17776_v26, %v8014_v59  ;;  %v17965_v37 = vadd.f32 %v17798_v60, %v8016_v2  ;;  %v7945_v59 = vadd.f32 %v17624_v23, %v6891_v31  ;;  %v10780_v31 = vld [vmem:[%s18789_s4 + $0x314] sm:$0xf] }
 0x942   : > { %v8124_v50 = vpop.f32.mrf.mxu0 }
 0x943   : > { %v17967_v32 = vpop.permute.xlu1 %6980  ;;  %v17969_v40 = vpop.permute.xlu0 %6985 }
 0x944   : > { %20146 = vst [vmem:[#allocation146_spill] sm:$0xff] %v17969_v40  ;;  %v8030_v26 = vpop.f32.mrf.mxu3  ;;  %v10791_v40 = vld [vmem:[%s18789_s4 + $0x368] sm:$0xf0] }
 0x946   : > { %8294 = vmatmul.bf16.gmra.mxu1 %v9954_v0 }
 0x947   : > { %v17977_v60 = vpop.f32.mrf.mxu1 }
 0x948   : > { %8072 = vmatmul.bf16.gmra.mxu3 %v10194_v7  ;;  %v10722_v7 = vld [vmem:[%s18789_s4 + $0x140] sm:$0xf0] }
 0x949   : > { %v9982_v15 = vor.u32 %v10722_v7, %v9981_v42 }
 0x94a   : > { %v8127_v2 = vpop.f32.mrf.mxu0 }
 0x94b   : > { %v17991_v30 = vpop.permute.xlu1 %6930  ;;  %v17993_v11 = vpop.permute.xlu0 %6935 }
 0x94c   : > { %v8033_v52 = vpop.f32.mrf.mxu3 }
 0x94d   : > { %v8034_v0 = vadd.f32 %v8033_v52, %v7945_v59 }
 0x94e   : > { %8166 = vmatmul.bf16.gmra.mxu0 %v10226_v21 }
 0x94f   : > { %v17996_v19 = vadd.f32 %v8122_v56, %v8034_v0  ;;  %8215 = vmatmul.bf16.gmra.mxu2 %v10006_v8  ;;  %v18004_v55 = vpop.f32.mrf.mxu1  ;;  %v10219_v56 = vld [vmem:[%s18789_s4 + $0x32c] sm:$0xf0] }
 0x950   : > { %v10222_v7 = vor.u32 %v10780_v31, %v10219_v56  ;;  %v10009_v56 = vld [vmem:[%s18789_s4 + $0x160] sm:$0xf] }
 0x952   : > { %v8129_v59 = vpop.f32.mrf.mxu0 }
 0x953   : > { %v6881_v22 = vpop.permute.xlu1 %6880  ;;  %v6886_v23 = vpop.permute.xlu0 %6885 }
 0x954   : > { %v7940_v4 = vadd.f32 %v17578_v18, %v6881_v22  ;;  %v7942_v21 = vadd.f32 %v17598_v43, %v6886_v23  ;;  %v8035_v52 = vpop.f32.mrf.mxu3  ;;  %v7950_v22 = vadd.f32 %v17670_v47, %v17917_v58  ;;  %v10787_v47 = vld [vmem:[%s18789_s4 + $0x34c] sm:$0xf]  ;;  %v10247_v58 = vld [vmem:[%s18789_s4 + $0x364] sm:$0xf0] }
 0x955   : > { %v8036_v42 = vadd.f32 %v8035_v52, %v7947_v62  ;;  %v10250_v52 = vor.u32 %v10787_v47, %v10247_v58 }
 0x956   : > { %v8029_v8 = vadd.f32 %v8028_v63, %v7940_v4  ;;  %v8031_v0 = vadd.f32 %v8030_v26, %v7942_v21  ;;  %8299 = vmatmul.bf16.gmra.mxu1 %v9982_v15  ;;  %v10031_v63 = vld [vmem:[%s18789_s4 + $0x1ac] sm:$0xf0]  ;;  %v10254_v26 = vor.u32 %v10791_v40, %v10253_v27  ;;  %v10729_v27 = vld [vmem:[%s18789_s4 + $0x178] sm:$0xf0] }
 0x957   : > { %v18028_v43 = vadd.f32 %v8124_v50, %v8036_v42  ;;  %v18038_v23 = vpop.f32.mrf.mxu1  ;;  %v10034_v15 = vor.u32 %v10732_v12, %v10031_v63  ;;  %v10010_v40 = vor.u32 %v10729_v27, %v10009_v56  ;;  %v10688_v42 = vld [vmem:[%s18789_s4 + $0x30] sm:$0xf0] }
 0x958   : > { %v18023_v17 = vadd.f32 %v17903_v49, %v8029_v8  ;;  %v18026_v18 = vadd.f32 %v17927_v1, %v8031_v0  ;;  %8077 = vmatmul.bf16.gmra.mxu3 %v10222_v7  ;;  %v9849_v0 = vld [vmem:[%s18789_s4 + $0x18] sm:$0xf]  ;;  %v10736_v56 = vld [vmem:[%s18789_s4 + $0x1b0] sm:$0xf0] }
 0x959   : > { %v9850_v12 = vor.u32 %v10688_v42, %v9849_v0 }
 0x95a   : > { %v8132_v49 = vpop.f32.mrf.mxu0 }
 0x95c   : > { %v8038_v1 = vpop.f32.mrf.mxu3 }
 0x95d   : > { %v8039_v50 = vadd.f32 %v8038_v1, %v7950_v22 }
 0x95e   : > { %8171 = vmatmul.bf16.gmra.mxu0 %v10254_v26  ;;  %v6846_v26 = vpop.permute.xlu2 %6845 }
 0x95f   : > { %v18040_v31 = vadd.f32 %v8127_v2, %v8039_v50  ;;  %8220 = vmatmul.bf16.gmra.mxu2 %v10034_v15  ;;  %v7952_v2 = vadd.f32 %v17690_v44, %v17826_v48  ;;  %v18056_v8 = vpop.f32.mrf.mxu1  ;;  %v10739_v44 = vld [vmem:[%s18789_s4 + $0x1cc] sm:$0xf]  ;;  %v10059_v48 = vld [vmem:[%s18789_s4 + $0x1e4] sm:$0xf0] }
 0x960   : > { %v10062_v1 = vor.u32 %v10739_v44, %v10059_v48  ;;  %v10695_v48 = vld [vmem:[%s18789_s4 + $0x68] sm:$0xf0] }
 0x962   : > { %v8134_v62 = vpop.f32.mrf.mxu0 }
 0x964   : > { %v8040_v4 = vpop.f32.mrf.mxu3 }
 0x965   : > { %v8041_v21 = vadd.f32 %v8040_v4, %v7952_v2 }
 0x966   : > { %8304 = vmatmul.bf16.gmra.mxu1 %v10010_v40  ;;  %v7922_v40 = vadd.f32 %v17421_v45, %v6846_v26  ;;  %v18092_v44 = vpop.permute.xlu2 %6975  ;;  %v9877_v45 = vld [vmem:[%s18789_s4 + $0x50] sm:$0xf]  ;;  %v6921_v26 = vpop.permute.xlu1 %6920 }
 0x967   : > { %v18064_v7 = vadd.f32 %v8129_v59, %v8041_v21  ;;  %v10037_v59 = vld [vmem:[%s18789_s4 + $0x198] sm:$0xf]  ;;  %v18081_v27 = vpop.f32.mrf.mxu1  ;;  %v6841_v21 = vpop.permute.xlu0 %6840 }
 0x968   : > { %8082 = vmatmul.bf16.gmra.mxu3 %v10250_v52  ;;  %v10038_v47 = vor.u32 %v10736_v56, %v10037_v59  ;;  %v8011_v42 = vadd.f32 %v17801_v20, %v7922_v40  ;;  %v10746_v20 = vld [vmem:[%s18789_s4 + $0x204] sm:$0xf]  ;;  %v9878_v59 = vor.u32 %v10695_v48, %v9877_v45 }
 0x969   : > { %v10698_v45 = vld [vmem:[%s18789_s4 + $0x84] sm:$0xf] }
 0x96a   : > { %v8137_v63 = vpop.f32.mrf.mxu0 }
 0x96c   : > { %v8043_v22 = vpop.f32.mrf.mxu3 }
 0x96d   : > { %v8044_v15 = vadd.f32 %v8043_v22, %v17812_v5  ;;  %v10691_v5 = vld [vmem:[%s18789_s4 + $0x4c] sm:$0xf]  ;;  %v7920_v22 = vadd.f32 %v17404_v38, %v6841_v21 }
 0x96e   : > { %8452 = vmatmul.bf16.vlgmr.msra.gmra.mxu0 %v9850_v12 }
 0x96f   : > { %v18073_v50 = vadd.f32 %v8132_v49, %v8044_v15  ;;  %8225 = vmatmul.bf16.gmra.mxu2 %v10062_v1  ;;  %v9871_v49 = vld [vmem:[%s18789_s4 + $0x64] sm:$0xf0]  ;;  %v18109_v1 = vpop.f32.mrf.mxu1  ;;  %v8100_v15 = vadd.f32 %v17754_v6, %v8011_v42  ;;  %v8009_v38 = vadd.f32 %v17779_v36, %v7920_v22  ;;  %v10743_v6 = vld [vmem:[%s18789_s4 + $0x1e8] sm:$0xf0] }
 0x970   : > { %v9874_v0 = vor.u32 %v10691_v5, %v9871_v49 }
 0x971   : > { %v8186_v58 = vpop.f32.mrf.mxu2 }
 0x972   : > { %v8139_v2 = vpop.f32.mrf.mxu0 }
 0x974   : > { %v8045_v4 = vpop.f32.mrf.mxu3 }
 0x975   : > { %v8046_v52 = vadd.f32 %v8045_v4, %v17859_v16  ;;  %v10087_v16 = vld [vmem:[%s18789_s4 + $0x21c] sm:$0xf0] }
 0x976   : > { %8309 = vmatmul.bf16.gmra.mxu1 %v10038_v47  ;;  %v10090_v49 = vor.u32 %v10746_v20, %v10087_v16 }
 0x977   : > { %v18100_v12 = vadd.f32 %v8134_v62, %v8046_v52  ;;  %v7960_v62 = vadd.f32 %v17760_v35, %v6921_v26  ;;  %v10065_v52 = vld [vmem:[%s18789_s4 + $0x1d0] sm:$0xf]  ;;  %v6926_v35 = vpop.permute.xlu2 %6925 }
 0x978   : > { %8368 = vmatmul.bf16.vlgmr.msra.gmra.mxu3 %v9874_v0  ;;  %v8098_v0 = vadd.f32 %v17735_v10, %v8009_v38  ;;  %v10066_v42 = vor.u32 %v10743_v6, %v10065_v52  ;;  %v7962_v48 = vadd.f32 %v17781_v39, %v6926_v35  ;;  %v10115_v38 = vld [vmem:[%s18789_s4 + $0x254] sm:$0xf0] }
 0x979   : > { %v8188_v56 = vpop.f32.mrf.mxu2 }
 0x97a   : > { %v8189_v47 = vadd.f32 %v8188_v56, %v8100_v15  ;;  %v8187_v36 = vadd.f32 %v8186_v58, %v8098_v0  ;;  %v10702_v56 = vld [vmem:[%s18789_s4 + $0xa0] sm:$0xf0] }
 0x97b   : > { %v8142_v40 = vpop.f32.mrf.mxu0 }
 0x97c   : > { %v8048_v5 = vpop.f32.mrf.mxu3 }
 0x97d   : > { %v8049_v4 = vadd.f32 %v8048_v5, %v7960_v62  ;;  %v9905_v62 = vld [vmem:[%s18789_s4 + $0x88] sm:$0xf] }
 0x97e   : > { %8457 = vmatmul.bf16.gmra.mxu0 %v9878_v59  ;;  %v9906_v5 = vor.u32 %v10702_v56, %v9905_v62 }
 0x97f   : > { %v18114_v21 = vadd.f32 %v8137_v63, %v8049_v4  ;;  %8230 = vmatmul.bf16.gmra.mxu2 %v10090_v49  ;;  %v9899_v63 = vld [vmem:[%s18789_s4 + $0x9c] sm:$0xf0]  ;;  %v7965_v49 = vadd.f32 %v17803_v25, %v17991_v30  ;;  %v10750_v25 = vld [vmem:[%s18789_s4 + $0x220] sm:$0xf0] }
 0x980   : > { %v9902_v59 = vor.u32 %v10698_v45, %v9899_v63  ;;  %v10093_v63 = vld [vmem:[%s18789_s4 + $0x208] sm:$0xf] }
 0x981   : > { %v10094_v30 = vor.u32 %v10750_v25, %v10093_v63 }
 0x982   : > { %v8191_v26 = vpop.f32.mrf.mxu2 }
 0x983   : > { %v8275_v22 = vpop.f32.mrf.mxu1  ;;  %v8192_v20 = vadd.f32 %v8191_v26, %v17962_v14  ;;  %v8144_v15 = vpop.f32.mrf.mxu0  ;;  %v10753_v14 = vld [vmem:[%s18789_s4 + $0x23c] sm:$0xf] }
 0x984   : > { %v18131_v16 = vadd.f32 %v8275_v22, %v8187_v36  ;;  %v8050_v10 = vpop.f32.mrf.mxu3  ;;  %v10118_v36 = vor.u32 %v10753_v14, %v10115_v38  ;;  %v9933_v14 = vld [vmem:[%s18789_s4 + $0xc0] sm:$0xf]  ;;  %v10709_v38 = vld [vmem:[%s18789_s4 + $0xd8] sm:$0xf0] }
 0x985   : > { %v8051_v58 = vadd.f32 %v8050_v10, %v7962_v48 }
 0x986   : > { %8314 = vmatmul.bf16.gmra.mxu1 %v10066_v42 }
 0x987   : > { %v18139_v39 = vadd.f32 %v8139_v2, %v8051_v58 }
 0x988   : > { %8373 = vmatmul.bf16.gmra.mxu3 %v9902_v59 }
 0x98a   : > { %v8193_v4 = vpop.f32.mrf.mxu2 }
 0x98b   : > { %v8277_v52 = vpop.f32.mrf.mxu1  ;;  %v8194_v6 = vadd.f32 %v8193_v4, %v17965_v37  ;;  %v8147_v0 = vpop.f32.mrf.mxu0  ;;  %v10705_v37 = vld [vmem:[%s18789_s4 + $0xbc] sm:$0xf] }
 0x98c   : > { %v18150_v35 = vadd.f32 %v8277_v52, %v8189_v47  ;;  %v8053_v2 = vpop.f32.mrf.mxu3  ;;  %v9927_v47 = vld [vmem:[%s18789_s4 + $0xd4] sm:$0xf0] }
 0x98d   : > { %v8054_v42 = vadd.f32 %v8053_v2, %v7965_v49  ;;  %v9930_v56 = vor.u32 %v10705_v37, %v9927_v47 }
 0x98e   : > { %8462 = vmatmul.bf16.gmra.mxu0 %v9906_v5  ;;  %v7970_v5 = vadd.f32 %v17843_v24, %v17951_v3  ;;  %v10757_v24 = vld [vmem:[%s18789_s4 + $0x258] sm:$0xf0] }
 0x98f   : > { %v18152_v45 = vadd.f32 %v8142_v40, %v8054_v42  ;;  %8235 = vmatmul.bf16.gmra.mxu2 %v10118_v36  ;;  %v7967_v40 = vadd.f32 %v17824_v9, %v17993_v11  ;;  %v10143_v11 = vld [vmem:[%s18789_s4 + $0x28c] sm:$0xf0] }
 0x992   : > { %v8196_v48 = vpop.f32.mrf.mxu2 }
 0x993   : > { %v8280_v26 = vpop.f32.mrf.mxu1  ;;  %v8197_v22 = vadd.f32 %v8196_v48, %v17869_v34  ;;  %v8149_v59 = vpop.f32.mrf.mxu0  ;;  %v10760_v34 = vld [vmem:[%s18789_s4 + $0x274] sm:$0xf] }
 0x994   : > { %v18169_v10 = vadd.f32 %v8280_v26, %v8192_v20  ;;  %v8055_v58 = vpop.f32.mrf.mxu3  ;;  %v9934_v20 = vor.u32 %v10709_v38, %v9933_v14  ;;  %v10146_v42 = vor.u32 %v10760_v34, %v10143_v11  ;;  %v9961_v14 = vld [vmem:[%s18789_s4 + $0xf8] sm:$0xf]  ;;  %v10716_v38 = vld [vmem:[%s18789_s4 + $0x110] sm:$0xf0]  ;;  %v7975_v34 = vadd.f32 %v17882_v13, %v17900_v28 }
 0x995   : > { %v8056_v62 = vadd.f32 %v8055_v58, %v7967_v40  ;;  %v10764_v13 = vld [vmem:[%s18789_s4 + $0x290] sm:$0xf0] }
 0x996   : > { %8319 = vmatmul.bf16.gmra.mxu1 %v10094_v30  ;;  %v10121_v30 = vld [vmem:[%s18789_s4 + $0x240] sm:$0xf] }
 0x997   : > { %v18177_v9 = vadd.f32 %v8144_v15, %v8056_v62  ;;  %v10122_v3 = vor.u32 %v10757_v24, %v10121_v30  ;;  %v10149_v24 = vld [vmem:[%s18789_s4 + $0x278] sm:$0xf] }
 0x998   : > { %8378 = vmatmul.bf16.gmra.mxu3 %v9930_v56  ;;  %v10150_v28 = vor.u32 %v10764_v13, %v10149_v24  ;;  %v10177_v24 = vld [vmem:[%s18789_s4 + $0x2b0] sm:$0xf]  ;;  %v6966_v13 = vpop.permute.xlu2 %6965 }
 0x99a   : > { %v8198_v49 = vpop.f32.mrf.mxu2 }
 0x99b   : > { %v8282_v4 = vpop.f32.mrf.mxu1  ;;  %v8199_v52 = vadd.f32 %v8198_v49, %v17890_v29  ;;  %v8152_v36 = vpop.f32.mrf.mxu0  ;;  %v10712_v29 = vld [vmem:[%s18789_s4 + $0xf4] sm:$0xf] }
 0x99c   : > { %v18188_v2 = vadd.f32 %v8282_v4, %v8194_v6  ;;  %v8058_v15 = vpop.f32.mrf.mxu3  ;;  %v9955_v6 = vld [vmem:[%s18789_s4 + $0x10c] sm:$0xf0] }
 0x99d   : > { %v8059_v63 = vadd.f32 %v8058_v15, %v7970_v5  ;;  %v9958_v56 = vor.u32 %v10712_v29, %v9955_v6 }
 0x99e   : > { %8467 = vmatmul.bf16.gmra.mxu0 %v9934_v20 }
 0x99f   : > { %v18190_v25 = vadd.f32 %v8147_v0, %v8059_v63  ;;  %8240 = vmatmul.bf16.gmra.mxu2 %v10146_v42  ;;  %v7972_v0 = vadd.f32 %v17861_v51, %v17898_v46  ;;  %v10767_v46 = vld [vmem:[%s18789_s4 + $0x2ac] sm:$0xf]  ;;  %v6971_v63 = vpop.permute.xlu0 %6970 }
 0x9a2   : > { %v8201_v37 = vpop.f32.mrf.mxu2 }
 0x9a3   : > { %v8285_v47 = vpop.f32.mrf.mxu1  ;;  %v8202_v40 = vadd.f32 %v8201_v37, %v17913_v53  ;;  %v8154_v58 = vpop.f32.mrf.mxu0  ;;  %v10171_v53 = vld [vmem:[%s18789_s4 + $0x2c4] sm:$0xf0] }
 0x9a4   : > { %v18207_v48 = vadd.f32 %v8285_v47, %v8197_v22  ;;  %v8060_v26 = vpop.f32.mrf.mxu3  ;;  %v9962_v22 = vor.u32 %v10716_v38, %v9961_v14  ;;  %v10174_v15 = vor.u32 %v10767_v46, %v10171_v53  ;;  %v10723_v14 = vld [vmem:[%s18789_s4 + $0x148] sm:$0xf0] }
 0x9a5   : > { %v8061_v62 = vadd.f32 %v8060_v26, %v7972_v0 }
 0x9a6   : > { %8324 = vmatmul.bf16.gmra.mxu1 %v10122_v3 }
 0x9a7   : > { %v18215_v51 = vadd.f32 %v8149_v59, %v8061_v62 }
 0x9a8   : > { %8383 = vmatmul.bf16.gmra.mxu3 %v9958_v56  ;;  %v9989_v56 = vld [vmem:[%s18789_s4 + $0x130] sm:$0xf] }
 0x9a9   : > { %v9990_v38 = vor.u32 %v10723_v14, %v9989_v56  ;;  %v10730_v56 = vld [vmem:[%s18789_s4 + $0x180] sm:$0xf0] }
 0x9aa   : > { %v8203_v11 = vpop.f32.mrf.mxu2 }
 0x9ab   : > { %v8287_v20 = vpop.f32.mrf.mxu1  ;;  %v8204_v5 = vadd.f32 %v8203_v11, %v17939_v57  ;;  %v8157_v4 = vpop.f32.mrf.mxu0  ;;  %v10719_v57 = vld [vmem:[%s18789_s4 + $0x12c] sm:$0xf] }
 0x9ac   : > { %v18226_v49 = vadd.f32 %v8287_v20, %v8199_v52  ;;  %v8063_v59 = vpop.f32.mrf.mxu3  ;;  %v9983_v52 = vld [vmem:[%s18789_s4 + $0x144] sm:$0xf0] }
 0x9ad   : > { %v8064_v42 = vadd.f32 %v8063_v59, %v7975_v34  ;;  %v9986_v62 = vor.u32 %v10719_v57, %v9983_v52 }
 0x9ae   : > { %8472 = vmatmul.bf16.gmra.mxu0 %v9962_v22 }
 0x9af   : > { %v18228_v30 = vadd.f32 %v8152_v36, %v8064_v42  ;;  %8245 = vmatmul.bf16.gmra.mxu2 %v10174_v15  ;;  %v7977_v36 = vadd.f32 %v17905_v54, %v17873_v41  ;;  %v6961_v54 = vpop.permute.xlu0 %6960 }
 0x9b0   : > { %v7980_v46 = vadd.f32 %v17931_v61, %v6961_v54  ;;  %v10771_v61 = vld [vmem:[%s18789_s4 + $0x2c8] sm:$0xf0] }
 0x9b2   : > { %v8206_v3 = vpop.f32.mrf.mxu2 }
 0x9b3   : > { %v8290_v29 = vpop.f32.mrf.mxu1  ;;  %v8207_v6 = vadd.f32 %v8206_v3, %v18023_v17  ;;  %v8159_v47 = vpop.f32.mrf.mxu0  ;;  %v10774_v17 = vld [vmem:[%s18789_s4 + $0x2e4] sm:$0xf] }
 0x9b4   : > { %v18245_v0 = vadd.f32 %v8290_v29, %v8202_v40  ;;  %v8065_v37 = vpop.f32.mrf.mxu3  ;;  %v10199_v40 = vld [vmem:[%s18789_s4 + $0x2fc] sm:$0xf0] }
 0x9b5   : > { %v8066_v26 = vadd.f32 %v8065_v37, %v7977_v36  ;;  %v10202_v59 = vor.u32 %v10774_v17, %v10199_v40  ;;  %v7985_v17 = vadd.f32 %v17977_v60, %v6971_v63 }
 0x9b6   : > { %8329 = vmatmul.bf16.gmra.mxu1 %v10150_v28  ;;  %v7982_v28 = vadd.f32 %v17953_v33, %v6966_v13  ;;  %v10781_v33 = vld [vmem:[%s18789_s4 + $0x31c] sm:$0xf] }
 0x9b7   : > { %v18253_v41 = vadd.f32 %v8154_v58, %v8066_v26 }
 0x9b8   : > { %8388 = vmatmul.bf16.gmra.mxu3 %v9986_v62  ;;  %v10017_v62 = vld [vmem:[%s18789_s4 + $0x168] sm:$0xf] }
 0x9b9   : > { %v10018_v54 = vor.u32 %v10730_v56, %v10017_v62  ;;  %v7990_v56 = vadd.f32 %v18038_v23, %v17967_v32 }
 0x9ba   : > { %v8208_v53 = vpop.f32.mrf.mxu2 }
 0x9bb   : > { %v8292_v22 = vpop.f32.mrf.mxu1  ;;  %v8209_v34 = vadd.f32 %v8208_v53, %v18026_v18  ;;  %v8162_v20 = vpop.f32.mrf.mxu0  ;;  %v10178_v18 = vor.u32 %v10771_v61, %v10177_v24  ;;  %v10778_v24 = vld [vmem:[%s18789_s4 + $0x300] sm:$0xf0]  ;;  %v7987_v61 = vadd.f32 %v18004_v55, %v18092_v44  ;;  %v10788_v55 = vld [vmem:[%s18789_s4 + $0x354] sm:$0xf]  ;;  %v10255_v44 = vld [vmem:[%s18789_s4 + $0x36c] sm:$0xf0] }
 0x9bc   : > { %v18263_v11 = vadd.f32 %v8292_v22, %v8204_v5  ;;  %v8068_v58 = vpop.f32.mrf.mxu3  ;;  %v10726_v5 = vld [vmem:[%s18789_s4 + $0x164] sm:$0xf] }
 0x9bd   : > { %v8069_v15 = vadd.f32 %v8068_v58, %v7980_v46 }
 0x9be   : > { %8477 = vmatmul.bf16.gmra.mxu0 %v9990_v38 }
 0x9bf   : > { %v18265_v42 = vadd.f32 %v8157_v4, %v8069_v15  ;;  %8250 = vmatmul.bf16.gmra.mxu2 %v10202_v59  ;;  %v10011_v4 = vld [vmem:[%s18789_s4 + $0x17c] sm:$0xf0]  ;;  %v10205_v15 = vld [vmem:[%s18789_s4 + $0x2e8] sm:$0xf] }
 0x9c0   : > { %v10014_v26 = vor.u32 %v10726_v5, %v10011_v4  ;;  %v10206_v63 = vor.u32 %v10778_v24, %v10205_v15  ;;  %v10067_v15 = vld [vmem:[%s18789_s4 + $0x1ec] sm:$0xf0] }
 0x9c1   : > { %v20147_v24 = vld [vmem:[#allocation146_spill] sm:$0xff] }
 0x9c2   : > { %v8211_v57 = vpop.f32.mrf.mxu2 }
 0x9c3   : > { %v8295_v52 = vpop.f32.mrf.mxu1  ;;  %v8164_v29 = vpop.f32.mrf.mxu0  ;;  %v8212_v60 = vadd.f32 %v8211_v57, %v17996_v19  ;;  %v10045_v57 = vld [vmem:[%s18789_s4 + $0x1a0] sm:$0xf] }
 0x9c4   : > { %v18280_v36 = vadd.f32 %v8295_v52, %v8207_v6  ;;  %v8070_v3 = vpop.f32.mrf.mxu3  ;;  %v10227_v6 = vld [vmem:[%s18789_s4 + $0x334] sm:$0xf0] }
 0x9c5   : > { %v8071_v37 = vadd.f32 %v8070_v3, %v7982_v28  ;;  %v10737_v3 = vld [vmem:[%s18789_s4 + $0x1b8] sm:$0xf0] }
 0x9c6   : > { %8334 = vmatmul.bf16.gmra.mxu1 %v10178_v18  ;;  %v10046_v62 = vor.u32 %v10737_v3, %v10045_v57 }
 0x9c7   : > { %v18288_v14 = vadd.f32 %v8159_v47, %v8071_v37  ;;  %v10230_v47 = vor.u32 %v10781_v33, %v10227_v6 }
 0x9c8   : > { %8393 = vmatmul.bf16.gmra.mxu3 %v10014_v26 }
 0x9ca   : > { %v8213_v40 = vpop.f32.mrf.mxu2 }
 0x9cb   : > { %v8297_v38 = vpop.f32.mrf.mxu1  ;;  %v8167_v22 = vpop.f32.mrf.mxu0  ;;  %v8214_v26 = vadd.f32 %v8213_v40, %v18028_v43  ;;  %v10785_v43 = vld [vmem:[%s18789_s4 + $0x338] sm:$0xf0] }
 0x9cc   : > { %v18297_v46 = vadd.f32 %v8297_v38, %v8209_v34  ;;  %v8073_v53 = vpop.f32.mrf.mxu3  ;;  %v10733_v34 = vld [vmem:[%s18789_s4 + $0x19c] sm:$0xf]  ;;  %v10258_v38 = vor.u32 %v10788_v55, %v10255_v44  ;;  %v20148_v55 = vld [vmem:[#allocation26_spill] sm:$0xff] }
 0x9cd   : > { %v8074_v58 = vadd.f32 %v8073_v53, %v7985_v17  ;;  %v7995_v44 = vadd.f32 %v18081_v27, %v20148_v55 }
 0x9ce   : > { %8482 = vmatmul.bf16.gmra.mxu0 %v10018_v54 }
 0x9cf   : > { %v18299_v59 = vadd.f32 %v8162_v20, %v8074_v58  ;;  %8255 = vmatmul.bf16.gmra.mxu2 %v10230_v47  ;;  %v10039_v20 = vld [vmem:[%s18789_s4 + $0x1b4] sm:$0xf0]  ;;  %v10233_v47 = vld [vmem:[%s18789_s4 + $0x320] sm:$0xf]  ;;  %v10740_v58 = vld [vmem:[%s18789_s4 + $0x1d4] sm:$0xf] }
 0x9d0   : > { %v10042_v19 = vor.u32 %v10733_v34, %v10039_v20  ;;  %v10234_v23 = vor.u32 %v10785_v43, %v10233_v47  ;;  %v10747_v43 = vld [vmem:[%s18789_s4 + $0x20c] sm:$0xf] }
 0x9d2   : > { %v8216_v13 = vpop.f32.mrf.mxu2 }
 0x9d3   : > { %v8300_v18 = vpop.f32.mrf.mxu1  ;;  %v8169_v28 = vpop.f32.mrf.mxu0  ;;  %v8217_v32 = vadd.f32 %v8216_v13, %v18040_v31  ;;  %v10070_v31 = vor.u32 %v10740_v58, %v10067_v15  ;;  %v10073_v13 = vld [vmem:[%s18789_s4 + $0x1d8] sm:$0xf] }
 0x9d4   : > { %v18316_v5 = vadd.f32 %v8300_v18, %v8212_v60  ;;  %v8075_v4 = vpop.f32.mrf.mxu3  ;;  %v7992_v60 = vadd.f32 %v18056_v8, %v20147_v24  ;;  %v10684_v8 = vld [vmem:[%s18789_s4 + $0x14] sm:$0xf] }
 0x9d5   : > { %v8076_v52 = vadd.f32 %v8075_v4, %v7987_v61  ;;  %v10744_v4 = vld [vmem:[%s18789_s4 + $0x1f0] sm:$0xf0] }
 0x9d6   : > { %8339 = vmatmul.bf16.gmra.mxu1 %v10206_v63  ;;  %v10074_v3 = vor.u32 %v10744_v4, %v10073_v13 }
 0x9d7   : > { %v18324_v37 = vadd.f32 %v8164_v29, %v8076_v52 }
 0x9d8   : > { %8398 = vmatmul.bf16.gmra.mxu3 %v10042_v19  ;;  %v9843_v19 = vld [vmem:[%s18789_s4 + $0x2c] sm:$0xf0] }
 0x9da   : > { %v8218_v33 = vpop.f32.mrf.mxu2 }
 0x9db   : > { %v8302_v6 = vpop.f32.mrf.mxu1  ;;  %v8172_v17 = vpop.f32.mrf.mxu0  ;;  %v8219_v57 = vadd.f32 %v8218_v33, %v18064_v7  ;;  %v10792_v7 = vld [vmem:[%s18789_s4 + $0x370] sm:$0xf0] }
 0x9dc   : > { %v18335_v54 = vadd.f32 %v8302_v6, %v8214_v26  ;;  %v8078_v29 = vpop.f32.mrf.mxu3 }
 0x9dd   : > { %v8079_v53 = vadd.f32 %v8078_v29, %v7990_v56  ;;  %v9846_v29 = vor.u32 %v10684_v8, %v9843_v19 }
 0x9de   : > { %8487 = vmatmul.bf16.gmra.mxu0 %v10046_v62 }
 0x9df   : > { %v18343_v40 = vadd.f32 %v8167_v22, %v8079_v53  ;;  %8260 = vmatmul.bf16.gmra.mxu2 %v10258_v38  ;;  %v10261_v53 = vld [vmem:[%s18789_s4 + $0x358] sm:$0xf] }
 0x9e0   : > { %v10262_v47 = vor.u32 %v10792_v7, %v10261_v53 }
 0x9e2   : > { %v8221_v63 = vpop.f32.mrf.mxu2 }
 0x9e3   : > { %v8305_v34 = vpop.f32.mrf.mxu1  ;;  %v8174_v61 = vpop.f32.mrf.mxu0  ;;  %v8222_v27 = vadd.f32 %v8221_v63, %v18073_v50 }
 0x9e4   : > { %v18354_v20 = vadd.f32 %v8305_v34, %v8217_v32  ;;  %v8080_v22 = vpop.f32.mrf.mxu3  ;;  %v10095_v32 = vld [vmem:[%s18789_s4 + $0x224] sm:$0xf0] }
 0x9e5   : > { %v8081_v18 = vadd.f32 %v8080_v22, %v7992_v60  ;;  %v10098_v63 = vor.u32 %v10747_v43, %v10095_v32  ;;  %v10101_v22 = vld [vmem:[%s18789_s4 + $0x210] sm:$0xf] }
 0x9e6   : > { %8344 = vmatmul.bf16.gmra.mxu1 %v10234_v23  ;;  %v20149_v23 = vld [vmem:[#allocation32_spill] sm:$0xff] }
 0x9e7   : > { %v18362_v52 = vadd.f32 %v8169_v28, %v8081_v18  ;;  %v7997_v58 = vadd.f32 %v18109_v1, %v20149_v23  ;;  %v10751_v18 = vld [vmem:[%s18789_s4 + $0x228] sm:$0xf0] }
 0x9e8   : > { %8403 = vmatmul.bf16.gmra.mxu3 %v10070_v31  ;;  %v10102_v13 = vor.u32 %v10751_v18, %v10101_v22  ;;  %v10761_v22 = vld [vmem:[%s18789_s4 + $0x27c] sm:$0xf] }
 0x9ea   : > { %v8223_v26 = vpop.f32.mrf.mxu2 }
 0x9eb   : > { %v8307_v62 = vpop.f32.mrf.mxu1  ;;  %v18375_v6 = vpop.f32.mrf.mxu0  ;;  %v8224_v1 = vadd.f32 %v8223_v26, %v18100_v12  ;;  %v10123_v12 = vld [vmem:[%s18789_s4 + $0x25c] sm:$0xf0] }
 0x9ec   : > { %v18373_v56 = vadd.f32 %v8307_v62, %v8219_v57  ;;  %v8083_v28 = vpop.f32.mrf.mxu3 }
 0x9ed   : > { %v8084_v38 = vadd.f32 %v8083_v28, %v7995_v44 }
 0x9ee   : > { %8492 = vmatmul.bf16.gmra.mxu0 %v10074_v3 }
 0x9ef   : > { %v18383_v33 = vadd.f32 %v8172_v17, %v8084_v38  ;;  %8363 = vmatmul.bf16.vlgmr.msra.gmra.mxu2 %v9846_v29 }
 0x9f2   : > { %v8226_v15 = vpop.f32.mrf.mxu2 }
 0x9f3   : > { %v8310_v24 = vpop.f32.mrf.mxu1  ;;  %v18396_v34 = vpop.f32.mrf.mxu0  ;;  %v8227_v62 = vadd.f32 %v8226_v15, %v18114_v21  ;;  %v10129_v21 = vld [vmem:[%s18789_s4 + $0x248] sm:$0xf] }
 0x9f4   : > { %v18394_v60 = vadd.f32 %v8310_v24, %v8222_v27  ;;  %v8085_v17 = vpop.f32.mrf.mxu3 }
 0x9f5   : > { %v8086_v50 = vadd.f32 %v8085_v17, %v7997_v58 }
 0x9f6   : > { %8349 = vmatmul.bf16.gmra.mxu1 %v10262_v47  ;;  %v10758_v47 = vld [vmem:[%s18789_s4 + $0x260] sm:$0xf0] }
 0x9f7   : > { %v18404_v31 = vadd.f32 %v8174_v61, %v8086_v50  ;;  %v10754_v61 = vld [vmem:[%s18789_s4 + $0x244] sm:$0xf]  ;;  %v10130_v32 = vor.u32 %v10758_v47, %v10129_v21 }
 0x9f8   : > { %8408 = vmatmul.bf16.gmra.mxu3 %v10098_v63  ;;  %v10126_v7 = vor.u32 %v10754_v61, %v10123_v12 }
 0x9fa   : > { %v8228_v4 = vpop.f32.mrf.mxu2 }
 0x9fb   : > { %v8312_v8 = vpop.f32.mrf.mxu1  ;;  %v8458_v3 = vpop.f32.mrf.mxu0  ;;  %v8229_v43 = vadd.f32 %v8228_v4, %v18139_v39  ;;  %v10151_v39 = vld [vmem:[%s18789_s4 + $0x294] sm:$0xf0] }
 0x9fc   : > { %v18407_v19 = vadd.f32 %v8312_v8, %v8224_v1  ;;  %v8369_v57 = vpop.f32.mrf.mxu3 }
 0x9fd   : > { %v8370_v55 = vadd.f32 %v8369_v57, %v18169_v10  ;;  %v10154_v57 = vor.u32 %v10761_v22, %v10151_v39 }
 0x9fe   : > { %8497 = vmatmul.bf16.gmra.mxu0 %v10102_v13 }
 0x9ff   : > { %v18410_v44 = vadd.f32 %v8458_v3, %v8370_v55  ;;  %v10765_v55 = vld [vmem:[%s18789_s4 + $0x298] sm:$0xf0] }
 0xa02   : > { %v8231_v26 = vpop.f32.mrf.mxu2 }
 0xa03   : > { %v8315_v28 = vpop.f32.mrf.mxu1  ;;  %v8460_v53 = vpop.f32.mrf.mxu0  ;;  %v8232_v63 = vadd.f32 %v8231_v26, %v18152_v45  ;;  %v10157_v45 = vld [vmem:[%s18789_s4 + $0x280] sm:$0xf] }
 0xa04   : > { %v18419_v29 = vadd.f32 %v8315_v28, %v8227_v62  ;;  %v8371_v38 = vpop.f32.mrf.mxu3  ;;  %v10158_v61 = vor.u32 %v10765_v55, %v10157_v45 }
 0xa05   : > { %v8372_v10 = vadd.f32 %v8371_v38, %v18188_v2 }
 0xa07   : > { %v18422_v27 = vadd.f32 %v8460_v53, %v8372_v10 }
 0xa08   : > { %8413 = vmatmul.bf16.gmra.mxu3 %v10126_v7  ;;  %v10768_v7 = vld [vmem:[%s18789_s4 + $0x2b4] sm:$0xf] }
 0xa0a   : > { %v8233_v23 = vpop.f32.mrf.mxu2 }
 0xa0b   : > { %v8317_v58 = vpop.f32.mrf.mxu1  ;;  %v8463_v24 = vpop.f32.mrf.mxu0  ;;  %v8234_v62 = vadd.f32 %v8233_v23, %v18177_v9  ;;  %v10179_v9 = vld [vmem:[%s18789_s4 + $0x2cc] sm:$0xf0] }
 0xa0c   : > { %v18431_v15 = vadd.f32 %v8317_v58, %v8229_v43  ;;  %v8374_v2 = vpop.f32.mrf.mxu3 }
 0xa0d   : > { %v8375_v17 = vadd.f32 %v8374_v2, %v18207_v48  ;;  %v10185_v2 = vld [vmem:[%s18789_s4 + $0x2b8] sm:$0xf] }
 0xa0e   : > { %8502 = vmatmul.bf16.gmra.mxu0 %v10130_v32 }
 0xa0f   : > { %v18434_v50 = vadd.f32 %v8463_v24, %v8375_v17  ;;  %v10772_v24 = vld [vmem:[%s18789_s4 + $0x2d0] sm:$0xf0] }
 0xa10   : > { %v10186_v17 = vor.u32 %v10772_v24, %v10185_v2 }
 0xa12   : > { %v18443_v18 = vpop.f32.mrf.mxu2 }
 0xa13   : > { %v8320_v1 = vpop.f32.mrf.mxu1  ;;  %v8465_v48 = vpop.f32.mrf.mxu0 }
 0xa14   : > { %v18445_v13 = vadd.f32 %v8320_v1, %v8232_v63  ;;  %v8376_v4 = vpop.f32.mrf.mxu3 }
 0xa15   : > { %v8377_v8 = vadd.f32 %v8376_v4, %v18226_v49 }
 0xa17   : > { %v18448_v3 = vadd.f32 %v8465_v48, %v8377_v8  ;;  %v10775_v48 = vld [vmem:[%s18789_s4 + $0x2ec] sm:$0xf]  ;;  %v10207_v8 = vld [vmem:[%s18789_s4 + $0x304] sm:$0xf0] }
 0xa18   : > { %8418 = vmatmul.bf16.gmra.mxu3 %v10154_v57 }
 0xa1a   : > { %v18457_v12 = vpop.f32.mrf.mxu2 }
 0xa1b   : > { %v8322_v26 = vpop.f32.mrf.mxu1  ;;  %v8468_v38 = vpop.f32.mrf.mxu0 }
 0xa1c   : > { %v18459_v28 = vadd.f32 %v8322_v26, %v8234_v62  ;;  %v8379_v49 = vpop.f32.mrf.mxu3  ;;  %v10210_v26 = vor.u32 %v10775_v48, %v10207_v8 }
 0xa1d   : > { %v8380_v53 = vadd.f32 %v8379_v49, %v18245_v0  ;;  %v10182_v0 = vor.u32 %v10768_v7, %v10179_v9  ;;  %v10213_v49 = vld [vmem:[%s18789_s4 + $0x2f0] sm:$0xf] }
 0xa1e   : > { %8507 = vmatmul.bf16.gmra.mxu0 %v10158_v61 }
 0xa1f   : > { %v18462_v10 = vadd.f32 %v8468_v38, %v8380_v53  ;;  %v10779_v38 = vld [vmem:[%s18789_s4 + $0x308] sm:$0xf0] }
 0xa20   : > { %v10214_v53 = vor.u32 %v10779_v38, %v10213_v49 }
 0xa22   : > { %v18470_v21 = vpop.f32.mrf.mxu2 }
 0xa23   : > { %v18472_v47 = vpop.f32.mrf.mxu1  ;;  %v8470_v32 = vpop.f32.mrf.mxu0 }
 0xa24   : > { %v8381_v43 = vpop.f32.mrf.mxu3 }
 0xa25   : > { %v8382_v23 = vadd.f32 %v8381_v43, %v18263_v11 }
 0xa27   : > { %v18475_v58 = vadd.f32 %v8470_v32, %v8382_v23 }
 0xa28   : > { %8423 = vmatmul.bf16.gmra.mxu3 %v10182_v0  ;;  %v8535_v0 = vmax.f32 %v18410_v44, 0.0 }
 0xa2a   : > { %v18483_v63 = vpop.f32.mrf.mxu2 }
 0xa2b   : > { %v18485_v22 = vpop.f32.mrf.mxu1  ;;  %v8473_v1 = vpop.f32.mrf.mxu0 }
 0xa2c   : > { %v8384_v39 = vpop.f32.mrf.mxu3 }
 0xa2d   : > { %v8385_v11 = vadd.f32 %v8384_v39, %v18280_v36  ;;  %v10235_v39 = vld [vmem:[%s18789_s4 + $0x33c] sm:$0xf0] }
 0xa2e   : > { %8512 = vmatmul.bf16.gmra.mxu0 %v10186_v17  ;;  %v10782_v17 = vld [vmem:[%s18789_s4 + $0x324] sm:$0xf] }
 0xa2f   : > { %v18488_v4 = vadd.f32 %v8473_v1, %v8385_v11 }
 0xa32   : > { %v8246_v57 = vpop.f32.mrf.mxu2 }
 0xa33   : > { %v18496_v45 = vpop.f32.mrf.mxu1  ;;  %v8475_v62 = vpop.f32.mrf.mxu0  ;;  %v8247_v24 = vadd.f32 %v8246_v57, %v18265_v42  ;;  %v10238_v42 = vor.u32 %v10782_v17, %v10235_v39 }
 0xa34   : > { %v8386_v55 = vpop.f32.mrf.mxu3 }
 0xa35   : > { %v8387_v61 = vadd.f32 %v8386_v55, %v18297_v46 }
 0xa37   : > { %v18499_v36 = vadd.f32 %v8475_v62, %v8387_v61  ;;  %v10241_v62 = vld [vmem:[%s18789_s4 + $0x328] sm:$0xf]  ;;  %v10786_v61 = vld [vmem:[%s18789_s4 + $0x340] sm:$0xf0] }
 0xa38   : > { %8428 = vmatmul.bf16.gmra.mxu3 %v10210_v26  ;;  %v8536_v26 = vmax.f32 %v18422_v27, 0.0  ;;  %v10242_v38 = vor.u32 %v10786_v61, %v10241_v62  ;;  %v10789_v27 = vld [vmem:[%s18789_s4 + $0x35c] sm:$0xf] }
 0xa3a   : > { %v18507_v7 = vpop.f32.mrf.mxu2 }
 0xa3b   : > { %v18509_v9 = vpop.f32.mrf.mxu1  ;;  %v8478_v32 = vpop.f32.mrf.mxu0 }
 0xa3c   : > { %v8389_v43 = vpop.f32.mrf.mxu3 }
 0xa3d   : > { %v8390_v46 = vadd.f32 %v8389_v43, %v18316_v5 }
 0xa3e   : > { %8517 = vmatmul.bf16.gmra.mxu0 %v10214_v53 }
 0xa3f   : > { %v8479_v23 = vadd.f32 %v8478_v32, %v8390_v46 }
 0xa41   : > { %v8543_v2 = vmax.f32 %v8479_v23, 0.0 }
 0xa42   : > { %v18522_v11 = vpop.f32.mrf.mxu2 }
 0xa43   : > { %v18520_v1 = vmax.f32 %v8535_v0, %v8543_v2  ;;  %v8335_v5 = vpop.f32.mrf.mxu1  ;;  %v8480_v44 = vpop.f32.mrf.mxu0  ;;  %v8537_v0 = vmax.f32 %v18434_v50, 0.0  ;;  %v10269_v50 = vld [vmem:[%s18789_s4 + $0x360] sm:$0xf] }
 0xa44   : > { %v18524_v48 = vadd.f32 %v8335_v5, %v8247_v24  ;;  %v8391_v8 = vpop.f32.mrf.mxu3  ;;  %v10263_v24 = vld [vmem:[%s18789_s4 + $0x374] sm:$0xf0] }
 0xa45   : > { %v8392_v55 = vadd.f32 %v8391_v8, %v18335_v54 }
 0xa47   : > { %v8481_v57 = vadd.f32 %v8480_v44, %v8392_v55  ;;  %v10266_v44 = vor.u32 %v10789_v27, %v10263_v24 }
 0xa48   : > { %8433 = vmatmul.bf16.gmra.mxu3 %v10238_v42  ;;  %v10793_v42 = vld [vmem:[%s18789_s4 + $0x378] sm:$0xf0] }
 0xa49   : > { %v8544_v49 = vmax.f32 %v8481_v57, 0.0  ;;  %v8538_v57 = vmax.f32 %v18448_v3, 0.0  ;;  %v10270_v61 = vor.u32 %v10793_v42, %v10269_v50 }
 0xa4a   : > { %v18536_v43 = vpop.f32.mrf.mxu2 }
 0xa4b   : > { %v18534_v53 = vmax.f32 %v8536_v26, %v8544_v49  ;;  %v8483_v32 = vpop.f32.mrf.mxu0 }
 0xa4c   : > { %v8394_v54 = vpop.f32.mrf.mxu3 }
 0xa4d   : > { %v8395_v46 = vadd.f32 %v8394_v54, %v18354_v20 }
 0xa4e   : > { %8522 = vmatmul.bf16.gmra.mxu0 %v10242_v38 }
 0xa4f   : > { %v8484_v23 = vadd.f32 %v8483_v32, %v8395_v46  ;;  %v8539_v46 = vmax.f32 %v18462_v10, 0.0 }
 0xa51   : > { %v8545_v2 = vmax.f32 %v8484_v23, 0.0 }
 0xa52   : > { %v18548_v39 = vpop.f32.mrf.mxu2 }
 0xa53   : > { %v18546_v17 = vmax.f32 %v8537_v0, %v8545_v2  ;;  %v8485_v8 = vpop.f32.mrf.mxu0 }
 0xa54   : > { %v8396_v5 = vpop.f32.mrf.mxu3 }
 0xa55   : > { %v8397_v20 = vadd.f32 %v8396_v5, %v18373_v56 }
 0xa57   : > { %v8486_v55 = vadd.f32 %v8485_v8, %v8397_v20  ;;  %v8540_v8 = vmax.f32 %v18475_v58, 0.0 }
 0xa58   : > { %8438 = vmatmul.bf16.gmra.mxu3 %v10266_v44 }
 0xa59   : > { %v8546_v62 = vmax.f32 %v8486_v55, 0.0 }
 0xa5a   : > { %v18560_v49 = vpop.f32.mrf.mxu2 }
 0xa5b   : > { %v18558_v26 = vmax.f32 %v8538_v57, %v8546_v62  ;;  %v8488_v38 = vpop.f32.mrf.mxu0 }
 0xa5c   : > { %v8399_v56 = vpop.f32.mrf.mxu3 }
 0xa5d   : > { %v8400_v54 = vadd.f32 %v8399_v56, %v18394_v60 }
 0xa5e   : > { %8527 = vmatmul.bf16.gmra.mxu0 %v10270_v61 }
 0xa5f   : > { %v8489_v32 = vadd.f32 %v8488_v38, %v8400_v54  ;;  %v8541_v54 = vmax.f32 %v18488_v4, 0.0 }
 0xa61   : > { %v8547_v23 = vmax.f32 %v8489_v32, 0.0 }
 0xa62   : > { %v18566_v2 = vpop.f32.mrf.mxu2 }
 0xa63   : > { %v18564_v0 = vmax.f32 %v8539_v46, %v8547_v23  ;;  %v8490_v27 = vpop.f32.mrf.mxu0 }
 0xa64   : > { %v8401_v3 = vpop.f32.mrf.mxu3 }
 0xa65   : > { %v8402_v24 = vadd.f32 %v8401_v3, %v18407_v19 }
 0xa67   : > { %v8491_v5 = vadd.f32 %v8490_v27, %v8402_v24 }
 0xa69   : > { %v8548_v20 = vmax.f32 %v8491_v5, 0.0 }
 0xa6a   : > { %v18572_v60 = vpop.f32.mrf.mxu2 }
 0xa6b   : > { %v18570_v44 = vmax.f32 %v8540_v8, %v8548_v20  ;;  %v8493_v50 = vpop.f32.mrf.mxu0 }
 0xa6c   : > { %v8404_v55 = vpop.f32.mrf.mxu3 }
 0xa6d   : > { %v8405_v10 = vadd.f32 %v8404_v55, %v18419_v29 }
 0xa6f   : > { %v8494_v42 = vadd.f32 %v8493_v50, %v8405_v10 }
 0xa71   : > { %v8549_v46 = vmax.f32 %v8494_v42, 0.0 }
 0xa72   : > { %v8364_v57 = vpop.f32.mrf.mxu2 }
 0xa73   : > { %v8365_v62 = vadd.f32 %v8364_v57, %v18131_v16  ;;  %v8495_v56 = vpop.f32.mrf.mxu0 }
 0xa74   : > { %v8406_v61 = vpop.f32.mrf.mxu3 }
 0xa75   : > { %v8407_v19 = vadd.f32 %v8406_v61, %v18431_v15  ;;  %v8454_v38 = vadd.f32 %v18375_v6, %v8365_v62  ;;  %v8542_v15 = vmax.f32 %v18499_v36, 0.0 }
 0xa77   : > { %v8496_v58 = vadd.f32 %v8495_v56, %v8407_v19  ;;  %v8533_v32 = vmax.f32 %v8454_v38, 0.0 }
 0xa79   : > { %v8565_v23 = vmax.f32 %v8533_v32, %v8541_v54  ;;  %v8550_v50 = vmax.f32 %v8496_v58, 0.0  ;;  %v8239_v54 = vadd.f32 %v18457_v12, %v18215_v51 }
 0xa7a   : > { %v8366_v3 = vpop.f32.mrf.mxu2 }
 0xa7b   : > { %v8367_v27 = vadd.f32 %v8366_v3, %v18150_v35  ;;  %v8498_v24 = vpop.f32.mrf.mxu0  ;;  %v8573_v5 = vmax.f32 %v8565_v23, %v8549_v46 }
 0xa7c   : > { %v8409_v29 = vpop.f32.mrf.mxu3 }
 0xa7d   : > { %v8410_v16 = vadd.f32 %v8409_v29, %v18445_v13  ;;  %v8456_v8 = vadd.f32 %v18396_v34, %v8367_v27  ;;  %v8237_v13 = vadd.f32 %v18443_v18, %v18190_v25 }
 0xa7f   : > { %v8499_v20 = vadd.f32 %v8498_v24, %v8410_v16  ;;  %v8534_v6 = vmax.f32 %v8456_v8, 0.0  ;;  %v8326_v56 = vadd.f32 %v18472_v47, %v8237_v13 }
 0xa81   : > { %v8551_v55 = vmax.f32 %v8499_v20, 0.0  ;;  %v8566_v4 = vmax.f32 %v8534_v6, %v8542_v15  ;;  %v8337_v20 = vpop.f32.mrf.mxu1 }
 0xa83   : > { %v18584_v10 = vmax.f32 %v18520_v1, %v8551_v55  ;;  %v8500_v57 = vpop.f32.mrf.mxu0  ;;  %v8574_v35 = vmax.f32 %v8566_v4, %v8550_v50 }
 0xa84   : > { %v8411_v42 = vpop.f32.mrf.mxu3 }
 0xa85   : > { %v8412_v62 = vadd.f32 %v8411_v42, %v18459_v28  ;;  %v8328_v28 = vadd.f32 %v18485_v22, %v8239_v54 }
 0xa87   : > { %v8501_v61 = vadd.f32 %v8500_v57, %v8412_v62 }
 0xa89   : > { %v8552_v34 = vmax.f32 %v8501_v61, 0.0  ;;  %v8340_v42 = vpop.f32.mrf.mxu1 }
 0xa8b   : > { %v18591_v36 = vmax.f32 %v18534_v53, %v8552_v34  ;;  %v8503_v38 = vpop.f32.mrf.mxu0  ;;  %v8242_v53 = vadd.f32 %v18470_v21, %v18228_v30 }
 0xa8c   : > { %v8414_v19 = vpop.f32.mrf.mxu3 }
 0xa8d   : > { %v8415_v58 = vadd.f32 %v8414_v19, %v8326_v56  ;;  %v8331_v27 = vadd.f32 %v18496_v45, %v8242_v53 }
 0xa8f   : > { %v8504_v1 = vadd.f32 %v8503_v38, %v8415_v58 }
 0xa91   : > { %v8553_v32 = vmax.f32 %v8504_v1, 0.0  ;;  %v8342_v56 = vpop.f32.mrf.mxu1 }
 0xa93   : > { %v18597_v46 = vmax.f32 %v18546_v17, %v8553_v32  ;;  %v8505_v18 = vpop.f32.mrf.mxu0  ;;  %v8244_v17 = vadd.f32 %v18483_v63, %v18253_v41 }
 0xa94   : > { %v8416_v25 = vpop.f32.mrf.mxu3 }
 0xa95   : > { %v8417_v23 = vadd.f32 %v8416_v25, %v8328_v28  ;;  %v8333_v8 = vadd.f32 %v18509_v9, %v8244_v17  ;;  %v8249_v9 = vadd.f32 %v18507_v7, %v18288_v14  ;;  %v8254_v14 = vadd.f32 %v18536_v43, %v18324_v37 }
 0xa97   : > { %v8506_v47 = vadd.f32 %v8505_v18, %v8417_v23  ;;  %v8343_v25 = vadd.f32 %v8342_v56, %v8254_v14  ;;  %v8640_v14 = vld [vmem:[%s18792_s7 + $0x50] sm:$0xff] }
 0xa99   : > { %v8554_v3 = vmax.f32 %v8506_v47, 0.0  ;;  %v8345_v7 = vpop.f32.mrf.mxu1 }
 0xa9b   : > { %v18603_v29 = vmax.f32 %v18558_v26, %v8554_v3  ;;  %v8508_v12 = vpop.f32.mrf.mxu0 }
 0xa9c   : > { %v8419_v51 = vpop.f32.mrf.mxu3 }
 0xa9d   : > { %v8420_v24 = vadd.f32 %v8419_v51, %v8331_v27 }
 0xa9f   : > { %v8509_v22 = vadd.f32 %v8508_v12, %v8420_v24 }
 0xaa1   : > { %v8555_v16 = vmax.f32 %v8509_v22, 0.0  ;;  %v8347_v27 = vpop.f32.mrf.mxu1  ;;  %v8259_v22 = vadd.f32 %v18560_v49, %v18362_v52 }
 0xaa3   : > { %v18609_v15 = vmax.f32 %v18564_v0, %v8555_v16  ;;  %v8510_v21 = vpop.f32.mrf.mxu0  ;;  %v8338_v0 = vadd.f32 %v8337_v20, %v8249_v9  ;;  %v8348_v17 = vadd.f32 %v8347_v27, %v8259_v22  ;;  %v8616_v22 = vld [vmem:[%s18791_s6 + $0x10] sm:$0xff] }
 0xaa4   : > { %v8421_v30 = vpop.f32.mrf.mxu3 }
 0xaa5   : > { %v8422_v45 = vadd.f32 %v8421_v30, %v8333_v8 }
 0xaa7   : > { %v8511_v6 = vadd.f32 %v8510_v21, %v8422_v45  ;;  %v8262_v21 = vadd.f32 %v18566_v2, %v18383_v33 }
 0xaa9   : > { %v8556_v26 = vmax.f32 %v8511_v6, 0.0  ;;  %v8350_v30 = vpop.f32.mrf.mxu1 }
 0xaaa   : > { %v8351_v6 = vadd.f32 %v8350_v30, %v8262_v21  ;;  %v8624_v30 = vld [vmem:[%s18791_s6 + $0x50] sm:$0xff]  ;;  %v8626_v21 = vld [vmem:[%s18791_s6 + $0x60] sm:$0xff] }
 0xaab   : > { %v18612_v55 = vmax.f32 %v18570_v44, %v8556_v26  ;;  %v8513_v4 = vpop.f32.mrf.mxu0  ;;  %v8252_v44 = vadd.f32 %v18522_v11, %v18299_v59  ;;  %v8257_v59 = vadd.f32 %v18548_v39, %v18343_v40 }
 0xaac   : > { %v8424_v50 = vpop.f32.mrf.mxu3 }
 0xaad   : > { %v8425_v41 = vadd.f32 %v8424_v50, %v18524_v48  ;;  %v8341_v58 = vadd.f32 %v8340_v42, %v8252_v44 }
 0xaaf   : > { %v8514_v63 = vadd.f32 %v8513_v4, %v8425_v41  ;;  %v8264_v41 = vadd.f32 %v18572_v60, %v18404_v31 }
 0xab1   : > { %v8557_v57 = vmax.f32 %v8514_v63, 0.0  ;;  %v8352_v42 = vpop.f32.mrf.mxu1 }
 0xab2   : > { %v8353_v9 = vadd.f32 %v8352_v42, %v8264_v41 }
 0xab3   : > { %v18617_v62 = vmax.f32 %v8573_v5, %v8557_v57  ;;  %v8515_v13 = vpop.f32.mrf.mxu0 }
 0xab4   : > { %v8426_v61 = vpop.f32.mrf.mxu3 }
 0xab5   : > { %v8427_v34 = vadd.f32 %v8426_v61, %v8338_v0  ;;  %v8590_v44 = vsel %vm8589_vm12, %v18617_v62, -inf  ;;  %v8641_v62 = vld [vmem:[%s18792_s7 + $0x58] sm:$0xff] }
 0xab7   : > { %v8516_v19 = vadd.f32 %v8515_v13, %v8427_v34 }
 0xab9   : > { %v8558_v38 = vmax.f32 %v8516_v19, 0.0 }
 0xabb   : > { %v8582_v1 = vmax.f32 %v8574_v35, %v8558_v38  ;;  %v8518_v54 = vpop.f32.mrf.mxu0  ;;  %v8346_v35 = vadd.f32 %v8345_v7, %v8257_v59  ;;  %v8645_v38 = vld [vmem:[%s18792_s7 + $0x78] sm:$0xff]  ;;  %v8630_v7 = vld [vmem:[%s18792_s7] sm:$0xff] }
 0xabc   : > { %v8429_v48 = vpop.f32.mrf.mxu3 }
 0xabd   : > { %v8430_v32 = vadd.f32 %v8429_v48, %v8341_v58  ;;  %v8639_v58 = vld [vmem:[%s18792_s7 + $0x48] sm:$0xff]  ;;  %v8638_v48 = vld [vmem:[%s18792_s7 + $0x40] sm:$0xff] }
 0xabf   : > { %v8519_v28 = vadd.f32 %v8518_v54, %v8430_v32  ;;  %v8643_v54 = vld [vmem:[%s18792_s7 + $0x68] sm:$0xff]  ;;  %v8633_v32 = vld [vmem:[%s18792_s7 + $0x18] sm:$0xff] }
 0xac1   : > { %v8559_v5 = vmax.f32 %v8519_v28, 0.0  ;;  %v8635_v28 = vld [vmem:[%s18792_s7 + $0x28] sm:$0xff] }
 0xac3   : > { %v8583_v18 = vmax.f32 %v18584_v10, %v8559_v5  ;;  %v8520_v47 = vpop.f32.mrf.mxu0  ;;  %v8632_v5 = vld [vmem:[%s18792_s7 + $0x10] sm:$0xff] }
 0xac4   : > { %v8431_v23 = vpop.f32.mrf.mxu3 }
 0xac5   : > { %v8432_v53 = vadd.f32 %v8431_v23, %v8343_v25  ;;  %v8596_v31 = vsel %vm8589_vm12, %v8583_v18, -inf  ;;  %v8637_v25 = vld [vmem:[%s18792_s7 + $0x38] sm:$0xff]  ;;  %v8859_v18 = vld [vmem:[%s18794_s9 + $0x8] sm:$0x3]  ;;  %v8634_v23 = vld [vmem:[%s18792_s7 + $0x20] sm:$0xff] }
 0xac7   : > { %v8521_v3 = vadd.f32 %v8520_v47, %v8432_v53  ;;  %v8631_v47 = vld [vmem:[%s18792_s7 + $0x8] sm:$0xff]  ;;  %v8858_v53 = vld [vmem:[%s18794_s9] sm:$0xff] }
 0xac9   : > { %v8560_v11 = vmax.f32 %v8521_v3, 0.0 }
 0xacb   : > { %v8584_v51 = vmax.f32 %v18591_v36, %v8560_v11  ;;  %v8523_v24 = vpop.f32.mrf.mxu0 }
 0xacc   : > { %v8434_v12 = vpop.f32.mrf.mxu3 }
 0xacd   : > { %v8435_v37 = vadd.f32 %v8434_v12, %v8346_v35  ;;  %v8599_v60 = vsel %vm8589_vm12, %v8584_v51, -inf }
 0xacf   : > { %v8524_v43 = vadd.f32 %v8523_v24, %v8435_v37  ;;  %v8614_v24 = vld [vmem:[%s18791_s6] sm:$0xff] }
 0xad1   : > { %v8561_v10 = vmax.f32 %v8524_v43, 0.0  ;;  %v8615_v43 = vld [vmem:[%s18791_s6 + $0x8] sm:$0xff] }
 0xad3   : > { %v8585_v16 = vmax.f32 %v18597_v46, %v8561_v10  ;;  %v8525_v20 = vpop.f32.mrf.mxu0  ;;  %v8617_v10 = vld [vmem:[%s18791_s6 + $0x18] sm:$0xff] }
 0xad4   : > { %v8436_v8 = vpop.f32.mrf.mxu3 }
 0xad5   : > { %v8437_v40 = vadd.f32 %v8436_v8, %v8348_v17  ;;  %v8602_v39 = vsel %vm8589_vm12, %v8585_v16, -inf  ;;  %v8618_v17 = vld [vmem:[%s18791_s6 + $0x20] sm:$0xff]  ;;  %v8619_v16 = vld [vmem:[%s18791_s6 + $0x28] sm:$0xff]  ;;  %v8620_v8 = vld [vmem:[%s18791_s6 + $0x30] sm:$0xff] }
 0xad6   : > { %8603 = vmax.xlane.f32.xlu2 %v8602_v39  ;;  %v8623_v39 = vld [vmem:[%s18791_s6 + $0x48] sm:$0xff] }
 0xad7   : > { %v8526_v36 = vadd.f32 %v8525_v20, %v8437_v40  ;;  %v8621_v20 = vld [vmem:[%s18791_s6 + $0x38] sm:$0xff]  ;;  %v8622_v40 = vld [vmem:[%s18791_s6 + $0x40] sm:$0xff] }
 0xad9   : > { %v8562_v45 = vmax.f32 %v8526_v36, 0.0  ;;  %v8625_v36 = vld [vmem:[%s18791_s6 + $0x58] sm:$0xff] }
 0xadb   : > { %v8586_v52 = vmax.f32 %v18603_v29, %v8562_v45  ;;  %v8528_v26 = vpop.f32.mrf.mxu0  ;;  %v8593_v29 = vsel %vm8589_vm12, %v8582_v1, -inf  ;;  %v8636_v1 = vld [vmem:[%s18792_s7 + $0x30] sm:$0xff]  ;;  %v8627_v45 = vld [vmem:[%s18791_s6 + $0x68] sm:$0xff] }
 0xadc   : > { %v8439_v49 = vpop.f32.mrf.mxu3 }
 0xadd   : > { %v8440_v50 = vadd.f32 %v8439_v49, %v8351_v6  ;;  %v8605_v46 = vsel %vm8589_vm12, %v8586_v52, -inf  ;;  %v8628_v6 = vld [vmem:[%s18791_s6 + $0x70] sm:$0xff]  ;;  %v8629_v52 = vld [vmem:[%s18791_s6 + $0x78] sm:$0xff] }
 0xade   : > { %8606 = vmax.xlane.f32.xlu0 %v8605_v46 }
 0xadf   : > { %v8529_v4 = vadd.f32 %v8528_v26, %v8440_v50 }
 0xae1   : > { %v8563_v63 = vmax.f32 %v8529_v4, 0.0 }
 0xae3   : > { %v8587_v57 = vmax.f32 %v18609_v15, %v8563_v63  ;;  %v8530_v61 = vpop.f32.mrf.mxu0  ;;  %v8644_v15 = vld [vmem:[%s18792_s7 + $0x70] sm:$0xff] }
 0xae4   : > { %v8441_v33 = vpop.f32.mrf.mxu3 }
 0xae5   : > { %v8442_v2 = vadd.f32 %v8441_v33, %v8353_v9  ;;  %v8608_v0 = vsel %vm8589_vm12, %v8587_v57, -inf }
 0xae6   : > { %8609 = vmax.xlane.f32.xlu2 %v8608_v0  ;;  %8594 = vmax.xlane.f32.xlu0 %v8593_v29 }
 0xae7   : > { %v8531_v13 = vadd.f32 %v8530_v61, %v8442_v2 }
 0xae9   : > { %v8564_v34 = vmax.f32 %v8531_v13, 0.0 }
 0xaeb   : > { %v8588_v56 = vmax.f32 %v18612_v55, %v8564_v34  ;;  %v8642_v55 = vld [vmem:[%s18792_s7 + $0x60] sm:$0xff] }
 0xaed   : > { %v8611_v19 = vsel %vm8589_vm12, %v8588_v56, -inf }
 0xaee   : > { %8612 = vmax.xlane.f32.xlu1 %v8611_v19  ;;  %8597 = vmax.xlane.f32.xlu2 %v8596_v31 }
 0xaf6   : > { %8600 = vmax.xlane.f32.xlu1 %v8599_v60 }
 0xafa   : > { %8718 = vperm.xlu0 %10889, %v8644_v15  }
 0xafe   : > { %8591 = vmax.xlane.f32.xlu1 %v8590_v44 }
 0xb02   : > { %8708 = vperm.xlu0 %10889, %v8642_v55  }
 0xb06   : > { %8723 = vperm.xlu2 %10891, %v8645_v38  }
 0xb0a   : > { %8693 = vperm.xlu0 %10889, %v8639_v58  }
 0xb0e   : > { %8703 = vperm.xlu2 %10891, %v8641_v62  }
 0xb12   : > { %8678 = vperm.xlu0 %10889, %v8636_v1  }
 0xb16   : > { %8688 = vperm.xlu2 %10891, %v8638_v48  }
 0xb17   : > { %8713 = vperm.xlu1 %10890, %v8643_v54  }
 0xb1a   : > { %8663 = vperm.xlu0 %10889, %v8633_v32  }
 0xb1e   : > { %8673 = vperm.xlu2 %10891, %v8635_v28  }
 0xb1f   : > { %8698 = vperm.xlu1 %10890, %v8640_v14  }
 0xb22   : > { %8648 = vperm.xlu0 %10889, %v8630_v7  }
 0xb26   : > { %8658 = vperm.xlu2 %10891, %v8632_v5  }
 0xb27   : > { %8683 = vperm.xlu1 %10890, %v8637_v25  }
 0xb2e   : > { %8867 = vperm.xlu2 %10891, %v8859_v18  }
 0xb2f   : > { %8668 = vperm.xlu1 %10890, %v8634_v23  }
 0xb37   : > { %8653 = vperm.xlu1 %10890, %v8631_v47  }
 0xb3f   : > { %8862 = vperm.xlu1 %10890, %v8858_v53  }
 0xb49   : > { %v8604_v3 = vpop.xlane.xlu2 %8603 }
 0xb51   : > { %v8607_v35 = vpop.xlane.xlu0 %8606 }
 0xb59   : > { %v8610_v59 = vpop.xlane.xlu2 %8609  ;;  %v8595_v12 = vpop.xlane.xlu0 %8594 }
 0xb61   : > { %v8613_v11 = vpop.xlane.xlu1 %8612  ;;  %v8598_v51 = vpop.xlane.xlu2 %8597 }
 0xb62   : > { %8783 = vmatpush.msrb.mxu2 %v8613_v11 }
 0xb64   : > { %8784 = vmatpush.msrb.mxu2 %v8610_v59 }
 0xb66   : > { %8785 = vmatpush.msrb.mxu2 %v8607_v35 }
 0xb68   : > { %8786 = vmatpush.msrb.mxu2 %v8604_v3 }
 0xb69   : > { %v8601_v27 = vpop.xlane.xlu1 %8600  ;;  %v8724_v61 = vpop.permute.xlu2 %8723 }
 0xb6a   : > { %8787 = vmatpush.msrb.mxu2 %v8601_v27 }
 0xb6c   : > { %8788 = vmatpush.msrb.mxu2 %v8598_v51  ;;  %v8719_v29 = vpop.permute.xlu0 %8718 }
 0xb6e   : > { %8789 = vmatpush.msrb.mxu2 %v8595_v12 }
 0xb71   : > { %v8592_v37 = vpop.xlane.xlu1 %8591  ;;  %v8704_v31 = vpop.permute.xlu2 %8703 }
 0xb72   : > { %8790 = vmatpush.msrb.mxu2 %v8592_v37 }
 0xb73   : > { %10495 = vmatmul.msk.f32.vlgmr.msrb.gmra.mxu2 %vm8726_vm13, %v8614_v24 }
 0xb74   : > { %v8709_v56 = vpop.permute.xlu0 %8708 }
 0xb79   : > { %v8689_v1 = vpop.permute.xlu2 %8688 }
 0xb7b   : > { %10496 = vmatmul.msk.f32.gmra.mxu2 %vm8726_vm13, %v8615_v43 }
 0xb7c   : > { %v8694_v15 = vpop.permute.xlu0 %8693 }
 0xb81   : > { %v8674_v3 = vpop.permute.xlu2 %8673 }
 0xb83   : > { %10497 = vmatmul.msk.f32.gmra.mxu2 %vm8726_vm13, %v8616_v22 }
 0xb84   : > { %v8679_v7 = vpop.permute.xlu0 %8678 }
 0xb89   : > { %v8714_v34 = vpop.permute.xlu1 %8713 }
 0xb8b   : > { %10498 = vmatmul.msk.f32.gmra.mxu2 %vm8726_vm13, %v8617_v10 }
 0xb8c   : > { %v8664_v12 = vpop.permute.xlu0 %8663 }
 0xb91   : > { %v8699_v60 = vpop.permute.xlu1 %8698 }
 0xb93   : > { %10499 = vmatmul.msk.f32.gmra.mxu2 %vm8726_vm13, %v8618_v17 }
 0xb99   : > { %v8684_v32 = vpop.permute.xlu1 %8683 }
 0xb9b   : > { %10500 = vmatmul.msk.f32.gmra.mxu2 %vm8726_vm13, %v8619_v16  ;;  %v8659_v16 = vpop.permute.xlu2 %8658 }
 0xba1   : > { %v8669_v35 = vpop.permute.xlu1 %8668 }
 0xba3   : > { %10501 = vmatmul.msk.f32.gmra.mxu2 %vm8726_vm13, %v8620_v8 }
 0xbab   : > { %10502 = vmatmul.msk.f32.gmra.mxu2 %vm8726_vm13, %v8621_v20 }
 0xbb3   : > { %10503 = vmatmul.msk.f32.gmra.mxu2 %vm8726_vm13, %v8622_v40  ;;  %v8654_v40 = vpop.permute.xlu1 %8653 }
 0xbbb   : > { %10504 = vmatmul.msk.f32.gmra.mxu2 %vm8726_vm13, %v8623_v39 }
 0xbc3   : > { %10505 = vmatmul.msk.f32.gmra.mxu2 %vm8726_vm13, %v8624_v30 }
 0xbcb   : > { %10506 = vmatmul.msk.f32.gmra.mxu2 %vm8726_vm13, %v8625_v36  ;;  %v8649_v36 = vpop.permute.xlu0 %8648 }
 0xbd3   : > { %10507 = vmatmul.msk.f32.gmra.mxu2 %vm8726_vm13, %v8626_v21 }
 0xbdb   : > { %10508 = vmatmul.msk.f32.gmra.mxu2 %vm8726_vm13, %v8627_v45 }
 0xbe3   : > { %10509 = vmatmul.msk.f32.gmra.mxu2 %vm8726_vm13, %v8628_v6 }
 0xbeb   : > { %10510 = vmatmul.msk.f32.gmra.mxu2 %vm8726_vm13, %v8629_v52 }
 0xbf6   : > { %v18764_v49 = vpop.f32.mrf.mxu2 }
 0xbf7   : > { %v8793_v21 = vadd.f32 %v18764_v49, %v8649_v36 }
 0xbf9   : > { %v8840_v52 = vmax.f32 %v8793_v21, 0.0 }
 0xbfe   : > { %v18766_v26 = vpop.f32.mrf.mxu2 }
 0xbff   : > { %v8796_v39 = vadd.f32 %v18766_v26, %v8654_v40  ;;  %v8857_v26 = vld [vmem:[%s18793_s8 + $0x8] sm:$0x3] }
 0xc01   : > { %v8841_v6 = vmax.f32 %v8796_v39, 0.0 }
 0xc06   : > { %v8798_v50 = vpop.f32.mrf.mxu2 }
 0xc07   : > { %v8799_v8 = vadd.f32 %v8798_v50, %v8659_v16  ;;  %v8856_v50 = vld [vmem:[%s18793_s8] sm:$0xff] }
 0xc09   : > { %v8842_v45 = vmax.f32 %v8799_v8, 0.0 }
 0xc0e   : > { %v8801_v46 = vpop.f32.mrf.mxu2 }
 0xc0f   : > { %v8802_v10 = vadd.f32 %v8801_v46, %v8664_v12 }
 0xc11   : > { %v8843_v30 = vmax.f32 %v8802_v10, 0.0 }
 0xc16   : > { %v8804_v4 = vpop.f32.mrf.mxu2 }
 0xc17   : > { %v8805_v43 = vadd.f32 %v8804_v4, %v8669_v35  ;;  %v8868_v4 = vpop.permute.xlu2 %8867 }
 0xc19   : > { %v8844_v20 = vmax.f32 %v8805_v43, 0.0 }
 0xc1e   : > { %v8807_v42 = vpop.f32.mrf.mxu2 }
 0xc1f   : > { %v8808_v24 = vadd.f32 %v8807_v42, %v8674_v3  ;;  %v8863_v42 = vpop.permute.xlu1 %8862 }
 0xc21   : > { %v8845_v17 = vmax.f32 %v8808_v24, 0.0 }
 0xc26   : > { %v8810_v41 = vpop.f32.mrf.mxu2 }
 0xc27   : > { %v8811_v27 = vadd.f32 %v8810_v41, %v8679_v7 }
 0xc29   : > { %v8846_v22 = vmax.f32 %v8811_v27, 0.0 }
 0xc2e   : > { %v8813_v63 = vpop.f32.mrf.mxu2 }
 0xc2f   : > { %v8814_v59 = vadd.f32 %v8813_v63, %v8684_v32 }
 0xc31   : > { %v8847_v37 = vmax.f32 %v8814_v59, 0.0 }
 0xc36   : > { %v8816_v9 = vpop.f32.mrf.mxu2 }
 0xc37   : > { %v8817_v47 = vadd.f32 %v8816_v9, %v8689_v1 }
 0xc39   : > { %v8848_v51 = vmax.f32 %v8817_v47, 0.0 }
 0xc3e   : > { %v8819_v57 = vpop.f32.mrf.mxu2 }
 0xc3f   : > { %v8820_v18 = vadd.f32 %v8819_v57, %v8694_v15 }
 0xc41   : > { %v8849_v11 = vmax.f32 %v8820_v18, 0.0 }
 0xc46   : > { %v8822_v33 = vpop.f32.mrf.mxu2 }
 0xc47   : > { %v8823_v5 = vadd.f32 %v8822_v33, %v8699_v60 }
 0xc49   : > { %v8850_v53 = vmax.f32 %v8823_v5, 0.0 }
 0xc4e   : > { %v8825_v2 = vpop.f32.mrf.mxu2 }
 0xc4f   : > { %v8826_v28 = vadd.f32 %v8825_v2, %v8704_v31 }
 0xc51   : > { %v8851_v23 = vmax.f32 %v8826_v28, 0.0 }
 0xc56   : > { %v8828_v0 = vpop.f32.mrf.mxu2 }
 0xc57   : > { %v8829_v48 = vadd.f32 %v8828_v0, %v8709_v56 }
 0xc59   : > { %v8852_v25 = vmax.f32 %v8829_v48, 0.0 }
 0xc5e   : > { %v8831_v13 = vpop.f32.mrf.mxu2 }
 0xc5f   : > { %v8832_v58 = vadd.f32 %v8831_v13, %v8714_v34 }
 0xc61   : > { %v8853_v14 = vmax.f32 %v8832_v58, 0.0 }
 0xc66   : > { %v8834_v19 = vpop.f32.mrf.mxu2 }
 0xc67   : > { %v8835_v55 = vadd.f32 %v8834_v19, %v8719_v29 }
 0xc69   : > { %v8854_v54 = vmax.f32 %v8835_v55, 0.0 }
 0xc6e   : > { %v8837_v44 = vpop.f32.mrf.mxu2 }
 0xc6f   : > { %v8838_v38 = vadd.f32 %v8837_v44, %v8724_v61 }
 0xc71   : > { %v8855_v62 = vmax.f32 %v8838_v38, 0.0 }
 0xc73   : > { %8870 = vmatpush.msra.mxu2 %v8855_v62 }
 0xc75   : > { %8871 = vmatpush.msra.mxu2 %v8854_v54 }
 0xc77   : > { %8872 = vmatpush.msra.mxu2 %v8853_v14 }
 0xc79   : > { %8873 = vmatpush.msra.mxu2 %v8852_v25 }
 0xc7b   : > { %8874 = vmatpush.msra.mxu2 %v8851_v23 }
 0xc7d   : > { %8875 = vmatpush.msra.mxu2 %v8850_v53 }
 0xc7f   : > { %8876 = vmatpush.msra.mxu2 %v8849_v11 }
 0xc81   : > { %8877 = vmatpush.msra.mxu2 %v8848_v51 }
 0xc83   : > { %8878 = vmatpush.msra.mxu2 %v8847_v37 }
 0xc85   : > { %8879 = vmatpush.msra.mxu2 %v8846_v22 }
 0xc87   : > { %8880 = vmatpush.msra.mxu2 %v8845_v17 }
 0xc89   : > { %8881 = vmatpush.msra.mxu2 %v8844_v20 }
 0xc8b   : > { %8882 = vmatpush.msra.mxu2 %v8843_v30 }
 0xc8d   : > { %8883 = vmatpush.msra.mxu2 %v8842_v45 }
 0xc8f   : > { %8884 = vmatpush.msra.mxu2 %v8841_v6 }
 0xc91   : > { %8885 = vmatpush.msra.mxu2 %v8840_v52 }
 0xc92   : > { %8886 = vmatmul.f32.vlgmr.msra.gmra.mxu2 %v8856_v50 }
 0xc9a   : > { %8889 = vmatmul.f32.gmra.mxu2 %v8857_v26 }
 0xd15   : > { %v8887_v46 = vpop.f32.mrf.mxu2 }
 0xd16   : > { %v8888_v63 = vadd.f32 %v8887_v46, %v8863_v42 }
 0xd1d   : > { %v8890_v49 = vpop.f32.mrf.mxu2 }
 0xd1e   : > { %v8891_v41 = vadd.f32 %v8890_v49, %v8868_v4 }
 0xd20   : > { %v8894_v9 = vsel %vm8893_vm14, %v8891_v41, -inf }
 0xd21   : > { %v8895_v57 = vmax.f32 %v8888_v63, %v8894_v9 }
 0xd23   : > { %v8896_v33 = vrot.slane %v8895_v57, 4 }
 0xd25   : > { %v8897_v2 = vmax.f32 %v8895_v57, %v8896_v33 }
 0xd27   : > { %v8898_v0 = vrot.slane %v8897_v2, 2 }
 0xd29   : > { %v8899_v29 = vmax.f32 %v8897_v2, %v8898_v0 }
 0xd2b   : > { %v8900_v61 = vrot.slane %v8899_v29, 1 }
 0xd2d   : > { %v8901_v13 = vmax.f32 %v8899_v29, %v8900_v61 }
 0xd2f   : > { %v8902_v34 = vsub.f32 %v8888_v63, %v8901_v13  ;;  %v8903_v56 = vsub.f32 %v8891_v41, %v8901_v13 }
 0xd31   : > { %v8904_v19 = vmul.f32 1.442695, %v8902_v34  ;;  %v8906_v31 = vmul.f32 1.442695, %v8903_v56 }
 0xd33   : > { %11532 = vpow2.f32 %v8904_v19 }
 0xd34   : > { %11534 = vpow2.f32 %v8906_v31 }
 0xd39   : > { %v11533_v60 = vpop.eup %11532 }
 0xd3a   : > { %v11535_v15 = vpop.eup %11534 }
 0xd3b   : > { %v8908_v44 = vsel %vm8893_vm14, %v11535_v15, 0.0 }
 0xd3c   : > { %v8909_v55 = vadd.f32 %v11533_v60, %v8908_v44 }
 0xd3e   : > { %v8910_v38 = vrot.slane %v8909_v55, 4 }
 0xd40   : > { %v8911_v58 = vadd.f32 %v8910_v38, %v8909_v55 }
 0xd42   : > { %v8912_v62 = vrot.slane %v8911_v58, 2 }
 0xd44   : > { %v8913_v1 = vadd.f32 %v8912_v62, %v8911_v58 }
 0xd46   : > { %v8914_v48 = vrot.slane %v8913_v1, 1 }
 0xd48   : > { %v8915_v54 = vadd.f32 %v8914_v48, %v8913_v1 }
 0xd4a   : > { %11536 = vrcp.f32 %v8915_v54 }
 0xd50   : > { %v11537_v32 = vpop.eup %11536 }
 0xd51   : > { %v8917_v28 = vmul.f32 %v11537_v32, %v11533_v60  ;;  %v8918_v14 = vmul.f32 %v11537_v32, %v11535_v15 }
 0xd53   : > { %8920 = vst.msk [vmem:[%s359_s23] sm:$0xff] %vm8919_vm15, %v8917_v28 }
 0xd54   : > { %8922 = vst.msk [vmem:[%s359_s23 + $0x8] sm:$0x3] %vm8921_vm0, %v8918_v14 }
 0xd55 PF: > { %s20_s13 = sadd.s32 1, %s11544_s13  }
 0xd56   : > { %p17_p4 = scmp.ge.s32.totalorder %s20_s13, 4  }
 0xd58   :  { %19 = sbr.rel (!%p17_p4) target bundleno = 1 (0x1), region = 90 }

</bundles_post_ra>
